<compile_context>
chip_gen: v7x
topology: tpu7x:2x2x1
jax: 0.10.0
libtpu: 0.0.40
codegen_flags: <defaults>
</compile_context>

<pallas_src>
import functools

import jax
import jax.numpy as jnp
from jax.experimental import pallas as pl
from jax.experimental.pallas import tpu as pltpu


# ----------------------------- helpers ------------------------------------- #

def _round_up(x, m):
    return (x + m - 1) // m * m


def _choose_tile(m):
    """Return (tm, m_padded) with tm | m_padded, tm a multiple of 8, tm <= 1024."""
    if m <= 1024:
        m_pad = _round_up(m, 8)
        return m_pad, m_pad
    tm = 1024
    return tm, _round_up(m, tm)


# ----------------------------- Pallas kernels ------------------------------ #

def _grouped_gemm_bn_relu_kernel(p_ref, w_ref, g_ref, b_ref, y_ref,
                                 sum_ref, sq_ref, *, inv_count, eps):
    """Fused grouped GEMM + training-mode BatchNorm + ReLU.

    grid = (Gp, Gm).  Y (the whole (Gp, M, Cp) layer output) is VMEM-resident
    across the grid; per-channel sum / sum-of-squares accumulate in scratch and
    the BN scale/shift + ReLU is applied in a finalize step on the last grid point.
    """
    gi = pl.program_id(0)
    mi = pl.program_id(1)

    @pl.when((gi == 0) & (mi == 0))
    def _():
        sum_ref[...] = jnp.zeros_like(sum_ref)
        sq_ref[...] = jnp.zeros_like(sq_ref)

    # bf16 x bf16 -> f32 accumulation on the MXU.
    y = jnp.dot(p_ref[0], w_ref[0], preferred_element_type=jnp.float32)
    tm = y.shape[0]
    y_ref[gi, pl.ds(mi * tm, tm), :] = y

    sum_ref[...] += jnp.sum(y, axis=0, keepdims=True)
    sq_ref[...] += jnp.sum(y * y, axis=0, keepdims=True)

    @pl.when((gi == pl.num_programs(0) - 1) & (mi == pl.num_programs(1) - 1))
    def _():
        # Biased batch statistics (training-mode BatchNorm2d).  Zero-padded rows /
        # channels contribute 0 to both sums and the real-element count is used.
        mean = sum_ref[...] * inv_count
        var = jnp.maximum(sq_ref[...] * inv_count - mean * mean, 0.0)
        scale = g_ref[...] * jax.lax.rsqrt(var + eps)
        shift = b_ref[...] - mean * scale
        for g in range(y_ref.shape[0]):           # static unroll over groups
            y_ref[g] = jnp.maximum(y_ref[g] * scale + shift, 0.0)


def _grouped_gemm_tanh_kernel(p_ref, w_ref, o_ref):
    """O = tanh(P @ W) per (group, M-tile)."""
    o_ref[0] = jnp.tanh(
        jnp.dot(p_ref[0], w_ref[0], preferred_element_type=jnp.float32))


# ----------------------------- kernel wrappers ----------------------------- #

def _pad_operands(p, w):
    """Cast to bf16 and zero-pad K and Co to multiples of 128, M to tile multiple."""
    gp, k, co = w.shape
    _, m_real, kp_in = p.shape
    assert kp_in == k
    kp = _round_up(k, 128)
    cp = _round_up(co, 128)
    tm, m_pad = _choose_tile(m_real)

    p_b = p.astype(jnp.bfloat16)
    if m_pad != m_real or kp != k:
        p_b = jnp.pad(p_b, ((0, 0), (0, m_pad - m_real), (0, kp - k)))
    w_b = w.astype(jnp.bfloat16)
    if kp != k or cp != co:
        w_b = jnp.pad(w_b, ((0, 0), (0, kp - k), (0, cp - co)))
    return p_b, w_b, tm, m_pad, kp, cp


def grouped_gemm_bn_relu(p, w, gamma, beta, *, eps=1e-5):
    """p: (Gp or 1, M, K) f32, w: (Gp, K, Co) f32 -> relu(batchnorm(P @ W)): (Gp, M, Co)."""
    gp, k, co = w.shape
    m_real = p.shape[1]
    shared_p = (p.shape[0] == 1) and (gp != 1)

    p_b, w_b, tm, m_pad, kp, cp = _pad_operands(p, w)
    gm = m_pad // tm

    if gp * m_pad * cp * 4 > (24 << 20):
        # TODO(synk): tile the fused BN epilogue (two-pass over Y) for configs whose
        # per-layer activation does not fit in VMEM.
        raise NotImplementedError("per-layer activation too large for VMEM-resident BN")

    g_pad = jnp.pad(gamma.astype(jnp.float32), (0, cp - co)).reshape(1, cp)
    b_pad = jnp.pad(beta.astype(jnp.float32), (0, cp - co)).reshape(1, cp)

    inv_count = 1.0 / float(gp * m_real)
    kern = functools.partial(_grouped_gemm_bn_relu_kernel,
                             inv_count=inv_count, eps=float(eps))

    p_index = (lambda gi, mi: (0, mi, 0)) if shared_p else (lambda gi, mi: (gi, mi, 0))

    y = pl.pallas_call(
        kern,
        out_shape=jax.ShapeDtypeStruct((gp, m_pad, cp), jnp.float32),
        grid_spec=pltpu.PrefetchScalarGridSpec(
            num_scalar_prefetch=0,
            grid=(gp, gm),
            in_specs=[
                pl.BlockSpec((1, tm, kp), p_index),
                pl.BlockSpec((1, kp, cp), lambda gi, mi: (gi, 0, 0)),
                pl.BlockSpec((1, cp), lambda gi, mi: (0, 0)),
                pl.BlockSpec((1, cp), lambda gi, mi: (0, 0)),
            ],
            out_specs=pl.BlockSpec((gp, m_pad, cp), lambda gi, mi: (0, 0, 0)),
            scratch_shapes=[pltpu.VMEM((1, cp), jnp.float32),
                            pltpu.VMEM((1, cp), jnp.float32)],
        ),
        compiler_params=pltpu.CompilerParams(
            dimension_semantics=("arbitrary", "arbitrary")),
    )(p_b, w_b, g_pad, b_pad)
    return y[:, :m_real, :co]


def grouped_gemm_tanh(p, w):
    """p: (Gp, M, K) f32, w: (Gp, K, Co) f32 -> tanh(P @ W): (Gp, M, Co)."""
    gp, k, co = w.shape
    m_real = p.shape[1]
    p_b, w_b, tm, m_pad, kp, cp = _pad_operands(p, w)
    gm = m_pad // tm

    y = pl.pallas_call(
        _grouped_gemm_tanh_kernel,
        out_shape=jax.ShapeDtypeStruct((gp, m_pad, cp), jnp.float32),
        grid_spec=pltpu.PrefetchScalarGridSpec(
            num_scalar_prefetch=0,
            grid=(gp, gm),
            in_specs=[
                pl.BlockSpec((1, tm, kp), lambda gi, mi: (gi, mi, 0)),
                pl.BlockSpec((1, kp, cp), lambda gi, mi: (gi, 0, 0)),
            ],
            out_specs=pl.BlockSpec((1, tm, cp), lambda gi, mi: (gi, mi, 0)),
        ),
        compiler_params=pltpu.CompilerParams(
            dimension_semantics=("parallel", "parallel")),
    )(p_b, w_b)
    return y[:, :m_real, :co]


# ------------------ ConvTranspose2d -> grouped-GEMM glue ------------------- #
# TODO(synk): patch extraction is still XLA-side slicing/stacking; an in-kernel
#             gather (grid over taps with index_map offsets) would avoid
#             materializing the 4x patch blow-up in HBM for large configs.

def _first_layer_gemm_inputs(x_nhwc, w_torch):
    """ConvTranspose2d(nz, Co, 4, stride=1, padding=0) on a 1x1 input.

    y[n, ky, kx, co] = sum_ci x[n, ci] * W[ci, co, ky, kx]
    -> 16 groups (one per kernel position), shared P of shape (1, N, Ci).
    """
    n, h, w, ci = x_nhwc.shape
    assert h == 1 and w == 1, "Generator expects a (N, nz, 1, 1) latent"
    co = w_torch.shape[1]
    p = x_nhwc.reshape(1, n, ci)
    wg = jnp.transpose(w_torch, (2, 3, 0, 1)).reshape(16, ci, co)  # group = ky*4+kx
    return p, wg


def _subpixel_gemm_inputs(x_nhwc, w_torch):
    """ConvTranspose2d(k=4, stride=2, padding=1) as 4 sub-pixel stride-1 convs.

    Output parity (a, b):  y[n, 2my+a, 2mx+b, co] =
        sum_{oy,ox in {0,1}, ci} xp[n, my+a+oy, mx+b+ox, ci]
                                 * W[ci, co, 3-a-2*oy, 3-b-2*ox]
    where xp is x zero-padded by 1 on each spatial side.  Only the non-zero taps
    are ever materialized (no zero-dilation).
    """
    n, h, w, ci = x_nhwc.shape
    co = w_torch.shape[1]
    xp = jnp.pad(x_nhwc, ((0, 0), (1, 1), (1, 1), (0, 0)))

    p_groups, w_groups = [], []
    for a in range(2):
        for b in range(2):
            pat = jnp.stack(
                [xp[:, a + oy: a + oy + h, b + ox: b + ox + w, :]
                 for oy in range(2) for ox in range(2)],
                axis=3)                                   # (N, H, W, 4, Ci)
            p_groups.append(pat.reshape(n * h * w, 4 * ci))
            wt = jnp.stack(
                [w_torch[:, :, 3 - a - 2 * oy, 3 - b - 2 * ox]
                 for oy in range(2) for ox in range(2)],
                axis=0)                                   # (4, Ci, Co)
            w_groups.append(wt.reshape(4 * ci, co))
    p = jnp.stack(p_groups, axis=0)                       # (4, N*H*W, 4*Ci)
    wg = jnp.stack(w_groups, axis=0)                      # (4, 4*Ci, Co)
    return p, wg


def _interleave_parities(y, n, h, w, co):
    """y: (4, N*H*W, Co) with parity index a*2+b -> NHWC (N, 2H, 2W, Co)."""
    y = y.reshape(2, 2, n, h, w, co)
    y = jnp.transpose(y, (2, 3, 0, 4, 1, 5))              # (N, H, a, W, b, Co)
    return y.reshape(n, 2 * h, 2 * w, co)


# ------------------------------ Generator ----------------------------------- #

def init_generator_params(key, nc, nz, ngf):
    ks = jax.random.split(key, 5)
    std = 0.02
    params = {
        "w1": jax.random.normal(ks[0], (nz, ngf * 8, 4, 4), jnp.float32) * std,
        "w2": jax.random.normal(ks[1], (ngf * 8, ngf * 4, 4, 4), jnp.float32) * std,
        "w3": jax.random.normal(ks[2], (ngf * 4, ngf * 2, 4, 4), jnp.float32) * std,
        "w4": jax.random.normal(ks[3], (ngf * 2, ngf, 4, 4), jnp.float32) * std,
        "w5": jax.random.normal(ks[4], (ngf, nc, 4, 4), jnp.float32) * std,
        "bn_gamma": [jnp.ones((c,), jnp.float32) for c in (ngf * 8, ngf * 4, ngf * 2, ngf)],
        "bn_beta": [jnp.zeros((c,), jnp.float32) for c in (ngf * 8, ngf * 4, ngf * 2, ngf)],
    }
    return params


def generator_forward(x_nchw, params, eps=1e-5):
    """DCGAN Generator forward: (N, nz, 1, 1) -> (N, nc, 64, 64)."""
    x = jnp.transpose(x_nchw.astype(jnp.float32), (0, 2, 3, 1))      # NHWC
    n = x.shape[0]

    # Layer 1: ConvT(nz, ngf*8, 4, 1, 0) + BN + ReLU -> 4x4
    p, wg = _first_layer_gemm_inputs(x, params["w1"])
    y = grouped_gemm_bn_relu(p, wg, params["bn_gamma"][0], params["bn_beta"][0], eps=eps)
    co1 = params["w1"].shape[1]
    x = jnp.transpose(y.reshape(4, 4, n, co1), (2, 0, 1, 3))          # (N, 4, 4, ngf*8)

    # Layers 2-4: ConvT(k=4, s=2, p=1) + BN + ReLU (sub-pixel decomposition)
    for w, gamma, beta in (
            (params["w2"], params["bn_gamma"][1], params["bn_beta"][1]),
            (params["w3"], params["bn_gamma"][2], params["bn_beta"][2]),
            (params["w4"], params["bn_gamma"][3], params["bn_beta"][3])):
        h, ww = x.shape[1], x.shape[2]
        p, wg = _subpixel_gemm_inputs(x, w)
        y = grouped_gemm_bn_relu(p, wg, gamma, beta, eps=eps)
        x = _interleave_parities(y, n, h, ww, w.shape[1])

    # Layer 5: ConvT(ngf, nc, 4, 2, 1) + Tanh
    h, ww = x.shape[1], x.shape[2]
    p, wg = _subpixel_gemm_inputs(x, params["w5"])
    y = grouped_gemm_tanh(p, wg)
    x = _interleave_parities(y, n, h, ww, params["w5"].shape[1])

    # TODO(synk): BatchNorm2d running_mean/running_var buffer updates (training-time
    #             side effect) are not reproduced; they do not affect this output.
    return jnp.transpose(x, (0, 3, 1, 2))                             # NCHW


# --------------------------------- main -------------------------------------- #

if __name__ == "__main__":
    batch, nz, ngf, nc = 2, 16, 8, 3

    key = jax.random.PRNGKey(0)
    pkey, xkey = jax.random.split(key)
    params = init_generator_params(pkey, nc=nc, nz=nz, ngf=ngf)
    x = jax.random.normal(xkey, (batch, nz, 1, 1), jnp.float32)       # NCHW latent

    fwd = jax.jit(generator_forward)
    out = jax.block_until_ready(fwd(x, params))

    assert out.shape == (batch, nc, 64, 64), out.shape
    assert bool(jnp.all(jnp.isfinite(out)))
    assert bool(jnp.all(jnp.abs(out) <= 1.0 + 1e-6))                  # tanh range

    print("KERNEL_OK")
</pallas_src>

<mosaic_0001>
module attributes {stable_mosaic.version = 11 : i64} {
  func.func @_grouped_gemm_bn_relu_kernel(%arg0: i32, %arg1: i32, %arg2: memref<1x8x128xbf16, #tpu.memory_space<vmem>>, %arg3: memref<1x128x128xbf16, #tpu.memory_space<vmem>>, %arg4: memref<1x128xf32, #tpu.memory_space<vmem>>, %arg5: memref<1x128xf32, #tpu.memory_space<vmem>>, %arg6: memref<16x8x128xf32, #tpu.memory_space<vmem>>, %arg7: memref<1x128xf32, #tpu.memory_space<vmem>>, %arg8: memref<1x128xf32, #tpu.memory_space<vmem>>) attributes {dimension_semantics = [#tpu.dimension_semantics<arbitrary>, #tpu.dimension_semantics<arbitrary>], iteration_bounds = array<i64: 16, 1>, scalar_prefetch = 0 : i64, scratch_operands = 2 : i64, tpu.core_type = #tpu.core_type<tc>, window_params = [{transform_indices = @transform_0, window_bounds = array<i64: 1, 8, 128>}, {transform_indices = @transform_1, window_bounds = array<i64: 1, 128, 128>}, {pipeline_mode = #tpu.pipeline_mode<synchronous>, transform_indices = @transform_2, window_bounds = array<i64: 1, 128>}, {pipeline_mode = #tpu.pipeline_mode<synchronous>, transform_indices = @transform_3, window_bounds = array<i64: 1, 128>}, {pipeline_mode = #tpu.pipeline_mode<synchronous>, transform_indices = @transform_4, window_bounds = array<i64: 16, 8, 128>}]} {
    %c0_i32 = arith.constant 0 : i32
    %0 = arith.cmpi eq, %arg0, %c0_i32 : i32
    %c0_i32_0 = arith.constant 0 : i32
    %1 = arith.cmpi eq, %arg1, %c0_i32_0 : i32
    %2 = arith.andi %0, %1 : i1
    %3 = arith.extui %2 : i1 to i32
    %c0_i32_1 = arith.constant 0 : i32
    %4 = arith.cmpi ne, %3, %c0_i32_1 : i32
    scf.if %4 {
      %cst_20 = arith.constant 0.000000e+00 : f32
      %32 = vector.broadcast %cst_20 : f32 to vector<1x128xf32>
      %c0_21 = arith.constant 0 : index
      %c0_22 = arith.constant 0 : index
      %33 = vector.load %arg7[%c0_21, %c0_22] : memref<1x128xf32, #tpu.memory_space<vmem>>, vector<1x128xf32>
      tpu.vector_store %arg7[%c0_21, %c0_22], %32 {strides = array<i32>} : memref<1x128xf32, #tpu.memory_space<vmem>>, vector<1x128xf32>,
      %cst_23 = arith.constant 0.000000e+00 : f32
      %34 = vector.broadcast %cst_23 : f32 to vector<1x128xf32>
      %c0_24 = arith.constant 0 : index
      %c0_25 = arith.constant 0 : index
      %35 = vector.load %arg8[%c0_24, %c0_25] : memref<1x128xf32, #tpu.memory_space<vmem>>, vector<1x128xf32>
      tpu.vector_store %arg8[%c0_24, %c0_25], %34 {strides = array<i32>} : memref<1x128xf32, #tpu.memory_space<vmem>>, vector<1x128xf32>,
    } else {
    }
    %c0 = arith.constant 0 : index
    %c0_2 = arith.constant 0 : index
    %c0_3 = arith.constant 0 : index
    %5 = vector.load %arg2[%c0, %c0_2, %c0_3] : memref<1x8x128xbf16, #tpu.memory_space<vmem>>, vector<1x8x128xbf16>
    %6 = vector.shape_cast %5 : vector<1x8x128xbf16> to vector<8x128xbf16>
    %c0_4 = arith.constant 0 : index
    %c0_5 = arith.constant 0 : index
    %c0_6 = arith.constant 0 : index
    %7 = vector.load %arg3[%c0_4, %c0_5, %c0_6] : memref<1x128x128xbf16, #tpu.memory_space<vmem>>, vector<1x128x128xbf16>
    %8 = vector.shape_cast %7 : vector<1x128x128xbf16> to vector<128x128xbf16>
    %cst = arith.constant dense<0.000000e+00> : vector<8x128xf32>
    %9 = tpu.matmul %6, %8, %cst {dimension_numbers = #tpu.dot_dimension_numbers<[1], [0], [0], [1], [0, 0, 1, 1], [], []>} : vector<8x128xbf16>, vector<128x128xbf16>, vector<8x128xf32> -> vector<8x128xf32>
    %c8_i32 = arith.constant 8 : i32
    %10 = arith.muli %arg1, %c8_i32 : i32
    %11 = arith.index_cast %arg0 : i32 to index
    %12 = arith.index_cast %10 : i32 to index
    %c0_7 = arith.constant 0 : index
    %13 = vector.load %arg6[%11, %12, %c0_7] : memref<16x8x128xf32, #tpu.memory_space<vmem>>, vector<1x8x128xf32>
    %14 = vector.shape_cast %13 : vector<1x8x128xf32> to vector<8x128xf32>
    %15 = vector.shape_cast %9 : vector<8x128xf32> to vector<1x8x128xf32>
    tpu.vector_store %arg6[%11, %12, %c0_7], %15 {strides = array<i32>} : memref<16x8x128xf32, #tpu.memory_space<vmem>>, vector<1x8x128xf32>,
    %c0_8 = arith.constant 0 : index
    %c0_9 = arith.constant 0 : index
    %16 = vector.load %arg7[%c0_8, %c0_9] : memref<1x128xf32, #tpu.memory_space<vmem>>, vector<1x128xf32>
    %cst_10 = arith.constant dense<0.000000e+00> : vector<128xf32>
    %17 = vector.multi_reduction <add>, %9, %cst_10 [0] : vector<8x128xf32> to vector<128xf32>
    %18 = vector.shape_cast %17 : vector<128xf32> to vector<1x128xf32>
    %19 = arith.addf %16, %18 : vector<1x128xf32>
    %c0_11 = arith.constant 0 : index
    %c0_12 = arith.constant 0 : index
    %20 = vector.load %arg7[%c0_11, %c0_12] : memref<1x128xf32, #tpu.memory_space<vmem>>, vector<1x128xf32>
    tpu.vector_store %arg7[%c0_11, %c0_12], %19 {strides = array<i32>} : memref<1x128xf32, #tpu.memory_space<vmem>>, vector<1x128xf32>,
    %c0_13 = arith.constant 0 : index
    %c0_14 = arith.constant 0 : index
    %21 = vector.load %arg8[%c0_13, %c0_14] : memref<1x128xf32, #tpu.memory_space<vmem>>, vector<1x128xf32>
    %22 = arith.mulf %9, %9 : vector<8x128xf32>
    %cst_15 = arith.constant dense<0.000000e+00> : vector<128xf32>
    %23 = vector.multi_reduction <add>, %22, %cst_15 [0] : vector<8x128xf32> to vector<128xf32>
    %24 = vector.shape_cast %23 : vector<128xf32> to vector<1x128xf32>
    %25 = arith.addf %21, %24 : vector<1x128xf32>
    %c0_16 = arith.constant 0 : index
    %c0_17 = arith.constant 0 : index
    %26 = vector.load %arg8[%c0_16, %c0_17] : memref<1x128xf32, #tpu.memory_space<vmem>>, vector<1x128xf32>
    tpu.vector_store %arg8[%c0_16, %c0_17], %25 {strides = array<i32>} : memref<1x128xf32, #tpu.memory_space<vmem>>, vector<1x128xf32>,
    %c15_i32 = arith.constant 15 : i32
    %27 = arith.cmpi eq, %arg0, %c15_i32 : i32
    %c0_i32_18 = arith.constant 0 : i32
    %28 = arith.cmpi eq, %arg1, %c0_i32_18 : i32
    %29 = arith.andi %27, %28 : i1
    %30 = arith.extui %29 : i1 to i32
    %c0_i32_19 = arith.constant 0 : i32
    %31 = arith.cmpi ne, %30, %c0_i32_19 : i32
    scf.if %31 {
      %c0_20 = arith.constant 0 : index
      %c0_21 = arith.constant 0 : index
      %32 = vector.load %arg7[%c0_20, %c0_21] : memref<1x128xf32, #tpu.memory_space<vmem>>, vector<1x128xf32>
      %cst_22 = arith.constant 3.125000e-02 : f32
      %33 = vector.broadcast %cst_22 : f32 to vector<1x128xf32>
      %34 = arith.mulf %32, %33 : vector<1x128xf32>
      %c0_23 = arith.constant 0 : index
      %c0_24 = arith.constant 0 : index
      %35 = vector.load %arg8[%c0_23, %c0_24] : memref<1x128xf32, #tpu.memory_space<vmem>>, vector<1x128xf32>
      %cst_25 = arith.constant 3.125000e-02 : f32
      %36 = vector.broadcast %cst_25 : f32 to vector<1x128xf32>
      %37 = arith.mulf %35, %36 : vector<1x128xf32>
      %38 = arith.mulf %34, %34 : vector<1x128xf32>
      %39 = arith.subf %37, %38 : vector<1x128xf32>
      %cst_26 = arith.constant 0.000000e+00 : f32
      %40 = vector.broadcast %cst_26 : f32 to vector<1x128xf32>
      %41 = arith.maximumf %39, %40 : vector<1x128xf32>
      %c0_27 = arith.constant 0 : index
      %c0_28 = arith.constant 0 : index
      %42 = vector.load %arg4[%c0_27, %c0_28] : memref<1x128xf32, #tpu.memory_space<vmem>>, vector<1x128xf32>
      %cst_29 = arith.constant 9.99999974E-6 : f32
      %43 = vector.broadcast %cst_29 : f32 to vector<1x128xf32>
      %44 = arith.addf %41, %43 : vector<1x128xf32>
      %45 = math.rsqrt %44 : vector<1x128xf32>
      %46 = arith.mulf %42, %45 : vector<1x128xf32>
      %c0_30 = arith.constant 0 : index
      %c0_31 = arith.constant 0 : index
      %47 = vector.load %arg5[%c0_30, %c0_31] : memref<1x128xf32, #tpu.memory_space<vmem>>, vector<1x128xf32>
      %48 = arith.mulf %34, %46 : vector<1x128xf32>
      %49 = arith.subf %47, %48 : vector<1x128xf32>
      %c0_32 = arith.constant 0 : index
      %c0_33 = arith.constant 0 : index
      %c0_34 = arith.constant 0 : index
      %50 = vector.load %arg6[%c0_32, %c0_33, %c0_34] : memref<16x8x128xf32, #tpu.memory_space<vmem>>, vector<1x8x128xf32>
      %51 = vector.shape_cast %50 : vector<1x8x128xf32> to vector<8x128xf32>
      %52 = vector.broadcast %46 : vector<1x128xf32> to vector<8x128xf32>
      %53 = arith.mulf %51, %52 : vector<8x128xf32>
      %54 = vector.broadcast %49 : vector<1x128xf32> to vector<8x128xf32>
      %55 = arith.addf %53, %54 : vector<8x128xf32>
      %cst_35 = arith.constant 0.000000e+00 : f32
      %56 = vector.broadcast %cst_35 : f32 to vector<8x128xf32>
      %57 = arith.maximumf %55, %56 : vector<8x128xf32>
      %c0_36 = arith.constant 0 : index
      %c0_37 = arith.constant 0 : index
      %c0_38 = arith.constant 0 : index
      %58 = vector.load %arg6[%c0_36, %c0_37, %c0_38] : memref<16x8x128xf32, #tpu.memory_space<vmem>>, vector<1x8x128xf32>
      %59 = vector.shape_cast %58 : vector<1x8x128xf32> to vector<8x128xf32>
      %60 = vector.shape_cast %57 : vector<8x128xf32> to vector<1x8x128xf32>
      tpu.vector_store %arg6[%c0_36, %c0_37, %c0_38], %60 {strides = array<i32>} : memref<16x8x128xf32, #tpu.memory_space<vmem>>, vector<1x8x128xf32>,
      %c1 = arith.constant 1 : index
      %c0_39 = arith.constant 0 : index
      %c0_40 = arith.constant 0 : index
      %61 = vector.load %arg6[%c1, %c0_39, %c0_40] : memref<16x8x128xf32, #tpu.memory_space<vmem>>, vector<1x8x128xf32>
      %62 = vector.shape_cast %61 : vector<1x8x128xf32> to vector<8x128xf32>
      %63 = vector.broadcast %46 : vector<1x128xf32> to vector<8x128xf32>
      %64 = arith.mulf %62, %63 : vector<8x128xf32>
      %65 = vector.broadcast %49 : vector<1x128xf32> to vector<8x128xf32>
      %66 = arith.addf %64, %65 : vector<8x128xf32>
      %cst_41 = arith.constant 0.000000e+00 : f32
      %67 = vector.broadcast %cst_41 : f32 to vector<8x128xf32>
      %68 = arith.maximumf %66, %67 : vector<8x128xf32>
      %c1_42 = arith.constant 1 : index
      %c0_43 = arith.constant 0 : index
      %c0_44 = arith.constant 0 : index
      %69 = vector.load %arg6[%c1_42, %c0_43, %c0_44] : memref<16x8x128xf32, #tpu.memory_space<vmem>>, vector<1x8x128xf32>
      %70 = vector.shape_cast %69 : vector<1x8x128xf32> to vector<8x128xf32>
      %71 = vector.shape_cast %68 : vector<8x128xf32> to vector<1x8x128xf32>
      tpu.vector_store %arg6[%c1_42, %c0_43, %c0_44], %71 {strides = array<i32>} : memref<16x8x128xf32, #tpu.memory_space<vmem>>, vector<1x8x128xf32>,
      %c2 = arith.constant 2 : index
      %c0_45 = arith.constant 0 : index
      %c0_46 = arith.constant 0 : index
      %72 = vector.load %arg6[%c2, %c0_45, %c0_46] : memref<16x8x128xf32, #tpu.memory_space<vmem>>, vector<1x8x128xf32>
      %73 = vector.shape_cast %72 : vector<1x8x128xf32> to vector<8x128xf32>
      %74 = vector.broadcast %46 : vector<1x128xf32> to vector<8x128xf32>
      %75 = arith.mulf %73, %74 : vector<8x128xf32>
      %76 = vector.broadcast %49 : vector<1x128xf32> to vector<8x128xf32>
      %77 = arith.addf %75, %76 : vector<8x128xf32>
      %cst_47 = arith.constant 0.000000e+00 : f32
      %78 = vector.broadcast %cst_47 : f32 to vector<8x128xf32>
      %79 = arith.maximumf %77, %78 : vector<8x128xf32>
      %c2_48 = arith.constant 2 : index
      %c0_49 = arith.constant 0 : index
      %c0_50 = arith.constant 0 : index
      %80 = vector.load %arg6[%c2_48, %c0_49, %c0_50] : memref<16x8x128xf32, #tpu.memory_space<vmem>>, vector<1x8x128xf32>
      %81 = vector.shape_cast %80 : vector<1x8x128xf32> to vector<8x128xf32>
      %82 = vector.shape_cast %79 : vector<8x128xf32> to vector<1x8x128xf32>
      tpu.vector_store %arg6[%c2_48, %c0_49, %c0_50], %82 {strides = array<i32>} : memref<16x8x128xf32, #tpu.memory_space<vmem>>, vector<1x8x128xf32>,
      %c3 = arith.constant 3 : index
      %c0_51 = arith.constant 0 : index
      %c0_52 = arith.constant 0 : index
      %83 = vector.load %arg6[%c3, %c0_51, %c0_52] : memref<16x8x128xf32, #tpu.memory_space<vmem>>, vector<1x8x128xf32>
      %84 = vector.shape_cast %83 : vector<1x8x128xf32> to vector<8x128xf32>
      %85 = vector.broadcast %46 : vector<1x128xf32> to vector<8x128xf32>
      %86 = arith.mulf %84, %85 : vector<8x128xf32>
      %87 = vector.broadcast %49 : vector<1x128xf32> to vector<8x128xf32>
      %88 = arith.addf %86, %87 : vector<8x128xf32>
      %cst_53 = arith.constant 0.000000e+00 : f32
      %89 = vector.broadcast %cst_53 : f32 to vector<8x128xf32>
      %90 = arith.maximumf %88, %89 : vector<8x128xf32>
      %c3_54 = arith.constant 3 : index
      %c0_55 = arith.constant 0 : index
      %c0_56 = arith.constant 0 : index
      %91 = vector.load %arg6[%c3_54, %c0_55, %c0_56] : memref<16x8x128xf32, #tpu.memory_space<vmem>>, vector<1x8x128xf32>
      %92 = vector.shape_cast %91 : vector<1x8x128xf32> to vector<8x128xf32>
      %93 = vector.shape_cast %90 : vector<8x128xf32> to vector<1x8x128xf32>
      tpu.vector_store %arg6[%c3_54, %c0_55, %c0_56], %93 {strides = array<i32>} : memref<16x8x128xf32, #tpu.memory_space<vmem>>, vector<1x8x128xf32>,
      %c4 = arith.constant 4 : index
      %c0_57 = arith.constant 0 : index
      %c0_58 = arith.constant 0 : index
      %94 = vector.load %arg6[%c4, %c0_57, %c0_58] : memref<16x8x128xf32, #tpu.memory_space<vmem>>, vector<1x8x128xf32>
      %95 = vector.shape_cast %94 : vector<1x8x128xf32> to vector<8x128xf32>
      %96 = vector.broadcast %46 : vector<1x128xf32> to vector<8x128xf32>
      %97 = arith.mulf %95, %96 : vector<8x128xf32>
      %98 = vector.broadcast %49 : vector<1x128xf32> to vector<8x128xf32>
      %99 = arith.addf %97, %98 : vector<8x128xf32>
      %cst_59 = arith.constant 0.000000e+00 : f32
      %100 = vector.broadcast %cst_59 : f32 to vector<8x128xf32>
      %101 = arith.maximumf %99, %100 : vector<8x128xf32>
      %c4_60 = arith.constant 4 : index
      %c0_61 = arith.constant 0 : index
      %c0_62 = arith.constant 0 : index
      %102 = vector.load %arg6[%c4_60, %c0_61, %c0_62] : memref<16x8x128xf32, #tpu.memory_space<vmem>>, vector<1x8x128xf32>
      %103 = vector.shape_cast %102 : vector<1x8x128xf32> to vector<8x128xf32>
      %104 = vector.shape_cast %101 : vector<8x128xf32> to vector<1x8x128xf32>
      tpu.vector_store %arg6[%c4_60, %c0_61, %c0_62], %104 {strides = array<i32>} : memref<16x8x128xf32, #tpu.memory_space<vmem>>, vector<1x8x128xf32>,
      %c5 = arith.constant 5 : index
      %c0_63 = arith.constant 0 : index
      %c0_64 = arith.constant 0 : index
      %105 = vector.load %arg6[%c5, %c0_63, %c0_64] : memref<16x8x128xf32, #tpu.memory_space<vmem>>, vector<1x8x128xf32>
      %106 = vector.shape_cast %105 : vector<1x8x128xf32> to vector<8x128xf32>
      %107 = vector.broadcast %46 : vector<1x128xf32> to vector<8x128xf32>
      %108 = arith.mulf %106, %107 : vector<8x128xf32>
      %109 = vector.broadcast %49 : vector<1x128xf32> to vector<8x128xf32>
      %110 = arith.addf %108, %109 : vector<8x128xf32>
      %cst_65 = arith.constant 0.000000e+00 : f32
      %111 = vector.broadcast %cst_65 : f32 to vector<8x128xf32>
      %112 = arith.maximumf %110, %111 : vector<8x128xf32>
      %c5_66 = arith.constant 5 : index
      %c0_67 = arith.constant 0 : index
      %c0_68 = arith.constant 0 : index
      %113 = vector.load %arg6[%c5_66, %c0_67, %c0_68] : memref<16x8x128xf32, #tpu.memory_space<vmem>>, vector<1x8x128xf32>
      %114 = vector.shape_cast %113 : vector<1x8x128xf32> to vector<8x128xf32>
      %115 = vector.shape_cast %112 : vector<8x128xf32> to vector<1x8x128xf32>
      tpu.vector_store %arg6[%c5_66, %c0_67, %c0_68], %115 {strides = array<i32>} : memref<16x8x128xf32, #tpu.memory_space<vmem>>, vector<1x8x128xf32>,
      %c6 = arith.constant 6 : index
      %c0_69 = arith.constant 0 : index
      %c0_70 = arith.constant 0 : index
      %116 = vector.load %arg6[%c6, %c0_69, %c0_70] : memref<16x8x128xf32, #tpu.memory_space<vmem>>, vector<1x8x128xf32>
      %117 = vector.shape_cast %116 : vector<1x8x128xf32> to vector<8x128xf32>
      %118 = vector.broadcast %46 : vector<1x128xf32> to vector<8x128xf32>
      %119 = arith.mulf %117, %118 : vector<8x128xf32>
      %120 = vector.broadcast %49 : vector<1x128xf32> to vector<8x128xf32>
      %121 = arith.addf %119, %120 : vector<8x128xf32>
      %cst_71 = arith.constant 0.000000e+00 : f32
      %122 = vector.broadcast %cst_71 : f32 to vector<8x128xf32>
      %123 = arith.maximumf %121, %122 : vector<8x128xf32>
      %c6_72 = arith.constant 6 : index
      %c0_73 = arith.constant 0 : index
      %c0_74 = arith.constant 0 : index
      %124 = vector.load %arg6[%c6_72, %c0_73, %c0_74] : memref<16x8x128xf32, #tpu.memory_space<vmem>>, vector<1x8x128xf32>
      %125 = vector.shape_cast %124 : vector<1x8x128xf32> to vector<8x128xf32>
      %126 = vector.shape_cast %123 : vector<8x128xf32> to vector<1x8x128xf32>
      tpu.vector_store %arg6[%c6_72, %c0_73, %c0_74], %126 {strides = array<i32>} : memref<16x8x128xf32, #tpu.memory_space<vmem>>, vector<1x8x128xf32>,
      %c7 = arith.constant 7 : index
      %c0_75 = arith.constant 0 : index
      %c0_76 = arith.constant 0 : index
      %127 = vector.load %arg6[%c7, %c0_75, %c0_76] : memref<16x8x128xf32, #tpu.memory_space<vmem>>, vector<1x8x128xf32>
      %128 = vector.shape_cast %127 : vector<1x8x128xf32> to vector<8x128xf32>
      %129 = vector.broadcast %46 : vector<1x128xf32> to vector<8x128xf32>
      %130 = arith.mulf %128, %129 : vector<8x128xf32>
      %131 = vector.broadcast %49 : vector<1x128xf32> to vector<8x128xf32>
      %132 = arith.addf %130, %131 : vector<8x128xf32>
      %cst_77 = arith.constant 0.000000e+00 : f32
      %133 = vector.broadcast %cst_77 : f32 to vector<8x128xf32>
      %134 = arith.maximumf %132, %133 : vector<8x128xf32>
      %c7_78 = arith.constant 7 : index
      %c0_79 = arith.constant 0 : index
      %c0_80 = arith.constant 0 : index
      %135 = vector.load %arg6[%c7_78, %c0_79, %c0_80] : memref<16x8x128xf32, #tpu.memory_space<vmem>>, vector<1x8x128xf32>
      %136 = vector.shape_cast %135 : vector<1x8x128xf32> to vector<8x128xf32>
      %137 = vector.shape_cast %134 : vector<8x128xf32> to vector<1x8x128xf32>
      tpu.vector_store %arg6[%c7_78, %c0_79, %c0_80], %137 {strides = array<i32>} : memref<16x8x128xf32, #tpu.memory_space<vmem>>, vector<1x8x128xf32>,
      %c8 = arith.constant 8 : index
      %c0_81 = arith.constant 0 : index
      %c0_82 = arith.constant 0 : index
      %138 = vector.load %arg6[%c8, %c0_81, %c0_82] : memref<16x8x128xf32, #tpu.memory_space<vmem>>, vector<1x8x128xf32>
      %139 = vector.shape_cast %138 : vector<1x8x128xf32> to vector<8x128xf32>
      %140 = vector.broadcast %46 : vector<1x128xf32> to vector<8x128xf32>
      %141 = arith.mulf %139, %140 : vector<8x128xf32>
      %142 = vector.broadcast %49 : vector<1x128xf32> to vector<8x128xf32>
      %143 = arith.addf %141, %142 : vector<8x128xf32>
      %cst_83 = arith.constant 0.000000e+00 : f32
      %144 = vector.broadcast %cst_83 : f32 to vector<8x128xf32>
      %145 = arith.maximumf %143, %144 : vector<8x128xf32>
      %c8_84 = arith.constant 8 : index
      %c0_85 = arith.constant 0 : index
      %c0_86 = arith.constant 0 : index
      %146 = vector.load %arg6[%c8_84, %c0_85, %c0_86] : memref<16x8x128xf32, #tpu.memory_space<vmem>>, vector<1x8x128xf32>
      %147 = vector.shape_cast %146 : vector<1x8x128xf32> to vector<8x128xf32>
      %148 = vector.shape_cast %145 : vector<8x128xf32> to vector<1x8x128xf32>
      tpu.vector_store %arg6[%c8_84, %c0_85, %c0_86], %148 {strides = array<i32>} : memref<16x8x128xf32, #tpu.memory_space<vmem>>, vector<1x8x128xf32>,
      %c9 = arith.constant 9 : index
      %c0_87 = arith.constant 0 : index
      %c0_88 = arith.constant 0 : index
      %149 = vector.load %arg6[%c9, %c0_87, %c0_88] : memref<16x8x128xf32, #tpu.memory_space<vmem>>, vector<1x8x128xf32>
      %150 = vector.shape_cast %149 : vector<1x8x128xf32> to vector<8x128xf32>
      %151 = vector.broadcast %46 : vector<1x128xf32> to vector<8x128xf32>
      %152 = arith.mulf %150, %151 : vector<8x128xf32>
      %153 = vector.broadcast %49 : vector<1x128xf32> to vector<8x128xf32>
      %154 = arith.addf %152, %153 : vector<8x128xf32>
      %cst_89 = arith.constant 0.000000e+00 : f32
      %155 = vector.broadcast %cst_89 : f32 to vector<8x128xf32>
      %156 = arith.maximumf %154, %155 : vector<8x128xf32>
      %c9_90 = arith.constant 9 : index
      %c0_91 = arith.constant 0 : index
      %c0_92 = arith.constant 0 : index
      %157 = vector.load %arg6[%c9_90, %c0_91, %c0_92] : memref<16x8x128xf32, #tpu.memory_space<vmem>>, vector<1x8x128xf32>
      %158 = vector.shape_cast %157 : vector<1x8x128xf32> to vector<8x128xf32>
      %159 = vector.shape_cast %156 : vector<8x128xf32> to vector<1x8x128xf32>
      tpu.vector_store %arg6[%c9_90, %c0_91, %c0_92], %159 {strides = array<i32>} : memref<16x8x128xf32, #tpu.memory_space<vmem>>, vector<1x8x128xf32>,
      %c10 = arith.constant 10 : index
      %c0_93 = arith.constant 0 : index
      %c0_94 = arith.constant 0 : index
      %160 = vector.load %arg6[%c10, %c0_93, %c0_94] : memref<16x8x128xf32, #tpu.memory_space<vmem>>, vector<1x8x128xf32>
      %161 = vector.shape_cast %160 : vector<1x8x128xf32> to vector<8x128xf32>
      %162 = vector.broadcast %46 : vector<1x128xf32> to vector<8x128xf32>
      %163 = arith.mulf %161, %162 : vector<8x128xf32>
      %164 = vector.broadcast %49 : vector<1x128xf32> to vector<8x128xf32>
      %165 = arith.addf %163, %164 : vector<8x128xf32>
      %cst_95 = arith.constant 0.000000e+00 : f32
      %166 = vector.broadcast %cst_95 : f32 to vector<8x128xf32>
      %167 = arith.maximumf %165, %166 : vector<8x128xf32>
      %c10_96 = arith.constant 10 : index
      %c0_97 = arith.constant 0 : index
      %c0_98 = arith.constant 0 : index
      %168 = vector.load %arg6[%c10_96, %c0_97, %c0_98] : memref<16x8x128xf32, #tpu.memory_space<vmem>>, vector<1x8x128xf32>
      %169 = vector.shape_cast %168 : vector<1x8x128xf32> to vector<8x128xf32>
      %170 = vector.shape_cast %167 : vector<8x128xf32> to vector<1x8x128xf32>
      tpu.vector_store %arg6[%c10_96, %c0_97, %c0_98], %170 {strides = array<i32>} : memref<16x8x128xf32, #tpu.memory_space<vmem>>, vector<1x8x128xf32>,
      %c11 = arith.constant 11 : index
      %c0_99 = arith.constant 0 : index
      %c0_100 = arith.constant 0 : index
      %171 = vector.load %arg6[%c11, %c0_99, %c0_100] : memref<16x8x128xf32, #tpu.memory_space<vmem>>, vector<1x8x128xf32>
      %172 = vector.shape_cast %171 : vector<1x8x128xf32> to vector<8x128xf32>
      %173 = vector.broadcast %46 : vector<1x128xf32> to vector<8x128xf32>
      %174 = arith.mulf %172, %173 : vector<8x128xf32>
      %175 = vector.broadcast %49 : vector<1x128xf32> to vector<8x128xf32>
      %176 = arith.addf %174, %175 : vector<8x128xf32>
      %cst_101 = arith.constant 0.000000e+00 : f32
      %177 = vector.broadcast %cst_101 : f32 to vector<8x128xf32>
      %178 = arith.maximumf %176, %177 : vector<8x128xf32>
      %c11_102 = arith.constant 11 : index
      %c0_103 = arith.constant 0 : index
      %c0_104 = arith.constant 0 : index
      %179 = vector.load %arg6[%c11_102, %c0_103, %c0_104] : memref<16x8x128xf32, #tpu.memory_space<vmem>>, vector<1x8x128xf32>
      %180 = vector.shape_cast %179 : vector<1x8x128xf32> to vector<8x128xf32>
      %181 = vector.shape_cast %178 : vector<8x128xf32> to vector<1x8x128xf32>
      tpu.vector_store %arg6[%c11_102, %c0_103, %c0_104], %181 {strides = array<i32>} : memref<16x8x128xf32, #tpu.memory_space<vmem>>, vector<1x8x128xf32>,
      %c12 = arith.constant 12 : index
      %c0_105 = arith.constant 0 : index
      %c0_106 = arith.constant 0 : index
      %182 = vector.load %arg6[%c12, %c0_105, %c0_106] : memref<16x8x128xf32, #tpu.memory_space<vmem>>, vector<1x8x128xf32>
      %183 = vector.shape_cast %182 : vector<1x8x128xf32> to vector<8x128xf32>
      %184 = vector.broadcast %46 : vector<1x128xf32> to vector<8x128xf32>
      %185 = arith.mulf %183, %184 : vector<8x128xf32>
      %186 = vector.broadcast %49 : vector<1x128xf32> to vector<8x128xf32>
      %187 = arith.addf %185, %186 : vector<8x128xf32>
      %cst_107 = arith.constant 0.000000e+00 : f32
      %188 = vector.broadcast %cst_107 : f32 to vector<8x128xf32>
      %189 = arith.maximumf %187, %188 : vector<8x128xf32>
      %c12_108 = arith.constant 12 : index
      %c0_109 = arith.constant 0 : index
      %c0_110 = arith.constant 0 : index
      %190 = vector.load %arg6[%c12_108, %c0_109, %c0_110] : memref<16x8x128xf32, #tpu.memory_space<vmem>>, vector<1x8x128xf32>
      %191 = vector.shape_cast %190 : vector<1x8x128xf32> to vector<8x128xf32>
      %192 = vector.shape_cast %189 : vector<8x128xf32> to vector<1x8x128xf32>
      tpu.vector_store %arg6[%c12_108, %c0_109, %c0_110], %192 {strides = array<i32>} : memref<16x8x128xf32, #tpu.memory_space<vmem>>, vector<1x8x128xf32>,
      %c13 = arith.constant 13 : index
      %c0_111 = arith.constant 0 : index
      %c0_112 = arith.constant 0 : index
      %193 = vector.load %arg6[%c13, %c0_111, %c0_112] : memref<16x8x128xf32, #tpu.memory_space<vmem>>, vector<1x8x128xf32>
      %194 = vector.shape_cast %193 : vector<1x8x128xf32> to vector<8x128xf32>
      %195 = vector.broadcast %46 : vector<1x128xf32> to vector<8x128xf32>
      %196 = arith.mulf %194, %195 : vector<8x128xf32>
      %197 = vector.broadcast %49 : vector<1x128xf32> to vector<8x128xf32>
      %198 = arith.addf %196, %197 : vector<8x128xf32>
      %cst_113 = arith.constant 0.000000e+00 : f32
      %199 = vector.broadcast %cst_113 : f32 to vector<8x128xf32>
      %200 = arith.maximumf %198, %199 : vector<8x128xf32>
      %c13_114 = arith.constant 13 : index
      %c0_115 = arith.constant 0 : index
      %c0_116 = arith.constant 0 : index
      %201 = vector.load %arg6[%c13_114, %c0_115, %c0_116] : memref<16x8x128xf32, #tpu.memory_space<vmem>>, vector<1x8x128xf32>
      %202 = vector.shape_cast %201 : vector<1x8x128xf32> to vector<8x128xf32>
      %203 = vector.shape_cast %200 : vector<8x128xf32> to vector<1x8x128xf32>
      tpu.vector_store %arg6[%c13_114, %c0_115, %c0_116], %203 {strides = array<i32>} : memref<16x8x128xf32, #tpu.memory_space<vmem>>, vector<1x8x128xf32>,
      %c14 = arith.constant 14 : index
      %c0_117 = arith.constant 0 : index
      %c0_118 = arith.constant 0 : index
      %204 = vector.load %arg6[%c14, %c0_117, %c0_118] : memref<16x8x128xf32, #tpu.memory_space<vmem>>, vector<1x8x128xf32>
      %205 = vector.shape_cast %204 : vector<1x8x128xf32> to vector<8x128xf32>
      %206 = vector.broadcast %46 : vector<1x128xf32> to vector<8x128xf32>
      %207 = arith.mulf %205, %206 : vector<8x128xf32>
      %208 = vector.broadcast %49 : vector<1x128xf32> to vector<8x128xf32>
      %209 = arith.addf %207, %208 : vector<8x128xf32>
      %cst_119 = arith.constant 0.000000e+00 : f32
      %210 = vector.broadcast %cst_119 : f32 to vector<8x128xf32>
      %211 = arith.maximumf %209, %210 : vector<8x128xf32>
      %c14_120 = arith.constant 14 : index
      %c0_121 = arith.constant 0 : index
      %c0_122 = arith.constant 0 : index
      %212 = vector.load %arg6[%c14_120, %c0_121, %c0_122] : memref<16x8x128xf32, #tpu.memory_space<vmem>>, vector<1x8x128xf32>
      %213 = vector.shape_cast %212 : vector<1x8x128xf32> to vector<8x128xf32>
      %214 = vector.shape_cast %211 : vector<8x128xf32> to vector<1x8x128xf32>
      tpu.vector_store %arg6[%c14_120, %c0_121, %c0_122], %214 {strides = array<i32>} : memref<16x8x128xf32, #tpu.memory_space<vmem>>, vector<1x8x128xf32>,
      %c15 = arith.constant 15 : index
      %c0_123 = arith.constant 0 : index
      %c0_124 = arith.constant 0 : index
      %215 = vector.load %arg6[%c15, %c0_123, %c0_124] : memref<16x8x128xf32, #tpu.memory_space<vmem>>, vector<1x8x128xf32>
      %216 = vector.shape_cast %215 : vector<1x8x128xf32> to vector<8x128xf32>
      %217 = vector.broadcast %46 : vector<1x128xf32> to vector<8x128xf32>
      %218 = arith.mulf %216, %217 : vector<8x128xf32>
      %219 = vector.broadcast %49 : vector<1x128xf32> to vector<8x128xf32>
      %220 = arith.addf %218, %219 : vector<8x128xf32>
      %cst_125 = arith.constant 0.000000e+00 : f32
      %221 = vector.broadcast %cst_125 : f32 to vector<8x128xf32>
      %222 = arith.maximumf %220, %221 : vector<8x128xf32>
      %c15_126 = arith.constant 15 : index
      %c0_127 = arith.constant 0 : index
      %c0_128 = arith.constant 0 : index
      %223 = vector.load %arg6[%c15_126, %c0_127, %c0_128] : memref<16x8x128xf32, #tpu.memory_space<vmem>>, vector<1x8x128xf32>
      %224 = vector.shape_cast %223 : vector<1x8x128xf32> to vector<8x128xf32>
      %225 = vector.shape_cast %222 : vector<8x128xf32> to vector<1x8x128xf32>
      tpu.vector_store %arg6[%c15_126, %c0_127, %c0_128], %225 {strides = array<i32>} : memref<16x8x128xf32, #tpu.memory_space<vmem>>, vector<1x8x128xf32>,
    } else {
    }
    return
  }
  func.func @transform_0(%arg0: i32, %arg1: i32) -> (i32, i32, i32) {
    %c0_i32 = arith.constant 0 : i32
    %c0_i32_0 = arith.constant 0 : i32
    %c0_i32_1 = arith.constant 0 : i32
    return %c0_i32, %arg1, %c0_i32_0 : i32, i32, i32
  }
  func.func @transform_1(%arg0: i32, %arg1: i32) -> (i32, i32, i32) {
    %c0_i32 = arith.constant 0 : i32
    %c0_i32_0 = arith.constant 0 : i32
    %c0_i32_1 = arith.constant 0 : i32
    return %arg0, %c0_i32, %c0_i32_0 : i32, i32, i32
  }
  func.func @transform_2(%arg0: i32, %arg1: i32) -> (i32, i32) {
    %c0_i32 = arith.constant 0 : i32
    %c0_i32_0 = arith.constant 0 : i32
    %c0_i32_1 = arith.constant 0 : i32
    return %c0_i32, %c0_i32_0 : i32, i32
  }
  func.func @transform_3(%arg0: i32, %arg1: i32) -> (i32, i32) {
    %c0_i32 = arith.constant 0 : i32
    %c0_i32_0 = arith.constant 0 : i32
    %c0_i32_1 = arith.constant 0 : i32
    return %c0_i32, %c0_i32_0 : i32, i32
  }
  func.func @transform_4(%arg0: i32, %arg1: i32) -> (i32, i32, i32) {
    %c0_i32 = arith.constant 0 : i32
    %c0_i32_0 = arith.constant 0 : i32
    %c0_i32_1 = arith.constant 0 : i32
    %c0_i32_2 = arith.constant 0 : i32
    return %c0_i32, %c0_i32_0, %c0_i32_1 : i32, i32, i32
  }
}

module attributes {stable_mosaic.version = 11 : i64} {
  func.func @_grouped_gemm_bn_relu_kernel(%arg0: i32, %arg1: i32, %arg2: memref<1x32x256xbf16, #tpu.memory_space<vmem>>, %arg3: memref<1x256x128xbf16, #tpu.memory_space<vmem>>, %arg4: memref<1x128xf32, #tpu.memory_space<vmem>>, %arg5: memref<1x128xf32, #tpu.memory_space<vmem>>, %arg6: memref<4x32x128xf32, #tpu.memory_space<vmem>>, %arg7: memref<1x128xf32, #tpu.memory_space<vmem>>, %arg8: memref<1x128xf32, #tpu.memory_space<vmem>>) attributes {dimension_semantics = [#tpu.dimension_semantics<arbitrary>, #tpu.dimension_semantics<arbitrary>], iteration_bounds = array<i64: 4, 1>, scalar_prefetch = 0 : i64, scratch_operands = 2 : i64, tpu.core_type = #tpu.core_type<tc>, window_params = [{transform_indices = @transform_0, window_bounds = array<i64: 1, 32, 256>}, {transform_indices = @transform_1, window_bounds = array<i64: 1, 256, 128>}, {pipeline_mode = #tpu.pipeline_mode<synchronous>, transform_indices = @transform_2, window_bounds = array<i64: 1, 128>}, {pipeline_mode = #tpu.pipeline_mode<synchronous>, transform_indices = @transform_3, window_bounds = array<i64: 1, 128>}, {pipeline_mode = #tpu.pipeline_mode<synchronous>, transform_indices = @transform_4, window_bounds = array<i64: 4, 32, 128>}]} {
    %c0_i32 = arith.constant 0 : i32
    %0 = arith.cmpi eq, %arg0, %c0_i32 : i32
    %c0_i32_0 = arith.constant 0 : i32
    %1 = arith.cmpi eq, %arg1, %c0_i32_0 : i32
    %2 = arith.andi %0, %1 : i1
    %3 = arith.extui %2 : i1 to i32
    %c0_i32_1 = arith.constant 0 : i32
    %4 = arith.cmpi ne, %3, %c0_i32_1 : i32
    scf.if %4 {
      %cst_20 = arith.constant 0.000000e+00 : f32
      %32 = vector.broadcast %cst_20 : f32 to vector<1x128xf32>
      %c0_21 = arith.constant 0 : index
      %c0_22 = arith.constant 0 : index
      %33 = vector.load %arg7[%c0_21, %c0_22] : memref<1x128xf32, #tpu.memory_space<vmem>>, vector<1x128xf32>
      tpu.vector_store %arg7[%c0_21, %c0_22], %32 {strides = array<i32>} : memref<1x128xf32, #tpu.memory_space<vmem>>, vector<1x128xf32>,
      %cst_23 = arith.constant 0.000000e+00 : f32
      %34 = vector.broadcast %cst_23 : f32 to vector<1x128xf32>
      %c0_24 = arith.constant 0 : index
      %c0_25 = arith.constant 0 : index
      %35 = vector.load %arg8[%c0_24, %c0_25] : memref<1x128xf32, #tpu.memory_space<vmem>>, vector<1x128xf32>
      tpu.vector_store %arg8[%c0_24, %c0_25], %34 {strides = array<i32>} : memref<1x128xf32, #tpu.memory_space<vmem>>, vector<1x128xf32>,
    } else {
    }
    %c0 = arith.constant 0 : index
    %c0_2 = arith.constant 0 : index
    %c0_3 = arith.constant 0 : index
    %5 = vector.load %arg2[%c0, %c0_2, %c0_3] : memref<1x32x256xbf16, #tpu.memory_space<vmem>>, vector<1x32x256xbf16>
    %6 = vector.shape_cast %5 : vector<1x32x256xbf16> to vector<32x256xbf16>
    %c0_4 = arith.constant 0 : index
    %c0_5 = arith.constant 0 : index
    %c0_6 = arith.constant 0 : index
    %7 = vector.load %arg3[%c0_4, %c0_5, %c0_6] : memref<1x256x128xbf16, #tpu.memory_space<vmem>>, vector<1x256x128xbf16>
    %8 = vector.shape_cast %7 : vector<1x256x128xbf16> to vector<256x128xbf16>
    %cst = arith.constant dense<0.000000e+00> : vector<32x128xf32>
    %9 = tpu.matmul %6, %8, %cst {dimension_numbers = #tpu.dot_dimension_numbers<[1], [0], [0], [1], [0, 0, 1, 1], [], []>} : vector<32x256xbf16>, vector<256x128xbf16>, vector<32x128xf32> -> vector<32x128xf32>
    %c32_i32 = arith.constant 32 : i32
    %10 = arith.muli %arg1, %c32_i32 : i32
    %11 = arith.index_cast %arg0 : i32 to index
    %12 = arith.index_cast %10 : i32 to index
    %c0_7 = arith.constant 0 : index
    %13 = vector.load %arg6[%11, %12, %c0_7] : memref<4x32x128xf32, #tpu.memory_space<vmem>>, vector<1x32x128xf32>
    %14 = vector.shape_cast %13 : vector<1x32x128xf32> to vector<32x128xf32>
    %15 = vector.shape_cast %9 : vector<32x128xf32> to vector<1x32x128xf32>
    tpu.vector_store %arg6[%11, %12, %c0_7], %15 {strides = array<i32>} : memref<4x32x128xf32, #tpu.memory_space<vmem>>, vector<1x32x128xf32>,
    %c0_8 = arith.constant 0 : index
    %c0_9 = arith.constant 0 : index
    %16 = vector.load %arg7[%c0_8, %c0_9] : memref<1x128xf32, #tpu.memory_space<vmem>>, vector<1x128xf32>
    %cst_10 = arith.constant dense<0.000000e+00> : vector<128xf32>
    %17 = vector.multi_reduction <add>, %9, %cst_10 [0] : vector<32x128xf32> to vector<128xf32>
    %18 = vector.shape_cast %17 : vector<128xf32> to vector<1x128xf32>
    %19 = arith.addf %16, %18 : vector<1x128xf32>
    %c0_11 = arith.constant 0 : index
    %c0_12 = arith.constant 0 : index
    %20 = vector.load %arg7[%c0_11, %c0_12] : memref<1x128xf32, #tpu.memory_space<vmem>>, vector<1x128xf32>
    tpu.vector_store %arg7[%c0_11, %c0_12], %19 {strides = array<i32>} : memref<1x128xf32, #tpu.memory_space<vmem>>, vector<1x128xf32>,
    %c0_13 = arith.constant 0 : index
    %c0_14 = arith.constant 0 : index
    %21 = vector.load %arg8[%c0_13, %c0_14] : memref<1x128xf32, #tpu.memory_space<vmem>>, vector<1x128xf32>
    %22 = arith.mulf %9, %9 : vector<32x128xf32>
    %cst_15 = arith.constant dense<0.000000e+00> : vector<128xf32>
    %23 = vector.multi_reduction <add>, %22, %cst_15 [0] : vector<32x128xf32> to vector<128xf32>
    %24 = vector.shape_cast %23 : vector<128xf32> to vector<1x128xf32>
    %25 = arith.addf %21, %24 : vector<1x128xf32>
    %c0_16 = arith.constant 0 : index
    %c0_17 = arith.constant 0 : index
    %26 = vector.load %arg8[%c0_16, %c0_17] : memref<1x128xf32, #tpu.memory_space<vmem>>, vector<1x128xf32>
    tpu.vector_store %arg8[%c0_16, %c0_17], %25 {strides = array<i32>} : memref<1x128xf32, #tpu.memory_space<vmem>>, vector<1x128xf32>,
    %c3_i32 = arith.constant 3 : i32
    %27 = arith.cmpi eq, %arg0, %c3_i32 : i32
    %c0_i32_18 = arith.constant 0 : i32
    %28 = arith.cmpi eq, %arg1, %c0_i32_18 : i32
    %29 = arith.andi %27, %28 : i1
    %30 = arith.extui %29 : i1 to i32
    %c0_i32_19 = arith.constant 0 : i32
    %31 = arith.cmpi ne, %30, %c0_i32_19 : i32
    scf.if %31 {
      %c0_20 = arith.constant 0 : index
      %c0_21 = arith.constant 0 : index
      %32 = vector.load %arg7[%c0_20, %c0_21] : memref<1x128xf32, #tpu.memory_space<vmem>>, vector<1x128xf32>
      %cst_22 = arith.constant 7.812500e-03 : f32
      %33 = vector.broadcast %cst_22 : f32 to vector<1x128xf32>
      %34 = arith.mulf %32, %33 : vector<1x128xf32>
      %c0_23 = arith.constant 0 : index
      %c0_24 = arith.constant 0 : index
      %35 = vector.load %arg8[%c0_23, %c0_24] : memref<1x128xf32, #tpu.memory_space<vmem>>, vector<1x128xf32>
      %cst_25 = arith.constant 7.812500e-03 : f32
      %36 = vector.broadcast %cst_25 : f32 to vector<1x128xf32>
      %37 = arith.mulf %35, %36 : vector<1x128xf32>
      %38 = arith.mulf %34, %34 : vector<1x128xf32>
      %39 = arith.subf %37, %38 : vector<1x128xf32>
      %cst_26 = arith.constant 0.000000e+00 : f32
      %40 = vector.broadcast %cst_26 : f32 to vector<1x128xf32>
      %41 = arith.maximumf %39, %40 : vector<1x128xf32>
      %c0_27 = arith.constant 0 : index
      %c0_28 = arith.constant 0 : index
      %42 = vector.load %arg4[%c0_27, %c0_28] : memref<1x128xf32, #tpu.memory_space<vmem>>, vector<1x128xf32>
      %cst_29 = arith.constant 9.99999974E-6 : f32
      %43 = vector.broadcast %cst_29 : f32 to vector<1x128xf32>
      %44 = arith.addf %41, %43 : vector<1x128xf32>
      %45 = math.rsqrt %44 : vector<1x128xf32>
      %46 = arith.mulf %42, %45 : vector<1x128xf32>
      %c0_30 = arith.constant 0 : index
      %c0_31 = arith.constant 0 : index
      %47 = vector.load %arg5[%c0_30, %c0_31] : memref<1x128xf32, #tpu.memory_space<vmem>>, vector<1x128xf32>
      %48 = arith.mulf %34, %46 : vector<1x128xf32>
      %49 = arith.subf %47, %48 : vector<1x128xf32>
      %c0_32 = arith.constant 0 : index
      %c0_33 = arith.constant 0 : index
      %c0_34 = arith.constant 0 : index
      %50 = vector.load %arg6[%c0_32, %c0_33, %c0_34] : memref<4x32x128xf32, #tpu.memory_space<vmem>>, vector<1x32x128xf32>
      %51 = vector.shape_cast %50 : vector<1x32x128xf32> to vector<32x128xf32>
      %52 = vector.broadcast %46 : vector<1x128xf32> to vector<32x128xf32>
      %53 = arith.mulf %51, %52 : vector<32x128xf32>
      %54 = vector.broadcast %49 : vector<1x128xf32> to vector<32x128xf32>
      %55 = arith.addf %53, %54 : vector<32x128xf32>
      %cst_35 = arith.constant 0.000000e+00 : f32
      %56 = vector.broadcast %cst_35 : f32 to vector<32x128xf32>
      %57 = arith.maximumf %55, %56 : vector<32x128xf32>
      %c0_36 = arith.constant 0 : index
      %c0_37 = arith.constant 0 : index
      %c0_38 = arith.constant 0 : index
      %58 = vector.load %arg6[%c0_36, %c0_37, %c0_38] : memref<4x32x128xf32, #tpu.memory_space<vmem>>, vector<1x32x128xf32>
      %59 = vector.shape_cast %58 : vector<1x32x128xf32> to vector<32x128xf32>
      %60 = vector.shape_cast %57 : vector<32x128xf32> to vector<1x32x128xf32>
      tpu.vector_store %arg6[%c0_36, %c0_37, %c0_38], %60 {strides = array<i32>} : memref<4x32x128xf32, #tpu.memory_space<vmem>>, vector<1x32x128xf32>,
      %c1 = arith.constant 1 : index
      %c0_39 = arith.constant 0 : index
      %c0_40 = arith.constant 0 : index
      %61 = vector.load %arg6[%c1, %c0_39, %c0_40] : memref<4x32x128xf32, #tpu.memory_space<vmem>>, vector<1x32x128xf32>
      %62 = vector.shape_cast %61 : vector<1x32x128xf32> to vector<32x128xf32>
      %63 = vector.broadcast %46 : vector<1x128xf32> to vector<32x128xf32>
      %64 = arith.mulf %62, %63 : vector<32x128xf32>
      %65 = vector.broadcast %49 : vector<1x128xf32> to vector<32x128xf32>
      %66 = arith.addf %64, %65 : vector<32x128xf32>
      %cst_41 = arith.constant 0.000000e+00 : f32
      %67 = vector.broadcast %cst_41 : f32 to vector<32x128xf32>
      %68 = arith.maximumf %66, %67 : vector<32x128xf32>
      %c1_42 = arith.constant 1 : index
      %c0_43 = arith.constant 0 : index
      %c0_44 = arith.constant 0 : index
      %69 = vector.load %arg6[%c1_42, %c0_43, %c0_44] : memref<4x32x128xf32, #tpu.memory_space<vmem>>, vector<1x32x128xf32>
      %70 = vector.shape_cast %69 : vector<1x32x128xf32> to vector<32x128xf32>
      %71 = vector.shape_cast %68 : vector<32x128xf32> to vector<1x32x128xf32>
      tpu.vector_store %arg6[%c1_42, %c0_43, %c0_44], %71 {strides = array<i32>} : memref<4x32x128xf32, #tpu.memory_space<vmem>>, vector<1x32x128xf32>,
      %c2 = arith.constant 2 : index
      %c0_45 = arith.constant 0 : index
      %c0_46 = arith.constant 0 : index
      %72 = vector.load %arg6[%c2, %c0_45, %c0_46] : memref<4x32x128xf32, #tpu.memory_space<vmem>>, vector<1x32x128xf32>
      %73 = vector.shape_cast %72 : vector<1x32x128xf32> to vector<32x128xf32>
      %74 = vector.broadcast %46 : vector<1x128xf32> to vector<32x128xf32>
      %75 = arith.mulf %73, %74 : vector<32x128xf32>
      %76 = vector.broadcast %49 : vector<1x128xf32> to vector<32x128xf32>
      %77 = arith.addf %75, %76 : vector<32x128xf32>
      %cst_47 = arith.constant 0.000000e+00 : f32
      %78 = vector.broadcast %cst_47 : f32 to vector<32x128xf32>
      %79 = arith.maximumf %77, %78 : vector<32x128xf32>
      %c2_48 = arith.constant 2 : index
      %c0_49 = arith.constant 0 : index
      %c0_50 = arith.constant 0 : index
      %80 = vector.load %arg6[%c2_48, %c0_49, %c0_50] : memref<4x32x128xf32, #tpu.memory_space<vmem>>, vector<1x32x128xf32>
      %81 = vector.shape_cast %80 : vector<1x32x128xf32> to vector<32x128xf32>
      %82 = vector.shape_cast %79 : vector<32x128xf32> to vector<1x32x128xf32>
      tpu.vector_store %arg6[%c2_48, %c0_49, %c0_50], %82 {strides = array<i32>} : memref<4x32x128xf32, #tpu.memory_space<vmem>>, vector<1x32x128xf32>,
      %c3 = arith.constant 3 : index
      %c0_51 = arith.constant 0 : index
      %c0_52 = arith.constant 0 : index
      %83 = vector.load %arg6[%c3, %c0_51, %c0_52] : memref<4x32x128xf32, #tpu.memory_space<vmem>>, vector<1x32x128xf32>
      %84 = vector.shape_cast %83 : vector<1x32x128xf32> to vector<32x128xf32>
      %85 = vector.broadcast %46 : vector<1x128xf32> to vector<32x128xf32>
      %86 = arith.mulf %84, %85 : vector<32x128xf32>
      %87 = vector.broadcast %49 : vector<1x128xf32> to vector<32x128xf32>
      %88 = arith.addf %86, %87 : vector<32x128xf32>
      %cst_53 = arith.constant 0.000000e+00 : f32
      %89 = vector.broadcast %cst_53 : f32 to vector<32x128xf32>
      %90 = arith.maximumf %88, %89 : vector<32x128xf32>
      %c3_54 = arith.constant 3 : index
      %c0_55 = arith.constant 0 : index
      %c0_56 = arith.constant 0 : index
      %91 = vector.load %arg6[%c3_54, %c0_55, %c0_56] : memref<4x32x128xf32, #tpu.memory_space<vmem>>, vector<1x32x128xf32>
      %92 = vector.shape_cast %91 : vector<1x32x128xf32> to vector<32x128xf32>
      %93 = vector.shape_cast %90 : vector<32x128xf32> to vector<1x32x128xf32>
      tpu.vector_store %arg6[%c3_54, %c0_55, %c0_56], %93 {strides = array<i32>} : memref<4x32x128xf32, #tpu.memory_space<vmem>>, vector<1x32x128xf32>,
    } else {
    }
    return
  }
  func.func @transform_0(%arg0: i32, %arg1: i32) -> (i32, i32, i32) {
    %c0_i32 = arith.constant 0 : i32
    %c0_i32_0 = arith.constant 0 : i32
    return %arg0, %arg1, %c0_i32 : i32, i32, i32
  }
  func.func @transform_1(%arg0: i32, %arg1: i32) -> (i32, i32, i32) {
    %c0_i32 = arith.constant 0 : i32
    %c0_i32_0 = arith.constant 0 : i32
    %c0_i32_1 = arith.constant 0 : i32
    return %arg0, %c0_i32, %c0_i32_0 : i32, i32, i32
  }
  func.func @transform_2(%arg0: i32, %arg1: i32) -> (i32, i32) {
    %c0_i32 = arith.constant 0 : i32
    %c0_i32_0 = arith.constant 0 : i32
    %c0_i32_1 = arith.constant 0 : i32
    return %c0_i32, %c0_i32_0 : i32, i32
  }
  func.func @transform_3(%arg0: i32, %arg1: i32) -> (i32, i32) {
    %c0_i32 = arith.constant 0 : i32
    %c0_i32_0 = arith.constant 0 : i32
    %c0_i32_1 = arith.constant 0 : i32
    return %c0_i32, %c0_i32_0 : i32, i32
  }
  func.func @transform_4(%arg0: i32, %arg1: i32) -> (i32, i32, i32) {
    %c0_i32 = arith.constant 0 : i32
    %c0_i32_0 = arith.constant 0 : i32
    %c0_i32_1 = arith.constant 0 : i32
    %c0_i32_2 = arith.constant 0 : i32
    return %c0_i32, %c0_i32_0, %c0_i32_1 : i32, i32, i32
  }
}

module attributes {stable_mosaic.version = 11 : i64} {
  func.func @_grouped_gemm_bn_relu_kernel(%arg0: i32, %arg1: i32, %arg2: memref<1x128x128xbf16, #tpu.memory_space<vmem>>, %arg3: memref<1x128x128xbf16, #tpu.memory_space<vmem>>, %arg4: memref<1x128xf32, #tpu.memory_space<vmem>>, %arg5: memref<1x128xf32, #tpu.memory_space<vmem>>, %arg6: memref<4x128x128xf32, #tpu.memory_space<vmem>>, %arg7: memref<1x128xf32, #tpu.memory_space<vmem>>, %arg8: memref<1x128xf32, #tpu.memory_space<vmem>>) attributes {dimension_semantics = [#tpu.dimension_semantics<arbitrary>, #tpu.dimension_semantics<arbitrary>], iteration_bounds = array<i64: 4, 1>, scalar_prefetch = 0 : i64, scratch_operands = 2 : i64, tpu.core_type = #tpu.core_type<tc>, window_params = [{transform_indices = @transform_0, window_bounds = array<i64: 1, 128, 128>}, {transform_indices = @transform_1, window_bounds = array<i64: 1, 128, 128>}, {pipeline_mode = #tpu.pipeline_mode<synchronous>, transform_indices = @transform_2, window_bounds = array<i64: 1, 128>}, {pipeline_mode = #tpu.pipeline_mode<synchronous>, transform_indices = @transform_3, window_bounds = array<i64: 1, 128>}, {pipeline_mode = #tpu.pipeline_mode<synchronous>, transform_indices = @transform_4, window_bounds = array<i64: 4, 128, 128>}]} {
    %c0_i32 = arith.constant 0 : i32
    %0 = arith.cmpi eq, %arg0, %c0_i32 : i32
    %c0_i32_0 = arith.constant 0 : i32
    %1 = arith.cmpi eq, %arg1, %c0_i32_0 : i32
    %2 = arith.andi %0, %1 : i1
    %3 = arith.extui %2 : i1 to i32
    %c0_i32_1 = arith.constant 0 : i32
    %4 = arith.cmpi ne, %3, %c0_i32_1 : i32
    scf.if %4 {
      %cst_20 = arith.constant 0.000000e+00 : f32
      %32 = vector.broadcast %cst_20 : f32 to vector<1x128xf32>
      %c0_21 = arith.constant 0 : index
      %c0_22 = arith.constant 0 : index
      %33 = vector.load %arg7[%c0_21, %c0_22] : memref<1x128xf32, #tpu.memory_space<vmem>>, vector<1x128xf32>
      tpu.vector_store %arg7[%c0_21, %c0_22], %32 {strides = array<i32>} : memref<1x128xf32, #tpu.memory_space<vmem>>, vector<1x128xf32>,
      %cst_23 = arith.constant 0.000000e+00 : f32
      %34 = vector.broadcast %cst_23 : f32 to vector<1x128xf32>
      %c0_24 = arith.constant 0 : index
      %c0_25 = arith.constant 0 : index
      %35 = vector.load %arg8[%c0_24, %c0_25] : memref<1x128xf32, #tpu.memory_space<vmem>>, vector<1x128xf32>
      tpu.vector_store %arg8[%c0_24, %c0_25], %34 {strides = array<i32>} : memref<1x128xf32, #tpu.memory_space<vmem>>, vector<1x128xf32>,
    } else {
    }
    %c0 = arith.constant 0 : index
    %c0_2 = arith.constant 0 : index
    %c0_3 = arith.constant 0 : index
    %5 = vector.load %arg2[%c0, %c0_2, %c0_3] : memref<1x128x128xbf16, #tpu.memory_space<vmem>>, vector<1x128x128xbf16>
    %6 = vector.shape_cast %5 : vector<1x128x128xbf16> to vector<128x128xbf16>
    %c0_4 = arith.constant 0 : index
    %c0_5 = arith.constant 0 : index
    %c0_6 = arith.constant 0 : index
    %7 = vector.load %arg3[%c0_4, %c0_5, %c0_6] : memref<1x128x128xbf16, #tpu.memory_space<vmem>>, vector<1x128x128xbf16>
    %8 = vector.shape_cast %7 : vector<1x128x128xbf16> to vector<128x128xbf16>
    %cst = arith.constant dense<0.000000e+00> : vector<128x128xf32>
    %9 = tpu.matmul %6, %8, %cst {dimension_numbers = #tpu.dot_dimension_numbers<[1], [0], [0], [1], [0, 0, 1, 1], [], []>} : vector<128x128xbf16>, vector<128x128xbf16>, vector<128x128xf32> -> vector<128x128xf32>
    %c128_i32 = arith.constant 128 : i32
    %10 = arith.muli %arg1, %c128_i32 : i32
    %11 = arith.index_cast %arg0 : i32 to index
    %12 = arith.index_cast %10 : i32 to index
    %c0_7 = arith.constant 0 : index
    %13 = vector.load %arg6[%11, %12, %c0_7] : memref<4x128x128xf32, #tpu.memory_space<vmem>>, vector<1x128x128xf32>
    %14 = vector.shape_cast %13 : vector<1x128x128xf32> to vector<128x128xf32>
    %15 = vector.shape_cast %9 : vector<128x128xf32> to vector<1x128x128xf32>
    tpu.vector_store %arg6[%11, %12, %c0_7], %15 {strides = array<i32>} : memref<4x128x128xf32, #tpu.memory_space<vmem>>, vector<1x128x128xf32>,
    %c0_8 = arith.constant 0 : index
    %c0_9 = arith.constant 0 : index
    %16 = vector.load %arg7[%c0_8, %c0_9] : memref<1x128xf32, #tpu.memory_space<vmem>>, vector<1x128xf32>
    %cst_10 = arith.constant dense<0.000000e+00> : vector<128xf32>
    %17 = vector.multi_reduction <add>, %9, %cst_10 [0] : vector<128x128xf32> to vector<128xf32>
    %18 = vector.shape_cast %17 : vector<128xf32> to vector<1x128xf32>
    %19 = arith.addf %16, %18 : vector<1x128xf32>
    %c0_11 = arith.constant 0 : index
    %c0_12 = arith.constant 0 : index
    %20 = vector.load %arg7[%c0_11, %c0_12] : memref<1x128xf32, #tpu.memory_space<vmem>>, vector<1x128xf32>
    tpu.vector_store %arg7[%c0_11, %c0_12], %19 {strides = array<i32>} : memref<1x128xf32, #tpu.memory_space<vmem>>, vector<1x128xf32>,
    %c0_13 = arith.constant 0 : index
    %c0_14 = arith.constant 0 : index
    %21 = vector.load %arg8[%c0_13, %c0_14] : memref<1x128xf32, #tpu.memory_space<vmem>>, vector<1x128xf32>
    %22 = arith.mulf %9, %9 : vector<128x128xf32>
    %cst_15 = arith.constant dense<0.000000e+00> : vector<128xf32>
    %23 = vector.multi_reduction <add>, %22, %cst_15 [0] : vector<128x128xf32> to vector<128xf32>
    %24 = vector.shape_cast %23 : vector<128xf32> to vector<1x128xf32>
    %25 = arith.addf %21, %24 : vector<1x128xf32>
    %c0_16 = arith.constant 0 : index
    %c0_17 = arith.constant 0 : index
    %26 = vector.load %arg8[%c0_16, %c0_17] : memref<1x128xf32, #tpu.memory_space<vmem>>, vector<1x128xf32>
    tpu.vector_store %arg8[%c0_16, %c0_17], %25 {strides = array<i32>} : memref<1x128xf32, #tpu.memory_space<vmem>>, vector<1x128xf32>,
    %c3_i32 = arith.constant 3 : i32
    %27 = arith.cmpi eq, %arg0, %c3_i32 : i32
    %c0_i32_18 = arith.constant 0 : i32
    %28 = arith.cmpi eq, %arg1, %c0_i32_18 : i32
    %29 = arith.andi %27, %28 : i1
    %30 = arith.extui %29 : i1 to i32
    %c0_i32_19 = arith.constant 0 : i32
    %31 = arith.cmpi ne, %30, %c0_i32_19 : i32
    scf.if %31 {
      %c0_20 = arith.constant 0 : index
      %c0_21 = arith.constant 0 : index
      %32 = vector.load %arg7[%c0_20, %c0_21] : memref<1x128xf32, #tpu.memory_space<vmem>>, vector<1x128xf32>
      %cst_22 = arith.constant 0.001953125 : f32
      %33 = vector.broadcast %cst_22 : f32 to vector<1x128xf32>
      %34 = arith.mulf %32, %33 : vector<1x128xf32>
      %c0_23 = arith.constant 0 : index
      %c0_24 = arith.constant 0 : index
      %35 = vector.load %arg8[%c0_23, %c0_24] : memref<1x128xf32, #tpu.memory_space<vmem>>, vector<1x128xf32>
      %cst_25 = arith.constant 0.001953125 : f32
      %36 = vector.broadcast %cst_25 : f32 to vector<1x128xf32>
      %37 = arith.mulf %35, %36 : vector<1x128xf32>
      %38 = arith.mulf %34, %34 : vector<1x128xf32>
      %39 = arith.subf %37, %38 : vector<1x128xf32>
      %cst_26 = arith.constant 0.000000e+00 : f32
      %40 = vector.broadcast %cst_26 : f32 to vector<1x128xf32>
      %41 = arith.maximumf %39, %40 : vector<1x128xf32>
      %c0_27 = arith.constant 0 : index
      %c0_28 = arith.constant 0 : index
      %42 = vector.load %arg4[%c0_27, %c0_28] : memref<1x128xf32, #tpu.memory_space<vmem>>, vector<1x128xf32>
      %cst_29 = arith.constant 9.99999974E-6 : f32
      %43 = vector.broadcast %cst_29 : f32 to vector<1x128xf32>
      %44 = arith.addf %41, %43 : vector<1x128xf32>
      %45 = math.rsqrt %44 : vector<1x128xf32>
      %46 = arith.mulf %42, %45 : vector<1x128xf32>
      %c0_30 = arith.constant 0 : index
      %c0_31 = arith.constant 0 : index
      %47 = vector.load %arg5[%c0_30, %c0_31] : memref<1x128xf32, #tpu.memory_space<vmem>>, vector<1x128xf32>
      %48 = arith.mulf %34, %46 : vector<1x128xf32>
      %49 = arith.subf %47, %48 : vector<1x128xf32>
      %c0_32 = arith.constant 0 : index
      %c0_33 = arith.constant 0 : index
      %c0_34 = arith.constant 0 : index
      %50 = vector.load %arg6[%c0_32, %c0_33, %c0_34] : memref<4x128x128xf32, #tpu.memory_space<vmem>>, vector<1x128x128xf32>
      %51 = vector.shape_cast %50 : vector<1x128x128xf32> to vector<128x128xf32>
      %52 = vector.broadcast %46 : vector<1x128xf32> to vector<128x128xf32>
      %53 = arith.mulf %51, %52 : vector<128x128xf32>
      %54 = vector.broadcast %49 : vector<1x128xf32> to vector<128x128xf32>
      %55 = arith.addf %53, %54 : vector<128x128xf32>
      %cst_35 = arith.constant 0.000000e+00 : f32
      %56 = vector.broadcast %cst_35 : f32 to vector<128x128xf32>
      %57 = arith.maximumf %55, %56 : vector<128x128xf32>
      %c0_36 = arith.constant 0 : index
      %c0_37 = arith.constant 0 : index
      %c0_38 = arith.constant 0 : index
      %58 = vector.load %arg6[%c0_36, %c0_37, %c0_38] : memref<4x128x128xf32, #tpu.memory_space<vmem>>, vector<1x128x128xf32>
      %59 = vector.shape_cast %58 : vector<1x128x128xf32> to vector<128x128xf32>
      %60 = vector.shape_cast %57 : vector<128x128xf32> to vector<1x128x128xf32>
      tpu.vector_store %arg6[%c0_36, %c0_37, %c0_38], %60 {strides = array<i32>} : memref<4x128x128xf32, #tpu.memory_space<vmem>>, vector<1x128x128xf32>,
      %c1 = arith.constant 1 : index
      %c0_39 = arith.constant 0 : index
      %c0_40 = arith.constant 0 : index
      %61 = vector.load %arg6[%c1, %c0_39, %c0_40] : memref<4x128x128xf32, #tpu.memory_space<vmem>>, vector<1x128x128xf32>
      %62 = vector.shape_cast %61 : vector<1x128x128xf32> to vector<128x128xf32>
      %63 = vector.broadcast %46 : vector<1x128xf32> to vector<128x128xf32>
      %64 = arith.mulf %62, %63 : vector<128x128xf32>
      %65 = vector.broadcast %49 : vector<1x128xf32> to vector<128x128xf32>
      %66 = arith.addf %64, %65 : vector<128x128xf32>
      %cst_41 = arith.constant 0.000000e+00 : f32
      %67 = vector.broadcast %cst_41 : f32 to vector<128x128xf32>
      %68 = arith.maximumf %66, %67 : vector<128x128xf32>
      %c1_42 = arith.constant 1 : index
      %c0_43 = arith.constant 0 : index
      %c0_44 = arith.constant 0 : index
      %69 = vector.load %arg6[%c1_42, %c0_43, %c0_44] : memref<4x128x128xf32, #tpu.memory_space<vmem>>, vector<1x128x128xf32>
      %70 = vector.shape_cast %69 : vector<1x128x128xf32> to vector<128x128xf32>
      %71 = vector.shape_cast %68 : vector<128x128xf32> to vector<1x128x128xf32>
      tpu.vector_store %arg6[%c1_42, %c0_43, %c0_44], %71 {strides = array<i32>} : memref<4x128x128xf32, #tpu.memory_space<vmem>>, vector<1x128x128xf32>,
      %c2 = arith.constant 2 : index
      %c0_45 = arith.constant 0 : index
      %c0_46 = arith.constant 0 : index
      %72 = vector.load %arg6[%c2, %c0_45, %c0_46] : memref<4x128x128xf32, #tpu.memory_space<vmem>>, vector<1x128x128xf32>
      %73 = vector.shape_cast %72 : vector<1x128x128xf32> to vector<128x128xf32>
      %74 = vector.broadcast %46 : vector<1x128xf32> to vector<128x128xf32>
      %75 = arith.mulf %73, %74 : vector<128x128xf32>
      %76 = vector.broadcast %49 : vector<1x128xf32> to vector<128x128xf32>
      %77 = arith.addf %75, %76 : vector<128x128xf32>
      %cst_47 = arith.constant 0.000000e+00 : f32
      %78 = vector.broadcast %cst_47 : f32 to vector<128x128xf32>
      %79 = arith.maximumf %77, %78 : vector<128x128xf32>
      %c2_48 = arith.constant 2 : index
      %c0_49 = arith.constant 0 : index
      %c0_50 = arith.constant 0 : index
      %80 = vector.load %arg6[%c2_48, %c0_49, %c0_50] : memref<4x128x128xf32, #tpu.memory_space<vmem>>, vector<1x128x128xf32>
      %81 = vector.shape_cast %80 : vector<1x128x128xf32> to vector<128x128xf32>
      %82 = vector.shape_cast %79 : vector<128x128xf32> to vector<1x128x128xf32>
      tpu.vector_store %arg6[%c2_48, %c0_49, %c0_50], %82 {strides = array<i32>} : memref<4x128x128xf32, #tpu.memory_space<vmem>>, vector<1x128x128xf32>,
      %c3 = arith.constant 3 : index
      %c0_51 = arith.constant 0 : index
      %c0_52 = arith.constant 0 : index
      %83 = vector.load %arg6[%c3, %c0_51, %c0_52] : memref<4x128x128xf32, #tpu.memory_space<vmem>>, vector<1x128x128xf32>
      %84 = vector.shape_cast %83 : vector<1x128x128xf32> to vector<128x128xf32>
      %85 = vector.broadcast %46 : vector<1x128xf32> to vector<128x128xf32>
      %86 = arith.mulf %84, %85 : vector<128x128xf32>
      %87 = vector.broadcast %49 : vector<1x128xf32> to vector<128x128xf32>
      %88 = arith.addf %86, %87 : vector<128x128xf32>
      %cst_53 = arith.constant 0.000000e+00 : f32
      %89 = vector.broadcast %cst_53 : f32 to vector<128x128xf32>
      %90 = arith.maximumf %88, %89 : vector<128x128xf32>
      %c3_54 = arith.constant 3 : index
      %c0_55 = arith.constant 0 : index
      %c0_56 = arith.constant 0 : index
      %91 = vector.load %arg6[%c3_54, %c0_55, %c0_56] : memref<4x128x128xf32, #tpu.memory_space<vmem>>, vector<1x128x128xf32>
      %92 = vector.shape_cast %91 : vector<1x128x128xf32> to vector<128x128xf32>
      %93 = vector.shape_cast %90 : vector<128x128xf32> to vector<1x128x128xf32>
      tpu.vector_store %arg6[%c3_54, %c0_55, %c0_56], %93 {strides = array<i32>} : memref<4x128x128xf32, #tpu.memory_space<vmem>>, vector<1x128x128xf32>,
    } else {
    }
    return
  }
  func.func @transform_0(%arg0: i32, %arg1: i32) -> (i32, i32, i32) {
    %c0_i32 = arith.constant 0 : i32
    %c0_i32_0 = arith.constant 0 : i32
    return %arg0, %arg1, %c0_i32 : i32, i32, i32
  }
  func.func @transform_1(%arg0: i32, %arg1: i32) -> (i32, i32, i32) {
    %c0_i32 = arith.constant 0 : i32
    %c0_i32_0 = arith.constant 0 : i32
    %c0_i32_1 = arith.constant 0 : i32
    return %arg0, %c0_i32, %c0_i32_0 : i32, i32, i32
  }
  func.func @transform_2(%arg0: i32, %arg1: i32) -> (i32, i32) {
    %c0_i32 = arith.constant 0 : i32
    %c0_i32_0 = arith.constant 0 : i32
    %c0_i32_1 = arith.constant 0 : i32
    return %c0_i32, %c0_i32_0 : i32, i32
  }
  func.func @transform_3(%arg0: i32, %arg1: i32) -> (i32, i32) {
    %c0_i32 = arith.constant 0 : i32
    %c0_i32_0 = arith.constant 0 : i32
    %c0_i32_1 = arith.constant 0 : i32
    return %c0_i32, %c0_i32_0 : i32, i32
  }
  func.func @transform_4(%arg0: i32, %arg1: i32) -> (i32, i32, i32) {
    %c0_i32 = arith.constant 0 : i32
    %c0_i32_0 = arith.constant 0 : i32
    %c0_i32_1 = arith.constant 0 : i32
    %c0_i32_2 = arith.constant 0 : i32
    return %c0_i32, %c0_i32_0, %c0_i32_1 : i32, i32, i32
  }
}

module attributes {stable_mosaic.version = 11 : i64} {
  func.func @_grouped_gemm_bn_relu_kernel(%arg0: i32, %arg1: i32, %arg2: memref<1x512x128xbf16, #tpu.memory_space<vmem>>, %arg3: memref<1x128x128xbf16, #tpu.memory_space<vmem>>, %arg4: memref<1x128xf32, #tpu.memory_space<vmem>>, %arg5: memref<1x128xf32, #tpu.memory_space<vmem>>, %arg6: memref<4x512x128xf32, #tpu.memory_space<vmem>>, %arg7: memref<1x128xf32, #tpu.memory_space<vmem>>, %arg8: memref<1x128xf32, #tpu.memory_space<vmem>>) attributes {dimension_semantics = [#tpu.dimension_semantics<arbitrary>, #tpu.dimension_semantics<arbitrary>], iteration_bounds = array<i64: 4, 1>, scalar_prefetch = 0 : i64, scratch_operands = 2 : i64, tpu.core_type = #tpu.core_type<tc>, window_params = [{transform_indices = @transform_0, window_bounds = array<i64: 1, 512, 128>}, {transform_indices = @transform_1, window_bounds = array<i64: 1, 128, 128>}, {pipeline_mode = #tpu.pipeline_mode<synchronous>, transform_indices = @transform_2, window_bounds = array<i64: 1, 128>}, {pipeline_mode = #tpu.pipeline_mode<synchronous>, transform_indices = @transform_3, window_bounds = array<i64: 1, 128>}, {pipeline_mode = #tpu.pipeline_mode<synchronous>, transform_indices = @transform_4, window_bounds = array<i64: 4, 512, 128>}]} {
    %c0_i32 = arith.constant 0 : i32
    %0 = arith.cmpi eq, %arg0, %c0_i32 : i32
    %c0_i32_0 = arith.constant 0 : i32
    %1 = arith.cmpi eq, %arg1, %c0_i32_0 : i32
    %2 = arith.andi %0, %1 : i1
    %3 = arith.extui %2 : i1 to i32
    %c0_i32_1 = arith.constant 0 : i32
    %4 = arith.cmpi ne, %3, %c0_i32_1 : i32
    scf.if %4 {
      %cst_20 = arith.constant 0.000000e+00 : f32
      %32 = vector.broadcast %cst_20 : f32 to vector<1x128xf32>
      %c0_21 = arith.constant 0 : index
      %c0_22 = arith.constant 0 : index
      %33 = vector.load %arg7[%c0_21, %c0_22] : memref<1x128xf32, #tpu.memory_space<vmem>>, vector<1x128xf32>
      tpu.vector_store %arg7[%c0_21, %c0_22], %32 {strides = array<i32>} : memref<1x128xf32, #tpu.memory_space<vmem>>, vector<1x128xf32>,
      %cst_23 = arith.constant 0.000000e+00 : f32
      %34 = vector.broadcast %cst_23 : f32 to vector<1x128xf32>
      %c0_24 = arith.constant 0 : index
      %c0_25 = arith.constant 0 : index
      %35 = vector.load %arg8[%c0_24, %c0_25] : memref<1x128xf32, #tpu.memory_space<vmem>>, vector<1x128xf32>
      tpu.vector_store %arg8[%c0_24, %c0_25], %34 {strides = array<i32>} : memref<1x128xf32, #tpu.memory_space<vmem>>, vector<1x128xf32>,
    } else {
    }
    %c0 = arith.constant 0 : index
    %c0_2 = arith.constant 0 : index
    %c0_3 = arith.constant 0 : index
    %5 = vector.load %arg2[%c0, %c0_2, %c0_3] : memref<1x512x128xbf16, #tpu.memory_space<vmem>>, vector<1x512x128xbf16>
    %6 = vector.shape_cast %5 : vector<1x512x128xbf16> to vector<512x128xbf16>
    %c0_4 = arith.constant 0 : index
    %c0_5 = arith.constant 0 : index
    %c0_6 = arith.constant 0 : index
    %7 = vector.load %arg3[%c0_4, %c0_5, %c0_6] : memref<1x128x128xbf16, #tpu.memory_space<vmem>>, vector<1x128x128xbf16>
    %8 = vector.shape_cast %7 : vector<1x128x128xbf16> to vector<128x128xbf16>
    %cst = arith.constant dense<0.000000e+00> : vector<512x128xf32>
    %9 = tpu.matmul %6, %8, %cst {dimension_numbers = #tpu.dot_dimension_numbers<[1], [0], [0], [1], [0, 0, 1, 1], [], []>} : vector<512x128xbf16>, vector<128x128xbf16>, vector<512x128xf32> -> vector<512x128xf32>
    %c512_i32 = arith.constant 512 : i32
    %10 = arith.muli %arg1, %c512_i32 : i32
    %11 = arith.index_cast %arg0 : i32 to index
    %12 = arith.index_cast %10 : i32 to index
    %c0_7 = arith.constant 0 : index
    %13 = vector.load %arg6[%11, %12, %c0_7] : memref<4x512x128xf32, #tpu.memory_space<vmem>>, vector<1x512x128xf32>
    %14 = vector.shape_cast %13 : vector<1x512x128xf32> to vector<512x128xf32>
    %15 = vector.shape_cast %9 : vector<512x128xf32> to vector<1x512x128xf32>
    tpu.vector_store %arg6[%11, %12, %c0_7], %15 {strides = array<i32>} : memref<4x512x128xf32, #tpu.memory_space<vmem>>, vector<1x512x128xf32>,
    %c0_8 = arith.constant 0 : index
    %c0_9 = arith.constant 0 : index
    %16 = vector.load %arg7[%c0_8, %c0_9] : memref<1x128xf32, #tpu.memory_space<vmem>>, vector<1x128xf32>
    %cst_10 = arith.constant dense<0.000000e+00> : vector<128xf32>
    %17 = vector.multi_reduction <add>, %9, %cst_10 [0] : vector<512x128xf32> to vector<128xf32>
    %18 = vector.shape_cast %17 : vector<128xf32> to vector<1x128xf32>
    %19 = arith.addf %16, %18 : vector<1x128xf32>
    %c0_11 = arith.constant 0 : index
    %c0_12 = arith.constant 0 : index
    %20 = vector.load %arg7[%c0_11, %c0_12] : memref<1x128xf32, #tpu.memory_space<vmem>>, vector<1x128xf32>
    tpu.vector_store %arg7[%c0_11, %c0_12], %19 {strides = array<i32>} : memref<1x128xf32, #tpu.memory_space<vmem>>, vector<1x128xf32>,
    %c0_13 = arith.constant 0 : index
    %c0_14 = arith.constant 0 : index
    %21 = vector.load %arg8[%c0_13, %c0_14] : memref<1x128xf32, #tpu.memory_space<vmem>>, vector<1x128xf32>
    %22 = arith.mulf %9, %9 : vector<512x128xf32>
    %cst_15 = arith.constant dense<0.000000e+00> : vector<128xf32>
    %23 = vector.multi_reduction <add>, %22, %cst_15 [0] : vector<512x128xf32> to vector<128xf32>
    %24 = vector.shape_cast %23 : vector<128xf32> to vector<1x128xf32>
    %25 = arith.addf %21, %24 : vector<1x128xf32>
    %c0_16 = arith.constant 0 : index
    %c0_17 = arith.constant 0 : index
    %26 = vector.load %arg8[%c0_16, %c0_17] : memref<1x128xf32, #tpu.memory_space<vmem>>, vector<1x128xf32>
    tpu.vector_store %arg8[%c0_16, %c0_17], %25 {strides = array<i32>} : memref<1x128xf32, #tpu.memory_space<vmem>>, vector<1x128xf32>,
    %c3_i32 = arith.constant 3 : i32
    %27 = arith.cmpi eq, %arg0, %c3_i32 : i32
    %c0_i32_18 = arith.constant 0 : i32
    %28 = arith.cmpi eq, %arg1, %c0_i32_18 : i32
    %29 = arith.andi %27, %28 : i1
    %30 = arith.extui %29 : i1 to i32
    %c0_i32_19 = arith.constant 0 : i32
    %31 = arith.cmpi ne, %30, %c0_i32_19 : i32
    scf.if %31 {
      %c0_20 = arith.constant 0 : index
      %c0_21 = arith.constant 0 : index
      %32 = vector.load %arg7[%c0_20, %c0_21] : memref<1x128xf32, #tpu.memory_space<vmem>>, vector<1x128xf32>
      %cst_22 = arith.constant 4.8828125E-4 : f32
      %33 = vector.broadcast %cst_22 : f32 to vector<1x128xf32>
      %34 = arith.mulf %32, %33 : vector<1x128xf32>
      %c0_23 = arith.constant 0 : index
      %c0_24 = arith.constant 0 : index
      %35 = vector.load %arg8[%c0_23, %c0_24] : memref<1x128xf32, #tpu.memory_space<vmem>>, vector<1x128xf32>
      %cst_25 = arith.constant 4.8828125E-4 : f32
      %36 = vector.broadcast %cst_25 : f32 to vector<1x128xf32>
      %37 = arith.mulf %35, %36 : vector<1x128xf32>
      %38 = arith.mulf %34, %34 : vector<1x128xf32>
      %39 = arith.subf %37, %38 : vector<1x128xf32>
      %cst_26 = arith.constant 0.000000e+00 : f32
      %40 = vector.broadcast %cst_26 : f32 to vector<1x128xf32>
      %41 = arith.maximumf %39, %40 : vector<1x128xf32>
      %c0_27 = arith.constant 0 : index
      %c0_28 = arith.constant 0 : index
      %42 = vector.load %arg4[%c0_27, %c0_28] : memref<1x128xf32, #tpu.memory_space<vmem>>, vector<1x128xf32>
      %cst_29 = arith.constant 9.99999974E-6 : f32
      %43 = vector.broadcast %cst_29 : f32 to vector<1x128xf32>
      %44 = arith.addf %41, %43 : vector<1x128xf32>
      %45 = math.rsqrt %44 : vector<1x128xf32>
      %46 = arith.mulf %42, %45 : vector<1x128xf32>
      %c0_30 = arith.constant 0 : index
      %c0_31 = arith.constant 0 : index
      %47 = vector.load %arg5[%c0_30, %c0_31] : memref<1x128xf32, #tpu.memory_space<vmem>>, vector<1x128xf32>
      %48 = arith.mulf %34, %46 : vector<1x128xf32>
      %49 = arith.subf %47, %48 : vector<1x128xf32>
      %c0_32 = arith.constant 0 : index
      %c0_33 = arith.constant 0 : index
      %c0_34 = arith.constant 0 : index
      %50 = vector.load %arg6[%c0_32, %c0_33, %c0_34] : memref<4x512x128xf32, #tpu.memory_space<vmem>>, vector<1x512x128xf32>
      %51 = vector.shape_cast %50 : vector<1x512x128xf32> to vector<512x128xf32>
      %52 = vector.broadcast %46 : vector<1x128xf32> to vector<512x128xf32>
      %53 = arith.mulf %51, %52 : vector<512x128xf32>
      %54 = vector.broadcast %49 : vector<1x128xf32> to vector<512x128xf32>
      %55 = arith.addf %53, %54 : vector<512x128xf32>
      %cst_35 = arith.constant 0.000000e+00 : f32
      %56 = vector.broadcast %cst_35 : f32 to vector<512x128xf32>
      %57 = arith.maximumf %55, %56 : vector<512x128xf32>
      %c0_36 = arith.constant 0 : index
      %c0_37 = arith.constant 0 : index
      %c0_38 = arith.constant 0 : index
      %58 = vector.load %arg6[%c0_36, %c0_37, %c0_38] : memref<4x512x128xf32, #tpu.memory_space<vmem>>, vector<1x512x128xf32>
      %59 = vector.shape_cast %58 : vector<1x512x128xf32> to vector<512x128xf32>
      %60 = vector.shape_cast %57 : vector<512x128xf32> to vector<1x512x128xf32>
      tpu.vector_store %arg6[%c0_36, %c0_37, %c0_38], %60 {strides = array<i32>} : memref<4x512x128xf32, #tpu.memory_space<vmem>>, vector<1x512x128xf32>,
      %c1 = arith.constant 1 : index
      %c0_39 = arith.constant 0 : index
      %c0_40 = arith.constant 0 : index
      %61 = vector.load %arg6[%c1, %c0_39, %c0_40] : memref<4x512x128xf32, #tpu.memory_space<vmem>>, vector<1x512x128xf32>
      %62 = vector.shape_cast %61 : vector<1x512x128xf32> to vector<512x128xf32>
      %63 = vector.broadcast %46 : vector<1x128xf32> to vector<512x128xf32>
      %64 = arith.mulf %62, %63 : vector<512x128xf32>
      %65 = vector.broadcast %49 : vector<1x128xf32> to vector<512x128xf32>
      %66 = arith.addf %64, %65 : vector<512x128xf32>
      %cst_41 = arith.constant 0.000000e+00 : f32
      %67 = vector.broadcast %cst_41 : f32 to vector<512x128xf32>
      %68 = arith.maximumf %66, %67 : vector<512x128xf32>
      %c1_42 = arith.constant 1 : index
      %c0_43 = arith.constant 0 : index
      %c0_44 = arith.constant 0 : index
      %69 = vector.load %arg6[%c1_42, %c0_43, %c0_44] : memref<4x512x128xf32, #tpu.memory_space<vmem>>, vector<1x512x128xf32>
      %70 = vector.shape_cast %69 : vector<1x512x128xf32> to vector<512x128xf32>
      %71 = vector.shape_cast %68 : vector<512x128xf32> to vector<1x512x128xf32>
      tpu.vector_store %arg6[%c1_42, %c0_43, %c0_44], %71 {strides = array<i32>} : memref<4x512x128xf32, #tpu.memory_space<vmem>>, vector<1x512x128xf32>,
      %c2 = arith.constant 2 : index
      %c0_45 = arith.constant 0 : index
      %c0_46 = arith.constant 0 : index
      %72 = vector.load %arg6[%c2, %c0_45, %c0_46] : memref<4x512x128xf32, #tpu.memory_space<vmem>>, vector<1x512x128xf32>
      %73 = vector.shape_cast %72 : vector<1x512x128xf32> to vector<512x128xf32>
      %74 = vector.broadcast %46 : vector<1x128xf32> to vector<512x128xf32>
      %75 = arith.mulf %73, %74 : vector<512x128xf32>
      %76 = vector.broadcast %49 : vector<1x128xf32> to vector<512x128xf32>
      %77 = arith.addf %75, %76 : vector<512x128xf32>
      %cst_47 = arith.constant 0.000000e+00 : f32
      %78 = vector.broadcast %cst_47 : f32 to vector<512x128xf32>
      %79 = arith.maximumf %77, %78 : vector<512x128xf32>
      %c2_48 = arith.constant 2 : index
      %c0_49 = arith.constant 0 : index
      %c0_50 = arith.constant 0 : index
      %80 = vector.load %arg6[%c2_48, %c0_49, %c0_50] : memref<4x512x128xf32, #tpu.memory_space<vmem>>, vector<1x512x128xf32>
      %81 = vector.shape_cast %80 : vector<1x512x128xf32> to vector<512x128xf32>
      %82 = vector.shape_cast %79 : vector<512x128xf32> to vector<1x512x128xf32>
      tpu.vector_store %arg6[%c2_48, %c0_49, %c0_50], %82 {strides = array<i32>} : memref<4x512x128xf32, #tpu.memory_space<vmem>>, vector<1x512x128xf32>,
      %c3 = arith.constant 3 : index
      %c0_51 = arith.constant 0 : index
      %c0_52 = arith.constant 0 : index
      %83 = vector.load %arg6[%c3, %c0_51, %c0_52] : memref<4x512x128xf32, #tpu.memory_space<vmem>>, vector<1x512x128xf32>
      %84 = vector.shape_cast %83 : vector<1x512x128xf32> to vector<512x128xf32>
      %85 = vector.broadcast %46 : vector<1x128xf32> to vector<512x128xf32>
      %86 = arith.mulf %84, %85 : vector<512x128xf32>
      %87 = vector.broadcast %49 : vector<1x128xf32> to vector<512x128xf32>
      %88 = arith.addf %86, %87 : vector<512x128xf32>
      %cst_53 = arith.constant 0.000000e+00 : f32
      %89 = vector.broadcast %cst_53 : f32 to vector<512x128xf32>
      %90 = arith.maximumf %88, %89 : vector<512x128xf32>
      %c3_54 = arith.constant 3 : index
      %c0_55 = arith.constant 0 : index
      %c0_56 = arith.constant 0 : index
      %91 = vector.load %arg6[%c3_54, %c0_55, %c0_56] : memref<4x512x128xf32, #tpu.memory_space<vmem>>, vector<1x512x128xf32>
      %92 = vector.shape_cast %91 : vector<1x512x128xf32> to vector<512x128xf32>
      %93 = vector.shape_cast %90 : vector<512x128xf32> to vector<1x512x128xf32>
      tpu.vector_store %arg6[%c3_54, %c0_55, %c0_56], %93 {strides = array<i32>} : memref<4x512x128xf32, #tpu.memory_space<vmem>>, vector<1x512x128xf32>,
    } else {
    }
    return
  }
  func.func @transform_0(%arg0: i32, %arg1: i32) -> (i32, i32, i32) {
    %c0_i32 = arith.constant 0 : i32
    %c0_i32_0 = arith.constant 0 : i32
    return %arg0, %arg1, %c0_i32 : i32, i32, i32
  }
  func.func @transform_1(%arg0: i32, %arg1: i32) -> (i32, i32, i32) {
    %c0_i32 = arith.constant 0 : i32
    %c0_i32_0 = arith.constant 0 : i32
    %c0_i32_1 = arith.constant 0 : i32
    return %arg0, %c0_i32, %c0_i32_0 : i32, i32, i32
  }
  func.func @transform_2(%arg0: i32, %arg1: i32) -> (i32, i32) {
    %c0_i32 = arith.constant 0 : i32
    %c0_i32_0 = arith.constant 0 : i32
    %c0_i32_1 = arith.constant 0 : i32
    return %c0_i32, %c0_i32_0 : i32, i32
  }
  func.func @transform_3(%arg0: i32, %arg1: i32) -> (i32, i32) {
    %c0_i32 = arith.constant 0 : i32
    %c0_i32_0 = arith.constant 0 : i32
    %c0_i32_1 = arith.constant 0 : i32
    return %c0_i32, %c0_i32_0 : i32, i32
  }
  func.func @transform_4(%arg0: i32, %arg1: i32) -> (i32, i32, i32) {
    %c0_i32 = arith.constant 0 : i32
    %c0_i32_0 = arith.constant 0 : i32
    %c0_i32_1 = arith.constant 0 : i32
    %c0_i32_2 = arith.constant 0 : i32
    return %c0_i32, %c0_i32_0, %c0_i32_1 : i32, i32, i32
  }
}

module attributes {stable_mosaic.version = 11 : i64} {
  func.func @_grouped_gemm_tanh_kernel(%arg0: i32, %arg1: i32, %arg2: memref<1x1024x128xbf16, #tpu.memory_space<vmem>>, %arg3: memref<1x128x128xbf16, #tpu.memory_space<vmem>>, %arg4: memref<1x1024x128xf32, #tpu.memory_space<vmem>>) attributes {dimension_semantics = [#tpu.dimension_semantics<parallel>, #tpu.dimension_semantics<parallel>], iteration_bounds = array<i64: 4, 2>, scalar_prefetch = 0 : i64, scratch_operands = 0 : i64, tpu.core_type = #tpu.core_type<tc>, window_params = [{transform_indices = @transform_0, window_bounds = array<i64: 1, 1024, 128>}, {transform_indices = @transform_1, window_bounds = array<i64: 1, 128, 128>}, {transform_indices = @transform_2, window_bounds = array<i64: 1, 1024, 128>}]} {
    %c0 = arith.constant 0 : index
    %c0_0 = arith.constant 0 : index
    %c0_1 = arith.constant 0 : index
    %0 = vector.load %arg2[%c0, %c0_0, %c0_1] : memref<1x1024x128xbf16, #tpu.memory_space<vmem>>, vector<1x1024x128xbf16>
    %1 = vector.shape_cast %0 : vector<1x1024x128xbf16> to vector<1024x128xbf16>
    %c0_2 = arith.constant 0 : index
    %c0_3 = arith.constant 0 : index
    %c0_4 = arith.constant 0 : index
    %2 = vector.load %arg3[%c0_2, %c0_3, %c0_4] : memref<1x128x128xbf16, #tpu.memory_space<vmem>>, vector<1x128x128xbf16>
    %3 = vector.shape_cast %2 : vector<1x128x128xbf16> to vector<128x128xbf16>
    %cst = arith.constant dense<0.000000e+00> : vector<1024x128xf32>
    %4 = tpu.matmul %1, %3, %cst {dimension_numbers = #tpu.dot_dimension_numbers<[1], [0], [0], [1], [0, 0, 1, 1], [], []>} : vector<1024x128xbf16>, vector<128x128xbf16>, vector<1024x128xf32> -> vector<1024x128xf32>
    %5 = math.tanh %4 : vector<1024x128xf32>
    %c0_5 = arith.constant 0 : index
    %c0_6 = arith.constant 0 : index
    %c0_7 = arith.constant 0 : index
    %6 = vector.load %arg4[%c0_5, %c0_6, %c0_7] : memref<1x1024x128xf32, #tpu.memory_space<vmem>>, vector<1x1024x128xf32>
    %7 = vector.shape_cast %6 : vector<1x1024x128xf32> to vector<1024x128xf32>
    %8 = vector.shape_cast %5 : vector<1024x128xf32> to vector<1x1024x128xf32>
    tpu.vector_store %arg4[%c0_5, %c0_6, %c0_7], %8 {strides = array<i32>} : memref<1x1024x128xf32, #tpu.memory_space<vmem>>, vector<1x1024x128xf32>,
    return
  }
  func.func @transform_0(%arg0: i32, %arg1: i32) -> (i32, i32, i32) {
    %c0_i32 = arith.constant 0 : i32
    %c0_i32_0 = arith.constant 0 : i32
    return %arg0, %arg1, %c0_i32 : i32, i32, i32
  }
  func.func @transform_1(%arg0: i32, %arg1: i32) -> (i32, i32, i32) {
    %c0_i32 = arith.constant 0 : i32
    %c0_i32_0 = arith.constant 0 : i32
    %c0_i32_1 = arith.constant 0 : i32
    return %arg0, %c0_i32, %c0_i32_0 : i32, i32, i32
  }
  func.func @transform_2(%arg0: i32, %arg1: i32) -> (i32, i32, i32) {
    %c0_i32 = arith.constant 0 : i32
    %c0_i32_0 = arith.constant 0 : i32
    return %arg0, %arg1, %c0_i32 : i32, i32, i32
  }
}

</mosaic_0001>

<bundles_post_ra>
// kernel: generator_forward.5
= control target key start
LH: loop header
LB: loop body
LE: loop exit
PB: predicated region body
PF: predicated region fallthrough
CT: control target
= control target key end

     0   :  { %s703_s15 = smov 0   ;;  %s705_s16 = smov 0   ;;  %s850_s0 = inlined_call_operand.vmem [shape: bf16[1,8,128], index: 0, kind: input, shape index: {}]   ;;  %s851_s1 = inlined_call_operand.vmem [shape: bf16[16,128,128], index: 1, kind: input, shape index: {}]   ;;  %s852_s2 = inlined_call_operand.vmem [shape: f32[1,128], index: 2, kind: input, shape index: {}]   ;;  %s853_s3 = inlined_call_operand.vmem [shape: f32[1,128], index: 3, kind: input, shape index: {}]   ;;  %s854_s4 = inlined_call_operand.vmem [shape: f32[16,8,128], index: 4, kind: output, shape index: {}]  }
   0x1   :  { %s707_s17 = smov 0  }
   0x2 LB: > { %s26_s18 = sadd.s32 1, %s669_s16  ;;  %p536_p0 = scmp.ge.s32.totalorder %s673_s17, 1  ;;  %s673_s17 = sphi %s707_s17, %s14_s17   ;;  %s669_s16 = sphi %s705_s16, %s856_s16   ;;  %s665_s15 = sphi %s703_s15, %s855_s15  }
   0x3   : > { %p28_p1 = scmp.ge.s32.totalorder %s26_s18, 16  ;;  %p178_p2 = scmp.lt.s32.totalorder %s673_s17, 17 }
   0x5   : > { %s858_s18 = smov (%p28_p1, %s26_s18), 0  ;;  %p179_p3 = pnand %p536_p0, %p178_p2 }
   0x6   : > { %p207_p4 = scmp.lt.s32.totalorder (!%p179_p3), %s665_s15, 15  ;;  %p213_p5 = scmp.eq.s32.totalorder (!%p179_p3), %s665_s15, 0 }
   0x7   : > { %182 = sbr.rel (%p179_p3) target bundleno = 331 (0x14b), region = 36 }
   0xe   : > { %s208_s19 = scalar_select %p207_p4, %s665_s15, 15 }
   0xf   : > { %218 = sbr.rel (!%p213_p5) target bundleno = 22 (0x16), region = 40  ;;  %v675_v0 = vmov (%p213_p5), 0.0  }
  0x10   : > { %s582_s20 = sshll.u32 %s208_s19, 6  ;;  %219 = vst [vmem:[#allocation2] sm:$0x1] (%p213_p5), %v675_v0  ;;  %220 = vst [vmem:[#allocation3] sm:$0x1] (%p213_p5), %v675_v0 }
  0x11   : > { %s211_s23 = scalar_lea.vmem %s851_s1, %s582_s20 }
  0x16 PF: > { %v641_v1 = vld [vmem:[%s211_s23] sm:$0xff]   ;;  %v676_v2 = vmov 0.0   ;;  %v642_v3 = vld [vmem:[%s211_s23 + $0x8] sm:$0xff]   ;;  %vm677_vm0 = vmmov 0   ;;  %v643_v4 = vld [vmem:[%s211_s23 + $0x10] sm:$0xff]   ;;  %p350_p6 = scmp.eq.s32.totalorder %s665_s15, 15 }
  0x17   : > { %594 = vmatprep.subr.bf16.mxu0 %v676_v2  ;;  %610 = vmatprep.mubr.msk.bf16.mxu0 %vm677_vm0, %v676_v2  ;;  %v644_v5 = vld [vmem:[%s211_s23 + $0x18] sm:$0xff]   ;;  %v645_v6 = vld [vmem:[%s211_s23 + $0x20] sm:$0xff]   ;;  %v646_v7 = vld [vmem:[%s211_s23 + $0x28] sm:$0xff]   ;;  %s548_s26 = sshll.u32 %s665_s15, 3  ;;  %v371_v40 = vlaneseq (%p350_p6) }
  0x18   : > { %595 = vmatpush3.bf16.msra.mxu0 %v641_v1  ;;  %v647_v8 = vld [vmem:[%s211_s23 + $0x30] sm:$0xff]   ;;  %v648_v9 = vld [vmem:[%s211_s23 + $0x38] sm:$0xff]   ;;  %v221_v10 = vld [vmem:[%s850_s0] sm:$0xf]  ;;  %s329_s29 = scalar_lea.vmem %s854_s4, %s548_s26 }
  0x19   : > { %596 = vmatprep.subr.bf16.mxu0 %v676_v2  ;;  %v331_v25 = vld [vmem:[#allocation2] sm:$0x1]  ;;  %v340_v28 = vld [vmem:[#allocation3] sm:$0x1]  ;;  %v372_v41 = vshrl.u32 (%p350_p6), %v371_v40, 7 }
  0x1a   : > { %v362_v42 = vld [vmem:[%s852_s2] sm:$0x1] (%p350_p6) }
  0x1b   : > { %v373_v43 = vsub.s32 (%p350_p6), 0, %v372_v41  ;;  %v366_v46 = vld [vmem:[%s853_s3] sm:$0x1] (%p350_p6) }
  0x1c   : > { %597 = vmatpush3.bf16.msra.mxu0 %v642_v3 }
  0x1d   : > { %598 = vmatprep.subr.bf16.mxu0 %v676_v2 }
  0x20   : > { %599 = vmatpush3.bf16.msra.mxu0 %v643_v4 }
  0x21   : > { %600 = vmatprep.subr.bf16.mxu0 %v676_v2 }
  0x24   : > { %601 = vmatpush3.bf16.msra.mxu0 %v644_v5 }
  0x25   : > { %602 = vmatprep.subr.bf16.mxu0 %v676_v2 }
  0x28   : > { %603 = vmatpush3.bf16.msra.mxu0 %v645_v6 }
  0x29   : > { %604 = vmatprep.subr.bf16.mxu0 %v676_v2 }
  0x2c   : > { %605 = vmatpush3.bf16.msra.mxu0 %v646_v7 }
  0x2d   : > { %606 = vmatprep.subr.bf16.mxu0 %v676_v2 }
  0x30   : > { %607 = vmatpush3.bf16.msra.mxu0 %v647_v8 }
  0x31   : > { %608 = vmatprep.subr.bf16.mxu0 %v676_v2 }
  0x34   : > { %609 = vmatpush3.bf16.msra.mxu0 %v648_v9 }
  0x37   : > { %611 = vmatmul.mubr.bf16.vlgmr.msra.gmra.mrb[0].mxu0 %v221_v10 }
 0x10a   : > { %v320_v11 = vpop.f32.mrb[0].mxu0 }
 0x10b   : > { %330 = vst [vmem:[%s329_s29] sm:$0xff] %v320_v11  ;;  %v332_v12 = vrot.slane %v320_v11, 4  ;;  %v341_v13 = vmul.f32 %v320_v11, %v320_v11  ;;  %v612_v14 = vpop.f32.mrb[1].mxu0 }
 0x10c   : > { %v323_v15 = vpop.f32.mrb[2].mxu0 }
 0x10d   : > { %v333_v16 = vadd.f32 %v332_v12, %v320_v11  ;;  %v342_v17 = vrot.slane %v341_v13, 4  ;;  %v613_v18 = vpop.f32.mrb[3].mxu0 }
 0x10f   : > { %v334_v19 = vrot.slane %v333_v16, 2  ;;  %v343_v20 = vadd.f32 %v342_v17, %v341_v13 }
 0x111   : > { %v335_v21 = vadd.f32 %v334_v19, %v333_v16  ;;  %v344_v22 = vrot.slane %v343_v20, 2 }
 0x112   : > { %v369_v47 = vld [vmem:[%s854_s4] sm:$0xff] (%p350_p6)  ;;  %v550_v48 = vld [vmem:[%s854_s4 + $0x8] sm:$0xff] (%p350_p6)  ;;  %v552_v49 = vld [vmem:[%s854_s4 + $0x10] sm:$0xff] (%p350_p6) }
 0x113   : > { %v336_v23 = vrot.slane %v335_v21, 1  ;;  %v345_v24 = vadd.f32 %v344_v22, %v343_v20  ;;  %v554_v50 = vld [vmem:[%s854_s4 + $0x18] sm:$0xff] (%p350_p6)  ;;  %v556_v51 = vld [vmem:[%s854_s4 + $0x20] sm:$0xff] (%p350_p6)  ;;  %v558_v54 = vld [vmem:[%s854_s4 + $0x28] sm:$0xff] (%p350_p6) }
 0x114   : > { %v560_v55 = vld [vmem:[%s854_s4 + $0x30] sm:$0xff] (%p350_p6)  ;;  %v562_v56 = vld [vmem:[%s854_s4 + $0x38] sm:$0xff] (%p350_p6)  ;;  %v564_v57 = vld [vmem:[%s854_s4 + $0x40] sm:$0xff] (%p350_p6) }
 0x115   : > { %v337_v26 = vadd.f32 %v336_v23, %v335_v21  ;;  %v346_v27 = vrot.slane %v345_v24, 1  ;;  %354 = sbr.rel (!%p350_p6) target bundleno = 331 (0x14b), region = 44  ;;  %v566_v58 = vld [vmem:[%s854_s4 + $0x48] sm:$0xff] (%p350_p6)  ;;  %v568_v59 = vld [vmem:[%s854_s4 + $0x50] sm:$0xff] (%p350_p6)  ;;  %v570_v0 = vld [vmem:[%s854_s4 + $0x58] sm:$0xff] (%p350_p6) }
 0x116   : > { %v572_v1 = vld [vmem:[%s854_s4 + $0x60] sm:$0xff] (%p350_p6)  ;;  %v574_v2 = vld [vmem:[%s854_s4 + $0x68] sm:$0xff] (%p350_p6) }
 0x117   : > { %v338_v29 = vadd.f32 %v337_v26, %v331_v25  ;;  %v347_v30 = vadd.f32 %v346_v27, %v345_v24  ;;  %v576_v27 = vld [vmem:[%s854_s4 + $0x70] sm:$0xff] (%p350_p6) }
 0x119   : > { %339 = vst [vmem:[#allocation2] sm:$0x1] %v338_v29  ;;  %v348_v31 = vadd.f32 %v347_v30, %v340_v28  ;;  %v578_v28 = vld [vmem:[%s854_s4 + $0x78] sm:$0xff] (%p350_p6) }
 0x11b   : > { %349 = vst [vmem:[#allocation3] sm:$0x1] %v348_v31 }
 0x120   : > { %v355_v32 = vld [vmem:[#allocation2] sm:$0x1] }
 0x121   : > { %v356_v34 = vmul.f32 0.03125, %v355_v32 }
 0x122   : > { %v357_v33 = vld [vmem:[#allocation3] sm:$0x1] }
 0x123   : > { %v358_v35 = vmul.f32 0.03125, %v357_v33  ;;  %v359_v36 = vmul.f32 %v356_v34, %v356_v34 }
 0x125   : > { %v360_v37 = vsub.f32 %v358_v35, %v359_v36 }
 0x127   : > { %v361_v38 = vmax.f32 %v360_v37, 0.0 }
 0x129   : > { %v363_v39 = vadd.f32 1e-05, %v361_v38 }
 0x12b   : > { %649 = vrsqrt.f32 %v363_v39 }
 0x135   : > { %v650_v44 = vpop.eup %649 }
 0x136   : > { %v365_v45 = vmul.f32 %v650_v44, %v362_v42 }
 0x138   : > { %v367_v52 = vmul.f32 %v365_v45, %v356_v34  ;;  %v374_v53 = vrot.slane %v365_v45, %v373_v43 }
 0x13a   : > { %v368_v60 = vsub.f32 %v366_v46, %v367_v52  ;;  %v376_v61 = vmul.f32 %v374_v53, %v369_v47  ;;  %v388_v62 = vmul.f32 %v550_v48, %v374_v53  ;;  %v394_v63 = vmul.f32 %v552_v49, %v374_v53 }
 0x13b   : > { %v400_v3 = vmul.f32 %v554_v50, %v374_v53  ;;  %v406_v4 = vmul.f32 %v556_v51, %v374_v53  ;;  %v412_v5 = vmul.f32 %v558_v54, %v374_v53  ;;  %v418_v6 = vmul.f32 %v560_v55, %v374_v53 }
 0x13c   : > { %v381_v7 = vrot.slane %v368_v60, %v373_v43  ;;  %v424_v8 = vmul.f32 %v562_v56, %v374_v53  ;;  %v430_v9 = vmul.f32 %v564_v57, %v374_v53  ;;  %v436_v10 = vmul.f32 %v566_v58, %v374_v53 }
 0x13d   : > { %v442_v11 = vmul.f32 %v568_v59, %v374_v53  ;;  %v448_v12 = vmul.f32 %v570_v0, %v374_v53  ;;  %v454_v13 = vmul.f32 %v572_v1, %v374_v53  ;;  %v460_v14 = vmul.f32 %v574_v2, %v374_v53 }
 0x13e   : > { %v383_v15 = vadd.f32 %v381_v7, %v376_v61  ;;  %v389_v16 = vadd.f32 %v388_v62, %v381_v7  ;;  %v395_v17 = vadd.f32 %v394_v63, %v381_v7  ;;  %v401_v18 = vadd.f32 %v400_v3, %v381_v7 }
 0x13f   : > { %v407_v19 = vadd.f32 %v406_v4, %v381_v7  ;;  %v413_v20 = vadd.f32 %v412_v5, %v381_v7  ;;  %v419_v21 = vadd.f32 %v418_v6, %v381_v7  ;;  %v425_v22 = vadd.f32 %v424_v8, %v381_v7 }
 0x140   : > { %v384_v23 = vmax.f32 %v383_v15, 0.0  ;;  %v390_v24 = vmax.f32 %v389_v16, 0.0  ;;  %v396_v25 = vmax.f32 %v395_v17, 0.0  ;;  %v402_v26 = vmax.f32 %v401_v18, 0.0 }
 0x141   : > { %v408_v29 = vmax.f32 %v407_v19, 0.0  ;;  %v414_v30 = vmax.f32 %v413_v20, 0.0  ;;  %v420_v31 = vmax.f32 %v419_v21, 0.0  ;;  %v426_v32 = vmax.f32 %v425_v22, 0.0 }
 0x142   : > { %385 = vst [vmem:[%s854_s4] sm:$0xff] %v384_v23  ;;  %551 = vst [vmem:[%s854_s4 + $0x8] sm:$0xff] %v390_v24  ;;  %v431_v33 = vadd.f32 %v430_v9, %v381_v7  ;;  %v437_v34 = vadd.f32 %v436_v10, %v381_v7  ;;  %v443_v35 = vadd.f32 %v442_v11, %v381_v7 }
 0x143   : > { %553 = vst [vmem:[%s854_s4 + $0x10] sm:$0xff] %v396_v25  ;;  %555 = vst [vmem:[%s854_s4 + $0x18] sm:$0xff] %v402_v26  ;;  %v449_v36 = vadd.f32 %v448_v12, %v381_v7  ;;  %v455_v37 = vadd.f32 %v454_v13, %v381_v7  ;;  %v461_v38 = vadd.f32 %v460_v14, %v381_v7 }
 0x144   : > { %557 = vst [vmem:[%s854_s4 + $0x20] sm:$0xff] %v408_v29  ;;  %559 = vst [vmem:[%s854_s4 + $0x28] sm:$0xff] %v414_v30  ;;  %v466_v39 = vmul.f32 %v576_v27, %v374_v53  ;;  %v472_v40 = vmul.f32 %v578_v28, %v374_v53  ;;  %v432_v41 = vmax.f32 %v431_v33, 0.0  ;;  %v438_v42 = vmax.f32 %v437_v34, 0.0 }
 0x145   : > { %561 = vst [vmem:[%s854_s4 + $0x30] sm:$0xff] %v420_v31  ;;  %563 = vst [vmem:[%s854_s4 + $0x38] sm:$0xff] %v426_v32  ;;  %v444_v43 = vmax.f32 %v443_v35, 0.0  ;;  %v450_v44 = vmax.f32 %v449_v36, 0.0  ;;  %v456_v45 = vmax.f32 %v455_v37, 0.0  ;;  %v462_v46 = vmax.f32 %v461_v38, 0.0 }
 0x146   : > { %v467_v47 = vadd.f32 %v466_v39, %v381_v7  ;;  %v473_v48 = vadd.f32 %v472_v40, %v381_v7  ;;  %565 = vst [vmem:[%s854_s4 + $0x40] sm:$0xff] %v432_v41  ;;  %567 = vst [vmem:[%s854_s4 + $0x48] sm:$0xff] %v438_v42 }
 0x147   : > { %569 = vst [vmem:[%s854_s4 + $0x50] sm:$0xff] %v444_v43  ;;  %571 = vst [vmem:[%s854_s4 + $0x58] sm:$0xff] %v450_v44 }
 0x148   : > { %573 = vst [vmem:[%s854_s4 + $0x60] sm:$0xff] %v456_v45  ;;  %575 = vst [vmem:[%s854_s4 + $0x68] sm:$0xff] %v462_v46  ;;  %v468_v49 = vmax.f32 %v467_v47, 0.0  ;;  %v474_v50 = vmax.f32 %v473_v48, 0.0 }
 0x14a   : > { %577 = vst [vmem:[%s854_s4 + $0x70] sm:$0xff] %v468_v49  ;;  %579 = vst [vmem:[%s854_s4 + $0x78] sm:$0xff] %v474_v50 }
 0x14b PF: > { %s14_s17 = sadd.s32 1, %s673_s17   ;;  %s855_s15 = smov %s669_s16 }
 0x14c   : > { %p11_p7 = scmp.ge.s32.totalorder %s14_s17, 18   ;;  %s856_s16 = smov %s858_s18 }
 0x14e   :  { %13 = sbr.rel (!%p11_p7) target bundleno = 2 (0x2), region = 89 }

// kernel: generator_forward.6
= control target key start
LH: loop header
LB: loop body
LE: loop exit
PB: predicated region body
PF: predicated region fallthrough
CT: control target
= control target key end

     0   :  { %s859_s15 = smov 0   ;;  %s861_s16 = smov 0   ;;  %s1030_s0 = inlined_call_operand.vmem [shape: bf16[4,32,256], index: 0, kind: input, shape index: {}]   ;;  %s1031_s1 = inlined_call_operand.vmem [shape: bf16[4,256,128], index: 1, kind: input, shape index: {}]   ;;  %s1032_s2 = inlined_call_operand.vmem [shape: f32[1,128], index: 2, kind: input, shape index: {}]   ;;  %s1033_s3 = inlined_call_operand.vmem [shape: f32[1,128], index: 3, kind: input, shape index: {}]   ;;  %s1034_s4 = inlined_call_operand.vmem [shape: f32[4,32,128], index: 4, kind: output, shape index: {}]  }
   0x1   :  { %s863_s17 = smov 0  }
   0x2 LB: > { %s26_s18 = sadd.s32 1, %s827_s16  ;;  %p658_p0 = scmp.ge.s32.totalorder %s831_s17, 1  ;;  %s831_s17 = sphi %s863_s17, %s14_s17   ;;  %s827_s16 = sphi %s861_s16, %s1036_s16   ;;  %s823_s15 = sphi %s859_s15, %s1035_s15  }
   0x3   : > { %p28_p1 = scmp.ge.s32.totalorder %s26_s18, 4  ;;  %p187_p2 = scmp.lt.s32.totalorder %s831_s17, 5 }
   0x5   : > { %s1038_s18 = smov (%p28_p1, %s26_s18), 0  ;;  %p188_p3 = pnand %p658_p0, %p187_p2 }
   0x6   : > { %p219_p4 = scmp.lt.s32.totalorder (!%p188_p3), %s823_s15, 3  ;;  %p235_p5 = scmp.eq.s32.totalorder (!%p188_p3), %s823_s15, 0 }
   0x7   : > { %191 = sbr.rel (%p188_p3) target bundleno = 342 (0x156), region = 36 }
   0xe   : > { %s220_s19 = scalar_select %p219_p4, %s823_s15, 3 }
   0xf   : > { %240 = sbr.rel (!%p235_p5) target bundleno = 22 (0x16), region = 40  ;;  %v833_v0 = vmov (%p235_p5), 0.0  }
  0x10   : > { %s712_s20 = sshll.u32 %s220_s19, 5  ;;  %s713_s21 = sshll.u32 %s220_s19, 7  ;;  %241 = vst [vmem:[#allocation2] sm:$0x1] (%p235_p5), %v833_v0  ;;  %242 = vst [vmem:[#allocation3] sm:$0x1] (%p235_p5), %v833_v0 }
  0x11   : > { %s885_s24 = scalar_lea.vmem %s1030_s0, %s712_s20  ;;  %s890_s27 = scalar_lea.vmem %s1031_s1, %s713_s21 }
  0x16 PF: > { %v785_v1 = vld [vmem:[%s890_s27 + $0x40] sm:$0xff]   ;;  %v787_v3 = vld [vmem:[%s890_s27 + $0x48] sm:$0xff]   ;;  %v789_v5 = vld [vmem:[%s890_s27 + $0x50] sm:$0xff]   ;;  %p480_p6 = scmp.eq.s32.totalorder %s823_s15, 3  ;;  %s684_s28 = sshll.u32 %s823_s15, 5 }
  0x17   : > { %v786_v2 = vld [vmem:[%s890_s27] sm:$0xff]   ;;  %716 = vmatprep.subr.bf16.mxu0 %v785_v1  ;;  %744 = vmatprep.subr.bf16.mxu1 %v785_v1  ;;  %v788_v4 = vld [vmem:[%s890_s27 + $0x8] sm:$0xff]   ;;  %v790_v6 = vld [vmem:[%s890_s27 + $0x10] sm:$0xff]   ;;  %s447_s5 = scalar_lea.vmem %s1034_s4, %s684_s28 }
  0x18   : > { %717 = vmatpush3.bf16.msra.mxu0 %v786_v2  ;;  %752 = vmatpush3.bf16.msra.mxu1 %v786_v2  ;;  %v791_v7 = vld [vmem:[%s890_s27 + $0x58] sm:$0xff]   ;;  %v793_v9 = vld [vmem:[%s890_s27 + $0x60] sm:$0xff]   ;;  %v795_v11 = vld [vmem:[%s890_s27 + $0x68] sm:$0xff]  }
  0x19   : > { %718 = vmatprep.subr.bf16.mxu0 %v787_v3  ;;  %745 = vmatprep.subr.bf16.mxu1 %v787_v3  ;;  %v792_v8 = vld [vmem:[%s890_s27 + $0x18] sm:$0xff]   ;;  %v794_v10 = vld [vmem:[%s890_s27 + $0x20] sm:$0xff]   ;;  %v796_v14 = vld [vmem:[%s890_s27 + $0x28] sm:$0xff]   ;;  %v504_v3 = vlaneseq (%p480_p6) }
  0x1a   : > { %v803_v12 = vld [vmem:[%s885_s24 + $0x4] ss:$8 sps:$4 sm:$0xff]   ;;  %v806_v13 = vld [vmem:[%s885_s24 + $0x14] ss:$8 sps:$4 sm:$0xff]   ;;  %v801_v19 = vld [vmem:[%s885_s24] ss:$8 sps:$4 sm:$0xff]  }
  0x1b   : > { %v797_v15 = vld [vmem:[%s890_s27 + $0x70] sm:$0xff]   ;;  %427 = vmatprep.mubr.bf16.mxu0 %v803_v12  ;;  %435 = vmatprep.mubr.bf16.mxu1 %v806_v13  ;;  %v799_v17 = vld [vmem:[%s890_s27 + $0x78] sm:$0xff]   ;;  %v452_v52 = vld [vmem:[#allocation2] sm:$0x1] }
  0x1c   : > { %719 = vmatpush3.bf16.msra.mxu0 %v788_v4  ;;  %753 = vmatpush3.bf16.msra.mxu1 %v788_v4  ;;  %v798_v16 = vld [vmem:[%s890_s27 + $0x30] sm:$0xff]   ;;  %v800_v18 = vld [vmem:[%s890_s27 + $0x38] sm:$0xff]   ;;  %v464_v55 = vld [vmem:[#allocation3] sm:$0x1]  ;;  %v505_v4 = vshrl.u32 (%p480_p6), %v504_v3, 7 }
  0x1d   : > { %720 = vmatprep.subr.bf16.mxu0 %v789_v5  ;;  %746 = vmatprep.subr.bf16.mxu1 %v789_v5  ;;  %v804_v20 = vld [vmem:[%s885_s24 + $0x10] ss:$8 sps:$4 sm:$0xff]   ;;  %v492_v5 = vld [vmem:[%s1032_s2] sm:$0x1] (%p480_p6) }
  0x20   : > { %721 = vmatpush3.bf16.msra.mxu0 %v790_v6  ;;  %754 = vmatpush3.bf16.msra.mxu1 %v790_v6  ;;  %v506_v6 = vsub.s32 (%p480_p6), 0, %v505_v4 }
  0x21   : > { %722 = vmatprep.subr.bf16.mxu0 %v791_v7  ;;  %747 = vmatprep.subr.bf16.mxu1 %v791_v7 }
  0x24   : > { %723 = vmatpush3.bf16.msra.mxu0 %v792_v8  ;;  %755 = vmatpush3.bf16.msra.mxu1 %v792_v8 }
  0x25   : > { %724 = vmatprep.subr.bf16.mxu0 %v793_v9  ;;  %748 = vmatprep.subr.bf16.mxu1 %v793_v9  ;;  %v496_v9 = vld [vmem:[%s1033_s3] sm:$0x1] (%p480_p6) }
  0x28   : > { %725 = vmatpush3.bf16.msra.mxu0 %v794_v10  ;;  %756 = vmatpush3.bf16.msra.mxu1 %v794_v10 }
  0x29   : > { %726 = vmatprep.subr.bf16.mxu0 %v795_v11  ;;  %749 = vmatprep.subr.bf16.mxu1 %v795_v11 }
  0x2c   : > { %727 = vmatpush3.bf16.msra.mxu0 %v796_v14  ;;  %757 = vmatpush3.bf16.msra.mxu1 %v796_v14 }
  0x2d   : > { %728 = vmatprep.subr.bf16.mxu0 %v797_v15  ;;  %750 = vmatprep.subr.bf16.mxu1 %v797_v15 }
  0x30   : > { %729 = vmatpush3.bf16.msra.mxu0 %v798_v16  ;;  %758 = vmatpush3.bf16.msra.mxu1 %v798_v16 }
  0x31   : > { %730 = vmatprep.subr.bf16.mxu0 %v799_v17  ;;  %751 = vmatprep.subr.bf16.mxu1 %v799_v17 }
  0x34   : > { %731 = vmatpush3.bf16.msra.mxu0 %v800_v18  ;;  %759 = vmatpush3.bf16.msra.mxu1 %v800_v18 }
  0x37   : > { %428 = vmatmul.mubr.bf16.vlgmr.msra.gmra.mrb[0].mxu0 %v801_v19  ;;  %436 = vmatmul.mubr.bf16.vlgmr.msra.gmra.mrb[0].mxu1 %v804_v20 }
 0x10a   : > { %v732_v21 = vpop.f32.mrb[0].mxu0  ;;  %v738_v22 = vpop.f32.mrb[0].mxu1 }
 0x10b   : > { %v733_v23 = vpop.f32.mrb[1].mxu0  ;;  %v739_v24 = vpop.f32.mrb[1].mxu1 }
 0x10c   : > { %v734_v25 = vadd.f32 %v733_v23, %v732_v21  ;;  %v735_v26 = vpop.f32.mrb[2].mxu0  ;;  %v740_v27 = vadd.f32 %v739_v24, %v738_v22  ;;  %v741_v28 = vpop.f32.mrb[2].mxu1 }
 0x10d   : > { %v736_v29 = vpop.f32.mrb[3].mxu0  ;;  %v742_v30 = vpop.f32.mrb[3].mxu1 }
 0x10e   : > { %448 = vst [vmem:[%s447_s5] sm:$0xff] %v734_v25  ;;  %450 = vst [vmem:[%s447_s5 + $0x10] sm:$0xff] %v740_v27  ;;  %v737_v31 = vadd.f32 %v736_v29, %v735_v26  ;;  %v743_v32 = vadd.f32 %v742_v30, %v741_v28  ;;  %v465_v33 = vmul.f32 %v734_v25, %v734_v25 }
 0x10f   : > { %v467_v34 = vmul.f32 %v740_v27, %v740_v27 }
 0x110   : > { %449 = vst [vmem:[%s447_s5 + $0x8] sm:$0xff] %v737_v31  ;;  %v453_v35 = vadd.f32 %v737_v31, %v734_v25  ;;  %v466_v36 = vmul.f32 %v737_v31, %v737_v31  ;;  %451 = vst [vmem:[%s447_s5 + $0x18] sm:$0xff] %v743_v32  ;;  %v468_v40 = vmul.f32 %v743_v32, %v743_v32 }
 0x112   : > { %v469_v37 = vadd.f32 %v466_v36, %v465_v33  ;;  %v454_v38 = vadd.f32 %v740_v27, %v453_v35 }
 0x114   : > { %v455_v39 = vadd.f32 %v743_v32, %v454_v38  ;;  %v470_v41 = vadd.f32 %v469_v37, %v467_v34 }
 0x116   : > { %v456_v42 = vrot.slane %v455_v39, 4  ;;  %v471_v43 = vadd.f32 %v470_v41, %v468_v40 }
 0x117   : > { %v499_v10 = vld [vmem:[%s1034_s4] sm:$0xff] (%p480_p6)  ;;  %v500_v11 = vld [vmem:[%s1034_s4 + $0x8] sm:$0xff] (%p480_p6)  ;;  %v501_v12 = vld [vmem:[%s1034_s4 + $0x10] sm:$0xff] (%p480_p6) }
 0x118   : > { %v457_v44 = vadd.f32 %v456_v42, %v455_v39  ;;  %v472_v45 = vrot.slane %v471_v43, 4  ;;  %v502_v13 = vld [vmem:[%s1034_s4 + $0x18] sm:$0xff] (%p480_p6)  ;;  %v686_v14 = vld [vmem:[%s1034_s4 + $0x20] sm:$0xff] (%p480_p6)  ;;  %v687_v17 = vld [vmem:[%s1034_s4 + $0x28] sm:$0xff] (%p480_p6) }
 0x119   : > { %v688_v18 = vld [vmem:[%s1034_s4 + $0x30] sm:$0xff] (%p480_p6)  ;;  %v689_v19 = vld [vmem:[%s1034_s4 + $0x38] sm:$0xff] (%p480_p6)  ;;  %v694_v20 = vld [vmem:[%s1034_s4 + $0x40] sm:$0xff] (%p480_p6) }
 0x11a   : > { %v458_v46 = vrot.slane %v457_v44, 2  ;;  %v473_v47 = vadd.f32 %v472_v45, %v471_v43  ;;  %v695_v21 = vld [vmem:[%s1034_s4 + $0x48] sm:$0xff] (%p480_p6)  ;;  %v696_v22 = vld [vmem:[%s1034_s4 + $0x50] sm:$0xff] (%p480_p6)  ;;  %v697_v27 = vld [vmem:[%s1034_s4 + $0x58] sm:$0xff] (%p480_p6) }
 0x11b   : > { %v702_v28 = vld [vmem:[%s1034_s4 + $0x60] sm:$0xff] (%p480_p6)  ;;  %v703_v29 = vld [vmem:[%s1034_s4 + $0x68] sm:$0xff] (%p480_p6) }
 0x11c   : > { %v459_v48 = vadd.f32 %v458_v46, %v457_v44  ;;  %v474_v49 = vrot.slane %v473_v47, 2 }
 0x11e   : > { %v460_v50 = vrot.slane %v459_v48, 1  ;;  %v475_v51 = vadd.f32 %v474_v49, %v473_v47 }
 0x120   : > { %v461_v53 = vadd.f32 %v460_v50, %v459_v48  ;;  %v476_v54 = vrot.slane %v475_v51, 1  ;;  %484 = sbr.rel (!%p480_p6) target bundleno = 342 (0x156), region = 44 }
 0x122   : > { %v462_v56 = vadd.f32 %v461_v53, %v452_v52  ;;  %v477_v57 = vadd.f32 %v476_v54, %v475_v51  ;;  %v704_v54 = vld [vmem:[%s1034_s4 + $0x70] sm:$0xff] (%p480_p6) }
 0x124   : > { %463 = vst [vmem:[#allocation2] sm:$0x1] %v462_v56  ;;  %v478_v58 = vadd.f32 %v477_v57, %v464_v55  ;;  %v705_v55 = vld [vmem:[%s1034_s4 + $0x78] sm:$0xff] (%p480_p6) }
 0x126   : > { %479 = vst [vmem:[#allocation3] sm:$0x1] %v478_v58 }
 0x12b   : > { %v485_v59 = vld [vmem:[#allocation2] sm:$0x1] }
 0x12c   : > { %v486_v61 = vmul.f32 0.0078125, %v485_v59 }
 0x12d   : > { %v487_v60 = vld [vmem:[#allocation3] sm:$0x1] }
 0x12e   : > { %v488_v62 = vmul.f32 0.0078125, %v487_v60  ;;  %v489_v63 = vmul.f32 %v486_v61, %v486_v61 }
 0x130   : > { %v490_v0 = vsub.f32 %v488_v62, %v489_v63 }
 0x132   : > { %v491_v1 = vmax.f32 %v490_v0, 0.0 }
 0x134   : > { %v493_v2 = vadd.f32 1e-05, %v491_v1 }
 0x136   : > { %807 = vrsqrt.f32 %v493_v2 }
 0x140   : > { %v808_v7 = vpop.eup %807 }
 0x141   : > { %v495_v8 = vmul.f32 %v808_v7, %v492_v5 }
 0x143   : > { %v497_v15 = vmul.f32 %v495_v8, %v486_v61  ;;  %v507_v16 = vrot.slane %v495_v8, %v506_v6 }
 0x145   : > { %v498_v23 = vsub.f32 %v496_v9, %v497_v15  ;;  %v509_v24 = vmul.f32 %v507_v16, %v499_v10  ;;  %v510_v25 = vmul.f32 %v507_v16, %v500_v11  ;;  %v511_v26 = vmul.f32 %v507_v16, %v501_v12 }
 0x146   : > { %v512_v30 = vmul.f32 %v507_v16, %v502_v13  ;;  %v536_v31 = vmul.f32 %v686_v14, %v507_v16  ;;  %v537_v32 = vmul.f32 %v687_v17, %v507_v16  ;;  %v538_v33 = vmul.f32 %v688_v18, %v507_v16 }
 0x147   : > { %v517_v34 = vrot.slane %v498_v23, %v506_v6  ;;  %v539_v35 = vmul.f32 %v689_v19, %v507_v16  ;;  %v557_v36 = vmul.f32 %v694_v20, %v507_v16  ;;  %v558_v37 = vmul.f32 %v695_v21, %v507_v16 }
 0x148   : > { %v559_v38 = vmul.f32 %v696_v22, %v507_v16  ;;  %v560_v39 = vmul.f32 %v697_v27, %v507_v16  ;;  %v578_v40 = vmul.f32 %v702_v28, %v507_v16  ;;  %v579_v41 = vmul.f32 %v703_v29, %v507_v16 }
 0x149   : > { %v519_v42 = vadd.f32 %v517_v34, %v509_v24  ;;  %v520_v43 = vadd.f32 %v517_v34, %v510_v25  ;;  %v521_v44 = vadd.f32 %v517_v34, %v511_v26  ;;  %v522_v45 = vadd.f32 %v517_v34, %v512_v30 }
 0x14a   : > { %v540_v46 = vadd.f32 %v536_v31, %v517_v34  ;;  %v541_v47 = vadd.f32 %v537_v32, %v517_v34  ;;  %v542_v48 = vadd.f32 %v538_v33, %v517_v34  ;;  %v543_v49 = vadd.f32 %v539_v35, %v517_v34 }
 0x14b   : > { %v523_v50 = vmax.f32 %v519_v42, 0.0  ;;  %v524_v51 = vmax.f32 %v520_v43, 0.0  ;;  %v525_v52 = vmax.f32 %v521_v44, 0.0  ;;  %v526_v53 = vmax.f32 %v522_v45, 0.0 }
 0x14c   : > { %v544_v56 = vmax.f32 %v540_v46, 0.0  ;;  %v545_v57 = vmax.f32 %v541_v47, 0.0  ;;  %v546_v58 = vmax.f32 %v542_v48, 0.0  ;;  %v547_v59 = vmax.f32 %v543_v49, 0.0 }
 0x14d   : > { %527 = vst [vmem:[%s1034_s4] sm:$0xff] %v523_v50  ;;  %528 = vst [vmem:[%s1034_s4 + $0x8] sm:$0xff] %v524_v51  ;;  %v561_v60 = vadd.f32 %v557_v36, %v517_v34  ;;  %v562_v61 = vadd.f32 %v558_v37, %v517_v34  ;;  %v563_v62 = vadd.f32 %v559_v38, %v517_v34 }
 0x14e   : > { %529 = vst [vmem:[%s1034_s4 + $0x10] sm:$0xff] %v525_v52  ;;  %530 = vst [vmem:[%s1034_s4 + $0x18] sm:$0xff] %v526_v53  ;;  %v564_v63 = vadd.f32 %v560_v39, %v517_v34  ;;  %v582_v0 = vadd.f32 %v578_v40, %v517_v34  ;;  %v583_v1 = vadd.f32 %v579_v41, %v517_v34 }
 0x14f   : > { %690 = vst [vmem:[%s1034_s4 + $0x20] sm:$0xff] %v544_v56  ;;  %691 = vst [vmem:[%s1034_s4 + $0x28] sm:$0xff] %v545_v57  ;;  %v580_v2 = vmul.f32 %v704_v54, %v507_v16  ;;  %v581_v3 = vmul.f32 %v705_v55, %v507_v16  ;;  %v565_v4 = vmax.f32 %v561_v60, 0.0  ;;  %v566_v5 = vmax.f32 %v562_v61, 0.0 }
 0x150   : > { %692 = vst [vmem:[%s1034_s4 + $0x30] sm:$0xff] %v546_v58  ;;  %693 = vst [vmem:[%s1034_s4 + $0x38] sm:$0xff] %v547_v59  ;;  %v567_v6 = vmax.f32 %v563_v62, 0.0  ;;  %v568_v7 = vmax.f32 %v564_v63, 0.0  ;;  %v586_v8 = vmax.f32 %v582_v0, 0.0  ;;  %v587_v9 = vmax.f32 %v583_v1, 0.0 }
 0x151   : > { %v584_v10 = vadd.f32 %v580_v2, %v517_v34  ;;  %v585_v11 = vadd.f32 %v581_v3, %v517_v34  ;;  %698 = vst [vmem:[%s1034_s4 + $0x40] sm:$0xff] %v565_v4  ;;  %699 = vst [vmem:[%s1034_s4 + $0x48] sm:$0xff] %v566_v5 }
 0x152   : > { %700 = vst [vmem:[%s1034_s4 + $0x50] sm:$0xff] %v567_v6  ;;  %701 = vst [vmem:[%s1034_s4 + $0x58] sm:$0xff] %v568_v7 }
 0x153   : > { %706 = vst [vmem:[%s1034_s4 + $0x60] sm:$0xff] %v586_v8  ;;  %707 = vst [vmem:[%s1034_s4 + $0x68] sm:$0xff] %v587_v9  ;;  %v588_v12 = vmax.f32 %v584_v10, 0.0  ;;  %v589_v13 = vmax.f32 %v585_v11, 0.0 }
 0x155   : > { %708 = vst [vmem:[%s1034_s4 + $0x70] sm:$0xff] %v588_v12  ;;  %709 = vst [vmem:[%s1034_s4 + $0x78] sm:$0xff] %v589_v13 }
 0x156 PF: > { %s14_s17 = sadd.s32 1, %s831_s17   ;;  %s1035_s15 = smov %s827_s16 }
 0x157   : > { %p11_p7 = scmp.ge.s32.totalorder %s14_s17, 6   ;;  %s1036_s16 = smov %s1038_s18 }
 0x159   :  { %13 = sbr.rel (!%p11_p7) target bundleno = 2 (0x2), region = 77 }

// kernel: generator_forward.7
= control target key start
LH: loop header
LB: loop body
LE: loop exit
PB: predicated region body
PF: predicated region fallthrough
CT: control target
= control target key end

     0   :  { %s1247_s15 = smov 0   ;;  %s1249_s16 = smov 0   ;;  %s1852_s0 = inlined_call_operand.vmem [shape: bf16[4,128,128], index: 0, kind: input, shape index: {}]   ;;  %s1853_s1 = inlined_call_operand.vmem [shape: bf16[4,128,128], index: 1, kind: input, shape index: {}]   ;;  %s1854_s2 = inlined_call_operand.vmem [shape: f32[1,128], index: 2, kind: input, shape index: {}]   ;;  %s1855_s3 = inlined_call_operand.vmem [shape: f32[1,128], index: 3, kind: input, shape index: {}]   ;;  %s1856_s4 = inlined_call_operand.vmem [shape: f32[4,128,128], index: 4, kind: output, shape index: {}]  }
   0x1   :  { %s1251_s17 = smov 0  }
   0x2 LB: > { %s26_s18 = sadd.s32 1, %s1215_s16  ;;  %p964_p0 = scmp.ge.s32.totalorder %s1219_s17, 1  ;;  %s1219_s17 = sphi %s1251_s17, %s14_s17   ;;  %s1215_s16 = sphi %s1249_s16, %s1858_s16   ;;  %s1211_s15 = sphi %s1247_s15, %s1857_s15  }
   0x3   : > { %p28_p1 = scmp.ge.s32.totalorder %s26_s18, 4  ;;  %p186_p2 = scmp.lt.s32.totalorder %s1219_s17, 5 }
   0x5   : > { %s1860_s18 = smov (%p28_p1, %s26_s18), 0  ;;  %p187_p3 = pnand %p964_p0, %p186_p2 }
   0x6   : > { %p217_p4 = scmp.lt.s32.totalorder (!%p187_p3), %s1211_s15, 3  ;;  %p232_p5 = scmp.eq.s32.totalorder (!%p187_p3), %s1211_s15, 0 }
   0x7   : > { %190 = sbr.rel (%p187_p3) target bundleno = 401 (0x191), region = 36 }
   0xe   : > { %s218_s19 = scalar_select %p217_p4, %s1211_s15, 3 }
   0xf   : > { %237 = sbr.rel (!%p232_p5) target bundleno = 22 (0x16), region = 40  ;;  %v1221_v0 = vmov (%p232_p5), 0.0  }
  0x10   : > { %s1086_s20 = sshll.u32 %s218_s19, 6  ;;  %238 = vst [vmem:[#allocation2] sm:$0x1] (%p232_p5), %v1221_v0  ;;  %239 = vst [vmem:[#allocation3] sm:$0x1] (%p232_p5), %v1221_v0 }
  0x11   : > { %s1273_s23 = scalar_lea.vmem %s1852_s0, %s1086_s20  ;;  %s1278_s26 = scalar_lea.vmem %s1853_s1, %s1086_s20 }
  0x16 PF: > { %v1179_v1 = vld [vmem:[%s1278_s26] sm:$0xff]   ;;  %v1180_v2 = vld [vmem:[%s1278_s26 + $0x8] sm:$0xff]   ;;  %v1181_v3 = vld [vmem:[%s1278_s26 + $0x10] sm:$0xff]   ;;  %p549_p6 = scmp.eq.s32.totalorder %s1211_s15, 3  ;;  %s986_s27 = sshll.u32 %s1211_s15, 7 }
  0x17   : > { %1106 = vmatprep.subr.bf16.mxu0 %v1179_v1  ;;  %1138 = vmatprep.subr.bf16.mxu1 %v1179_v1  ;;  %v1182_v4 = vld [vmem:[%s1278_s26 + $0x18] sm:$0xff]   ;;  %v1187_v5 = vld [vmem:[%s1273_s23] sm:$0xff]   ;;  %v1184_v8 = vld [vmem:[%s1278_s26 + $0x28] sm:$0xff]   ;;  %s1301_s30 = scalar_lea.vmem %s1856_s4, %s986_s27 }
  0x18   : > { %1107 = vmatpush3.bf16.msra.mxu0 %v1179_v1  ;;  %1146 = vmatpush3.bf16.msra.mxu1 %v1179_v1  ;;  %v1183_v6 = vld [vmem:[%s1278_s26 + $0x20] sm:$0xff]   ;;  %v1185_v9 = vld [vmem:[%s1278_s26 + $0x30] sm:$0xff]   ;;  %v1186_v10 = vld [vmem:[%s1278_s26 + $0x38] sm:$0xff]  }
  0x19   : > { %1108 = vmatprep.subr.bf16.mxu0 %v1180_v2  ;;  %1139 = vmatprep.subr.bf16.mxu1 %v1180_v2  ;;  %v1191_v7 = vld [vmem:[%s1273_s23 + $0x20] sm:$0xff]   ;;  %v1188_v11 = vld [vmem:[%s1273_s23 + $0x8] sm:$0xff]   ;;  %v1189_v13 = vld [vmem:[%s1273_s23 + $0x10] sm:$0xff]  }
  0x1a   : > { %1122 = vmatprep.mubr.bf16.mxu0 %v1187_v5  ;;  %1130 = vmatprep.mubr.bf16.mxu1 %v1191_v7  ;;  %v1192_v12 = vld [vmem:[%s1273_s23 + $0x28] sm:$0xff]   ;;  %v1193_v14 = vld [vmem:[%s1273_s23 + $0x30] sm:$0xff]   ;;  %v1190_v15 = vld [vmem:[%s1273_s23 + $0x18] sm:$0xff]  }
  0x1b   : > { %v1194_v16 = vld [vmem:[%s1273_s23 + $0x38] sm:$0xff]  }
  0x1c   : > { %1109 = vmatpush3.bf16.msra.mxu0 %v1180_v2  ;;  %1147 = vmatpush3.bf16.msra.mxu1 %v1180_v2 }
  0x1d   : > { %1110 = vmatprep.subr.bf16.mxu0 %v1181_v3  ;;  %1140 = vmatprep.subr.bf16.mxu1 %v1181_v3 }
  0x20   : > { %1111 = vmatpush3.bf16.msra.mxu0 %v1181_v3  ;;  %1148 = vmatpush3.bf16.msra.mxu1 %v1181_v3 }
  0x21   : > { %1112 = vmatprep.subr.bf16.mxu0 %v1182_v4  ;;  %1141 = vmatprep.subr.bf16.mxu1 %v1182_v4 }
  0x24   : > { %1113 = vmatpush3.bf16.msra.mxu0 %v1182_v4  ;;  %1149 = vmatpush3.bf16.msra.mxu1 %v1182_v4 }
  0x25   : > { %1114 = vmatprep.subr.bf16.mxu0 %v1183_v6  ;;  %1142 = vmatprep.subr.bf16.mxu1 %v1183_v6 }
  0x28   : > { %1115 = vmatpush3.bf16.msra.mxu0 %v1183_v6  ;;  %1150 = vmatpush3.bf16.msra.mxu1 %v1183_v6 }
  0x29   : > { %1116 = vmatprep.subr.bf16.mxu0 %v1184_v8  ;;  %1143 = vmatprep.subr.bf16.mxu1 %v1184_v8 }
  0x2c   : > { %1117 = vmatpush3.bf16.msra.mxu0 %v1184_v8  ;;  %1151 = vmatpush3.bf16.msra.mxu1 %v1184_v8 }
  0x2d   : > { %1118 = vmatprep.subr.bf16.mxu0 %v1185_v9  ;;  %1144 = vmatprep.subr.bf16.mxu1 %v1185_v9 }
  0x30   : > { %1119 = vmatpush3.bf16.msra.mxu0 %v1185_v9  ;;  %1152 = vmatpush3.bf16.msra.mxu1 %v1185_v9 }
  0x31   : > { %1120 = vmatprep.subr.bf16.mxu0 %v1186_v10  ;;  %1145 = vmatprep.subr.bf16.mxu1 %v1186_v10 }
  0x34   : > { %1121 = vmatpush3.bf16.msra.mxu0 %v1186_v10  ;;  %1153 = vmatpush3.bf16.msra.mxu1 %v1186_v10 }
  0x37   : > { %1123 = vmatmul.mubr.bf16.vlgmr.msra.gmra.mrb[0].mxu0 %v1188_v11  ;;  %1131 = vmatmul.mubr.bf16.vlgmr.msra.gmra.mrb[0].mxu1 %v1192_v12 }
  0x38   : > { %1126 = vmatprep.mubr.bf16.mxu0 %v1189_v13  ;;  %1134 = vmatprep.mubr.bf16.mxu1 %v1193_v14 }
  0x3f   : > { %1127 = vmatmul.mubr.bf16.gmra.mrb[4].mxu0 %v1190_v15  ;;  %1135 = vmatmul.mubr.bf16.gmra.mrb[4].mxu1 %v1194_v16 }
 0x10a   : > { %v1124_v17 = vpop.f32.mrb[0].mxu0  ;;  %v1132_v18 = vpop.f32.mrb[0].mxu1 }
 0x10b   : > { %471 = vst [vmem:[%s1301_s30 + $0x10] sm:$0xff] %v1124_v17  ;;  %v402_v19 = vpop.f32.mrb[1].mxu0  ;;  %479 = vst [vmem:[%s1301_s30 + $0x50] sm:$0xff] %v1132_v18  ;;  %v434_v20 = vpop.f32.mrb[1].mxu1  ;;  %v512_v28 = vmul.f32 %v1124_v17, %v1124_v17  ;;  %v520_v60 = vmul.f32 %v1132_v18, %v1132_v18 }
 0x10c   : > { %469 = vst [vmem:[%s1301_s30] sm:$0xff] %v402_v19  ;;  %v1125_v21 = vpop.f32.mrb[2].mxu0  ;;  %477 = vst [vmem:[%s1301_s30 + $0x40] sm:$0xff] %v434_v20  ;;  %v1133_v22 = vpop.f32.mrb[2].mxu1  ;;  %v510_v25 = vmul.f32 %v402_v19, %v402_v19  ;;  %v518_v54 = vmul.f32 %v434_v20, %v434_v20 }
 0x10d   : > { %472 = vst [vmem:[%s1301_s30 + $0x18] sm:$0xff] %v1125_v21  ;;  %v405_v23 = vpop.f32.mrb[3].mxu0  ;;  %480 = vst [vmem:[%s1301_s30 + $0x58] sm:$0xff] %v1133_v22  ;;  %v437_v24 = vpop.f32.mrb[3].mxu1  ;;  %v513_v31 = vmul.f32 %v1125_v21, %v1125_v21  ;;  %v521_v63 = vmul.f32 %v1133_v22, %v1133_v22 }
 0x10e   : > { %470 = vst [vmem:[%s1301_s30 + $0x8] sm:$0xff] %v405_v23  ;;  %v486_v26 = vadd.f32 %v405_v23, %v402_v19  ;;  %v511_v27 = vmul.f32 %v405_v23, %v405_v23  ;;  %478 = vst [vmem:[%s1301_s30 + $0x48] sm:$0xff] %v437_v24  ;;  %v519_v59 = vmul.f32 %v437_v24, %v437_v24 }
 0x110   : > { %v487_v29 = vadd.f32 %v1124_v17, %v486_v26  ;;  %v526_v30 = vadd.f32 %v511_v27, %v510_v25  ;;  %v509_v27 = vld [vmem:[#allocation3] sm:$0x1] }
 0x112   : > { %v527_v32 = vadd.f32 %v526_v30, %v512_v28  ;;  %v1128_v33 = vpop.f32.mrb[4].mxu0  ;;  %v488_v34 = vadd.f32 %v1125_v21, %v487_v29  ;;  %v1136_v35 = vpop.f32.mrb[4].mxu1 }
 0x113   : > { %475 = vst [vmem:[%s1301_s30 + $0x30] sm:$0xff] %v1128_v33  ;;  %v418_v36 = vpop.f32.mrb[5].mxu0  ;;  %483 = vst [vmem:[%s1301_s30 + $0x70] sm:$0xff] %v1136_v35  ;;  %v450_v37 = vpop.f32.mrb[5].mxu1  ;;  %v516_v48 = vmul.f32 %v1128_v33, %v1128_v33  ;;  %v524_v8 = vmul.f32 %v1136_v35, %v1136_v35 }
 0x114   : > { %473 = vst [vmem:[%s1301_s30 + $0x20] sm:$0xff] %v418_v36  ;;  %v489_v38 = vadd.f32 %v488_v34, %v418_v36  ;;  %v514_v39 = vmul.f32 %v418_v36, %v418_v36  ;;  %v528_v40 = vadd.f32 %v527_v32, %v513_v31  ;;  %v1129_v41 = vpop.f32.mrb[6].mxu0  ;;  %481 = vst [vmem:[%s1301_s30 + $0x60] sm:$0xff] %v450_v37  ;;  %v1137_v42 = vpop.f32.mrb[6].mxu1 }
 0x115   : > { %476 = vst [vmem:[%s1301_s30 + $0x38] sm:$0xff] %v1129_v41  ;;  %v421_v43 = vpop.f32.mrb[7].mxu0  ;;  %484 = vst [vmem:[%s1301_s30 + $0x78] sm:$0xff] %v1137_v42  ;;  %v453_v44 = vpop.f32.mrb[7].mxu1  ;;  %v517_v51 = vmul.f32 %v1129_v41, %v1129_v41  ;;  %v522_v2 = vmul.f32 %v450_v37, %v450_v37  ;;  %v525_v11 = vmul.f32 %v1137_v42, %v1137_v42 }
 0x116   : > { %v529_v45 = vadd.f32 %v528_v40, %v514_v39  ;;  %474 = vst [vmem:[%s1301_s30 + $0x28] sm:$0xff] %v421_v43  ;;  %v490_v46 = vadd.f32 %v489_v38, %v421_v43  ;;  %v515_v47 = vmul.f32 %v421_v43, %v421_v43  ;;  %482 = vst [vmem:[%s1301_s30 + $0x68] sm:$0xff] %v453_v44  ;;  %v585_v39 = vlaneseq (%p549_p6) }
 0x117   : > { %v523_v7 = vmul.f32 %v453_v44, %v453_v44 }
 0x118   : > { %v491_v49 = vadd.f32 %v1128_v33, %v490_v46  ;;  %v530_v50 = vadd.f32 %v529_v45, %v515_v47  ;;  %v586_v40 = vshrl.u32 (%p549_p6), %v585_v39, 7  ;;  %v565_v45 = vld [vmem:[%s1855_s3] sm:$0x1] (%p549_p6) }
 0x11a   : > { %v531_v52 = vadd.f32 %v530_v50, %v516_v48  ;;  %v492_v53 = vadd.f32 %v1129_v41, %v491_v49  ;;  %v561_v41 = vld [vmem:[%s1854_s2] sm:$0x1] (%p549_p6) }
 0x11c   : > { %v493_v55 = vadd.f32 %v492_v53, %v434_v20  ;;  %v532_v56 = vadd.f32 %v531_v52, %v517_v51 }
 0x11d   : > { %v568_v46 = vld [vmem:[%s1856_s4] sm:$0xff] (%p549_p6)  ;;  %v569_v47 = vld [vmem:[%s1856_s4 + $0x8] sm:$0xff] (%p549_p6)  ;;  %v570_v48 = vld [vmem:[%s1856_s4 + $0x10] sm:$0xff] (%p549_p6) }
 0x11e   : > { %v533_v57 = vadd.f32 %v532_v56, %v518_v54  ;;  %v494_v58 = vadd.f32 %v493_v55, %v437_v24  ;;  %v485_v24 = vld [vmem:[#allocation2] sm:$0x1]  ;;  %v571_v49 = vld [vmem:[%s1856_s4 + $0x18] sm:$0xff] (%p549_p6)  ;;  %v573_v53 = vld [vmem:[%s1856_s4 + $0x28] sm:$0xff] (%p549_p6) }
 0x11f   : > { %v572_v50 = vld [vmem:[%s1856_s4 + $0x20] sm:$0xff] (%p549_p6)  ;;  %v574_v54 = vld [vmem:[%s1856_s4 + $0x30] sm:$0xff] (%p549_p6)  ;;  %v575_v55 = vld [vmem:[%s1856_s4 + $0x38] sm:$0xff] (%p549_p6) }
 0x120   : > { %v495_v61 = vadd.f32 %v1132_v18, %v494_v58  ;;  %v534_v62 = vadd.f32 %v533_v57, %v519_v59  ;;  %v576_v56 = vld [vmem:[%s1856_s4 + $0x40] sm:$0xff] (%p549_p6)  ;;  %v577_v57 = vld [vmem:[%s1856_s4 + $0x48] sm:$0xff] (%p549_p6)  ;;  %v578_v58 = vld [vmem:[%s1856_s4 + $0x50] sm:$0xff] (%p549_p6) }
 0x122   : > { %v535_v0 = vadd.f32 %v534_v62, %v520_v60  ;;  %v496_v1 = vadd.f32 %v1133_v22, %v495_v61 }
 0x124   : > { %v497_v3 = vadd.f32 %v496_v1, %v450_v37  ;;  %v536_v4 = vadd.f32 %v535_v0, %v521_v63  ;;  %v579_v63 = vld [vmem:[%s1856_s4 + $0x58] sm:$0xff] (%p549_p6)  ;;  %v580_v0 = vld [vmem:[%s1856_s4 + $0x60] sm:$0xff] (%p549_p6)  ;;  %v581_v1 = vld [vmem:[%s1856_s4 + $0x68] sm:$0xff] (%p549_p6) }
 0x126   : > { %v537_v5 = vadd.f32 %v536_v4, %v522_v2  ;;  %v498_v6 = vadd.f32 %v497_v3, %v453_v44 }
 0x128   : > { %v499_v9 = vadd.f32 %v1136_v35, %v498_v6  ;;  %v538_v10 = vadd.f32 %v537_v5, %v523_v7 }
 0x12a   : > { %v500_v12 = vadd.f32 %v1137_v42, %v499_v9  ;;  %v539_v13 = vadd.f32 %v538_v10, %v524_v8  ;;  %v587_v42 = vsub.s32 (%p549_p6), 0, %v586_v40 }
 0x12c   : > { %v501_v14 = vrot.slane %v500_v12, 4  ;;  %v540_v15 = vadd.f32 %v539_v13, %v525_v11 }
 0x12e   : > { %v502_v16 = vadd.f32 %v501_v14, %v500_v12  ;;  %v541_v17 = vrot.slane %v540_v15, 4 }
 0x130   : > { %v503_v18 = vrot.slane %v502_v16, 2  ;;  %v542_v19 = vadd.f32 %v541_v17, %v540_v15 }
 0x132   : > { %v504_v20 = vadd.f32 %v503_v18, %v502_v16  ;;  %v543_v21 = vrot.slane %v542_v19, 2 }
 0x134   : > { %v505_v22 = vrot.slane %v504_v20, 1  ;;  %v544_v23 = vadd.f32 %v543_v21, %v542_v19 }
 0x136   : > { %v506_v25 = vadd.f32 %v505_v22, %v504_v20  ;;  %v545_v26 = vrot.slane %v544_v23, 1  ;;  %553 = sbr.rel (!%p549_p6) target bundleno = 401 (0x191), region = 44 }
 0x138   : > { %v507_v28 = vadd.f32 %v506_v25, %v485_v24  ;;  %v546_v29 = vadd.f32 %v545_v26, %v544_v23  ;;  %v582_v26 = vld [vmem:[%s1856_s4 + $0x70] sm:$0xff] (%p549_p6) }
 0x13a   : > { %508 = vst [vmem:[#allocation2] sm:$0x1] %v507_v28  ;;  %v547_v30 = vadd.f32 %v546_v29, %v509_v27  ;;  %v583_v27 = vld [vmem:[%s1856_s4 + $0x78] sm:$0xff] (%p549_p6) }
 0x13c   : > { %548 = vst [vmem:[#allocation3] sm:$0x1] %v547_v30 }
 0x141   : > { %v554_v31 = vld [vmem:[#allocation2] sm:$0x1] }
 0x142   : > { %v555_v33 = vmul.f32 0.001953125, %v554_v31 }
 0x143   : > { %v556_v32 = vld [vmem:[#allocation3] sm:$0x1] }
 0x144   : > { %v557_v34 = vmul.f32 0.001953125, %v556_v32  ;;  %v558_v35 = vmul.f32 %v555_v33, %v555_v33 }
 0x146   : > { %v559_v36 = vsub.f32 %v557_v34, %v558_v35 }
 0x148   : > { %v560_v37 = vmax.f32 %v559_v36, 0.0  ;;  %v988_v36 = vld [vmem:[%s1856_s4 + $0x80] sm:$0xff] }
 0x14a   : > { %v562_v38 = vadd.f32 1e-05, %v560_v37 }
 0x14c   : > { %1195 = vrsqrt.f32 %v562_v38 }
 0x156   : > { %v1196_v43 = vpop.eup %1195 }
 0x157   : > { %v564_v44 = vmul.f32 %v1196_v43, %v561_v41  ;;  %v989_v41 = vld [vmem:[%s1856_s4 + $0x88] sm:$0xff]  ;;  %v991_v43 = vld [vmem:[%s1856_s4 + $0x98] sm:$0xff] }
 0x159   : > { %v566_v51 = vmul.f32 %v564_v44, %v555_v33  ;;  %v1342_v52 = vrot.slane %v564_v44, %v587_v42 }
 0x15b   : > { %v567_v59 = vsub.f32 %v565_v45, %v566_v51  ;;  %v590_v60 = vmul.f32 %v1342_v52, %v568_v46  ;;  %v591_v61 = vmul.f32 %v1342_v52, %v569_v47  ;;  %v592_v62 = vmul.f32 %v1342_v52, %v570_v48  ;;  %v992_v48 = vld [vmem:[%s1856_s4 + $0xa0] sm:$0xff] }
 0x15c   : > { %v593_v2 = vmul.f32 %v1342_v52, %v571_v49  ;;  %v594_v3 = vmul.f32 %v1342_v52, %v572_v50  ;;  %v595_v4 = vmul.f32 %v1342_v52, %v573_v53  ;;  %v596_v5 = vmul.f32 %v1342_v52, %v574_v54  ;;  %v993_v49 = vld [vmem:[%s1856_s4 + $0xa8] sm:$0xff] }
 0x15d   : > { %v1378_v6 = vrot.slane %v567_v59, %v587_v42  ;;  %v597_v7 = vmul.f32 %v1342_v52, %v575_v55  ;;  %v598_v8 = vmul.f32 %v1342_v52, %v576_v56  ;;  %v599_v9 = vmul.f32 %v1342_v52, %v577_v57  ;;  %v990_v42 = vld [vmem:[%s1856_s4 + $0x90] sm:$0xff] }
 0x15e   : > { %v600_v10 = vmul.f32 %v1342_v52, %v578_v58  ;;  %v601_v11 = vmul.f32 %v1342_v52, %v579_v63  ;;  %v602_v12 = vmul.f32 %v1342_v52, %v580_v0  ;;  %v603_v13 = vmul.f32 %v1342_v52, %v581_v1  ;;  %v994_v59 = vld [vmem:[%s1856_s4 + $0xb0] sm:$0xff] }
 0x15f   : > { %v612_v14 = vadd.f32 %v1378_v6, %v590_v60  ;;  %v613_v15 = vadd.f32 %v1378_v6, %v591_v61  ;;  %v614_v16 = vadd.f32 %v1378_v6, %v592_v62  ;;  %v615_v17 = vadd.f32 %v1378_v6, %v593_v2  ;;  %v995_v60 = vld [vmem:[%s1856_s4 + $0xb8] sm:$0xff] }
 0x160   : > { %v616_v18 = vadd.f32 %v1378_v6, %v594_v3  ;;  %v617_v19 = vadd.f32 %v1378_v6, %v595_v4  ;;  %v618_v20 = vadd.f32 %v1378_v6, %v596_v5  ;;  %v619_v21 = vadd.f32 %v1378_v6, %v597_v7  ;;  %v996_v5 = vld [vmem:[%s1856_s4 + $0xc0] sm:$0xff] }
 0x161   : > { %v628_v22 = vmax.f32 %v612_v14, 0.0  ;;  %v629_v23 = vmax.f32 %v613_v15, 0.0  ;;  %v630_v24 = vmax.f32 %v614_v16, 0.0  ;;  %v631_v25 = vmax.f32 %v615_v17, 0.0 }
 0x162   : > { %v632_v28 = vmax.f32 %v616_v18, 0.0  ;;  %v633_v29 = vmax.f32 %v617_v19, 0.0  ;;  %v634_v30 = vmax.f32 %v618_v20, 0.0  ;;  %v635_v31 = vmax.f32 %v619_v21, 0.0  ;;  %v1000_v18 = vld [vmem:[%s1856_s4 + $0xe0] sm:$0xff]  ;;  %v1001_v19 = vld [vmem:[%s1856_s4 + $0xe8] sm:$0xff] }
 0x163   : > { %644 = vst [vmem:[%s1856_s4] sm:$0xff] %v628_v22  ;;  %645 = vst [vmem:[%s1856_s4 + $0x8] sm:$0xff] %v629_v23  ;;  %v620_v32 = vadd.f32 %v1378_v6, %v598_v8  ;;  %v621_v33 = vadd.f32 %v1378_v6, %v599_v9  ;;  %v622_v34 = vadd.f32 %v1378_v6, %v600_v10 }
 0x164   : > { %646 = vst [vmem:[%s1856_s4 + $0x10] sm:$0xff] %v630_v24  ;;  %647 = vst [vmem:[%s1856_s4 + $0x18] sm:$0xff] %v631_v25  ;;  %v623_v35 = vadd.f32 %v1378_v6, %v601_v11  ;;  %v624_v37 = vadd.f32 %v1378_v6, %v602_v12  ;;  %v625_v38 = vadd.f32 %v1378_v6, %v603_v13  ;;  %v997_v11 = vld [vmem:[%s1856_s4 + $0xc8] sm:$0xff]  ;;  %v998_v12 = vld [vmem:[%s1856_s4 + $0xd0] sm:$0xff] }
 0x165   : > { %648 = vst [vmem:[%s1856_s4 + $0x20] sm:$0xff] %v632_v28  ;;  %649 = vst [vmem:[%s1856_s4 + $0x28] sm:$0xff] %v633_v29  ;;  %v604_v39 = vmul.f32 %v1342_v52, %v582_v26  ;;  %v605_v40 = vmul.f32 %v1342_v52, %v583_v27  ;;  %v636_v44 = vmax.f32 %v620_v32, 0.0  ;;  %v637_v45 = vmax.f32 %v621_v33, 0.0  ;;  %v999_v13 = vld [vmem:[%s1856_s4 + $0xd8] sm:$0xff]  ;;  %v1002_v28 = vld [vmem:[%s1856_s4 + $0xf0] sm:$0xff] }
 0x166   : > { %650 = vst [vmem:[%s1856_s4 + $0x30] sm:$0xff] %v634_v30  ;;  %651 = vst [vmem:[%s1856_s4 + $0x38] sm:$0xff] %v635_v31  ;;  %v638_v46 = vmax.f32 %v622_v34, 0.0  ;;  %v639_v47 = vmax.f32 %v623_v35, 0.0  ;;  %v640_v50 = vmax.f32 %v624_v37, 0.0  ;;  %v641_v51 = vmax.f32 %v625_v38, 0.0 }
 0x167   : > { %v626_v53 = vadd.f32 %v1378_v6, %v604_v39  ;;  %v627_v54 = vadd.f32 %v1378_v6, %v605_v40  ;;  %652 = vst [vmem:[%s1856_s4 + $0x40] sm:$0xff] %v636_v44  ;;  %653 = vst [vmem:[%s1856_s4 + $0x48] sm:$0xff] %v637_v45  ;;  %v677_v55 = vmul.f32 %v988_v36, %v1342_v52  ;;  %v1003_v29 = vld [vmem:[%s1856_s4 + $0xf8] sm:$0xff]  ;;  %v1020_v38 = vld [vmem:[%s1856_s4 + $0x100] sm:$0xff] }
 0x168   : > { %654 = vst [vmem:[%s1856_s4 + $0x50] sm:$0xff] %v638_v46  ;;  %655 = vst [vmem:[%s1856_s4 + $0x58] sm:$0xff] %v639_v47  ;;  %v678_v56 = vmul.f32 %v989_v41, %v1342_v52  ;;  %v679_v57 = vmul.f32 %v990_v42, %v1342_v52  ;;  %v680_v58 = vmul.f32 %v991_v43, %v1342_v52  ;;  %v1021_v43 = vld [vmem:[%s1856_s4 + $0x108] sm:$0xff]  ;;  %v1022_v44 = vld [vmem:[%s1856_s4 + $0x110] sm:$0xff] }
 0x169   : > { %656 = vst [vmem:[%s1856_s4 + $0x60] sm:$0xff] %v640_v50  ;;  %657 = vst [vmem:[%s1856_s4 + $0x68] sm:$0xff] %v641_v51  ;;  %v642_v61 = vmax.f32 %v626_v53, 0.0  ;;  %v643_v62 = vmax.f32 %v627_v54, 0.0  ;;  %v681_v63 = vmul.f32 %v992_v48, %v1342_v52  ;;  %v682_v0 = vmul.f32 %v993_v49, %v1342_v52  ;;  %v1023_v45 = vld [vmem:[%s1856_s4 + $0x118] sm:$0xff]  ;;  %v1024_v50 = vld [vmem:[%s1856_s4 + $0x120] sm:$0xff] }
 0x16a   : > { %v693_v1 = vadd.f32 %v677_v55, %v1378_v6  ;;  %v694_v2 = vadd.f32 %v678_v56, %v1378_v6  ;;  %v695_v3 = vadd.f32 %v679_v57, %v1378_v6  ;;  %v696_v4 = vadd.f32 %v680_v58, %v1378_v6  ;;  %v1025_v51 = vld [vmem:[%s1856_s4 + $0x128] sm:$0xff] }
 0x16b   : > { %658 = vst [vmem:[%s1856_s4 + $0x70] sm:$0xff] %v642_v61  ;;  %659 = vst [vmem:[%s1856_s4 + $0x78] sm:$0xff] %v643_v62  ;;  %v697_v7 = vadd.f32 %v681_v63, %v1378_v6  ;;  %v698_v8 = vadd.f32 %v682_v0, %v1378_v6  ;;  %v683_v9 = vmul.f32 %v994_v59, %v1342_v52  ;;  %v1026_v61 = vld [vmem:[%s1856_s4 + $0x130] sm:$0xff]  ;;  %v1027_v62 = vld [vmem:[%s1856_s4 + $0x138] sm:$0xff] }
 0x16c   : > { %v684_v10 = vmul.f32 %v995_v60, %v1342_v52  ;;  %v709_v14 = vmax.f32 %v693_v1, 0.0  ;;  %v710_v15 = vmax.f32 %v694_v2, 0.0  ;;  %v711_v16 = vmax.f32 %v695_v3, 0.0 }
 0x16d   : > { %v712_v17 = vmax.f32 %v696_v4, 0.0  ;;  %v713_v20 = vmax.f32 %v697_v7, 0.0  ;;  %v714_v21 = vmax.f32 %v698_v8, 0.0  ;;  %v699_v22 = vadd.f32 %v683_v9, %v1378_v6  ;;  %v1028_v8 = vld [vmem:[%s1856_s4 + $0x140] sm:$0xff] }
 0x16e   : > { %v700_v23 = vadd.f32 %v684_v10, %v1378_v6  ;;  %1004 = vst [vmem:[%s1856_s4 + $0x80] sm:$0xff] %v709_v14  ;;  %1005 = vst [vmem:[%s1856_s4 + $0x88] sm:$0xff] %v710_v15  ;;  %v685_v24 = vmul.f32 %v996_v5, %v1342_v52  ;;  %v686_v25 = vmul.f32 %v997_v11, %v1342_v52  ;;  %v1030_v14 = vld [vmem:[%s1856_s4 + $0x150] sm:$0xff]  ;;  %v1031_v15 = vld [vmem:[%s1856_s4 + $0x158] sm:$0xff] }
 0x16f   : > { %1006 = vst [vmem:[%s1856_s4 + $0x90] sm:$0xff] %v711_v16  ;;  %1007 = vst [vmem:[%s1856_s4 + $0x98] sm:$0xff] %v712_v17  ;;  %v687_v26 = vmul.f32 %v998_v12, %v1342_v52  ;;  %v688_v27 = vmul.f32 %v999_v13, %v1342_v52  ;;  %v715_v30 = vmax.f32 %v699_v22, 0.0  ;;  %v689_v32 = vmul.f32 %v1000_v18, %v1342_v52  ;;  %v1029_v13 = vld [vmem:[%s1856_s4 + $0x148] sm:$0xff] }
 0x170   : > { %1008 = vst [vmem:[%s1856_s4 + $0xa0] sm:$0xff] %v713_v20  ;;  %1009 = vst [vmem:[%s1856_s4 + $0xa8] sm:$0xff] %v714_v21  ;;  %v716_v31 = vmax.f32 %v700_v23, 0.0  ;;  %v690_v33 = vmul.f32 %v1001_v19, %v1342_v52  ;;  %v701_v34 = vadd.f32 %v685_v24, %v1378_v6  ;;  %v702_v35 = vadd.f32 %v686_v25, %v1378_v6  ;;  %v1032_v20 = vld [vmem:[%s1856_s4 + $0x160] sm:$0xff]  ;;  %v1033_v21 = vld [vmem:[%s1856_s4 + $0x168] sm:$0xff] }
 0x171   : > { %v703_v36 = vadd.f32 %v687_v26, %v1378_v6  ;;  %v704_v37 = vadd.f32 %v688_v27, %v1378_v6  ;;  %1010 = vst [vmem:[%s1856_s4 + $0xb0] sm:$0xff] %v715_v30  ;;  %v705_v39 = vadd.f32 %v689_v32, %v1378_v6  ;;  %v691_v41 = vmul.f32 %v1002_v28, %v1342_v52  ;;  %v1034_v30 = vld [vmem:[%s1856_s4 + $0x170] sm:$0xff] }
 0x172   : > { %1011 = vst [vmem:[%s1856_s4 + $0xb8] sm:$0xff] %v716_v31  ;;  %v706_v40 = vadd.f32 %v690_v33, %v1378_v6  ;;  %v692_v42 = vmul.f32 %v1003_v29, %v1342_v52  ;;  %v717_v46 = vmax.f32 %v701_v34, 0.0  ;;  %v718_v47 = vmax.f32 %v702_v35, 0.0  ;;  %v1035_v31 = vld [vmem:[%s1856_s4 + $0x178] sm:$0xff] }
 0x173   : > { %v719_v48 = vmax.f32 %v703_v36, 0.0  ;;  %v720_v49 = vmax.f32 %v704_v37, 0.0  ;;  %v721_v53 = vmax.f32 %v705_v39, 0.0  ;;  %v707_v55 = vadd.f32 %v691_v41, %v1378_v6 }
 0x174   : > { %v722_v54 = vmax.f32 %v706_v40, 0.0  ;;  %v708_v56 = vadd.f32 %v692_v42, %v1378_v6  ;;  %1012 = vst [vmem:[%s1856_s4 + $0xc0] sm:$0xff] %v717_v46  ;;  %1013 = vst [vmem:[%s1856_s4 + $0xc8] sm:$0xff] %v718_v47  ;;  %v758_v57 = vmul.f32 %v1020_v38, %v1342_v52  ;;  %v759_v58 = vmul.f32 %v1021_v43, %v1342_v52  ;;  %v1052_v40 = vld [vmem:[%s1856_s4 + $0x180] sm:$0xff]  ;;  %v1054_v46 = vld [vmem:[%s1856_s4 + $0x190] sm:$0xff] }
 0x175   : > { %1014 = vst [vmem:[%s1856_s4 + $0xd0] sm:$0xff] %v719_v48  ;;  %1015 = vst [vmem:[%s1856_s4 + $0xd8] sm:$0xff] %v720_v49  ;;  %v760_v59 = vmul.f32 %v1022_v44, %v1342_v52  ;;  %v761_v60 = vmul.f32 %v1023_v45, %v1342_v52  ;;  %v723_v63 = vmax.f32 %v707_v55, 0.0  ;;  %v762_v1 = vmul.f32 %v1024_v50, %v1342_v52  ;;  %v1053_v45 = vld [vmem:[%s1856_s4 + $0x188] sm:$0xff]  ;;  %v1055_v47 = vld [vmem:[%s1856_s4 + $0x198] sm:$0xff] }
 0x176   : > { %1016 = vst [vmem:[%s1856_s4 + $0xe0] sm:$0xff] %v721_v53  ;;  %1017 = vst [vmem:[%s1856_s4 + $0xe8] sm:$0xff] %v722_v54  ;;  %v724_v0 = vmax.f32 %v708_v56, 0.0  ;;  %v763_v2 = vmul.f32 %v1025_v51, %v1342_v52  ;;  %v774_v3 = vadd.f32 %v758_v57, %v1378_v6  ;;  %v775_v4 = vadd.f32 %v759_v58, %v1378_v6  ;;  %v1056_v53 = vld [vmem:[%s1856_s4 + $0x1a0] sm:$0xff]  ;;  %v1057_v54 = vld [vmem:[%s1856_s4 + $0x1a8] sm:$0xff] }
 0x177   : > { %v776_v5 = vadd.f32 %v760_v59, %v1378_v6  ;;  %v777_v7 = vadd.f32 %v761_v60, %v1378_v6  ;;  %1018 = vst [vmem:[%s1856_s4 + $0xf0] sm:$0xff] %v723_v63  ;;  %v778_v9 = vadd.f32 %v762_v1, %v1378_v6  ;;  %v764_v11 = vmul.f32 %v1026_v61, %v1342_v52  ;;  %v1058_v63 = vld [vmem:[%s1856_s4 + $0x1b0] sm:$0xff] }
 0x178   : > { %1019 = vst [vmem:[%s1856_s4 + $0xf8] sm:$0xff] %v724_v0  ;;  %v779_v10 = vadd.f32 %v763_v2, %v1378_v6  ;;  %v765_v12 = vmul.f32 %v1027_v62, %v1342_v52  ;;  %v790_v16 = vmax.f32 %v774_v3, 0.0  ;;  %v791_v17 = vmax.f32 %v775_v4, 0.0  ;;  %v1059_v0 = vld [vmem:[%s1856_s4 + $0x1b8] sm:$0xff] }
 0x179   : > { %v792_v18 = vmax.f32 %v776_v5, 0.0  ;;  %v793_v19 = vmax.f32 %v777_v7, 0.0  ;;  %v794_v22 = vmax.f32 %v778_v9, 0.0  ;;  %v780_v24 = vadd.f32 %v764_v11, %v1378_v6 }
 0x17a   : > { %v795_v23 = vmax.f32 %v779_v10, 0.0  ;;  %v781_v25 = vadd.f32 %v765_v12, %v1378_v6  ;;  %1036 = vst [vmem:[%s1856_s4 + $0x100] sm:$0xff] %v790_v16  ;;  %1037 = vst [vmem:[%s1856_s4 + $0x108] sm:$0xff] %v791_v17  ;;  %v766_v26 = vmul.f32 %v1028_v8, %v1342_v52  ;;  %v767_v27 = vmul.f32 %v1029_v13, %v1342_v52  ;;  %v1060_v10 = vld [vmem:[%s1856_s4 + $0x1c0] sm:$0xff]  ;;  %v1062_v16 = vld [vmem:[%s1856_s4 + $0x1d0] sm:$0xff] }
 0x17b   : > { %1038 = vst [vmem:[%s1856_s4 + $0x110] sm:$0xff] %v792_v18  ;;  %1039 = vst [vmem:[%s1856_s4 + $0x118] sm:$0xff] %v793_v19  ;;  %v768_v28 = vmul.f32 %v1030_v14, %v1342_v52  ;;  %v769_v29 = vmul.f32 %v1031_v15, %v1342_v52  ;;  %v796_v32 = vmax.f32 %v780_v24, 0.0  ;;  %v770_v34 = vmul.f32 %v1032_v20, %v1342_v52  ;;  %v1061_v15 = vld [vmem:[%s1856_s4 + $0x1c8] sm:$0xff]  ;;  %v1063_v17 = vld [vmem:[%s1856_s4 + $0x1d8] sm:$0xff] }
 0x17c   : > { %1040 = vst [vmem:[%s1856_s4 + $0x120] sm:$0xff] %v794_v22  ;;  %1041 = vst [vmem:[%s1856_s4 + $0x128] sm:$0xff] %v795_v23  ;;  %v797_v33 = vmax.f32 %v781_v25, 0.0  ;;  %v771_v35 = vmul.f32 %v1033_v21, %v1342_v52  ;;  %v782_v36 = vadd.f32 %v766_v26, %v1378_v6  ;;  %v783_v37 = vadd.f32 %v767_v27, %v1378_v6  ;;  %v1064_v22 = vld [vmem:[%s1856_s4 + $0x1e0] sm:$0xff]  ;;  %v1065_v23 = vld [vmem:[%s1856_s4 + $0x1e8] sm:$0xff] }
 0x17d   : > { %v784_v38 = vadd.f32 %v768_v28, %v1378_v6  ;;  %v785_v39 = vadd.f32 %v769_v29, %v1378_v6  ;;  %1042 = vst [vmem:[%s1856_s4 + $0x130] sm:$0xff] %v796_v32  ;;  %v786_v41 = vadd.f32 %v770_v34, %v1378_v6  ;;  %v772_v43 = vmul.f32 %v1034_v30, %v1342_v52  ;;  %v1066_v32 = vld [vmem:[%s1856_s4 + $0x1f0] sm:$0xff] }
 0x17e   : > { %1043 = vst [vmem:[%s1856_s4 + $0x138] sm:$0xff] %v797_v33  ;;  %v787_v42 = vadd.f32 %v771_v35, %v1378_v6  ;;  %v773_v44 = vmul.f32 %v1035_v31, %v1342_v52  ;;  %v798_v48 = vmax.f32 %v782_v36, 0.0  ;;  %v799_v49 = vmax.f32 %v783_v37, 0.0  ;;  %v1067_v33 = vld [vmem:[%s1856_s4 + $0x1f8] sm:$0xff] }
 0x17f   : > { %v800_v50 = vmax.f32 %v784_v38, 0.0  ;;  %v801_v51 = vmax.f32 %v785_v39, 0.0  ;;  %v802_v55 = vmax.f32 %v786_v41, 0.0  ;;  %v788_v57 = vadd.f32 %v772_v43, %v1378_v6 }
 0x180   : > { %v803_v56 = vmax.f32 %v787_v42, 0.0  ;;  %v789_v58 = vadd.f32 %v773_v44, %v1378_v6  ;;  %1044 = vst [vmem:[%s1856_s4 + $0x140] sm:$0xff] %v798_v48  ;;  %1045 = vst [vmem:[%s1856_s4 + $0x148] sm:$0xff] %v799_v49  ;;  %v839_v59 = vmul.f32 %v1052_v40, %v1342_v52  ;;  %v840_v60 = vmul.f32 %v1053_v45, %v1342_v52 }
 0x181   : > { %1046 = vst [vmem:[%s1856_s4 + $0x150] sm:$0xff] %v800_v50  ;;  %1047 = vst [vmem:[%s1856_s4 + $0x158] sm:$0xff] %v801_v51  ;;  %v841_v61 = vmul.f32 %v1054_v46, %v1342_v52  ;;  %v842_v62 = vmul.f32 %v1055_v47, %v1342_v52  ;;  %v804_v1 = vmax.f32 %v788_v57, 0.0  ;;  %v843_v3 = vmul.f32 %v1056_v53, %v1342_v52 }
 0x182   : > { %1048 = vst [vmem:[%s1856_s4 + $0x160] sm:$0xff] %v802_v55  ;;  %1049 = vst [vmem:[%s1856_s4 + $0x168] sm:$0xff] %v803_v56  ;;  %v805_v2 = vmax.f32 %v789_v58, 0.0  ;;  %v844_v4 = vmul.f32 %v1057_v54, %v1342_v52  ;;  %v855_v5 = vadd.f32 %v839_v59, %v1378_v6  ;;  %v856_v7 = vadd.f32 %v840_v60, %v1378_v6 }
 0x183   : > { %v857_v8 = vadd.f32 %v841_v61, %v1378_v6  ;;  %v858_v9 = vadd.f32 %v842_v62, %v1378_v6  ;;  %1050 = vst [vmem:[%s1856_s4 + $0x170] sm:$0xff] %v804_v1  ;;  %v859_v11 = vadd.f32 %v843_v3, %v1378_v6  ;;  %v845_v13 = vmul.f32 %v1058_v63, %v1342_v52 }
 0x184   : > { %1051 = vst [vmem:[%s1856_s4 + $0x178] sm:$0xff] %v805_v2  ;;  %v860_v12 = vadd.f32 %v844_v4, %v1378_v6  ;;  %v846_v14 = vmul.f32 %v1059_v0, %v1342_v52  ;;  %v871_v18 = vmax.f32 %v855_v5, 0.0  ;;  %v872_v19 = vmax.f32 %v856_v7, 0.0 }
 0x185   : > { %v873_v20 = vmax.f32 %v857_v8, 0.0  ;;  %v874_v21 = vmax.f32 %v858_v9, 0.0  ;;  %v875_v24 = vmax.f32 %v859_v11, 0.0  ;;  %v861_v26 = vadd.f32 %v845_v13, %v1378_v6 }
 0x186   : > { %v876_v25 = vmax.f32 %v860_v12, 0.0  ;;  %v862_v27 = vadd.f32 %v846_v14, %v1378_v6  ;;  %1068 = vst [vmem:[%s1856_s4 + $0x180] sm:$0xff] %v871_v18  ;;  %1069 = vst [vmem:[%s1856_s4 + $0x188] sm:$0xff] %v872_v19  ;;  %v847_v28 = vmul.f32 %v1060_v10, %v1342_v52  ;;  %v848_v29 = vmul.f32 %v1061_v15, %v1342_v52 }
 0x187   : > { %1070 = vst [vmem:[%s1856_s4 + $0x190] sm:$0xff] %v873_v20  ;;  %1071 = vst [vmem:[%s1856_s4 + $0x198] sm:$0xff] %v874_v21  ;;  %v849_v30 = vmul.f32 %v1062_v16, %v1342_v52  ;;  %v850_v31 = vmul.f32 %v1063_v17, %v1342_v52  ;;  %v877_v34 = vmax.f32 %v861_v26, 0.0  ;;  %v851_v36 = vmul.f32 %v1064_v22, %v1342_v52 }
 0x188   : > { %1072 = vst [vmem:[%s1856_s4 + $0x1a0] sm:$0xff] %v875_v24  ;;  %1073 = vst [vmem:[%s1856_s4 + $0x1a8] sm:$0xff] %v876_v25  ;;  %v878_v35 = vmax.f32 %v862_v27, 0.0  ;;  %v852_v37 = vmul.f32 %v1065_v23, %v1342_v52  ;;  %v863_v38 = vadd.f32 %v847_v28, %v1378_v6  ;;  %v864_v39 = vadd.f32 %v848_v29, %v1378_v6 }
 0x189   : > { %v865_v40 = vadd.f32 %v849_v30, %v1378_v6  ;;  %v866_v41 = vadd.f32 %v850_v31, %v1378_v6  ;;  %1074 = vst [vmem:[%s1856_s4 + $0x1b0] sm:$0xff] %v877_v34  ;;  %v867_v42 = vadd.f32 %v851_v36, %v1378_v6  ;;  %v853_v44 = vmul.f32 %v1066_v32, %v1342_v52 }
 0x18a   : > { %1075 = vst [vmem:[%s1856_s4 + $0x1b8] sm:$0xff] %v878_v35  ;;  %v868_v43 = vadd.f32 %v852_v37, %v1378_v6  ;;  %v854_v45 = vmul.f32 %v1067_v33, %v1342_v52  ;;  %v879_v46 = vmax.f32 %v863_v38, 0.0  ;;  %v880_v47 = vmax.f32 %v864_v39, 0.0 }
 0x18b   : > { %v881_v48 = vmax.f32 %v865_v40, 0.0  ;;  %v882_v49 = vmax.f32 %v866_v41, 0.0  ;;  %v883_v50 = vmax.f32 %v867_v42, 0.0  ;;  %v869_v53 = vadd.f32 %v853_v44, %v1378_v6 }
 0x18c   : > { %v884_v51 = vmax.f32 %v868_v43, 0.0  ;;  %v870_v54 = vadd.f32 %v854_v45, %v1378_v6  ;;  %1076 = vst [vmem:[%s1856_s4 + $0x1c0] sm:$0xff] %v879_v46  ;;  %1077 = vst [vmem:[%s1856_s4 + $0x1c8] sm:$0xff] %v880_v47 }
 0x18d   : > { %1078 = vst [vmem:[%s1856_s4 + $0x1d0] sm:$0xff] %v881_v48  ;;  %1079 = vst [vmem:[%s1856_s4 + $0x1d8] sm:$0xff] %v882_v49  ;;  %v885_v52 = vmax.f32 %v869_v53, 0.0 }
 0x18e   : > { %1080 = vst [vmem:[%s1856_s4 + $0x1e0] sm:$0xff] %v883_v50  ;;  %1081 = vst [vmem:[%s1856_s4 + $0x1e8] sm:$0xff] %v884_v51  ;;  %v886_v6 = vmax.f32 %v870_v54, 0.0 }
 0x18f   : > { %1082 = vst [vmem:[%s1856_s4 + $0x1f0] sm:$0xff] %v885_v52 }
 0x190   : > { %1083 = vst [vmem:[%s1856_s4 + $0x1f8] sm:$0xff] %v886_v6 }
 0x191 PF: > { %s14_s17 = sadd.s32 1, %s1219_s17   ;;  %s1857_s15 = smov %s1215_s16 }
 0x192   : > { %p11_p7 = scmp.ge.s32.totalorder %s14_s17, 6   ;;  %s1858_s16 = smov %s1860_s18 }
 0x194   :  { %13 = sbr.rel (!%p11_p7) target bundleno = 2 (0x2), region = 77 }

// kernel: generator_forward.8
= control target key start
LH: loop header
LB: loop body
LE: loop exit
PB: predicated region body
PF: predicated region fallthrough
CT: control target
= control target key end

     0   :  { %s3191_s15 = smov 0   ;;  %s3193_s16 = smov 0   ;;  %s5596_s0 = inlined_call_operand.vmem [shape: bf16[4,512,128], index: 0, kind: input, shape index: {}]   ;;  %s5597_s1 = inlined_call_operand.vmem [shape: bf16[4,128,128], index: 1, kind: input, shape index: {}]   ;;  %s5598_s2 = inlined_call_operand.vmem [shape: f32[1,128], index: 2, kind: input, shape index: {}]   ;;  %s5599_s3 = inlined_call_operand.vmem [shape: f32[1,128], index: 3, kind: input, shape index: {}]   ;;  %s5600_s4 = inlined_call_operand.vmem [shape: f32[4,512,128], index: 4, kind: output, shape index: {}]  }
   0x1   :  { %s3195_s17 = smov 0  }
   0x2 LB: > { %s26_s18 = sadd.s32 1, %s3159_s16  ;;  %p2500_p0 = scmp.ge.s32.totalorder %s3163_s17, 1  ;;  %s3163_s17 = sphi %s3195_s17, %s14_s17   ;;  %s3159_s16 = sphi %s3193_s16, %s5602_s16   ;;  %s3155_s15 = sphi %s3191_s15, %s5601_s15  }
   0x3   : > { %p28_p1 = scmp.ge.s32.totalorder %s26_s18, 4  ;;  %p186_p2 = scmp.lt.s32.totalorder %s3163_s17, 5 }
   0x5   : > { %s5604_s18 = smov (%p28_p1, %s26_s18), 0  ;;  %p187_p3 = pnand %p2500_p0, %p186_p2 }
   0x6   : > { %p217_p4 = scmp.lt.s32.totalorder (!%p187_p3), %s3155_s15, 3  ;;  %p232_p5 = scmp.eq.s32.totalorder (!%p187_p3), %s3155_s15, 0 }
   0x7   : > { %190 = sbr.rel (%p187_p3) target bundleno = 641 (0x281), region = 36 }
   0xe   : > { %s218_s19 = scalar_select %p217_p4, %s3155_s15, 3 }
   0xf   : > { %237 = sbr.rel (!%p232_p5) target bundleno = 22 (0x16), region = 40  ;;  %v3165_v0 = vmov (%p232_p5), 0.0  }
  0x10   : > { %s2934_s20 = sshll.u32 %s218_s19, 8  ;;  %s2935_s21 = sshll.u32 %s218_s19, 6  ;;  %238 = vst [vmem:[#allocation2] sm:$0x1] (%p232_p5), %v3165_v0  ;;  %239 = vst [vmem:[#allocation3] sm:$0x1] (%p232_p5), %v3165_v0 }
  0x11   : > { %s3217_s24 = scalar_lea.vmem %s5596_s0, %s2934_s20  ;;  %s3222_s27 = scalar_lea.vmem %s5597_s1, %s2935_s21 }
  0x16 PF: > { %v3099_v1 = vld [vmem:[%s3222_s27] sm:$0xff]   ;;  %v3100_v2 = vld [vmem:[%s3222_s27 + $0x8] sm:$0xff]   ;;  %v3101_v3 = vld [vmem:[%s3222_s27 + $0x10] sm:$0xff]   ;;  %s2546_s28 = sshll.u32 %s3155_s15, 9  ;;  %p1125_p6 = scmp.eq.s32.totalorder %s3155_s15, 3 }
  0x17   : > { %2978 = vmatprep.subr.bf16.mxu0 %v3099_v1  ;;  %3058 = vmatprep.subr.bf16.mxu1 %v3099_v1  ;;  %v3102_v4 = vld [vmem:[%s3222_s27 + $0x18] sm:$0xff]   ;;  %v3107_v5 = vld [vmem:[%s3217_s24] sm:$0xff]   ;;  %v3104_v7 = vld [vmem:[%s3222_s27 + $0x28] sm:$0xff]   ;;  %s3268_s5 = scalar_lea.vmem %s5600_s4, %s2546_s28 }
  0x18   : > { %2979 = vmatpush3.bf16.msra.mxu0 %v3099_v1  ;;  %3066 = vmatpush3.bf16.msra.mxu1 %v3099_v1  ;;  %v3103_v6 = vld [vmem:[%s3222_s27 + $0x20] sm:$0xff]   ;;  %v3105_v8 = vld [vmem:[%s3222_s27 + $0x30] sm:$0xff]   ;;  %v3106_v9 = vld [vmem:[%s3222_s27 + $0x38] sm:$0xff]  }
  0x19   : > { %2980 = vmatprep.subr.bf16.mxu0 %v3100_v2  ;;  %3059 = vmatprep.subr.bf16.mxu1 %v3100_v2  ;;  %v3123_v10 = vld [vmem:[%s3217_s24 + $0x80] sm:$0xff]   ;;  %v3108_v11 = vld [vmem:[%s3217_s24 + $0x8] sm:$0xff]   ;;  %v3109_v12 = vld [vmem:[%s3217_s24 + $0x10] sm:$0xff]  }
  0x1a   : > { %2994 = vmatprep.mubr.bf16.mxu0 %v3107_v5  ;;  %3026 = vmatprep.mubr.bf16.mxu1 %v3123_v10  ;;  %v3124_v13 = vld [vmem:[%s3217_s24 + $0x88] sm:$0xff]   ;;  %v3125_v14 = vld [vmem:[%s3217_s24 + $0x90] sm:$0xff]   ;;  %v3110_v15 = vld [vmem:[%s3217_s24 + $0x18] sm:$0xff]  }
  0x1b   : > { %v3111_v16 = vld [vmem:[%s3217_s24 + $0x20] sm:$0xff]   ;;  %v3126_v17 = vld [vmem:[%s3217_s24 + $0x98] sm:$0xff]   ;;  %v3112_v19 = vld [vmem:[%s3217_s24 + $0x28] sm:$0xff]  }
  0x1c   : > { %2981 = vmatpush3.bf16.msra.mxu0 %v3100_v2  ;;  %3067 = vmatpush3.bf16.msra.mxu1 %v3100_v2  ;;  %v3127_v18 = vld [vmem:[%s3217_s24 + $0xa0] sm:$0xff]   ;;  %v3128_v20 = vld [vmem:[%s3217_s24 + $0xa8] sm:$0xff]   ;;  %v3113_v21 = vld [vmem:[%s3217_s24 + $0x30] sm:$0xff]  }
  0x1d   : > { %2982 = vmatprep.subr.bf16.mxu0 %v3101_v3  ;;  %3060 = vmatprep.subr.bf16.mxu1 %v3101_v3  ;;  %v3129_v22 = vld [vmem:[%s3217_s24 + $0xb0] sm:$0xff]   ;;  %v3114_v23 = vld [vmem:[%s3217_s24 + $0x38] sm:$0xff]   ;;  %v3115_v25 = vld [vmem:[%s3217_s24 + $0x40] sm:$0xff]  }
  0x1e   : > { %v3130_v24 = vld [vmem:[%s3217_s24 + $0xb8] sm:$0xff]   ;;  %v3131_v26 = vld [vmem:[%s3217_s24 + $0xc0] sm:$0xff]   ;;  %v3116_v27 = vld [vmem:[%s3217_s24 + $0x48] sm:$0xff]  }
  0x1f   : > { %v3132_v28 = vld [vmem:[%s3217_s24 + $0xc8] sm:$0xff]   ;;  %v3117_v29 = vld [vmem:[%s3217_s24 + $0x50] sm:$0xff]   ;;  %v3118_v31 = vld [vmem:[%s3217_s24 + $0x58] sm:$0xff]  }
  0x20   : > { %2983 = vmatpush3.bf16.msra.mxu0 %v3101_v3  ;;  %3068 = vmatpush3.bf16.msra.mxu1 %v3101_v3  ;;  %v3133_v30 = vld [vmem:[%s3217_s24 + $0xd0] sm:$0xff]   ;;  %v3134_v32 = vld [vmem:[%s3217_s24 + $0xd8] sm:$0xff]   ;;  %v3119_v33 = vld [vmem:[%s3217_s24 + $0x60] sm:$0xff]  }
  0x21   : > { %2984 = vmatprep.subr.bf16.mxu0 %v3102_v4  ;;  %3061 = vmatprep.subr.bf16.mxu1 %v3102_v4  ;;  %v3135_v34 = vld [vmem:[%s3217_s24 + $0xe0] sm:$0xff]   ;;  %v3120_v35 = vld [vmem:[%s3217_s24 + $0x68] sm:$0xff]   ;;  %v3121_v37 = vld [vmem:[%s3217_s24 + $0x70] sm:$0xff]  }
  0x22   : > { %v3136_v36 = vld [vmem:[%s3217_s24 + $0xe8] sm:$0xff]   ;;  %v3137_v38 = vld [vmem:[%s3217_s24 + $0xf0] sm:$0xff]   ;;  %v3122_v39 = vld [vmem:[%s3217_s24 + $0x78] sm:$0xff]  }
  0x23   : > { %v3138_v40 = vld [vmem:[%s3217_s24 + $0xf8] sm:$0xff]  }
  0x24   : > { %2985 = vmatpush3.bf16.msra.mxu0 %v3102_v4  ;;  %3069 = vmatpush3.bf16.msra.mxu1 %v3102_v4 }
  0x25   : > { %2986 = vmatprep.subr.bf16.mxu0 %v3103_v6  ;;  %3062 = vmatprep.subr.bf16.mxu1 %v3103_v6 }
  0x28   : > { %2987 = vmatpush3.bf16.msra.mxu0 %v3103_v6  ;;  %3070 = vmatpush3.bf16.msra.mxu1 %v3103_v6 }
  0x29   : > { %2988 = vmatprep.subr.bf16.mxu0 %v3104_v7  ;;  %3063 = vmatprep.subr.bf16.mxu1 %v3104_v7 }
  0x2c   : > { %2989 = vmatpush3.bf16.msra.mxu0 %v3104_v7  ;;  %3071 = vmatpush3.bf16.msra.mxu1 %v3104_v7 }
  0x2d   : > { %2990 = vmatprep.subr.bf16.mxu0 %v3105_v8  ;;  %3064 = vmatprep.subr.bf16.mxu1 %v3105_v8 }
  0x30   : > { %2991 = vmatpush3.bf16.msra.mxu0 %v3105_v8  ;;  %3072 = vmatpush3.bf16.msra.mxu1 %v3105_v8 }
  0x31   : > { %2992 = vmatprep.subr.bf16.mxu0 %v3106_v9  ;;  %3065 = vmatprep.subr.bf16.mxu1 %v3106_v9 }
  0x34   : > { %2993 = vmatpush3.bf16.msra.mxu0 %v3106_v9  ;;  %3073 = vmatpush3.bf16.msra.mxu1 %v3106_v9 }
  0x37   : > { %2995 = vmatmul.mubr.bf16.vlgmr.msra.gmra.mrb[0].mxu0 %v3108_v11  ;;  %3027 = vmatmul.mubr.bf16.vlgmr.msra.gmra.mrb[0].mxu1 %v3124_v13 }
  0x38   : > { %2998 = vmatprep.mubr.bf16.mxu0 %v3109_v12  ;;  %3030 = vmatprep.mubr.bf16.mxu1 %v3125_v14 }
  0x3f   : > { %2999 = vmatmul.mubr.bf16.gmra.mrb[4].mxu0 %v3110_v15  ;;  %3031 = vmatmul.mubr.bf16.gmra.mrb[4].mxu1 %v3126_v17 }
  0x40   : > { %3002 = vmatprep.mubr.bf16.mxu0 %v3111_v16  ;;  %3034 = vmatprep.mubr.bf16.mxu1 %v3127_v18 }
  0x47   : > { %3003 = vmatmul.mubr.bf16.gmra.mrb[8].mxu0 %v3112_v19  ;;  %3035 = vmatmul.mubr.bf16.gmra.mrb[8].mxu1 %v3128_v20 }
  0x48   : > { %3006 = vmatprep.mubr.bf16.mxu0 %v3113_v21  ;;  %3038 = vmatprep.mubr.bf16.mxu1 %v3129_v22 }
  0x4f   : > { %3007 = vmatmul.mubr.bf16.gmra.mrb[12].mxu0 %v3114_v23  ;;  %3039 = vmatmul.mubr.bf16.gmra.mrb[12].mxu1 %v3130_v24 }
  0x50   : > { %3010 = vmatprep.mubr.bf16.mxu0 %v3115_v25  ;;  %3042 = vmatprep.mubr.bf16.mxu1 %v3131_v26 }
  0x57   : > { %3011 = vmatmul.mubr.bf16.gmra.mrb[16].mxu0 %v3116_v27  ;;  %3043 = vmatmul.mubr.bf16.gmra.mrb[16].mxu1 %v3132_v28 }
  0x58   : > { %3014 = vmatprep.mubr.bf16.mxu0 %v3117_v29  ;;  %3046 = vmatprep.mubr.bf16.mxu1 %v3133_v30 }
  0x5f   : > { %3015 = vmatmul.mubr.bf16.gmra.mrb[20].mxu0 %v3118_v31  ;;  %3047 = vmatmul.mubr.bf16.gmra.mrb[20].mxu1 %v3134_v32 }
  0x60   : > { %3018 = vmatprep.mubr.bf16.mxu0 %v3119_v33  ;;  %3050 = vmatprep.mubr.bf16.mxu1 %v3135_v34 }
  0x67   : > { %3019 = vmatmul.mubr.bf16.gmra.mrb[24].mxu0 %v3120_v35  ;;  %3051 = vmatmul.mubr.bf16.gmra.mrb[24].mxu1 %v3136_v36 }
  0x68   : > { %3022 = vmatprep.mubr.bf16.mxu0 %v3121_v37  ;;  %3054 = vmatprep.mubr.bf16.mxu1 %v3137_v38 }
  0x6f   : > { %3023 = vmatmul.mubr.bf16.gmra.mrb[28].mxu0 %v3122_v39  ;;  %3055 = vmatmul.mubr.bf16.gmra.mrb[28].mxu1 %v3138_v40 }
 0x10a   : > { %v2996_v41 = vpop.f32.mrb[0].mxu0  ;;  %v3270_v42 = vpop.f32.mrb[0].mxu1 }
 0x10b   : > { %855 = vst [vmem:[%s3268_s5 + $0x10] sm:$0xff] %v2996_v41  ;;  %v594_v43 = vpop.f32.mrb[1].mxu0  ;;  %887 = vst [vmem:[%s3268_s5 + $0x110] sm:$0xff] %v3270_v42  ;;  %v3275_v44 = vpop.f32.mrb[1].mxu1  ;;  %v992_v52 = vmul.f32 %v2996_v41, %v2996_v41 }
 0x10c   : > { %853 = vst [vmem:[%s3268_s5] sm:$0xff] %v594_v43  ;;  %v2997_v45 = vpop.f32.mrb[2].mxu0  ;;  %885 = vst [vmem:[%s3268_s5 + $0x100] sm:$0xff] %v3275_v44  ;;  %v3280_v46 = vpop.f32.mrb[2].mxu1  ;;  %v990_v49 = vmul.f32 %v594_v43, %v594_v43 }
 0x10d   : > { %856 = vst [vmem:[%s3268_s5 + $0x18] sm:$0xff] %v2997_v45  ;;  %v597_v47 = vpop.f32.mrb[3].mxu0  ;;  %888 = vst [vmem:[%s3268_s5 + $0x118] sm:$0xff] %v3280_v46  ;;  %v3285_v48 = vpop.f32.mrb[3].mxu1  ;;  %v993_v55 = vmul.f32 %v2997_v45, %v2997_v45 }
 0x10e   : > { %854 = vst [vmem:[%s3268_s5 + $0x8] sm:$0xff] %v597_v47  ;;  %v918_v50 = vadd.f32 %v597_v47, %v594_v43  ;;  %v991_v51 = vmul.f32 %v597_v47, %v597_v47  ;;  %886 = vst [vmem:[%s3268_s5 + $0x108] sm:$0xff] %v3285_v48 }
 0x110   : > { %v919_v53 = vadd.f32 %v2996_v41, %v918_v50  ;;  %v1054_v54 = vadd.f32 %v991_v51, %v990_v49 }
 0x112   : > { %v1055_v56 = vadd.f32 %v1054_v54, %v992_v52  ;;  %v3000_v57 = vpop.f32.mrb[4].mxu0  ;;  %v920_v58 = vadd.f32 %v2997_v45, %v919_v53  ;;  %v3290_v59 = vpop.f32.mrb[4].mxu1 }
 0x113   : > { %859 = vst [vmem:[%s3268_s5 + $0x30] sm:$0xff] %v3000_v57  ;;  %v610_v60 = vpop.f32.mrb[5].mxu0  ;;  %891 = vst [vmem:[%s3268_s5 + $0x130] sm:$0xff] %v3290_v59  ;;  %v3295_v61 = vpop.f32.mrb[5].mxu1  ;;  %v996_v8 = vmul.f32 %v3000_v57, %v3000_v57 }
 0x114   : > { %857 = vst [vmem:[%s3268_s5 + $0x20] sm:$0xff] %v610_v60  ;;  %v921_v62 = vadd.f32 %v920_v58, %v610_v60  ;;  %v994_v63 = vmul.f32 %v610_v60, %v610_v60  ;;  %v1056_v0 = vadd.f32 %v1055_v56, %v993_v55  ;;  %v3001_v1 = vpop.f32.mrb[6].mxu0  ;;  %889 = vst [vmem:[%s3268_s5 + $0x120] sm:$0xff] %v3295_v61  ;;  %v3300_v2 = vpop.f32.mrb[6].mxu1 }
 0x115   : > { %860 = vst [vmem:[%s3268_s5 + $0x38] sm:$0xff] %v3001_v1  ;;  %v613_v3 = vpop.f32.mrb[7].mxu0  ;;  %892 = vst [vmem:[%s3268_s5 + $0x138] sm:$0xff] %v3300_v2  ;;  %v3305_v4 = vpop.f32.mrb[7].mxu1  ;;  %v997_v11 = vmul.f32 %v3001_v1, %v3001_v1 }
 0x116   : > { %v1057_v5 = vadd.f32 %v1056_v0, %v994_v63  ;;  %858 = vst [vmem:[%s3268_s5 + $0x28] sm:$0xff] %v613_v3  ;;  %v922_v6 = vadd.f32 %v921_v62, %v613_v3  ;;  %v995_v7 = vmul.f32 %v613_v3, %v613_v3  ;;  %890 = vst [vmem:[%s3268_s5 + $0x128] sm:$0xff] %v3305_v4 }
 0x118   : > { %v923_v9 = vadd.f32 %v3000_v57, %v922_v6  ;;  %v1058_v10 = vadd.f32 %v1057_v5, %v995_v7 }
 0x11a   : > { %v1059_v12 = vadd.f32 %v1058_v10, %v996_v8  ;;  %v3004_v13 = vpop.f32.mrb[8].mxu0  ;;  %v924_v14 = vadd.f32 %v3001_v1, %v923_v9  ;;  %v3310_v15 = vpop.f32.mrb[8].mxu1 }
 0x11b   : > { %863 = vst [vmem:[%s3268_s5 + $0x50] sm:$0xff] %v3004_v13  ;;  %v626_v16 = vpop.f32.mrb[9].mxu0  ;;  %895 = vst [vmem:[%s3268_s5 + $0x150] sm:$0xff] %v3310_v15  ;;  %v3315_v17 = vpop.f32.mrb[9].mxu1  ;;  %v1000_v28 = vmul.f32 %v3004_v13, %v3004_v13 }
 0x11c   : > { %861 = vst [vmem:[%s3268_s5 + $0x40] sm:$0xff] %v626_v16  ;;  %v925_v18 = vadd.f32 %v924_v14, %v626_v16  ;;  %v998_v19 = vmul.f32 %v626_v16, %v626_v16  ;;  %v1060_v20 = vadd.f32 %v1059_v12, %v997_v11  ;;  %v3005_v21 = vpop.f32.mrb[10].mxu0  ;;  %893 = vst [vmem:[%s3268_s5 + $0x140] sm:$0xff] %v3315_v17  ;;  %v3320_v22 = vpop.f32.mrb[10].mxu1 }
 0x11d   : > { %864 = vst [vmem:[%s3268_s5 + $0x58] sm:$0xff] %v3005_v21  ;;  %v629_v23 = vpop.f32.mrb[11].mxu0  ;;  %896 = vst [vmem:[%s3268_s5 + $0x158] sm:$0xff] %v3320_v22  ;;  %v3326_v24 = vpop.f32.mrb[11].mxu1  ;;  %v1001_v31 = vmul.f32 %v3005_v21, %v3005_v21 }
 0x11e   : > { %v1061_v25 = vadd.f32 %v1060_v20, %v998_v19  ;;  %862 = vst [vmem:[%s3268_s5 + $0x48] sm:$0xff] %v629_v23  ;;  %v926_v26 = vadd.f32 %v925_v18, %v629_v23  ;;  %v999_v27 = vmul.f32 %v629_v23, %v629_v23  ;;  %894 = vst [vmem:[%s3268_s5 + $0x148] sm:$0xff] %v3326_v24 }
 0x120   : > { %v927_v29 = vadd.f32 %v3004_v13, %v926_v26  ;;  %v1062_v30 = vadd.f32 %v1061_v25, %v999_v27 }
 0x122   : > { %v1063_v32 = vadd.f32 %v1062_v30, %v1000_v28  ;;  %v3008_v33 = vpop.f32.mrb[12].mxu0  ;;  %v928_v34 = vadd.f32 %v3005_v21, %v927_v29  ;;  %v3331_v35 = vpop.f32.mrb[12].mxu1 }
 0x123   : > { %867 = vst [vmem:[%s3268_s5 + $0x70] sm:$0xff] %v3008_v33  ;;  %v642_v36 = vpop.f32.mrb[13].mxu0  ;;  %899 = vst [vmem:[%s3268_s5 + $0x170] sm:$0xff] %v3331_v35  ;;  %v3336_v37 = vpop.f32.mrb[13].mxu1  ;;  %v1004_v52 = vmul.f32 %v3008_v33, %v3008_v33 }
 0x124   : > { %865 = vst [vmem:[%s3268_s5 + $0x60] sm:$0xff] %v642_v36  ;;  %v929_v38 = vadd.f32 %v928_v34, %v642_v36  ;;  %v1002_v39 = vmul.f32 %v642_v36, %v642_v36  ;;  %v1064_v40 = vadd.f32 %v1063_v32, %v1001_v31  ;;  %v3009_v41 = vpop.f32.mrb[14].mxu0  ;;  %897 = vst [vmem:[%s3268_s5 + $0x160] sm:$0xff] %v3336_v37  ;;  %v3341_v43 = vpop.f32.mrb[14].mxu1 }
 0x125   : > { %868 = vst [vmem:[%s3268_s5 + $0x78] sm:$0xff] %v3009_v41  ;;  %v645_v45 = vpop.f32.mrb[15].mxu0  ;;  %900 = vst [vmem:[%s3268_s5 + $0x178] sm:$0xff] %v3341_v43  ;;  %v3346_v47 = vpop.f32.mrb[15].mxu1  ;;  %v1005_v55 = vmul.f32 %v3009_v41, %v3009_v41 }
 0x126   : > { %v1065_v49 = vadd.f32 %v1064_v40, %v1002_v39  ;;  %866 = vst [vmem:[%s3268_s5 + $0x68] sm:$0xff] %v645_v45  ;;  %v930_v50 = vadd.f32 %v929_v38, %v645_v45  ;;  %v1003_v51 = vmul.f32 %v645_v45, %v645_v45  ;;  %898 = vst [vmem:[%s3268_s5 + $0x168] sm:$0xff] %v3346_v47 }
 0x128   : > { %v931_v53 = vadd.f32 %v3008_v33, %v930_v50  ;;  %v1066_v54 = vadd.f32 %v1065_v49, %v1003_v51 }
 0x12a   : > { %v1067_v56 = vadd.f32 %v1066_v54, %v1004_v52  ;;  %v3012_v57 = vpop.f32.mrb[16].mxu0  ;;  %v932_v58 = vadd.f32 %v3009_v41, %v931_v53  ;;  %v3351_v60 = vpop.f32.mrb[16].mxu1 }
 0x12b   : > { %871 = vst [vmem:[%s3268_s5 + $0x90] sm:$0xff] %v3012_v57  ;;  %v658_v62 = vpop.f32.mrb[17].mxu0  ;;  %903 = vst [vmem:[%s3268_s5 + $0x190] sm:$0xff] %v3351_v60  ;;  %v3356_v63 = vpop.f32.mrb[17].mxu1  ;;  %v1008_v12 = vmul.f32 %v3012_v57, %v3012_v57 }
 0x12c   : > { %869 = vst [vmem:[%s3268_s5 + $0x80] sm:$0xff] %v658_v62  ;;  %v933_v0 = vadd.f32 %v932_v58, %v658_v62  ;;  %v1006_v1 = vmul.f32 %v658_v62, %v658_v62  ;;  %v1068_v3 = vadd.f32 %v1067_v56, %v1005_v55  ;;  %v3013_v5 = vpop.f32.mrb[18].mxu0  ;;  %901 = vst [vmem:[%s3268_s5 + $0x180] sm:$0xff] %v3356_v63  ;;  %v3361_v6 = vpop.f32.mrb[18].mxu1 }
 0x12d   : > { %872 = vst [vmem:[%s3268_s5 + $0x98] sm:$0xff] %v3013_v5  ;;  %v661_v7 = vpop.f32.mrb[19].mxu0  ;;  %904 = vst [vmem:[%s3268_s5 + $0x198] sm:$0xff] %v3361_v6  ;;  %v3366_v8 = vpop.f32.mrb[19].mxu1  ;;  %v1009_v16 = vmul.f32 %v3013_v5, %v3013_v5 }
 0x12e   : > { %v1069_v9 = vadd.f32 %v1068_v3, %v1006_v1  ;;  %870 = vst [vmem:[%s3268_s5 + $0x88] sm:$0xff] %v661_v7  ;;  %v934_v10 = vadd.f32 %v933_v0, %v661_v7  ;;  %v1007_v11 = vmul.f32 %v661_v7, %v661_v7  ;;  %902 = vst [vmem:[%s3268_s5 + $0x188] sm:$0xff] %v3366_v8 }
 0x130   : > { %v935_v13 = vadd.f32 %v3012_v57, %v934_v10  ;;  %v1070_v14 = vadd.f32 %v1069_v9, %v1007_v11 }
 0x132   : > { %v1071_v18 = vadd.f32 %v1070_v14, %v1008_v12  ;;  %v3016_v19 = vpop.f32.mrb[20].mxu0  ;;  %v936_v20 = vadd.f32 %v3013_v5, %v935_v13  ;;  %v3371_v21 = vpop.f32.mrb[20].mxu1 }
 0x133   : > { %875 = vst [vmem:[%s3268_s5 + $0xb0] sm:$0xff] %v3016_v19  ;;  %v674_v23 = vpop.f32.mrb[21].mxu0  ;;  %907 = vst [vmem:[%s3268_s5 + $0x1b0] sm:$0xff] %v3371_v21  ;;  %v3376_v25 = vpop.f32.mrb[21].mxu1  ;;  %v1012_v38 = vmul.f32 %v3016_v19, %v3016_v19 }
 0x134   : > { %873 = vst [vmem:[%s3268_s5 + $0xa0] sm:$0xff] %v674_v23  ;;  %v937_v26 = vadd.f32 %v936_v20, %v674_v23  ;;  %v1010_v27 = vmul.f32 %v674_v23, %v674_v23  ;;  %v1072_v28 = vadd.f32 %v1071_v18, %v1009_v16  ;;  %v3017_v29 = vpop.f32.mrb[22].mxu0  ;;  %905 = vst [vmem:[%s3268_s5 + $0x1a0] sm:$0xff] %v3376_v25  ;;  %v3381_v30 = vpop.f32.mrb[22].mxu1 }
 0x135   : > { %876 = vst [vmem:[%s3268_s5 + $0xb8] sm:$0xff] %v3017_v29  ;;  %v677_v31 = vpop.f32.mrb[23].mxu0  ;;  %908 = vst [vmem:[%s3268_s5 + $0x1b8] sm:$0xff] %v3381_v30  ;;  %v3386_v32 = vpop.f32.mrb[23].mxu1  ;;  %v1013_v41 = vmul.f32 %v3017_v29, %v3017_v29 }
 0x136   : > { %v1073_v33 = vadd.f32 %v1072_v28, %v1010_v27  ;;  %874 = vst [vmem:[%s3268_s5 + $0xa8] sm:$0xff] %v677_v31  ;;  %v938_v34 = vadd.f32 %v937_v26, %v677_v31  ;;  %v1011_v36 = vmul.f32 %v677_v31, %v677_v31  ;;  %906 = vst [vmem:[%s3268_s5 + $0x1a8] sm:$0xff] %v3386_v32 }
 0x138   : > { %v939_v39 = vadd.f32 %v3016_v19, %v938_v34  ;;  %v1074_v40 = vadd.f32 %v1073_v33, %v1011_v36 }
 0x13a   : > { %v1075_v45 = vadd.f32 %v1074_v40, %v1012_v38  ;;  %v3020_v49 = vpop.f32.mrb[24].mxu0  ;;  %v940_v50 = vadd.f32 %v3017_v29, %v939_v39  ;;  %v3391_v51 = vpop.f32.mrb[24].mxu1 }
 0x13b   : > { %879 = vst [vmem:[%s3268_s5 + $0xd0] sm:$0xff] %v3020_v49  ;;  %v690_v52 = vpop.f32.mrb[25].mxu0  ;;  %911 = vst [vmem:[%s3268_s5 + $0x1d0] sm:$0xff] %v3391_v51  ;;  %v3396_v53 = vpop.f32.mrb[25].mxu1  ;;  %v1016_v7 = vmul.f32 %v3020_v49, %v3020_v49 }
 0x13c   : > { %877 = vst [vmem:[%s3268_s5 + $0xc0] sm:$0xff] %v690_v52  ;;  %v941_v54 = vadd.f32 %v940_v50, %v690_v52  ;;  %v1014_v55 = vmul.f32 %v690_v52, %v690_v52  ;;  %v1076_v56 = vadd.f32 %v1075_v45, %v1013_v41  ;;  %v3021_v57 = vpop.f32.mrb[26].mxu0  ;;  %909 = vst [vmem:[%s3268_s5 + $0x1c0] sm:$0xff] %v3396_v53  ;;  %v3401_v58 = vpop.f32.mrb[26].mxu1 }
 0x13d   : > { %880 = vst [vmem:[%s3268_s5 + $0xd8] sm:$0xff] %v3021_v57  ;;  %v693_v62 = vpop.f32.mrb[27].mxu0  ;;  %912 = vst [vmem:[%s3268_s5 + $0x1d8] sm:$0xff] %v3401_v58  ;;  %v3406_v0 = vpop.f32.mrb[27].mxu1  ;;  %v1017_v11 = vmul.f32 %v3021_v57, %v3021_v57  ;;  %v1022_v50 = vmul.f32 %v3275_v44, %v3275_v44 }
 0x13e   : > { %v1077_v1 = vadd.f32 %v1076_v56, %v1014_v55  ;;  %878 = vst [vmem:[%s3268_s5 + $0xc8] sm:$0xff] %v693_v62  ;;  %v942_v3 = vadd.f32 %v941_v54, %v693_v62  ;;  %v1015_v5 = vmul.f32 %v693_v62, %v693_v62  ;;  %910 = vst [vmem:[%s3268_s5 + $0x1c8] sm:$0xff] %v3406_v0 }
 0x13f   : > { %v1024_v62 = vmul.f32 %v3270_v42, %v3270_v42 }
 0x140   : > { %v943_v9 = vadd.f32 %v3020_v49, %v942_v3  ;;  %v1078_v10 = vadd.f32 %v1077_v1, %v1015_v5  ;;  %v1025_v5 = vmul.f32 %v3280_v46, %v3280_v46 }
 0x142   : > { %v1079_v12 = vadd.f32 %v1078_v10, %v1016_v7  ;;  %v3024_v13 = vpop.f32.mrb[28].mxu0  ;;  %v944_v14 = vadd.f32 %v3021_v57, %v943_v9  ;;  %v3411_v16 = vpop.f32.mrb[28].mxu1  ;;  %v1023_v57 = vmul.f32 %v3285_v48, %v3285_v48 }
 0x143   : > { %883 = vst [vmem:[%s3268_s5 + $0xf0] sm:$0xff] %v3024_v13  ;;  %v706_v18 = vpop.f32.mrb[29].mxu0  ;;  %915 = vst [vmem:[%s3268_s5 + $0x1f0] sm:$0xff] %v3411_v16  ;;  %v3416_v19 = vpop.f32.mrb[29].mxu1  ;;  %v1020_v38 = vmul.f32 %v3024_v13, %v3024_v13 }
 0x144   : > { %881 = vst [vmem:[%s3268_s5 + $0xe0] sm:$0xff] %v706_v18  ;;  %v945_v20 = vadd.f32 %v944_v14, %v706_v18  ;;  %v1018_v23 = vmul.f32 %v706_v18, %v706_v18  ;;  %v1080_v26 = vadd.f32 %v1079_v12, %v1017_v11  ;;  %v3025_v27 = vpop.f32.mrb[30].mxu0  ;;  %913 = vst [vmem:[%s3268_s5 + $0x1e0] sm:$0xff] %v3416_v19  ;;  %v3421_v28 = vpop.f32.mrb[30].mxu1 }
 0x145   : > { %884 = vst [vmem:[%s3268_s5 + $0xf8] sm:$0xff] %v3025_v27  ;;  %v709_v29 = vpop.f32.mrb[31].mxu0  ;;  %916 = vst [vmem:[%s3268_s5 + $0x1f8] sm:$0xff] %v3421_v28  ;;  %v3426_v31 = vpop.f32.mrb[31].mxu1  ;;  %v1021_v41 = vmul.f32 %v3025_v27, %v3025_v27 }
 0x146   : > { %v1081_v33 = vadd.f32 %v1080_v26, %v1018_v23  ;;  %882 = vst [vmem:[%s3268_s5 + $0xe8] sm:$0xff] %v709_v29  ;;  %v946_v34 = vadd.f32 %v945_v20, %v709_v29  ;;  %v1019_v36 = vmul.f32 %v709_v29, %v709_v29  ;;  %914 = vst [vmem:[%s3268_s5 + $0x1e8] sm:$0xff] %v3426_v31 }
 0x148   : > { %v947_v39 = vadd.f32 %v3024_v13, %v946_v34  ;;  %v1082_v40 = vadd.f32 %v1081_v33, %v1019_v36  ;;  %v1027_v13 = vmul.f32 %v3305_v4, %v3305_v4  ;;  %v1031_v33 = vmul.f32 %v3326_v24, %v3326_v24 }
 0x14a   : > { %v1083_v45 = vadd.f32 %v1082_v40, %v1020_v38  ;;  %v948_v49 = vadd.f32 %v3025_v27, %v947_v39 }
 0x14c   : > { %v949_v52 = vadd.f32 %v948_v49, %v3275_v44  ;;  %v1084_v54 = vadd.f32 %v1083_v45, %v1021_v41  ;;  %v1026_v44 = vmul.f32 %v3295_v61, %v3295_v61  ;;  %v1035_v49 = vmul.f32 %v3346_v47, %v3346_v47 }
 0x14e   : > { %v1085_v55 = vadd.f32 %v1084_v54, %v1022_v50  ;;  %v950_v56 = vadd.f32 %v949_v52, %v3285_v48 }
 0x150   : > { %v951_v1 = vadd.f32 %v3270_v42, %v950_v56  ;;  %v1086_v3 = vadd.f32 %v1085_v55, %v1023_v57  ;;  %v1028_v42 = vmul.f32 %v3290_v59, %v3290_v59 }
 0x152   : > { %v1087_v7 = vadd.f32 %v1086_v3, %v1024_v62  ;;  %v952_v9 = vadd.f32 %v3280_v46, %v951_v1  ;;  %v1029_v46 = vmul.f32 %v3300_v2, %v3300_v2  ;;  %v1039_v1 = vmul.f32 %v3366_v8, %v3366_v8 }
 0x154   : > { %v953_v10 = vadd.f32 %v952_v9, %v3295_v61  ;;  %v1088_v11 = vadd.f32 %v1087_v7, %v1025_v5  ;;  %v1030_v61 = vmul.f32 %v3315_v17, %v3315_v17 }
 0x156   : > { %v1089_v12 = vadd.f32 %v1088_v11, %v1026_v44  ;;  %v954_v48 = vadd.f32 %v953_v10, %v3305_v4 }
 0x158   : > { %v955_v14 = vadd.f32 %v3290_v59, %v954_v48  ;;  %v1090_v18 = vadd.f32 %v1089_v12, %v1027_v13  ;;  %v1032_v59 = vmul.f32 %v3310_v15, %v3310_v15  ;;  %v1043_v12 = vmul.f32 %v3386_v32, %v3386_v32 }
 0x15a   : > { %v1091_v20 = vadd.f32 %v1090_v18, %v1028_v42  ;;  %v956_v23 = vadd.f32 %v3300_v2, %v955_v14  ;;  %v1033_v2 = vmul.f32 %v3320_v22, %v3320_v22 }
 0x15c   : > { %v957_v26 = vadd.f32 %v956_v23, %v3315_v17  ;;  %v1092_v27 = vadd.f32 %v1091_v20, %v1029_v46  ;;  %v1034_v17 = vmul.f32 %v3336_v37, %v3336_v37  ;;  %v1047_v23 = vmul.f32 %v3406_v0, %v3406_v0 }
 0x15e   : > { %v1093_v29 = vadd.f32 %v1092_v27, %v1030_v61  ;;  %v958_v4 = vadd.f32 %v957_v26, %v3326_v24 }
 0x160   : > { %v959_v34 = vadd.f32 %v3310_v15, %v958_v4  ;;  %v1094_v36 = vadd.f32 %v1093_v29, %v1031_v33  ;;  %v1036_v15 = vmul.f32 %v3331_v35, %v3331_v35 }
 0x162   : > { %v1095_v38 = vadd.f32 %v1094_v36, %v1032_v59  ;;  %v960_v39 = vadd.f32 %v3320_v22, %v959_v34  ;;  %v1037_v22 = vmul.f32 %v3341_v43, %v3341_v43  ;;  %v1051_v34 = vmul.f32 %v3426_v31, %v3426_v31 }
 0x164   : > { %v961_v40 = vadd.f32 %v960_v39, %v3336_v37  ;;  %v1096_v41 = vadd.f32 %v1095_v38, %v1033_v2  ;;  %v1038_v37 = vmul.f32 %v3356_v63, %v3356_v63 }
 0x166   : > { %v1097_v45 = vadd.f32 %v1096_v41, %v1034_v17  ;;  %v962_v24 = vadd.f32 %v961_v40, %v3346_v47 }
 0x168   : > { %v963_v50 = vadd.f32 %v3331_v35, %v962_v24  ;;  %v1098_v52 = vadd.f32 %v1097_v45, %v1035_v49  ;;  %v1040_v35 = vmul.f32 %v3351_v60, %v3351_v60 }
 0x16a   : > { %v1099_v54 = vadd.f32 %v1098_v52, %v1036_v15  ;;  %v964_v55 = vadd.f32 %v3341_v43, %v963_v50  ;;  %v1041_v43 = vmul.f32 %v3361_v6, %v3361_v6  ;;  %v917_v52 = vld [vmem:[#allocation2] sm:$0x1] }
 0x16c   : > { %v965_v56 = vadd.f32 %v964_v55, %v3356_v63  ;;  %v1100_v57 = vadd.f32 %v1099_v54, %v1037_v22  ;;  %v1042_v63 = vmul.f32 %v3376_v25, %v3376_v25  ;;  %v989_v54 = vld [vmem:[#allocation3] sm:$0x1] }
 0x16e   : > { %v1101_v62 = vadd.f32 %v1100_v57, %v1038_v37  ;;  %v966_v47 = vadd.f32 %v965_v56, %v3366_v8 }
 0x170   : > { %v967_v3 = vadd.f32 %v3351_v60, %v966_v47  ;;  %v1102_v5 = vadd.f32 %v1101_v62, %v1039_v1  ;;  %v1044_v60 = vmul.f32 %v3371_v21, %v3371_v21 }
 0x172   : > { %v1103_v7 = vadd.f32 %v1102_v5, %v1040_v35  ;;  %v968_v9 = vadd.f32 %v3361_v6, %v967_v3  ;;  %v1045_v6 = vmul.f32 %v3381_v30, %v3381_v30 }
 0x174   : > { %v969_v44 = vadd.f32 %v968_v9, %v3376_v25  ;;  %v1104_v10 = vadd.f32 %v1103_v7, %v1041_v43  ;;  %v1046_v25 = vmul.f32 %v3396_v53, %v3396_v53  ;;  %v1209_v43 = vlaneseq (%p1125_p6)  ;;  %v1137_v9 = vld [vmem:[%s5598_s2] sm:$0x1] (%p1125_p6) }
 0x176   : > { %v1105_v11 = vadd.f32 %v1104_v10, %v1042_v63  ;;  %v970_v8 = vadd.f32 %v969_v44, %v3386_v32  ;;  %v1210_v7 = vshrl.u32 (%p1125_p6), %v1209_v43, 7 }
 0x178   : > { %v971_v48 = vadd.f32 %v3371_v21, %v970_v8  ;;  %v1106_v13 = vadd.f32 %v1105_v11, %v1043_v12  ;;  %v1048_v21 = vmul.f32 %v3391_v51, %v3391_v51  ;;  %v1211_v63 = vsub.s32 (%p1125_p6), 0, %v1210_v7  ;;  %v1141_v11 = vld [vmem:[%s5599_s3] sm:$0x1] (%p1125_p6)  ;;  %v1145_v12 = vld [vmem:[%s5600_s4 + $0x8] sm:$0xff] (%p1125_p6) }
 0x179   : > { %v1144_v8 = vld [vmem:[%s5600_s4] sm:$0xff] (%p1125_p6) }
 0x17a   : > { %v1107_v42 = vadd.f32 %v1106_v13, %v1044_v60  ;;  %v972_v14 = vadd.f32 %v3381_v30, %v971_v48  ;;  %v1049_v30 = vmul.f32 %v3401_v58, %v3401_v58  ;;  %v1146_v60 = vld [vmem:[%s5600_s4 + $0x10] sm:$0xff] (%p1125_p6)  ;;  %v1147_v48 = vld [vmem:[%s5600_s4 + $0x18] sm:$0xff] (%p1125_p6)  ;;  %v1148_v13 = vld [vmem:[%s5600_s4 + $0x20] sm:$0xff] (%p1125_p6) }
 0x17c   : > { %v973_v18 = vadd.f32 %v972_v14, %v3396_v53  ;;  %v1108_v46 = vadd.f32 %v1107_v42, %v1045_v6  ;;  %v1050_v53 = vmul.f32 %v3416_v19, %v3416_v19  ;;  %v1149_v14 = vld [vmem:[%s5600_s4 + $0x28] sm:$0xff] (%p1125_p6) }
 0x17e   : > { %v1109_v20 = vadd.f32 %v1108_v46, %v1046_v25  ;;  %v974_v32 = vadd.f32 %v973_v18, %v3406_v0  ;;  %v1150_v25 = vld [vmem:[%s5600_s4 + $0x30] sm:$0xff] (%p1125_p6)  ;;  %v1151_v18 = vld [vmem:[%s5600_s4 + $0x38] sm:$0xff] (%p1125_p6)  ;;  %v1152_v46 = vld [vmem:[%s5600_s4 + $0x40] sm:$0xff] (%p1125_p6) }
 0x180   : > { %v975_v61 = vadd.f32 %v3391_v51, %v974_v32  ;;  %v1110_v26 = vadd.f32 %v1109_v20, %v1047_v23  ;;  %v1052_v51 = vmul.f32 %v3411_v16, %v3411_v16  ;;  %v1153_v20 = vld [vmem:[%s5600_s4 + $0x48] sm:$0xff] (%p1125_p6)  ;;  %v1154_v32 = vld [vmem:[%s5600_s4 + $0x50] sm:$0xff] (%p1125_p6) }
 0x182   : > { %v1111_v27 = vadd.f32 %v1110_v26, %v1048_v21  ;;  %v976_v29 = vadd.f32 %v3401_v58, %v975_v61  ;;  %v1053_v58 = vmul.f32 %v3421_v28, %v3421_v28 }
 0x184   : > { %v977_v4 = vadd.f32 %v976_v29, %v3416_v19  ;;  %v1112_v33 = vadd.f32 %v1111_v27, %v1049_v30  ;;  %v1155_v30 = vld [vmem:[%s5600_s4 + $0x58] sm:$0xff] (%p1125_p6)  ;;  %v1156_v27 = vld [vmem:[%s5600_s4 + $0x60] sm:$0xff] (%p1125_p6)  ;;  %v1157_v29 = vld [vmem:[%s5600_s4 + $0x68] sm:$0xff] (%p1125_p6) }
 0x186   : > { %v1113_v59 = vadd.f32 %v1112_v33, %v1050_v53  ;;  %v978_v0 = vadd.f32 %v977_v4, %v3426_v31 }
 0x188   : > { %v979_v36 = vadd.f32 %v3411_v16, %v978_v0  ;;  %v1114_v2 = vadd.f32 %v1113_v59, %v1051_v34 }
 0x18a   : > { %v980_v38 = vadd.f32 %v3421_v28, %v979_v36  ;;  %v1115_v39 = vadd.f32 %v1114_v2, %v1052_v51 }
 0x18c   : > { %v981_v19 = vrot.slane %v980_v38, 4  ;;  %v1116_v17 = vadd.f32 %v1115_v39, %v1053_v58 }
 0x18e   : > { %v982_v40 = vadd.f32 %v981_v19, %v980_v38  ;;  %v1117_v41 = vrot.slane %v1116_v17, 4 }
 0x190   : > { %v983_v45 = vrot.slane %v982_v40, 2  ;;  %v1118_v24 = vadd.f32 %v1117_v41, %v1116_v17 }
 0x192   : > { %v984_v49 = vadd.f32 %v983_v45, %v982_v40  ;;  %v1119_v31 = vrot.slane %v1118_v24, 2 }
 0x194   : > { %v985_v15 = vrot.slane %v984_v49, 1  ;;  %v1120_v50 = vadd.f32 %v1119_v31, %v1118_v24 }
 0x196   : > { %v986_v22 = vadd.f32 %v985_v15, %v984_v49  ;;  %v1121_v16 = vrot.slane %v1120_v50, 1  ;;  %1129 = sbr.rel (!%p1125_p6) target bundleno = 641 (0x281), region = 44 }
 0x198   : > { %v987_v55 = vadd.f32 %v986_v22, %v917_v52  ;;  %v1122_v37 = vadd.f32 %v1121_v16, %v1120_v50  ;;  %v1158_v16 = vld [vmem:[%s5600_s4 + $0x70] sm:$0xff] (%p1125_p6) }
 0x19a   : > { %988 = vst [vmem:[#allocation2] sm:$0x1] %v987_v55  ;;  %v1123_v56 = vadd.f32 %v1122_v37, %v989_v54  ;;  %v1159_v54 = vld [vmem:[%s5600_s4 + $0x78] sm:$0xff] (%p1125_p6) }
 0x19c   : > { %1124 = vst [vmem:[#allocation3] sm:$0x1] %v1123_v56 }
 0x1a1   : > { %v1130_v28 = vld [vmem:[#allocation2] sm:$0x1] }
 0x1a2   : > { %v1131_v62 = vmul.f32 0.00048828125, %v1130_v28 }
 0x1a3   : > { %v1132_v57 = vld [vmem:[#allocation3] sm:$0x1] }
 0x1a4   : > { %v1133_v47 = vmul.f32 0.00048828125, %v1132_v57  ;;  %v1134_v1 = vmul.f32 %v1131_v62, %v1131_v62 }
 0x1a6   : > { %v1135_v35 = vsub.f32 %v1133_v47, %v1134_v1 }
 0x1a8   : > { %v1136_v3 = vmax.f32 %v1135_v35, 0.0  ;;  %v1160_v35 = vld [vmem:[%s5600_s4 + $0x80] sm:$0xff] }
 0x1aa   : > { %v1138_v5 = vadd.f32 1e-05, %v1136_v3 }
 0x1ac   : > { %3139 = vrsqrt.f32 %v1138_v5 }
 0x1b6   : > { %v3140_v44 = vpop.eup %3139 }
 0x1b7   : > { %v1140_v10 = vmul.f32 %v3140_v44, %v1137_v9  ;;  %v1161_v9 = vld [vmem:[%s5600_s4 + $0x88] sm:$0xff]  ;;  %v1163_v44 = vld [vmem:[%s5600_s4 + $0x98] sm:$0xff] }
 0x1b9   : > { %v1142_v6 = vmul.f32 %v1140_v10, %v1131_v62  ;;  %v3550_v42 = vrot.slane %v1140_v10, %v1211_v63 }
 0x1bb   : > { %v1143_v23 = vsub.f32 %v1141_v11, %v1142_v6  ;;  %v1214_v21 = vmul.f32 %v3550_v42, %v1144_v8  ;;  %v1215_v61 = vmul.f32 %v3550_v42, %v1145_v12  ;;  %v1216_v26 = vmul.f32 %v3550_v42, %v1146_v60  ;;  %v1164_v60 = vld [vmem:[%s5600_s4 + $0xa0] sm:$0xff] }
 0x1bc   : > { %v1217_v53 = vmul.f32 %v3550_v42, %v1147_v48  ;;  %v1218_v4 = vmul.f32 %v3550_v42, %v1148_v13  ;;  %v1219_v33 = vmul.f32 %v3550_v42, %v1149_v14  ;;  %v1220_v59 = vmul.f32 %v3550_v42, %v1150_v25  ;;  %v1165_v48 = vld [vmem:[%s5600_s4 + $0xa8] sm:$0xff] }
 0x1bd   : > { %v3586_v0 = vrot.slane %v1143_v23, %v1211_v63  ;;  %v1221_v34 = vmul.f32 %v3550_v42, %v1151_v18  ;;  %v1222_v51 = vmul.f32 %v3550_v42, %v1152_v46  ;;  %v1223_v36 = vmul.f32 %v3550_v42, %v1153_v20  ;;  %v1162_v63 = vld [vmem:[%s5600_s4 + $0x90] sm:$0xff] }
 0x1be   : > { %v1224_v2 = vmul.f32 %v3550_v42, %v1154_v32  ;;  %v1225_v58 = vmul.f32 %v3550_v42, %v1155_v30  ;;  %v1226_v38 = vmul.f32 %v3550_v42, %v1156_v27  ;;  %v1227_v39 = vmul.f32 %v3550_v42, %v1157_v29  ;;  %v1166_v23 = vld [vmem:[%s5600_s4 + $0xb0] sm:$0xff] }
 0x1bf   : > { %v1284_v19 = vadd.f32 %v3586_v0, %v1214_v21  ;;  %v1285_v17 = vadd.f32 %v3586_v0, %v1215_v61  ;;  %v1286_v40 = vadd.f32 %v3586_v0, %v1216_v26  ;;  %v1287_v41 = vadd.f32 %v3586_v0, %v1217_v53  ;;  %v1167_v21 = vld [vmem:[%s5600_s4 + $0xb8] sm:$0xff] }
 0x1c0   : > { %v1288_v45 = vadd.f32 %v3586_v0, %v1218_v4  ;;  %v1289_v24 = vadd.f32 %v3586_v0, %v1219_v33  ;;  %v1290_v49 = vadd.f32 %v3586_v0, %v1220_v59  ;;  %v1291_v31 = vadd.f32 %v3586_v0, %v1221_v34  ;;  %v1168_v59 = vld [vmem:[%s5600_s4 + $0xc0] sm:$0xff] }
 0x1c1   : > { %v1348_v15 = vmax.f32 %v1284_v19, 0.0  ;;  %v1349_v50 = vmax.f32 %v1285_v17, 0.0  ;;  %v1350_v52 = vmax.f32 %v1286_v40, 0.0  ;;  %v1351_v22 = vmax.f32 %v1287_v41, 0.0 }
 0x1c2   : > { %v1352_v55 = vmax.f32 %v1288_v45, 0.0  ;;  %v1353_v37 = vmax.f32 %v1289_v24, 0.0  ;;  %v1354_v56 = vmax.f32 %v1290_v49, 0.0  ;;  %v1355_v28 = vmax.f32 %v1291_v31, 0.0  ;;  %v1172_v45 = vld [vmem:[%s5600_s4 + $0xe0] sm:$0xff]  ;;  %v1173_v24 = vld [vmem:[%s5600_s4 + $0xe8] sm:$0xff] }
 0x1c3   : > { %1412 = vst [vmem:[%s5600_s4] sm:$0xff] %v1348_v15  ;;  %1413 = vst [vmem:[%s5600_s4 + $0x8] sm:$0xff] %v1349_v50  ;;  %v1292_v57 = vadd.f32 %v3586_v0, %v1222_v51  ;;  %v1293_v62 = vadd.f32 %v3586_v0, %v1223_v36  ;;  %v1294_v47 = vadd.f32 %v3586_v0, %v1224_v2 }
 0x1c4   : > { %1414 = vst [vmem:[%s5600_s4 + $0x10] sm:$0xff] %v1350_v52  ;;  %1415 = vst [vmem:[%s5600_s4 + $0x18] sm:$0xff] %v1351_v22  ;;  %v1295_v1 = vadd.f32 %v3586_v0, %v1225_v58  ;;  %v1296_v3 = vadd.f32 %v3586_v0, %v1226_v38  ;;  %v1297_v5 = vadd.f32 %v3586_v0, %v1227_v39  ;;  %v1169_v58 = vld [vmem:[%s5600_s4 + $0xc8] sm:$0xff]  ;;  %v1170_v38 = vld [vmem:[%s5600_s4 + $0xd0] sm:$0xff] }
 0x1c5   : > { %1416 = vst [vmem:[%s5600_s4 + $0x20] sm:$0xff] %v1352_v55  ;;  %1417 = vst [vmem:[%s5600_s4 + $0x28] sm:$0xff] %v1353_v37  ;;  %v1228_v43 = vmul.f32 %v3550_v42, %v1158_v16  ;;  %v1229_v7 = vmul.f32 %v3550_v42, %v1159_v54  ;;  %v1356_v10 = vmax.f32 %v1292_v57, 0.0  ;;  %v1357_v11 = vmax.f32 %v1293_v62, 0.0  ;;  %v1171_v39 = vld [vmem:[%s5600_s4 + $0xd8] sm:$0xff]  ;;  %v1174_v55 = vld [vmem:[%s5600_s4 + $0xf0] sm:$0xff] }
 0x1c6   : > { %1418 = vst [vmem:[%s5600_s4 + $0x30] sm:$0xff] %v1354_v56  ;;  %1419 = vst [vmem:[%s5600_s4 + $0x38] sm:$0xff] %v1355_v28  ;;  %v1358_v8 = vmax.f32 %v1294_v47, 0.0  ;;  %v1359_v12 = vmax.f32 %v1295_v1, 0.0  ;;  %v1360_v13 = vmax.f32 %v1296_v3, 0.0  ;;  %v1361_v6 = vmax.f32 %v1297_v5, 0.0 }
 0x1c7   : > { %v1298_v14 = vadd.f32 %v3586_v0, %v1228_v43  ;;  %v1299_v25 = vadd.f32 %v3586_v0, %v1229_v7  ;;  %1420 = vst [vmem:[%s5600_s4 + $0x40] sm:$0xff] %v1356_v10  ;;  %1421 = vst [vmem:[%s5600_s4 + $0x48] sm:$0xff] %v1357_v11  ;;  %v1230_v18 = vmul.f32 %v3550_v42, %v1160_v35  ;;  %v1175_v37 = vld [vmem:[%s5600_s4 + $0xf8] sm:$0xff]  ;;  %v1176_v5 = vld [vmem:[%s5600_s4 + $0x100] sm:$0xff] }
 0x1c8   : > { %1422 = vst [vmem:[%s5600_s4 + $0x50] sm:$0xff] %v1358_v8  ;;  %1423 = vst [vmem:[%s5600_s4 + $0x58] sm:$0xff] %v1359_v12  ;;  %v1231_v46 = vmul.f32 %v3550_v42, %v1161_v9  ;;  %v1232_v20 = vmul.f32 %v3550_v42, %v1162_v63  ;;  %v1233_v32 = vmul.f32 %v3550_v42, %v1163_v44  ;;  %v1177_v44 = vld [vmem:[%s5600_s4 + $0x108] sm:$0xff]  ;;  %v1178_v10 = vld [vmem:[%s5600_s4 + $0x110] sm:$0xff] }
 0x1c9   : > { %1424 = vst [vmem:[%s5600_s4 + $0x60] sm:$0xff] %v1360_v13  ;;  %1425 = vst [vmem:[%s5600_s4 + $0x68] sm:$0xff] %v1361_v6  ;;  %v1362_v61 = vmax.f32 %v1298_v14, 0.0  ;;  %v1363_v26 = vmax.f32 %v1299_v25, 0.0  ;;  %v1234_v30 = vmul.f32 %v3550_v42, %v1164_v60  ;;  %v1235_v27 = vmul.f32 %v3550_v42, %v1165_v48  ;;  %v1179_v11 = vld [vmem:[%s5600_s4 + $0x118] sm:$0xff]  ;;  %v1180_v13 = vld [vmem:[%s5600_s4 + $0x120] sm:$0xff] }
 0x1ca   : > { %v1300_v29 = vadd.f32 %v3586_v0, %v1230_v18  ;;  %v1301_v53 = vadd.f32 %v3586_v0, %v1231_v46  ;;  %v1302_v4 = vadd.f32 %v3586_v0, %v1232_v20  ;;  %v1303_v33 = vadd.f32 %v3586_v0, %v1233_v32  ;;  %v1181_v6 = vld [vmem:[%s5600_s4 + $0x128] sm:$0xff] }
 0x1cb   : > { %1426 = vst [vmem:[%s5600_s4 + $0x70] sm:$0xff] %v1362_v61  ;;  %1427 = vst [vmem:[%s5600_s4 + $0x78] sm:$0xff] %v1363_v26  ;;  %v1304_v34 = vadd.f32 %v3586_v0, %v1234_v30  ;;  %v1305_v51 = vadd.f32 %v3586_v0, %v1235_v27  ;;  %v1236_v36 = vmul.f32 %v3550_v42, %v1166_v23  ;;  %v1182_v61 = vld [vmem:[%s5600_s4 + $0x130] sm:$0xff]  ;;  %v1183_v26 = vld [vmem:[%s5600_s4 + $0x138] sm:$0xff] }
 0x1cc   : > { %v1237_v2 = vmul.f32 %v3550_v42, %v1167_v21  ;;  %v1364_v19 = vmax.f32 %v1300_v29, 0.0  ;;  %v1365_v17 = vmax.f32 %v1301_v53, 0.0  ;;  %v1366_v40 = vmax.f32 %v1302_v4, 0.0 }
 0x1cd   : > { %v1367_v41 = vmax.f32 %v1303_v33, 0.0  ;;  %v1368_v49 = vmax.f32 %v1304_v34, 0.0  ;;  %v1369_v31 = vmax.f32 %v1305_v51, 0.0  ;;  %v1306_v15 = vadd.f32 %v3586_v0, %v1236_v36  ;;  %v1184_v51 = vld [vmem:[%s5600_s4 + $0x140] sm:$0xff] }
 0x1ce   : > { %v1307_v50 = vadd.f32 %v3586_v0, %v1237_v2  ;;  %1428 = vst [vmem:[%s5600_s4 + $0x80] sm:$0xff] %v1364_v19  ;;  %1429 = vst [vmem:[%s5600_s4 + $0x88] sm:$0xff] %v1365_v17  ;;  %v1238_v52 = vmul.f32 %v3550_v42, %v1168_v59  ;;  %v1239_v22 = vmul.f32 %v3550_v42, %v1169_v58  ;;  %v1186_v19 = vld [vmem:[%s5600_s4 + $0x150] sm:$0xff]  ;;  %v1187_v17 = vld [vmem:[%s5600_s4 + $0x158] sm:$0xff] }
 0x1cf   : > { %1430 = vst [vmem:[%s5600_s4 + $0x90] sm:$0xff] %v1366_v40  ;;  %1431 = vst [vmem:[%s5600_s4 + $0x98] sm:$0xff] %v1367_v41  ;;  %v1240_v16 = vmul.f32 %v3550_v42, %v1170_v38  ;;  %v1241_v54 = vmul.f32 %v3550_v42, %v1171_v39  ;;  %v1370_v56 = vmax.f32 %v1306_v15, 0.0  ;;  %v1242_v57 = vmul.f32 %v3550_v42, %v1172_v45  ;;  %v1185_v39 = vld [vmem:[%s5600_s4 + $0x148] sm:$0xff] }
 0x1d0   : > { %1432 = vst [vmem:[%s5600_s4 + $0xa0] sm:$0xff] %v1368_v49  ;;  %1433 = vst [vmem:[%s5600_s4 + $0xa8] sm:$0xff] %v1369_v31  ;;  %v1371_v28 = vmax.f32 %v1307_v50, 0.0  ;;  %v1243_v62 = vmul.f32 %v3550_v42, %v1173_v24  ;;  %v1308_v47 = vadd.f32 %v3586_v0, %v1238_v52  ;;  %v1309_v1 = vadd.f32 %v3586_v0, %v1239_v22  ;;  %v1188_v49 = vld [vmem:[%s5600_s4 + $0x160] sm:$0xff]  ;;  %v1189_v31 = vld [vmem:[%s5600_s4 + $0x168] sm:$0xff] }
 0x1d1   : > { %v1310_v35 = vadd.f32 %v3586_v0, %v1240_v16  ;;  %v1311_v3 = vadd.f32 %v3586_v0, %v1241_v54  ;;  %1434 = vst [vmem:[%s5600_s4 + $0xb0] sm:$0xff] %v1370_v56  ;;  %v1312_v43 = vadd.f32 %v3586_v0, %v1242_v57  ;;  %v1244_v9 = vmul.f32 %v3550_v42, %v1174_v55  ;;  %v1190_v56 = vld [vmem:[%s5600_s4 + $0x170] sm:$0xff] }
 0x1d2   : > { %1435 = vst [vmem:[%s5600_s4 + $0xb8] sm:$0xff] %v1371_v28  ;;  %v1313_v7 = vadd.f32 %v3586_v0, %v1243_v62  ;;  %v1245_v63 = vmul.f32 %v3550_v42, %v1175_v37  ;;  %v1372_v8 = vmax.f32 %v1308_v47, 0.0  ;;  %v1373_v12 = vmax.f32 %v1309_v1, 0.0  ;;  %v1191_v28 = vld [vmem:[%s5600_s4 + $0x178] sm:$0xff] }
 0x1d3   : > { %v1374_v60 = vmax.f32 %v1310_v35, 0.0  ;;  %v1375_v48 = vmax.f32 %v1311_v3, 0.0  ;;  %v1376_v14 = vmax.f32 %v1312_v43, 0.0  ;;  %v1314_v18 = vadd.f32 %v3586_v0, %v1244_v9 }
 0x1d4   : > { %v1377_v25 = vmax.f32 %v1313_v7, 0.0  ;;  %v1315_v46 = vadd.f32 %v3586_v0, %v1245_v63  ;;  %1436 = vst [vmem:[%s5600_s4 + $0xc0] sm:$0xff] %v1372_v8  ;;  %1437 = vst [vmem:[%s5600_s4 + $0xc8] sm:$0xff] %v1373_v12  ;;  %v1246_v20 = vmul.f32 %v3550_v42, %v1176_v5  ;;  %v1247_v32 = vmul.f32 %v3550_v42, %v1177_v44  ;;  %v1192_v7 = vld [vmem:[%s5600_s4 + $0x180] sm:$0xff]  ;;  %v1194_v8 = vld [vmem:[%s5600_s4 + $0x190] sm:$0xff] }
 0x1d5   : > { %1438 = vst [vmem:[%s5600_s4 + $0xd0] sm:$0xff] %v1374_v60  ;;  %1439 = vst [vmem:[%s5600_s4 + $0xd8] sm:$0xff] %v1375_v48  ;;  %v1248_v23 = vmul.f32 %v3550_v42, %v1178_v10  ;;  %v1249_v21 = vmul.f32 %v3550_v42, %v1179_v11  ;;  %v1378_v30 = vmax.f32 %v1314_v18, 0.0  ;;  %v1250_v29 = vmul.f32 %v3550_v42, %v1180_v13  ;;  %v1193_v11 = vld [vmem:[%s5600_s4 + $0x188] sm:$0xff]  ;;  %v1195_v12 = vld [vmem:[%s5600_s4 + $0x198] sm:$0xff] }
 0x1d6   : > { %1440 = vst [vmem:[%s5600_s4 + $0xe0] sm:$0xff] %v1376_v14  ;;  %1441 = vst [vmem:[%s5600_s4 + $0xe8] sm:$0xff] %v1377_v25  ;;  %v1379_v27 = vmax.f32 %v1315_v46, 0.0  ;;  %v1251_v53 = vmul.f32 %v3550_v42, %v1181_v6  ;;  %v1316_v4 = vadd.f32 %v3586_v0, %v1246_v20  ;;  %v1317_v33 = vadd.f32 %v3586_v0, %v1247_v32  ;;  %v1196_v14 = vld [vmem:[%s5600_s4 + $0x1a0] sm:$0xff]  ;;  %v1197_v25 = vld [vmem:[%s5600_s4 + $0x1a8] sm:$0xff] }
 0x1d7   : > { %v1318_v59 = vadd.f32 %v3586_v0, %v1248_v23  ;;  %v1319_v34 = vadd.f32 %v3586_v0, %v1249_v21  ;;  %1442 = vst [vmem:[%s5600_s4 + $0xf0] sm:$0xff] %v1378_v30  ;;  %v1320_v36 = vadd.f32 %v3586_v0, %v1250_v29  ;;  %v1252_v58 = vmul.f32 %v3550_v42, %v1182_v61  ;;  %v1198_v30 = vld [vmem:[%s5600_s4 + $0x1b0] sm:$0xff] }
 0x1d8   : > { %1443 = vst [vmem:[%s5600_s4 + $0xf8] sm:$0xff] %v1379_v27  ;;  %v1321_v2 = vadd.f32 %v3586_v0, %v1251_v53  ;;  %v1253_v38 = vmul.f32 %v3550_v42, %v1183_v26  ;;  %v1380_v40 = vmax.f32 %v1316_v4, 0.0  ;;  %v1381_v41 = vmax.f32 %v1317_v33, 0.0  ;;  %v1199_v27 = vld [vmem:[%s5600_s4 + $0x1b8] sm:$0xff] }
 0x1d9   : > { %v1382_v45 = vmax.f32 %v1318_v59, 0.0  ;;  %v1383_v24 = vmax.f32 %v1319_v34, 0.0  ;;  %v1384_v15 = vmax.f32 %v1320_v36, 0.0  ;;  %v1322_v52 = vadd.f32 %v3586_v0, %v1252_v58 }
 0x1da   : > { %v1385_v50 = vmax.f32 %v1321_v2, 0.0  ;;  %v1323_v22 = vadd.f32 %v3586_v0, %v1253_v38  ;;  %1444 = vst [vmem:[%s5600_s4 + $0x100] sm:$0xff] %v1380_v40  ;;  %1445 = vst [vmem:[%s5600_s4 + $0x108] sm:$0xff] %v1381_v41  ;;  %v1254_v16 = vmul.f32 %v3550_v42, %v1184_v51  ;;  %v1255_v54 = vmul.f32 %v3550_v42, %v1185_v39  ;;  %v1200_v2 = vld [vmem:[%s5600_s4 + $0x1c0] sm:$0xff]  ;;  %v1202_v40 = vld [vmem:[%s5600_s4 + $0x1d0] sm:$0xff] }
 0x1db   : > { %1446 = vst [vmem:[%s5600_s4 + $0x110] sm:$0xff] %v1382_v45  ;;  %1447 = vst [vmem:[%s5600_s4 + $0x118] sm:$0xff] %v1383_v24  ;;  %v1256_v55 = vmul.f32 %v3550_v42, %v1186_v19  ;;  %v1257_v37 = vmul.f32 %v3550_v42, %v1187_v17  ;;  %v1386_v57 = vmax.f32 %v1322_v52, 0.0  ;;  %v1258_v47 = vmul.f32 %v3550_v42, %v1188_v49  ;;  %v1201_v17 = vld [vmem:[%s5600_s4 + $0x1c8] sm:$0xff]  ;;  %v1203_v41 = vld [vmem:[%s5600_s4 + $0x1d8] sm:$0xff] }
 0x1dc   : > { %1448 = vst [vmem:[%s5600_s4 + $0x120] sm:$0xff] %v1384_v15  ;;  %1449 = vst [vmem:[%s5600_s4 + $0x128] sm:$0xff] %v1385_v50  ;;  %v1387_v62 = vmax.f32 %v1323_v22, 0.0  ;;  %v1259_v1 = vmul.f32 %v3550_v42, %v1189_v31  ;;  %v1324_v35 = vadd.f32 %v3586_v0, %v1254_v16  ;;  %v1325_v3 = vadd.f32 %v3586_v0, %v1255_v54  ;;  %v1204_v15 = vld [vmem:[%s5600_s4 + $0x1e0] sm:$0xff]  ;;  %v1205_v50 = vld [vmem:[%s5600_s4 + $0x1e8] sm:$0xff] }
 0x1dd   : > { %v1326_v5 = vadd.f32 %v3586_v0, %v1256_v55  ;;  %v1327_v43 = vadd.f32 %v3586_v0, %v1257_v37  ;;  %1450 = vst [vmem:[%s5600_s4 + $0x130] sm:$0xff] %v1386_v57  ;;  %v1328_v9 = vadd.f32 %v3586_v0, %v1258_v47  ;;  %v1260_v44 = vmul.f32 %v3550_v42, %v1190_v56  ;;  %v1206_v57 = vld [vmem:[%s5600_s4 + $0x1f0] sm:$0xff] }
 0x1de   : > { %1451 = vst [vmem:[%s5600_s4 + $0x138] sm:$0xff] %v1387_v62  ;;  %v1329_v63 = vadd.f32 %v3586_v0, %v1259_v1  ;;  %v1261_v10 = vmul.f32 %v3550_v42, %v1191_v28  ;;  %v1388_v60 = vmax.f32 %v1324_v35, 0.0  ;;  %v1389_v48 = vmax.f32 %v1325_v3, 0.0  ;;  %v1207_v62 = vld [vmem:[%s5600_s4 + $0x1f8] sm:$0xff] }
 0x1df   : > { %v1390_v13 = vmax.f32 %v1326_v5, 0.0  ;;  %v1391_v6 = vmax.f32 %v1327_v43, 0.0  ;;  %v1392_v18 = vmax.f32 %v1328_v9, 0.0  ;;  %v1330_v20 = vadd.f32 %v3586_v0, %v1260_v44 }
 0x1e0   : > { %v1393_v46 = vmax.f32 %v1329_v63, 0.0  ;;  %v1331_v32 = vadd.f32 %v3586_v0, %v1261_v10  ;;  %1452 = vst [vmem:[%s5600_s4 + $0x140] sm:$0xff] %v1388_v60  ;;  %1453 = vst [vmem:[%s5600_s4 + $0x148] sm:$0xff] %v1389_v48  ;;  %v1262_v23 = vmul.f32 %v3550_v42, %v1192_v7  ;;  %v1263_v21 = vmul.f32 %v3550_v42, %v1193_v11  ;;  %v2548_v63 = vld [vmem:[%s5600_s4 + $0x200] sm:$0xff]  ;;  %v2550_v60 = vld [vmem:[%s5600_s4 + $0x210] sm:$0xff] }
 0x1e1   : > { %1454 = vst [vmem:[%s5600_s4 + $0x150] sm:$0xff] %v1390_v13  ;;  %1455 = vst [vmem:[%s5600_s4 + $0x158] sm:$0xff] %v1391_v6  ;;  %v1264_v61 = vmul.f32 %v3550_v42, %v1194_v8  ;;  %v1265_v26 = vmul.f32 %v3550_v42, %v1195_v12  ;;  %v1394_v29 = vmax.f32 %v1330_v20, 0.0  ;;  %v1266_v4 = vmul.f32 %v3550_v42, %v1196_v14  ;;  %v2549_v12 = vld [vmem:[%s5600_s4 + $0x208] sm:$0xff]  ;;  %v2551_v48 = vld [vmem:[%s5600_s4 + $0x218] sm:$0xff] }
 0x1e2   : > { %1456 = vst [vmem:[%s5600_s4 + $0x160] sm:$0xff] %v1392_v18  ;;  %1457 = vst [vmem:[%s5600_s4 + $0x168] sm:$0xff] %v1393_v46  ;;  %v1395_v53 = vmax.f32 %v1331_v32, 0.0  ;;  %v1267_v33 = vmul.f32 %v3550_v42, %v1197_v25  ;;  %v1332_v59 = vadd.f32 %v3586_v0, %v1262_v23  ;;  %v1333_v34 = vadd.f32 %v3586_v0, %v1263_v21  ;;  %v2552_v18 = vld [vmem:[%s5600_s4 + $0x220] sm:$0xff]  ;;  %v2553_v46 = vld [vmem:[%s5600_s4 + $0x228] sm:$0xff] }
 0x1e3   : > { %v1334_v51 = vadd.f32 %v3586_v0, %v1264_v61  ;;  %v1335_v36 = vadd.f32 %v3586_v0, %v1265_v26  ;;  %1458 = vst [vmem:[%s5600_s4 + $0x170] sm:$0xff] %v1394_v29  ;;  %v1336_v58 = vadd.f32 %v3586_v0, %v1266_v4  ;;  %v1268_v39 = vmul.f32 %v3550_v42, %v1198_v30  ;;  %v2554_v29 = vld [vmem:[%s5600_s4 + $0x230] sm:$0xff] }
 0x1e4   : > { %1459 = vst [vmem:[%s5600_s4 + $0x178] sm:$0xff] %v1395_v53  ;;  %v1337_v38 = vadd.f32 %v3586_v0, %v1267_v33  ;;  %v1269_v19 = vmul.f32 %v3550_v42, %v1199_v27  ;;  %v1396_v45 = vmax.f32 %v1332_v59, 0.0  ;;  %v1397_v24 = vmax.f32 %v1333_v34, 0.0  ;;  %v2555_v53 = vld [vmem:[%s5600_s4 + $0x238] sm:$0xff] }
 0x1e5   : > { %v1398_v49 = vmax.f32 %v1334_v51, 0.0  ;;  %v1399_v31 = vmax.f32 %v1335_v36, 0.0  ;;  %v1400_v52 = vmax.f32 %v1336_v58, 0.0  ;;  %v1338_v16 = vadd.f32 %v3586_v0, %v1268_v39 }
 0x1e6   : > { %v1401_v22 = vmax.f32 %v1337_v38, 0.0  ;;  %v1339_v54 = vadd.f32 %v3586_v0, %v1269_v19  ;;  %1460 = vst [vmem:[%s5600_s4 + $0x180] sm:$0xff] %v1396_v45  ;;  %1461 = vst [vmem:[%s5600_s4 + $0x188] sm:$0xff] %v1397_v24  ;;  %v1270_v55 = vmul.f32 %v3550_v42, %v1200_v2  ;;  %v1271_v37 = vmul.f32 %v3550_v42, %v1201_v17  ;;  %v2556_v38 = vld [vmem:[%s5600_s4 + $0x240] sm:$0xff]  ;;  %v2558_v45 = vld [vmem:[%s5600_s4 + $0x250] sm:$0xff] }
 0x1e7   : > { %1462 = vst [vmem:[%s5600_s4 + $0x190] sm:$0xff] %v1398_v49  ;;  %1463 = vst [vmem:[%s5600_s4 + $0x198] sm:$0xff] %v1399_v31  ;;  %v1272_v56 = vmul.f32 %v3550_v42, %v1202_v40  ;;  %v1273_v28 = vmul.f32 %v3550_v42, %v1203_v41  ;;  %v1402_v47 = vmax.f32 %v1338_v16, 0.0  ;;  %v1274_v35 = vmul.f32 %v3550_v42, %v1204_v15  ;;  %v2557_v41 = vld [vmem:[%s5600_s4 + $0x248] sm:$0xff]  ;;  %v2559_v24 = vld [vmem:[%s5600_s4 + $0x258] sm:$0xff] }
 0x1e8   : > { %1464 = vst [vmem:[%s5600_s4 + $0x1a0] sm:$0xff] %v1400_v52  ;;  %1465 = vst [vmem:[%s5600_s4 + $0x1a8] sm:$0xff] %v1401_v22  ;;  %v1403_v1 = vmax.f32 %v1339_v54, 0.0  ;;  %v1275_v3 = vmul.f32 %v3550_v42, %v1205_v50  ;;  %v1340_v5 = vadd.f32 %v3586_v0, %v1270_v55  ;;  %v1341_v43 = vadd.f32 %v3586_v0, %v1271_v37  ;;  %v2560_v52 = vld [vmem:[%s5600_s4 + $0x260] sm:$0xff]  ;;  %v2561_v22 = vld [vmem:[%s5600_s4 + $0x268] sm:$0xff] }
 0x1e9   : > { %v1342_v7 = vadd.f32 %v3586_v0, %v1272_v56  ;;  %v1343_v9 = vadd.f32 %v3586_v0, %v1273_v28  ;;  %1466 = vst [vmem:[%s5600_s4 + $0x1b0] sm:$0xff] %v1402_v47  ;;  %v1344_v44 = vadd.f32 %v3586_v0, %v1274_v35  ;;  %v1276_v11 = vmul.f32 %v3550_v42, %v1206_v57  ;;  %v2562_v47 = vld [vmem:[%s5600_s4 + $0x270] sm:$0xff] }
 0x1ea   : > { %1467 = vst [vmem:[%s5600_s4 + $0x1b8] sm:$0xff] %v1403_v1  ;;  %v1345_v10 = vadd.f32 %v3586_v0, %v1275_v3  ;;  %v1277_v8 = vmul.f32 %v3550_v42, %v1207_v62  ;;  %v1404_v13 = vmax.f32 %v1340_v5, 0.0  ;;  %v1405_v6 = vmax.f32 %v1341_v43, 0.0  ;;  %v2563_v1 = vld [vmem:[%s5600_s4 + $0x278] sm:$0xff] }
 0x1eb   : > { %v1406_v14 = vmax.f32 %v1342_v7, 0.0  ;;  %v1407_v25 = vmax.f32 %v1343_v9, 0.0  ;;  %v1408_v20 = vmax.f32 %v1344_v44, 0.0  ;;  %v1346_v23 = vadd.f32 %v3586_v0, %v1276_v11 }
 0x1ec   : > { %v1409_v32 = vmax.f32 %v1345_v10, 0.0  ;;  %v1347_v21 = vadd.f32 %v3586_v0, %v1277_v8  ;;  %1468 = vst [vmem:[%s5600_s4 + $0x1c0] sm:$0xff] %v1404_v13  ;;  %1469 = vst [vmem:[%s5600_s4 + $0x1c8] sm:$0xff] %v1405_v6  ;;  %v1541_v61 = vmul.f32 %v2548_v63, %v3550_v42  ;;  %v1542_v26 = vmul.f32 %v2549_v12, %v3550_v42  ;;  %v2564_v10 = vld [vmem:[%s5600_s4 + $0x280] sm:$0xff]  ;;  %v2566_v13 = vld [vmem:[%s5600_s4 + $0x290] sm:$0xff] }
 0x1ed   : > { %1470 = vst [vmem:[%s5600_s4 + $0x1d0] sm:$0xff] %v1406_v14  ;;  %1471 = vst [vmem:[%s5600_s4 + $0x1d8] sm:$0xff] %v1407_v25  ;;  %v1543_v30 = vmul.f32 %v2550_v60, %v3550_v42  ;;  %v1544_v27 = vmul.f32 %v2551_v48, %v3550_v42  ;;  %v1410_v4 = vmax.f32 %v1346_v23, 0.0  ;;  %v1545_v59 = vmul.f32 %v2552_v18, %v3550_v42  ;;  %v2565_v48 = vld [vmem:[%s5600_s4 + $0x288] sm:$0xff]  ;;  %v2567_v6 = vld [vmem:[%s5600_s4 + $0x298] sm:$0xff] }
 0x1ee   : > { %1472 = vst [vmem:[%s5600_s4 + $0x1e0] sm:$0xff] %v1408_v20  ;;  %1473 = vst [vmem:[%s5600_s4 + $0x1e8] sm:$0xff] %v1409_v32  ;;  %v1411_v33 = vmax.f32 %v1347_v21, 0.0  ;;  %v1546_v34 = vmul.f32 %v2553_v46, %v3550_v42  ;;  %v1605_v51 = vadd.f32 %v1541_v61, %v3586_v0  ;;  %v1606_v36 = vadd.f32 %v1542_v26, %v3586_v0  ;;  %v2568_v20 = vld [vmem:[%s5600_s4 + $0x2a0] sm:$0xff]  ;;  %v2569_v32 = vld [vmem:[%s5600_s4 + $0x2a8] sm:$0xff] }
 0x1ef   : > { %v1607_v2 = vadd.f32 %v1543_v30, %v3586_v0  ;;  %v1608_v58 = vadd.f32 %v1544_v27, %v3586_v0  ;;  %1474 = vst [vmem:[%s5600_s4 + $0x1f0] sm:$0xff] %v1410_v4  ;;  %v1609_v39 = vadd.f32 %v1545_v59, %v3586_v0  ;;  %v1547_v17 = vmul.f32 %v2554_v29, %v3550_v42  ;;  %v2570_v4 = vld [vmem:[%s5600_s4 + $0x2b0] sm:$0xff] }
 0x1f0   : > { %1475 = vst [vmem:[%s5600_s4 + $0x1f8] sm:$0xff] %v1411_v33  ;;  %v1610_v19 = vadd.f32 %v1546_v34, %v3586_v0  ;;  %v1548_v40 = vmul.f32 %v2555_v53, %v3550_v42  ;;  %v1669_v49 = vmax.f32 %v1605_v51, 0.0  ;;  %v1670_v31 = vmax.f32 %v1606_v36, 0.0  ;;  %v2571_v33 = vld [vmem:[%s5600_s4 + $0x2b8] sm:$0xff] }
 0x1f1   : > { %v1671_v15 = vmax.f32 %v1607_v2, 0.0  ;;  %v1672_v50 = vmax.f32 %v1608_v58, 0.0  ;;  %v1673_v16 = vmax.f32 %v1609_v39, 0.0  ;;  %v1611_v55 = vadd.f32 %v1547_v17, %v3586_v0 }
 0x1f2   : > { %v1674_v54 = vmax.f32 %v1610_v19, 0.0  ;;  %v1612_v37 = vadd.f32 %v1548_v40, %v3586_v0  ;;  %2612 = vst [vmem:[%s5600_s4 + $0x200] sm:$0xff] %v1669_v49  ;;  %2613 = vst [vmem:[%s5600_s4 + $0x208] sm:$0xff] %v1670_v31  ;;  %v1549_v56 = vmul.f32 %v2556_v38, %v3550_v42  ;;  %v1550_v28 = vmul.f32 %v2557_v41, %v3550_v42  ;;  %v2572_v19 = vld [vmem:[%s5600_s4 + $0x2c0] sm:$0xff]  ;;  %v2574_v49 = vld [vmem:[%s5600_s4 + $0x2d0] sm:$0xff] }
 0x1f3   : > { %2614 = vst [vmem:[%s5600_s4 + $0x210] sm:$0xff] %v1671_v15  ;;  %2615 = vst [vmem:[%s5600_s4 + $0x218] sm:$0xff] %v1672_v50  ;;  %v1551_v57 = vmul.f32 %v2558_v45, %v3550_v42  ;;  %v1552_v62 = vmul.f32 %v2559_v24, %v3550_v42  ;;  %v1675_v35 = vmax.f32 %v1611_v55, 0.0  ;;  %v1553_v5 = vmul.f32 %v2560_v52, %v3550_v42  ;;  %v2573_v24 = vld [vmem:[%s5600_s4 + $0x2c8] sm:$0xff]  ;;  %v2575_v31 = vld [vmem:[%s5600_s4 + $0x2d8] sm:$0xff] }
 0x1f4   : > { %2616 = vst [vmem:[%s5600_s4 + $0x220] sm:$0xff] %v1673_v16  ;;  %2617 = vst [vmem:[%s5600_s4 + $0x228] sm:$0xff] %v1674_v54  ;;  %v1676_v3 = vmax.f32 %v1612_v37, 0.0  ;;  %v1554_v43 = vmul.f32 %v2561_v22, %v3550_v42  ;;  %v1613_v7 = vadd.f32 %v1549_v56, %v3586_v0  ;;  %v1614_v9 = vadd.f32 %v1550_v28, %v3586_v0  ;;  %v2576_v16 = vld [vmem:[%s5600_s4 + $0x2e0] sm:$0xff]  ;;  %v2577_v54 = vld [vmem:[%s5600_s4 + $0x2e8] sm:$0xff] }
 0x1f5   : > { %v1615_v63 = vadd.f32 %v1551_v57, %v3586_v0  ;;  %v1616_v44 = vadd.f32 %v1552_v62, %v3586_v0  ;;  %2618 = vst [vmem:[%s5600_s4 + $0x230] sm:$0xff] %v1675_v35  ;;  %v1617_v11 = vadd.f32 %v1553_v5, %v3586_v0  ;;  %v1555_v12 = vmul.f32 %v2562_v47, %v3550_v42  ;;  %v2578_v35 = vld [vmem:[%s5600_s4 + $0x2f0] sm:$0xff] }
 0x1f6   : > { %2619 = vst [vmem:[%s5600_s4 + $0x238] sm:$0xff] %v1676_v3  ;;  %v1618_v8 = vadd.f32 %v1554_v43, %v3586_v0  ;;  %v1556_v60 = vmul.f32 %v2563_v1, %v3550_v42  ;;  %v1677_v14 = vmax.f32 %v1613_v7, 0.0  ;;  %v1678_v25 = vmax.f32 %v1614_v9, 0.0  ;;  %v2579_v3 = vld [vmem:[%s5600_s4 + $0x2f8] sm:$0xff] }
 0x1f7   : > { %v1679_v18 = vmax.f32 %v1615_v63, 0.0  ;;  %v1680_v46 = vmax.f32 %v1616_v44, 0.0  ;;  %v1681_v23 = vmax.f32 %v1617_v11, 0.0  ;;  %v1619_v61 = vadd.f32 %v1555_v12, %v3586_v0 }
 0x1f8   : > { %v1682_v21 = vmax.f32 %v1618_v8, 0.0  ;;  %v1620_v26 = vadd.f32 %v1556_v60, %v3586_v0  ;;  %2620 = vst [vmem:[%s5600_s4 + $0x240] sm:$0xff] %v1677_v14  ;;  %2621 = vst [vmem:[%s5600_s4 + $0x248] sm:$0xff] %v1678_v25  ;;  %v1557_v30 = vmul.f32 %v2564_v10, %v3550_v42  ;;  %v1558_v27 = vmul.f32 %v2565_v48, %v3550_v42  ;;  %v2580_v8 = vld [vmem:[%s5600_s4 + $0x300] sm:$0xff]  ;;  %v2582_v14 = vld [vmem:[%s5600_s4 + $0x310] sm:$0xff] }
 0x1f9   : > { %2622 = vst [vmem:[%s5600_s4 + $0x250] sm:$0xff] %v1679_v18  ;;  %2623 = vst [vmem:[%s5600_s4 + $0x258] sm:$0xff] %v1680_v46  ;;  %v1559_v29 = vmul.f32 %v2566_v13, %v3550_v42  ;;  %v1560_v53 = vmul.f32 %v2567_v6, %v3550_v42  ;;  %v1683_v59 = vmax.f32 %v1619_v61, 0.0  ;;  %v1561_v51 = vmul.f32 %v2568_v20, %v3550_v42  ;;  %v2581_v6 = vld [vmem:[%s5600_s4 + $0x308] sm:$0xff]  ;;  %v2583_v25 = vld [vmem:[%s5600_s4 + $0x318] sm:$0xff] }
 0x1fa   : > { %2624 = vst [vmem:[%s5600_s4 + $0x260] sm:$0xff] %v1681_v23  ;;  %2625 = vst [vmem:[%s5600_s4 + $0x268] sm:$0xff] %v1682_v21  ;;  %v1684_v34 = vmax.f32 %v1620_v26, 0.0  ;;  %v1562_v36 = vmul.f32 %v2569_v32, %v3550_v42  ;;  %v1621_v2 = vadd.f32 %v1557_v30, %v3586_v0  ;;  %v1622_v58 = vadd.f32 %v1558_v27, %v3586_v0  ;;  %v2584_v23 = vld [vmem:[%s5600_s4 + $0x320] sm:$0xff]  ;;  %v2585_v21 = vld [vmem:[%s5600_s4 + $0x328] sm:$0xff] }
 0x1fb   : > { %v1623_v38 = vadd.f32 %v1559_v29, %v3586_v0  ;;  %v1624_v39 = vadd.f32 %v1560_v53, %v3586_v0  ;;  %2626 = vst [vmem:[%s5600_s4 + $0x270] sm:$0xff] %v1683_v59  ;;  %v1625_v17 = vadd.f32 %v1561_v51, %v3586_v0  ;;  %v1563_v41 = vmul.f32 %v2570_v4, %v3550_v42  ;;  %v2586_v59 = vld [vmem:[%s5600_s4 + $0x330] sm:$0xff] }
 0x1fc   : > { %2627 = vst [vmem:[%s5600_s4 + $0x278] sm:$0xff] %v1684_v34  ;;  %v1626_v40 = vadd.f32 %v1562_v36, %v3586_v0  ;;  %v1564_v45 = vmul.f32 %v2571_v33, %v3550_v42  ;;  %v1685_v15 = vmax.f32 %v1621_v2, 0.0  ;;  %v1686_v50 = vmax.f32 %v1622_v58, 0.0  ;;  %v2587_v34 = vld [vmem:[%s5600_s4 + $0x338] sm:$0xff] }
 0x1fd   : > { %v1687_v52 = vmax.f32 %v1623_v38, 0.0  ;;  %v1688_v22 = vmax.f32 %v1624_v39, 0.0  ;;  %v1689_v55 = vmax.f32 %v1625_v17, 0.0  ;;  %v1627_v56 = vadd.f32 %v1563_v41, %v3586_v0 }
 0x1fe   : > { %v1690_v37 = vmax.f32 %v1626_v40, 0.0  ;;  %v1628_v28 = vadd.f32 %v1564_v45, %v3586_v0  ;;  %2628 = vst [vmem:[%s5600_s4 + $0x280] sm:$0xff] %v1685_v15  ;;  %2629 = vst [vmem:[%s5600_s4 + $0x288] sm:$0xff] %v1686_v50  ;;  %v1565_v57 = vmul.f32 %v2572_v19, %v3550_v42  ;;  %v1566_v62 = vmul.f32 %v2573_v24, %v3550_v42  ;;  %v2588_v40 = vld [vmem:[%s5600_s4 + $0x340] sm:$0xff]  ;;  %v2590_v15 = vld [vmem:[%s5600_s4 + $0x350] sm:$0xff] }
 0x1ff   : > { %2630 = vst [vmem:[%s5600_s4 + $0x290] sm:$0xff] %v1687_v52  ;;  %2631 = vst [vmem:[%s5600_s4 + $0x298] sm:$0xff] %v1688_v22  ;;  %v1567_v47 = vmul.f32 %v2574_v49, %v3550_v42  ;;  %v1568_v1 = vmul.f32 %v2575_v31, %v3550_v42  ;;  %v1691_v5 = vmax.f32 %v1627_v56, 0.0  ;;  %v1569_v7 = vmul.f32 %v2576_v16, %v3550_v42  ;;  %v2589_v31 = vld [vmem:[%s5600_s4 + $0x348] sm:$0xff]  ;;  %v2591_v50 = vld [vmem:[%s5600_s4 + $0x358] sm:$0xff] }
 0x200   : > { %2632 = vst [vmem:[%s5600_s4 + $0x2a0] sm:$0xff] %v1689_v55  ;;  %2633 = vst [vmem:[%s5600_s4 + $0x2a8] sm:$0xff] %v1690_v37  ;;  %v1692_v43 = vmax.f32 %v1628_v28, 0.0  ;;  %v1570_v9 = vmul.f32 %v2577_v54, %v3550_v42  ;;  %v1629_v63 = vadd.f32 %v1565_v57, %v3586_v0  ;;  %v1630_v44 = vadd.f32 %v1566_v62, %v3586_v0  ;;  %v2592_v55 = vld [vmem:[%s5600_s4 + $0x360] sm:$0xff]  ;;  %v2593_v37 = vld [vmem:[%s5600_s4 + $0x368] sm:$0xff] }
 0x201   : > { %v1631_v10 = vadd.f32 %v1567_v47, %v3586_v0  ;;  %v1632_v11 = vadd.f32 %v1568_v1, %v3586_v0  ;;  %2634 = vst [vmem:[%s5600_s4 + $0x2b0] sm:$0xff] %v1691_v5  ;;  %v1633_v12 = vadd.f32 %v1569_v7, %v3586_v0  ;;  %v1571_v48 = vmul.f32 %v2578_v35, %v3550_v42  ;;  %v2594_v5 = vld [vmem:[%s5600_s4 + $0x370] sm:$0xff] }
 0x202   : > { %2635 = vst [vmem:[%s5600_s4 + $0x2b8] sm:$0xff] %v1692_v43  ;;  %v1634_v60 = vadd.f32 %v1570_v9, %v3586_v0  ;;  %v1572_v13 = vmul.f32 %v2579_v3, %v3550_v42  ;;  %v1693_v18 = vmax.f32 %v1629_v63, 0.0  ;;  %v1694_v46 = vmax.f32 %v1630_v44, 0.0  ;;  %v2595_v43 = vld [vmem:[%s5600_s4 + $0x378] sm:$0xff] }
 0x203   : > { %v1695_v20 = vmax.f32 %v1631_v10, 0.0  ;;  %v1696_v32 = vmax.f32 %v1632_v11, 0.0  ;;  %v1697_v61 = vmax.f32 %v1633_v12, 0.0  ;;  %v1635_v30 = vadd.f32 %v1571_v48, %v3586_v0 }
 0x204   : > { %v1698_v26 = vmax.f32 %v1634_v60, 0.0  ;;  %v1636_v27 = vadd.f32 %v1572_v13, %v3586_v0  ;;  %2636 = vst [vmem:[%s5600_s4 + $0x2c0] sm:$0xff] %v1693_v18  ;;  %2637 = vst [vmem:[%s5600_s4 + $0x2c8] sm:$0xff] %v1694_v46  ;;  %v1573_v29 = vmul.f32 %v2580_v8, %v3550_v42  ;;  %v1574_v53 = vmul.f32 %v2581_v6, %v3550_v42  ;;  %v2596_v60 = vld [vmem:[%s5600_s4 + $0x380] sm:$0xff]  ;;  %v2598_v18 = vld [vmem:[%s5600_s4 + $0x390] sm:$0xff] }
 0x205   : > { %2638 = vst [vmem:[%s5600_s4 + $0x2d0] sm:$0xff] %v1695_v20  ;;  %2639 = vst [vmem:[%s5600_s4 + $0x2d8] sm:$0xff] %v1696_v32  ;;  %v1575_v4 = vmul.f32 %v2582_v14, %v3550_v42  ;;  %v1576_v33 = vmul.f32 %v2583_v25, %v3550_v42  ;;  %v1699_v51 = vmax.f32 %v1635_v30, 0.0  ;;  %v1577_v2 = vmul.f32 %v2584_v23, %v3550_v42  ;;  %v2597_v25 = vld [vmem:[%s5600_s4 + $0x388] sm:$0xff]  ;;  %v2599_v46 = vld [vmem:[%s5600_s4 + $0x398] sm:$0xff] }
 0x206   : > { %2640 = vst [vmem:[%s5600_s4 + $0x2e0] sm:$0xff] %v1697_v61  ;;  %2641 = vst [vmem:[%s5600_s4 + $0x2e8] sm:$0xff] %v1698_v26  ;;  %v1700_v36 = vmax.f32 %v1636_v27, 0.0  ;;  %v1578_v58 = vmul.f32 %v2585_v21, %v3550_v42  ;;  %v1637_v38 = vadd.f32 %v1573_v29, %v3586_v0  ;;  %v1638_v39 = vadd.f32 %v1574_v53, %v3586_v0  ;;  %v2600_v61 = vld [vmem:[%s5600_s4 + $0x3a0] sm:$0xff]  ;;  %v2601_v26 = vld [vmem:[%s5600_s4 + $0x3a8] sm:$0xff] }
 0x207   : > { %v1639_v19 = vadd.f32 %v1575_v4, %v3586_v0  ;;  %v1640_v17 = vadd.f32 %v1576_v33, %v3586_v0  ;;  %2642 = vst [vmem:[%s5600_s4 + $0x2f0] sm:$0xff] %v1699_v51  ;;  %v1641_v41 = vadd.f32 %v1577_v2, %v3586_v0  ;;  %v1579_v24 = vmul.f32 %v2586_v59, %v3550_v42  ;;  %v2602_v51 = vld [vmem:[%s5600_s4 + $0x3b0] sm:$0xff] }
 0x208   : > { %2643 = vst [vmem:[%s5600_s4 + $0x2f8] sm:$0xff] %v1700_v36  ;;  %v1642_v45 = vadd.f32 %v1578_v58, %v3586_v0  ;;  %v1580_v49 = vmul.f32 %v2587_v34, %v3550_v42  ;;  %v1701_v52 = vmax.f32 %v1637_v38, 0.0  ;;  %v1702_v22 = vmax.f32 %v1638_v39, 0.0  ;;  %v2603_v36 = vld [vmem:[%s5600_s4 + $0x3b8] sm:$0xff] }
 0x209   : > { %v1703_v16 = vmax.f32 %v1639_v19, 0.0  ;;  %v1704_v54 = vmax.f32 %v1640_v17, 0.0  ;;  %v1705_v56 = vmax.f32 %v1641_v41, 0.0  ;;  %v1643_v57 = vadd.f32 %v1579_v24, %v3586_v0 }
 0x20a   : > { %v1706_v28 = vmax.f32 %v1642_v45, 0.0  ;;  %v1644_v62 = vadd.f32 %v1580_v49, %v3586_v0  ;;  %2644 = vst [vmem:[%s5600_s4 + $0x300] sm:$0xff] %v1701_v52  ;;  %2645 = vst [vmem:[%s5600_s4 + $0x308] sm:$0xff] %v1702_v22  ;;  %v1581_v47 = vmul.f32 %v2588_v40, %v3550_v42  ;;  %v1582_v1 = vmul.f32 %v2589_v31, %v3550_v42  ;;  %v2604_v45 = vld [vmem:[%s5600_s4 + $0x3c0] sm:$0xff]  ;;  %v2606_v52 = vld [vmem:[%s5600_s4 + $0x3d0] sm:$0xff] }
 0x20b   : > { %2646 = vst [vmem:[%s5600_s4 + $0x310] sm:$0xff] %v1703_v16  ;;  %2647 = vst [vmem:[%s5600_s4 + $0x318] sm:$0xff] %v1704_v54  ;;  %v1583_v35 = vmul.f32 %v2590_v15, %v3550_v42  ;;  %v1584_v3 = vmul.f32 %v2591_v50, %v3550_v42  ;;  %v1707_v7 = vmax.f32 %v1643_v57, 0.0  ;;  %v1585_v63 = vmul.f32 %v2592_v55, %v3550_v42  ;;  %v2605_v50 = vld [vmem:[%s5600_s4 + $0x3c8] sm:$0xff]  ;;  %v2607_v22 = vld [vmem:[%s5600_s4 + $0x3d8] sm:$0xff] }
 0x20c   : > { %2648 = vst [vmem:[%s5600_s4 + $0x320] sm:$0xff] %v1705_v56  ;;  %2649 = vst [vmem:[%s5600_s4 + $0x328] sm:$0xff] %v1706_v28  ;;  %v1708_v9 = vmax.f32 %v1644_v62, 0.0  ;;  %v1586_v44 = vmul.f32 %v2593_v37, %v3550_v42  ;;  %v1645_v10 = vadd.f32 %v1581_v47, %v3586_v0  ;;  %v1646_v11 = vadd.f32 %v1582_v1, %v3586_v0  ;;  %v2608_v56 = vld [vmem:[%s5600_s4 + $0x3e0] sm:$0xff]  ;;  %v2609_v28 = vld [vmem:[%s5600_s4 + $0x3e8] sm:$0xff] }
 0x20d   : > { %v1647_v8 = vadd.f32 %v1583_v35, %v3586_v0  ;;  %v1648_v12 = vadd.f32 %v1584_v3, %v3586_v0  ;;  %2650 = vst [vmem:[%s5600_s4 + $0x330] sm:$0xff] %v1707_v7  ;;  %v1649_v48 = vadd.f32 %v1585_v63, %v3586_v0  ;;  %v1587_v6 = vmul.f32 %v2594_v5, %v3550_v42  ;;  %v2610_v7 = vld [vmem:[%s5600_s4 + $0x3f0] sm:$0xff] }
 0x20e   : > { %2651 = vst [vmem:[%s5600_s4 + $0x338] sm:$0xff] %v1708_v9  ;;  %v1650_v13 = vadd.f32 %v1586_v44, %v3586_v0  ;;  %v1588_v14 = vmul.f32 %v2595_v43, %v3550_v42  ;;  %v1709_v20 = vmax.f32 %v1645_v10, 0.0  ;;  %v1710_v32 = vmax.f32 %v1646_v11, 0.0  ;;  %v2611_v9 = vld [vmem:[%s5600_s4 + $0x3f8] sm:$0xff] }
 0x20f   : > { %v1711_v23 = vmax.f32 %v1647_v8, 0.0  ;;  %v1712_v21 = vmax.f32 %v1648_v12, 0.0  ;;  %v1713_v30 = vmax.f32 %v1649_v48, 0.0  ;;  %v1651_v29 = vadd.f32 %v1587_v6, %v3586_v0 }
 0x210   : > { %v1714_v27 = vmax.f32 %v1650_v13, 0.0  ;;  %v1652_v53 = vadd.f32 %v1588_v14, %v3586_v0  ;;  %2652 = vst [vmem:[%s5600_s4 + $0x340] sm:$0xff] %v1709_v20  ;;  %2653 = vst [vmem:[%s5600_s4 + $0x348] sm:$0xff] %v1710_v32  ;;  %v1589_v4 = vmul.f32 %v2596_v60, %v3550_v42  ;;  %v1590_v33 = vmul.f32 %v2597_v25, %v3550_v42  ;;  %v2676_v13 = vld [vmem:[%s5600_s4 + $0x400] sm:$0xff]  ;;  %v2678_v20 = vld [vmem:[%s5600_s4 + $0x410] sm:$0xff] }
 0x211   : > { %2654 = vst [vmem:[%s5600_s4 + $0x350] sm:$0xff] %v1711_v23  ;;  %2655 = vst [vmem:[%s5600_s4 + $0x358] sm:$0xff] %v1712_v21  ;;  %v1591_v59 = vmul.f32 %v2598_v18, %v3550_v42  ;;  %v1592_v34 = vmul.f32 %v2599_v46, %v3550_v42  ;;  %v1715_v2 = vmax.f32 %v1651_v29, 0.0  ;;  %v1593_v38 = vmul.f32 %v2600_v61, %v3550_v42  ;;  %v2677_v46 = vld [vmem:[%s5600_s4 + $0x408] sm:$0xff]  ;;  %v2679_v32 = vld [vmem:[%s5600_s4 + $0x418] sm:$0xff] }
 0x212   : > { %2656 = vst [vmem:[%s5600_s4 + $0x360] sm:$0xff] %v1713_v30  ;;  %2657 = vst [vmem:[%s5600_s4 + $0x368] sm:$0xff] %v1714_v27  ;;  %v1716_v58 = vmax.f32 %v1652_v53, 0.0  ;;  %v1594_v39 = vmul.f32 %v2601_v26, %v3550_v42  ;;  %v1653_v19 = vadd.f32 %v1589_v4, %v3586_v0  ;;  %v1654_v17 = vadd.f32 %v1590_v33, %v3586_v0  ;;  %v2680_v30 = vld [vmem:[%s5600_s4 + $0x420] sm:$0xff]  ;;  %v2681_v27 = vld [vmem:[%s5600_s4 + $0x428] sm:$0xff] }
 0x213   : > { %v1655_v40 = vadd.f32 %v1591_v59, %v3586_v0  ;;  %v1656_v41 = vadd.f32 %v1592_v34, %v3586_v0  ;;  %2658 = vst [vmem:[%s5600_s4 + $0x370] sm:$0xff] %v1715_v2  ;;  %v1657_v24 = vadd.f32 %v1593_v38, %v3586_v0  ;;  %v1595_v31 = vmul.f32 %v2602_v51, %v3550_v42  ;;  %v2682_v2 = vld [vmem:[%s5600_s4 + $0x430] sm:$0xff] }
 0x214   : > { %2659 = vst [vmem:[%s5600_s4 + $0x378] sm:$0xff] %v1716_v58  ;;  %v1658_v49 = vadd.f32 %v1594_v39, %v3586_v0  ;;  %v1596_v15 = vmul.f32 %v2603_v36, %v3550_v42  ;;  %v1717_v16 = vmax.f32 %v1653_v19, 0.0  ;;  %v1718_v54 = vmax.f32 %v1654_v17, 0.0  ;;  %v2683_v58 = vld [vmem:[%s5600_s4 + $0x438] sm:$0xff] }
 0x215   : > { %v1719_v55 = vmax.f32 %v1655_v40, 0.0  ;;  %v1720_v37 = vmax.f32 %v1656_v41, 0.0  ;;  %v1721_v57 = vmax.f32 %v1657_v24, 0.0  ;;  %v1659_v47 = vadd.f32 %v1595_v31, %v3586_v0 }
 0x216   : > { %v1722_v62 = vmax.f32 %v1658_v49, 0.0  ;;  %v1660_v1 = vadd.f32 %v1596_v15, %v3586_v0  ;;  %2660 = vst [vmem:[%s5600_s4 + $0x380] sm:$0xff] %v1717_v16  ;;  %2661 = vst [vmem:[%s5600_s4 + $0x388] sm:$0xff] %v1718_v54  ;;  %v1597_v35 = vmul.f32 %v2604_v45, %v3550_v42  ;;  %v1598_v3 = vmul.f32 %v2605_v50, %v3550_v42  ;;  %v2684_v49 = vld [vmem:[%s5600_s4 + $0x440] sm:$0xff]  ;;  %v2686_v16 = vld [vmem:[%s5600_s4 + $0x450] sm:$0xff] }
 0x217   : > { %2662 = vst [vmem:[%s5600_s4 + $0x390] sm:$0xff] %v1719_v55  ;;  %2663 = vst [vmem:[%s5600_s4 + $0x398] sm:$0xff] %v1720_v37  ;;  %v1599_v5 = vmul.f32 %v2606_v52, %v3550_v42  ;;  %v1600_v43 = vmul.f32 %v2607_v22, %v3550_v42  ;;  %v1723_v63 = vmax.f32 %v1659_v47, 0.0  ;;  %v1601_v10 = vmul.f32 %v2608_v56, %v3550_v42  ;;  %v2685_v22 = vld [vmem:[%s5600_s4 + $0x448] sm:$0xff]  ;;  %v2687_v54 = vld [vmem:[%s5600_s4 + $0x458] sm:$0xff] }
 0x218   : > { %2664 = vst [vmem:[%s5600_s4 + $0x3a0] sm:$0xff] %v1721_v57  ;;  %2665 = vst [vmem:[%s5600_s4 + $0x3a8] sm:$0xff] %v1722_v62  ;;  %v1724_v44 = vmax.f32 %v1660_v1, 0.0  ;;  %v1602_v11 = vmul.f32 %v2609_v28, %v3550_v42  ;;  %v1661_v8 = vadd.f32 %v1597_v35, %v3586_v0  ;;  %v1662_v12 = vadd.f32 %v1598_v3, %v3586_v0  ;;  %v2688_v57 = vld [vmem:[%s5600_s4 + $0x460] sm:$0xff]  ;;  %v2689_v62 = vld [vmem:[%s5600_s4 + $0x468] sm:$0xff] }
 0x219   : > { %v1663_v60 = vadd.f32 %v1599_v5, %v3586_v0  ;;  %v1664_v48 = vadd.f32 %v1600_v43, %v3586_v0  ;;  %2666 = vst [vmem:[%s5600_s4 + $0x3b0] sm:$0xff] %v1723_v63  ;;  %v1665_v6 = vadd.f32 %v1601_v10, %v3586_v0  ;;  %v1603_v25 = vmul.f32 %v2610_v7, %v3550_v42  ;;  %v2690_v63 = vld [vmem:[%s5600_s4 + $0x470] sm:$0xff] }
 0x21a   : > { %2667 = vst [vmem:[%s5600_s4 + $0x3b8] sm:$0xff] %v1724_v44  ;;  %v1666_v14 = vadd.f32 %v1602_v11, %v3586_v0  ;;  %v1604_v18 = vmul.f32 %v2611_v9, %v3550_v42  ;;  %v1725_v23 = vmax.f32 %v1661_v8, 0.0  ;;  %v1726_v21 = vmax.f32 %v1662_v12, 0.0  ;;  %v2691_v44 = vld [vmem:[%s5600_s4 + $0x478] sm:$0xff] }
 0x21b   : > { %v1727_v61 = vmax.f32 %v1663_v60, 0.0  ;;  %v1728_v26 = vmax.f32 %v1664_v48, 0.0  ;;  %v1729_v29 = vmax.f32 %v1665_v6, 0.0  ;;  %v1667_v4 = vadd.f32 %v1603_v25, %v3586_v0 }
 0x21c   : > { %v1730_v53 = vmax.f32 %v1666_v14, 0.0  ;;  %v1668_v33 = vadd.f32 %v1604_v18, %v3586_v0  ;;  %2668 = vst [vmem:[%s5600_s4 + $0x3c0] sm:$0xff] %v1725_v23  ;;  %2669 = vst [vmem:[%s5600_s4 + $0x3c8] sm:$0xff] %v1726_v21  ;;  %v1862_v59 = vmul.f32 %v2676_v13, %v3550_v42  ;;  %v1863_v34 = vmul.f32 %v2677_v46, %v3550_v42  ;;  %v2692_v14 = vld [vmem:[%s5600_s4 + $0x480] sm:$0xff]  ;;  %v2694_v23 = vld [vmem:[%s5600_s4 + $0x490] sm:$0xff] }
 0x21d   : > { %2670 = vst [vmem:[%s5600_s4 + $0x3d0] sm:$0xff] %v1727_v61  ;;  %2671 = vst [vmem:[%s5600_s4 + $0x3d8] sm:$0xff] %v1728_v26  ;;  %v1864_v51 = vmul.f32 %v2678_v20, %v3550_v42  ;;  %v1865_v36 = vmul.f32 %v2679_v32, %v3550_v42  ;;  %v1731_v38 = vmax.f32 %v1667_v4, 0.0  ;;  %v1866_v19 = vmul.f32 %v2680_v30, %v3550_v42  ;;  %v2693_v32 = vld [vmem:[%s5600_s4 + $0x488] sm:$0xff]  ;;  %v2695_v21 = vld [vmem:[%s5600_s4 + $0x498] sm:$0xff] }
 0x21e   : > { %2672 = vst [vmem:[%s5600_s4 + $0x3e0] sm:$0xff] %v1729_v29  ;;  %2673 = vst [vmem:[%s5600_s4 + $0x3e8] sm:$0xff] %v1730_v53  ;;  %v1732_v39 = vmax.f32 %v1668_v33, 0.0  ;;  %v1867_v17 = vmul.f32 %v2681_v27, %v3550_v42  ;;  %v1926_v40 = vadd.f32 %v1862_v59, %v3586_v0  ;;  %v1927_v41 = vadd.f32 %v1863_v34, %v3586_v0  ;;  %v2696_v29 = vld [vmem:[%s5600_s4 + $0x4a0] sm:$0xff]  ;;  %v2697_v53 = vld [vmem:[%s5600_s4 + $0x4a8] sm:$0xff] }
 0x21f   : > { %v1928_v45 = vadd.f32 %v1864_v51, %v3586_v0  ;;  %v1929_v24 = vadd.f32 %v1865_v36, %v3586_v0  ;;  %2674 = vst [vmem:[%s5600_s4 + $0x3f0] sm:$0xff] %v1731_v38  ;;  %v1930_v31 = vadd.f32 %v1866_v19, %v3586_v0  ;;  %v1868_v50 = vmul.f32 %v2682_v2, %v3550_v42  ;;  %v2698_v38 = vld [vmem:[%s5600_s4 + $0x4b0] sm:$0xff] }
 0x220   : > { %2675 = vst [vmem:[%s5600_s4 + $0x3f8] sm:$0xff] %v1732_v39  ;;  %v1931_v15 = vadd.f32 %v1867_v17, %v3586_v0  ;;  %v1869_v52 = vmul.f32 %v2683_v58, %v3550_v42  ;;  %v1990_v55 = vmax.f32 %v1926_v40, 0.0  ;;  %v1991_v37 = vmax.f32 %v1927_v41, 0.0  ;;  %v2699_v39 = vld [vmem:[%s5600_s4 + $0x4b8] sm:$0xff] }
 0x221   : > { %v1992_v56 = vmax.f32 %v1928_v45, 0.0  ;;  %v1993_v28 = vmax.f32 %v1929_v24, 0.0  ;;  %v1994_v47 = vmax.f32 %v1930_v31, 0.0  ;;  %v1932_v35 = vadd.f32 %v1868_v50, %v3586_v0 }
 0x222   : > { %v1995_v1 = vmax.f32 %v1931_v15, 0.0  ;;  %v1933_v3 = vadd.f32 %v1869_v52, %v3586_v0  ;;  %2740 = vst [vmem:[%s5600_s4 + $0x400] sm:$0xff] %v1990_v55  ;;  %2741 = vst [vmem:[%s5600_s4 + $0x408] sm:$0xff] %v1991_v37  ;;  %v1870_v5 = vmul.f32 %v2684_v49, %v3550_v42  ;;  %v1871_v43 = vmul.f32 %v2685_v22, %v3550_v42  ;;  %v2700_v15 = vld [vmem:[%s5600_s4 + $0x4c0] sm:$0xff]  ;;  %v2702_v55 = vld [vmem:[%s5600_s4 + $0x4d0] sm:$0xff] }
 0x223   : > { %2742 = vst [vmem:[%s5600_s4 + $0x410] sm:$0xff] %v1992_v56  ;;  %2743 = vst [vmem:[%s5600_s4 + $0x418] sm:$0xff] %v1993_v28  ;;  %v1872_v7 = vmul.f32 %v2686_v16, %v3550_v42  ;;  %v1873_v9 = vmul.f32 %v2687_v54, %v3550_v42  ;;  %v1996_v10 = vmax.f32 %v1932_v35, 0.0  ;;  %v1874_v8 = vmul.f32 %v2688_v57, %v3550_v42  ;;  %v2701_v54 = vld [vmem:[%s5600_s4 + $0x4c8] sm:$0xff]  ;;  %v2703_v37 = vld [vmem:[%s5600_s4 + $0x4d8] sm:$0xff] }
 0x224   : > { %2744 = vst [vmem:[%s5600_s4 + $0x420] sm:$0xff] %v1994_v47  ;;  %2745 = vst [vmem:[%s5600_s4 + $0x428] sm:$0xff] %v1995_v1  ;;  %v1997_v11 = vmax.f32 %v1933_v3, 0.0  ;;  %v1875_v12 = vmul.f32 %v2689_v62, %v3550_v42  ;;  %v1934_v60 = vadd.f32 %v1870_v5, %v3586_v0  ;;  %v1935_v48 = vadd.f32 %v1871_v43, %v3586_v0  ;;  %v2704_v47 = vld [vmem:[%s5600_s4 + $0x4e0] sm:$0xff]  ;;  %v2705_v1 = vld [vmem:[%s5600_s4 + $0x4e8] sm:$0xff] }
 0x225   : > { %v1936_v13 = vadd.f32 %v1872_v7, %v3586_v0  ;;  %v1937_v6 = vadd.f32 %v1873_v9, %v3586_v0  ;;  %2746 = vst [vmem:[%s5600_s4 + $0x430] sm:$0xff] %v1996_v10  ;;  %v1938_v25 = vadd.f32 %v1874_v8, %v3586_v0  ;;  %v1876_v46 = vmul.f32 %v2690_v63, %v3550_v42  ;;  %v2706_v10 = vld [vmem:[%s5600_s4 + $0x4f0] sm:$0xff] }
 0x226   : > { %2747 = vst [vmem:[%s5600_s4 + $0x438] sm:$0xff] %v1997_v11  ;;  %v1939_v18 = vadd.f32 %v1875_v12, %v3586_v0  ;;  %v1877_v20 = vmul.f32 %v2691_v44, %v3550_v42  ;;  %v1998_v61 = vmax.f32 %v1934_v60, 0.0  ;;  %v1999_v26 = vmax.f32 %v1935_v48, 0.0  ;;  %v2707_v11 = vld [vmem:[%s5600_s4 + $0x4f8] sm:$0xff] }
 0x227   : > { %v2000_v30 = vmax.f32 %v1936_v13, 0.0  ;;  %v2001_v27 = vmax.f32 %v1937_v6, 0.0  ;;  %v2002_v4 = vmax.f32 %v1938_v25, 0.0  ;;  %v1940_v59 = vadd.f32 %v1876_v46, %v3586_v0 }
 0x228   : > { %v2003_v33 = vmax.f32 %v1939_v18, 0.0  ;;  %v1941_v34 = vadd.f32 %v1877_v20, %v3586_v0  ;;  %2748 = vst [vmem:[%s5600_s4 + $0x440] sm:$0xff] %v1998_v61  ;;  %2749 = vst [vmem:[%s5600_s4 + $0x448] sm:$0xff] %v1999_v26  ;;  %v1878_v51 = vmul.f32 %v2692_v14, %v3550_v42  ;;  %v1879_v36 = vmul.f32 %v2693_v32, %v3550_v42  ;;  %v2708_v18 = vld [vmem:[%s5600_s4 + $0x500] sm:$0xff]  ;;  %v2710_v61 = vld [vmem:[%s5600_s4 + $0x510] sm:$0xff] }
 0x229   : > { %2750 = vst [vmem:[%s5600_s4 + $0x450] sm:$0xff] %v2000_v30  ;;  %2751 = vst [vmem:[%s5600_s4 + $0x458] sm:$0xff] %v2001_v27  ;;  %v1880_v2 = vmul.f32 %v2694_v23, %v3550_v42  ;;  %v1881_v58 = vmul.f32 %v2695_v21, %v3550_v42  ;;  %v2004_v19 = vmax.f32 %v1940_v59, 0.0  ;;  %v1882_v40 = vmul.f32 %v2696_v29, %v3550_v42  ;;  %v2709_v21 = vld [vmem:[%s5600_s4 + $0x508] sm:$0xff]  ;;  %v2711_v26 = vld [vmem:[%s5600_s4 + $0x518] sm:$0xff] }
 0x22a   : > { %2752 = vst [vmem:[%s5600_s4 + $0x460] sm:$0xff] %v2002_v4  ;;  %2753 = vst [vmem:[%s5600_s4 + $0x468] sm:$0xff] %v2003_v33  ;;  %v2005_v17 = vmax.f32 %v1941_v34, 0.0  ;;  %v1883_v41 = vmul.f32 %v2697_v53, %v3550_v42  ;;  %v1942_v45 = vadd.f32 %v1878_v51, %v3586_v0  ;;  %v1943_v24 = vadd.f32 %v1879_v36, %v3586_v0  ;;  %v2712_v4 = vld [vmem:[%s5600_s4 + $0x520] sm:$0xff]  ;;  %v2713_v33 = vld [vmem:[%s5600_s4 + $0x528] sm:$0xff] }
 0x22b   : > { %v1944_v49 = vadd.f32 %v1880_v2, %v3586_v0  ;;  %v1945_v31 = vadd.f32 %v1881_v58, %v3586_v0  ;;  %2754 = vst [vmem:[%s5600_s4 + $0x470] sm:$0xff] %v2004_v19  ;;  %v1946_v50 = vadd.f32 %v1882_v40, %v3586_v0  ;;  %v1884_v22 = vmul.f32 %v2698_v38, %v3550_v42  ;;  %v2714_v19 = vld [vmem:[%s5600_s4 + $0x530] sm:$0xff] }
 0x22c   : > { %2755 = vst [vmem:[%s5600_s4 + $0x478] sm:$0xff] %v2005_v17  ;;  %v1947_v52 = vadd.f32 %v1883_v41, %v3586_v0  ;;  %v1885_v16 = vmul.f32 %v2699_v39, %v3550_v42  ;;  %v2006_v56 = vmax.f32 %v1942_v45, 0.0  ;;  %v2007_v28 = vmax.f32 %v1943_v24, 0.0  ;;  %v2715_v17 = vld [vmem:[%s5600_s4 + $0x538] sm:$0xff] }
 0x22d   : > { %v2008_v57 = vmax.f32 %v1944_v49, 0.0  ;;  %v2009_v62 = vmax.f32 %v1945_v31, 0.0  ;;  %v2010_v35 = vmax.f32 %v1946_v50, 0.0  ;;  %v1948_v5 = vadd.f32 %v1884_v22, %v3586_v0 }
 0x22e   : > { %v2011_v3 = vmax.f32 %v1947_v52, 0.0  ;;  %v1949_v43 = vadd.f32 %v1885_v16, %v3586_v0  ;;  %2756 = vst [vmem:[%s5600_s4 + $0x480] sm:$0xff] %v2006_v56  ;;  %2757 = vst [vmem:[%s5600_s4 + $0x488] sm:$0xff] %v2007_v28  ;;  %v1886_v7 = vmul.f32 %v2700_v15, %v3550_v42  ;;  %v1887_v9 = vmul.f32 %v2701_v54, %v3550_v42  ;;  %v2716_v52 = vld [vmem:[%s5600_s4 + $0x540] sm:$0xff]  ;;  %v2718_v56 = vld [vmem:[%s5600_s4 + $0x550] sm:$0xff] }
 0x22f   : > { %2758 = vst [vmem:[%s5600_s4 + $0x490] sm:$0xff] %v2008_v57  ;;  %2759 = vst [vmem:[%s5600_s4 + $0x498] sm:$0xff] %v2009_v62  ;;  %v1888_v63 = vmul.f32 %v2702_v55, %v3550_v42  ;;  %v1889_v44 = vmul.f32 %v2703_v37, %v3550_v42  ;;  %v2012_v8 = vmax.f32 %v1948_v5, 0.0  ;;  %v1890_v60 = vmul.f32 %v2704_v47, %v3550_v42  ;;  %v2717_v37 = vld [vmem:[%s5600_s4 + $0x548] sm:$0xff]  ;;  %v2719_v28 = vld [vmem:[%s5600_s4 + $0x558] sm:$0xff] }
 0x230   : > { %2760 = vst [vmem:[%s5600_s4 + $0x4a0] sm:$0xff] %v2010_v35  ;;  %2761 = vst [vmem:[%s5600_s4 + $0x4a8] sm:$0xff] %v2011_v3  ;;  %v2013_v12 = vmax.f32 %v1949_v43, 0.0  ;;  %v1891_v48 = vmul.f32 %v2705_v1, %v3550_v42  ;;  %v1950_v13 = vadd.f32 %v1886_v7, %v3586_v0  ;;  %v1951_v6 = vadd.f32 %v1887_v9, %v3586_v0  ;;  %v2720_v35 = vld [vmem:[%s5600_s4 + $0x560] sm:$0xff]  ;;  %v2721_v3 = vld [vmem:[%s5600_s4 + $0x568] sm:$0xff] }
 0x231   : > { %v1952_v14 = vadd.f32 %v1888_v63, %v3586_v0  ;;  %v1953_v25 = vadd.f32 %v1889_v44, %v3586_v0  ;;  %2762 = vst [vmem:[%s5600_s4 + $0x4b0] sm:$0xff] %v2012_v8  ;;  %v1954_v46 = vadd.f32 %v1890_v60, %v3586_v0  ;;  %v1892_v32 = vmul.f32 %v2706_v10, %v3550_v42  ;;  %v2722_v8 = vld [vmem:[%s5600_s4 + $0x570] sm:$0xff] }
 0x232   : > { %2763 = vst [vmem:[%s5600_s4 + $0x4b8] sm:$0xff] %v2013_v12  ;;  %v1955_v20 = vadd.f32 %v1891_v48, %v3586_v0  ;;  %v1893_v23 = vmul.f32 %v2707_v11, %v3550_v42  ;;  %v2014_v30 = vmax.f32 %v1950_v13, 0.0  ;;  %v2015_v27 = vmax.f32 %v1951_v6, 0.0  ;;  %v2723_v12 = vld [vmem:[%s5600_s4 + $0x578] sm:$0xff] }
 0x233   : > { %v2016_v29 = vmax.f32 %v1952_v14, 0.0  ;;  %v2017_v53 = vmax.f32 %v1953_v25, 0.0  ;;  %v2018_v59 = vmax.f32 %v1954_v46, 0.0  ;;  %v1956_v51 = vadd.f32 %v1892_v32, %v3586_v0 }
 0x234   : > { %v2019_v34 = vmax.f32 %v1955_v20, 0.0  ;;  %v1957_v36 = vadd.f32 %v1893_v23, %v3586_v0  ;;  %2764 = vst [vmem:[%s5600_s4 + $0x4c0] sm:$0xff] %v2014_v30  ;;  %2765 = vst [vmem:[%s5600_s4 + $0x4c8] sm:$0xff] %v2015_v27  ;;  %v1894_v2 = vmul.f32 %v2708_v18, %v3550_v42  ;;  %v1895_v58 = vmul.f32 %v2709_v21, %v3550_v42  ;;  %v2724_v20 = vld [vmem:[%s5600_s4 + $0x580] sm:$0xff]  ;;  %v2726_v30 = vld [vmem:[%s5600_s4 + $0x590] sm:$0xff] }
 0x235   : > { %2766 = vst [vmem:[%s5600_s4 + $0x4d0] sm:$0xff] %v2016_v29  ;;  %2767 = vst [vmem:[%s5600_s4 + $0x4d8] sm:$0xff] %v2017_v53  ;;  %v1896_v38 = vmul.f32 %v2710_v61, %v3550_v42  ;;  %v1897_v39 = vmul.f32 %v2711_v26, %v3550_v42  ;;  %v2020_v40 = vmax.f32 %v1956_v51, 0.0  ;;  %v1898_v45 = vmul.f32 %v2712_v4, %v3550_v42  ;;  %v2725_v26 = vld [vmem:[%s5600_s4 + $0x588] sm:$0xff]  ;;  %v2727_v27 = vld [vmem:[%s5600_s4 + $0x598] sm:$0xff] }
 0x236   : > { %2768 = vst [vmem:[%s5600_s4 + $0x4e0] sm:$0xff] %v2018_v59  ;;  %2769 = vst [vmem:[%s5600_s4 + $0x4e8] sm:$0xff] %v2019_v34  ;;  %v2021_v41 = vmax.f32 %v1957_v36, 0.0  ;;  %v1899_v24 = vmul.f32 %v2713_v33, %v3550_v42  ;;  %v1958_v49 = vadd.f32 %v1894_v2, %v3586_v0  ;;  %v1959_v31 = vadd.f32 %v1895_v58, %v3586_v0  ;;  %v2728_v59 = vld [vmem:[%s5600_s4 + $0x5a0] sm:$0xff]  ;;  %v2729_v34 = vld [vmem:[%s5600_s4 + $0x5a8] sm:$0xff] }
 0x237   : > { %v1960_v15 = vadd.f32 %v1896_v38, %v3586_v0  ;;  %v1961_v50 = vadd.f32 %v1897_v39, %v3586_v0  ;;  %2770 = vst [vmem:[%s5600_s4 + $0x4f0] sm:$0xff] %v2020_v40  ;;  %v1962_v22 = vadd.f32 %v1898_v45, %v3586_v0  ;;  %v1900_v54 = vmul.f32 %v2714_v19, %v3550_v42  ;;  %v2730_v40 = vld [vmem:[%s5600_s4 + $0x5b0] sm:$0xff] }
 0x238   : > { %2771 = vst [vmem:[%s5600_s4 + $0x4f8] sm:$0xff] %v2021_v41  ;;  %v1963_v16 = vadd.f32 %v1899_v24, %v3586_v0  ;;  %v1901_v55 = vmul.f32 %v2715_v17, %v3550_v42  ;;  %v2022_v57 = vmax.f32 %v1958_v49, 0.0  ;;  %v2023_v62 = vmax.f32 %v1959_v31, 0.0  ;;  %v2731_v41 = vld [vmem:[%s5600_s4 + $0x5b8] sm:$0xff] }
 0x239   : > { %v2024_v47 = vmax.f32 %v1960_v15, 0.0  ;;  %v2025_v1 = vmax.f32 %v1961_v50, 0.0  ;;  %v2026_v5 = vmax.f32 %v1962_v22, 0.0  ;;  %v1964_v7 = vadd.f32 %v1900_v54, %v3586_v0 }
 0x23a   : > { %v2027_v43 = vmax.f32 %v1963_v16, 0.0  ;;  %v1965_v9 = vadd.f32 %v1901_v55, %v3586_v0  ;;  %2772 = vst [vmem:[%s5600_s4 + $0x500] sm:$0xff] %v2022_v57  ;;  %2773 = vst [vmem:[%s5600_s4 + $0x508] sm:$0xff] %v2023_v62  ;;  %v1902_v63 = vmul.f32 %v2716_v52, %v3550_v42  ;;  %v1903_v44 = vmul.f32 %v2717_v37, %v3550_v42  ;;  %v2732_v16 = vld [vmem:[%s5600_s4 + $0x5c0] sm:$0xff]  ;;  %v2734_v57 = vld [vmem:[%s5600_s4 + $0x5d0] sm:$0xff] }
 0x23b   : > { %2774 = vst [vmem:[%s5600_s4 + $0x510] sm:$0xff] %v2024_v47  ;;  %2775 = vst [vmem:[%s5600_s4 + $0x518] sm:$0xff] %v2025_v1  ;;  %v1904_v10 = vmul.f32 %v2718_v56, %v3550_v42  ;;  %v1905_v11 = vmul.f32 %v2719_v28, %v3550_v42  ;;  %v2028_v60 = vmax.f32 %v1964_v7, 0.0  ;;  %v1906_v13 = vmul.f32 %v2720_v35, %v3550_v42  ;;  %v2733_v28 = vld [vmem:[%s5600_s4 + $0x5c8] sm:$0xff]  ;;  %v2735_v62 = vld [vmem:[%s5600_s4 + $0x5d8] sm:$0xff] }
 0x23c   : > { %2776 = vst [vmem:[%s5600_s4 + $0x520] sm:$0xff] %v2026_v5  ;;  %2777 = vst [vmem:[%s5600_s4 + $0x528] sm:$0xff] %v2027_v43  ;;  %v2029_v48 = vmax.f32 %v1965_v9, 0.0  ;;  %v1907_v6 = vmul.f32 %v2721_v3, %v3550_v42  ;;  %v1966_v14 = vadd.f32 %v1902_v63, %v3586_v0  ;;  %v1967_v25 = vadd.f32 %v1903_v44, %v3586_v0  ;;  %v2736_v5 = vld [vmem:[%s5600_s4 + $0x5e0] sm:$0xff]  ;;  %v2737_v43 = vld [vmem:[%s5600_s4 + $0x5e8] sm:$0xff] }
 0x23d   : > { %v1968_v18 = vadd.f32 %v1904_v10, %v3586_v0  ;;  %v1969_v46 = vadd.f32 %v1905_v11, %v3586_v0  ;;  %2778 = vst [vmem:[%s5600_s4 + $0x530] sm:$0xff] %v2028_v60  ;;  %v1970_v32 = vadd.f32 %v1906_v13, %v3586_v0  ;;  %v1908_v21 = vmul.f32 %v2722_v8, %v3550_v42  ;;  %v2738_v60 = vld [vmem:[%s5600_s4 + $0x5f0] sm:$0xff] }
 0x23e   : > { %2779 = vst [vmem:[%s5600_s4 + $0x538] sm:$0xff] %v2029_v48  ;;  %v1971_v23 = vadd.f32 %v1907_v6, %v3586_v0  ;;  %v1909_v61 = vmul.f32 %v2723_v12, %v3550_v42  ;;  %v2030_v29 = vmax.f32 %v1966_v14, 0.0  ;;  %v2031_v53 = vmax.f32 %v1967_v25, 0.0  ;;  %v2739_v48 = vld [vmem:[%s5600_s4 + $0x5f8] sm:$0xff] }
 0x23f   : > { %v2032_v4 = vmax.f32 %v1968_v18, 0.0  ;;  %v2033_v33 = vmax.f32 %v1969_v46, 0.0  ;;  %v2034_v51 = vmax.f32 %v1970_v32, 0.0  ;;  %v1972_v2 = vadd.f32 %v1908_v21, %v3586_v0 }
 0x240   : > { %v2035_v36 = vmax.f32 %v1971_v23, 0.0  ;;  %v1973_v58 = vadd.f32 %v1909_v61, %v3586_v0  ;;  %2780 = vst [vmem:[%s5600_s4 + $0x540] sm:$0xff] %v2030_v29  ;;  %2781 = vst [vmem:[%s5600_s4 + $0x548] sm:$0xff] %v2031_v53  ;;  %v1910_v38 = vmul.f32 %v2724_v20, %v3550_v42  ;;  %v1911_v39 = vmul.f32 %v2725_v26, %v3550_v42  ;;  %v2804_v23 = vld [vmem:[%s5600_s4 + $0x600] sm:$0xff]  ;;  %v2806_v29 = vld [vmem:[%s5600_s4 + $0x610] sm:$0xff] }
 0x241   : > { %2782 = vst [vmem:[%s5600_s4 + $0x550] sm:$0xff] %v2032_v4  ;;  %2783 = vst [vmem:[%s5600_s4 + $0x558] sm:$0xff] %v2033_v33  ;;  %v1912_v19 = vmul.f32 %v2726_v30, %v3550_v42  ;;  %v1913_v17 = vmul.f32 %v2727_v27, %v3550_v42  ;;  %v2036_v45 = vmax.f32 %v1972_v2, 0.0  ;;  %v1914_v49 = vmul.f32 %v2728_v59, %v3550_v42  ;;  %v2805_v27 = vld [vmem:[%s5600_s4 + $0x608] sm:$0xff]  ;;  %v2807_v53 = vld [vmem:[%s5600_s4 + $0x618] sm:$0xff] }
 0x242   : > { %2784 = vst [vmem:[%s5600_s4 + $0x560] sm:$0xff] %v2034_v51  ;;  %2785 = vst [vmem:[%s5600_s4 + $0x568] sm:$0xff] %v2035_v36  ;;  %v2037_v24 = vmax.f32 %v1973_v58, 0.0  ;;  %v1915_v31 = vmul.f32 %v2729_v34, %v3550_v42  ;;  %v1974_v15 = vadd.f32 %v1910_v38, %v3586_v0  ;;  %v1975_v50 = vadd.f32 %v1911_v39, %v3586_v0  ;;  %v2808_v51 = vld [vmem:[%s5600_s4 + $0x620] sm:$0xff]  ;;  %v2809_v36 = vld [vmem:[%s5600_s4 + $0x628] sm:$0xff] }
 0x243   : > { %v1976_v52 = vadd.f32 %v1912_v19, %v3586_v0  ;;  %v1977_v22 = vadd.f32 %v1913_v17, %v3586_v0  ;;  %2786 = vst [vmem:[%s5600_s4 + $0x570] sm:$0xff] %v2036_v45  ;;  %v1978_v54 = vadd.f32 %v1914_v49, %v3586_v0  ;;  %v1916_v37 = vmul.f32 %v2730_v40, %v3550_v42  ;;  %v2810_v45 = vld [vmem:[%s5600_s4 + $0x630] sm:$0xff] }
 0x244   : > { %2787 = vst [vmem:[%s5600_s4 + $0x578] sm:$0xff] %v2037_v24  ;;  %v1979_v55 = vadd.f32 %v1915_v31, %v3586_v0  ;;  %v1917_v56 = vmul.f32 %v2731_v41, %v3550_v42  ;;  %v2038_v47 = vmax.f32 %v1974_v15, 0.0  ;;  %v2039_v1 = vmax.f32 %v1975_v50, 0.0  ;;  %v2811_v24 = vld [vmem:[%s5600_s4 + $0x638] sm:$0xff] }
 0x245   : > { %v2040_v35 = vmax.f32 %v1976_v52, 0.0  ;;  %v2041_v3 = vmax.f32 %v1977_v22, 0.0  ;;  %v2042_v7 = vmax.f32 %v1978_v54, 0.0  ;;  %v1980_v63 = vadd.f32 %v1916_v37, %v3586_v0 }
 0x246   : > { %v2043_v9 = vmax.f32 %v1979_v55, 0.0  ;;  %v1981_v44 = vadd.f32 %v1917_v56, %v3586_v0  ;;  %2788 = vst [vmem:[%s5600_s4 + $0x580] sm:$0xff] %v2038_v47  ;;  %2789 = vst [vmem:[%s5600_s4 + $0x588] sm:$0xff] %v2039_v1  ;;  %v1918_v10 = vmul.f32 %v2732_v16, %v3550_v42  ;;  %v1919_v11 = vmul.f32 %v2733_v28, %v3550_v42  ;;  %v2812_v55 = vld [vmem:[%s5600_s4 + $0x640] sm:$0xff]  ;;  %v2814_v47 = vld [vmem:[%s5600_s4 + $0x650] sm:$0xff] }
 0x247   : > { %2790 = vst [vmem:[%s5600_s4 + $0x590] sm:$0xff] %v2040_v35  ;;  %2791 = vst [vmem:[%s5600_s4 + $0x598] sm:$0xff] %v2041_v3  ;;  %v1920_v8 = vmul.f32 %v2734_v57, %v3550_v42  ;;  %v1921_v12 = vmul.f32 %v2735_v62, %v3550_v42  ;;  %v2044_v13 = vmax.f32 %v1980_v63, 0.0  ;;  %v1922_v14 = vmul.f32 %v2736_v5, %v3550_v42  ;;  %v2813_v62 = vld [vmem:[%s5600_s4 + $0x648] sm:$0xff]  ;;  %v2815_v1 = vld [vmem:[%s5600_s4 + $0x658] sm:$0xff] }
 0x248   : > { %2792 = vst [vmem:[%s5600_s4 + $0x5a0] sm:$0xff] %v2042_v7  ;;  %2793 = vst [vmem:[%s5600_s4 + $0x5a8] sm:$0xff] %v2043_v9  ;;  %v2045_v6 = vmax.f32 %v1981_v44, 0.0  ;;  %v1923_v25 = vmul.f32 %v2737_v43, %v3550_v42  ;;  %v1982_v18 = vadd.f32 %v1918_v10, %v3586_v0  ;;  %v1983_v46 = vadd.f32 %v1919_v11, %v3586_v0  ;;  %v2816_v7 = vld [vmem:[%s5600_s4 + $0x660] sm:$0xff]  ;;  %v2817_v9 = vld [vmem:[%s5600_s4 + $0x668] sm:$0xff] }
 0x249   : > { %v1984_v20 = vadd.f32 %v1920_v8, %v3586_v0  ;;  %v1985_v32 = vadd.f32 %v1921_v12, %v3586_v0  ;;  %2794 = vst [vmem:[%s5600_s4 + $0x5b0] sm:$0xff] %v2044_v13  ;;  %v1986_v21 = vadd.f32 %v1922_v14, %v3586_v0  ;;  %v1924_v26 = vmul.f32 %v2738_v60, %v3550_v42  ;;  %v2818_v13 = vld [vmem:[%s5600_s4 + $0x670] sm:$0xff] }
 0x24a   : > { %2795 = vst [vmem:[%s5600_s4 + $0x5b8] sm:$0xff] %v2045_v6  ;;  %v1987_v61 = vadd.f32 %v1923_v25, %v3586_v0  ;;  %v1925_v30 = vmul.f32 %v2739_v48, %v3550_v42  ;;  %v2046_v4 = vmax.f32 %v1982_v18, 0.0  ;;  %v2047_v33 = vmax.f32 %v1983_v46, 0.0  ;;  %v2819_v6 = vld [vmem:[%s5600_s4 + $0x678] sm:$0xff] }
 0x24b   : > { %v2048_v59 = vmax.f32 %v1984_v20, 0.0  ;;  %v2049_v34 = vmax.f32 %v1985_v32, 0.0  ;;  %v2050_v2 = vmax.f32 %v1986_v21, 0.0  ;;  %v1988_v38 = vadd.f32 %v1924_v26, %v3586_v0 }
 0x24c   : > { %v2051_v58 = vmax.f32 %v1987_v61, 0.0  ;;  %v1989_v39 = vadd.f32 %v1925_v30, %v3586_v0  ;;  %2796 = vst [vmem:[%s5600_s4 + $0x5c0] sm:$0xff] %v2046_v4  ;;  %2797 = vst [vmem:[%s5600_s4 + $0x5c8] sm:$0xff] %v2047_v33  ;;  %v2183_v19 = vmul.f32 %v2804_v23, %v3550_v42  ;;  %v2184_v17 = vmul.f32 %v2805_v27, %v3550_v42  ;;  %v2820_v61 = vld [vmem:[%s5600_s4 + $0x680] sm:$0xff]  ;;  %v2822_v4 = vld [vmem:[%s5600_s4 + $0x690] sm:$0xff] }
 0x24d   : > { %2798 = vst [vmem:[%s5600_s4 + $0x5d0] sm:$0xff] %v2048_v59  ;;  %2799 = vst [vmem:[%s5600_s4 + $0x5d8] sm:$0xff] %v2049_v34  ;;  %v2185_v40 = vmul.f32 %v2806_v29, %v3550_v42  ;;  %v2186_v41 = vmul.f32 %v2807_v53, %v3550_v42  ;;  %v2052_v49 = vmax.f32 %v1988_v38, 0.0  ;;  %v2187_v15 = vmul.f32 %v2808_v51, %v3550_v42  ;;  %v2821_v53 = vld [vmem:[%s5600_s4 + $0x688] sm:$0xff]  ;;  %v2823_v33 = vld [vmem:[%s5600_s4 + $0x698] sm:$0xff] }
 0x24e   : > { %2800 = vst [vmem:[%s5600_s4 + $0x5e0] sm:$0xff] %v2050_v2  ;;  %2801 = vst [vmem:[%s5600_s4 + $0x5e8] sm:$0xff] %v2051_v58  ;;  %v2053_v31 = vmax.f32 %v1989_v39, 0.0  ;;  %v2188_v50 = vmul.f32 %v2809_v36, %v3550_v42  ;;  %v2247_v52 = vadd.f32 %v2183_v19, %v3586_v0  ;;  %v2248_v22 = vadd.f32 %v2184_v17, %v3586_v0  ;;  %v2824_v2 = vld [vmem:[%s5600_s4 + $0x6a0] sm:$0xff]  ;;  %v2825_v58 = vld [vmem:[%s5600_s4 + $0x6a8] sm:$0xff] }
 0x24f   : > { %v2249_v16 = vadd.f32 %v2185_v40, %v3586_v0  ;;  %v2250_v54 = vadd.f32 %v2186_v41, %v3586_v0  ;;  %2802 = vst [vmem:[%s5600_s4 + $0x5f0] sm:$0xff] %v2052_v49  ;;  %v2251_v37 = vadd.f32 %v2187_v15, %v3586_v0  ;;  %v2189_v28 = vmul.f32 %v2810_v45, %v3550_v42  ;;  %v2826_v49 = vld [vmem:[%s5600_s4 + $0x6b0] sm:$0xff] }
 0x250   : > { %2803 = vst [vmem:[%s5600_s4 + $0x5f8] sm:$0xff] %v2053_v31  ;;  %v2252_v56 = vadd.f32 %v2188_v50, %v3586_v0  ;;  %v2190_v57 = vmul.f32 %v2811_v24, %v3550_v42  ;;  %v2311_v35 = vmax.f32 %v2247_v52, 0.0  ;;  %v2312_v3 = vmax.f32 %v2248_v22, 0.0  ;;  %v2827_v31 = vld [vmem:[%s5600_s4 + $0x6b8] sm:$0xff] }
 0x251   : > { %v2313_v5 = vmax.f32 %v2249_v16, 0.0  ;;  %v2314_v43 = vmax.f32 %v2250_v54, 0.0  ;;  %v2315_v63 = vmax.f32 %v2251_v37, 0.0  ;;  %v2253_v10 = vadd.f32 %v2189_v28, %v3586_v0 }
 0x252   : > { %v2316_v44 = vmax.f32 %v2252_v56, 0.0  ;;  %v2254_v11 = vadd.f32 %v2190_v57, %v3586_v0  ;;  %2868 = vst [vmem:[%s5600_s4 + $0x600] sm:$0xff] %v2311_v35  ;;  %2869 = vst [vmem:[%s5600_s4 + $0x608] sm:$0xff] %v2312_v3  ;;  %v2191_v8 = vmul.f32 %v2812_v55, %v3550_v42  ;;  %v2192_v12 = vmul.f32 %v2813_v62, %v3550_v42  ;;  %v2828_v56 = vld [vmem:[%s5600_s4 + $0x6c0] sm:$0xff]  ;;  %v2830_v35 = vld [vmem:[%s5600_s4 + $0x6d0] sm:$0xff] }
 0x253   : > { %2870 = vst [vmem:[%s5600_s4 + $0x610] sm:$0xff] %v2313_v5  ;;  %2871 = vst [vmem:[%s5600_s4 + $0x618] sm:$0xff] %v2314_v43  ;;  %v2193_v60 = vmul.f32 %v2814_v47, %v3550_v42  ;;  %v2194_v48 = vmul.f32 %v2815_v1, %v3550_v42  ;;  %v2317_v14 = vmax.f32 %v2253_v10, 0.0  ;;  %v2195_v18 = vmul.f32 %v2816_v7, %v3550_v42  ;;  %v2829_v1 = vld [vmem:[%s5600_s4 + $0x6c8] sm:$0xff]  ;;  %v2831_v3 = vld [vmem:[%s5600_s4 + $0x6d8] sm:$0xff] }
 0x254   : > { %2872 = vst [vmem:[%s5600_s4 + $0x620] sm:$0xff] %v2315_v63  ;;  %2873 = vst [vmem:[%s5600_s4 + $0x628] sm:$0xff] %v2316_v44  ;;  %v2318_v25 = vmax.f32 %v2254_v11, 0.0  ;;  %v2196_v46 = vmul.f32 %v2817_v9, %v3550_v42  ;;  %v2255_v20 = vadd.f32 %v2191_v8, %v3586_v0  ;;  %v2256_v32 = vadd.f32 %v2192_v12, %v3586_v0  ;;  %v2832_v63 = vld [vmem:[%s5600_s4 + $0x6e0] sm:$0xff]  ;;  %v2833_v44 = vld [vmem:[%s5600_s4 + $0x6e8] sm:$0xff] }
 0x255   : > { %v2257_v23 = vadd.f32 %v2193_v60, %v3586_v0  ;;  %v2258_v21 = vadd.f32 %v2194_v48, %v3586_v0  ;;  %2874 = vst [vmem:[%s5600_s4 + $0x630] sm:$0xff] %v2317_v14  ;;  %v2259_v26 = vadd.f32 %v2195_v18, %v3586_v0  ;;  %v2197_v27 = vmul.f32 %v2818_v13, %v3550_v42  ;;  %v2834_v14 = vld [vmem:[%s5600_s4 + $0x6f0] sm:$0xff] }
 0x256   : > { %2875 = vst [vmem:[%s5600_s4 + $0x638] sm:$0xff] %v2318_v25  ;;  %v2260_v30 = vadd.f32 %v2196_v46, %v3586_v0  ;;  %v2198_v29 = vmul.f32 %v2819_v6, %v3550_v42  ;;  %v2319_v59 = vmax.f32 %v2255_v20, 0.0  ;;  %v2320_v34 = vmax.f32 %v2256_v32, 0.0  ;;  %v2835_v25 = vld [vmem:[%s5600_s4 + $0x6f8] sm:$0xff] }
 0x257   : > { %v2321_v51 = vmax.f32 %v2257_v23, 0.0  ;;  %v2322_v36 = vmax.f32 %v2258_v21, 0.0  ;;  %v2323_v38 = vmax.f32 %v2259_v26, 0.0  ;;  %v2261_v19 = vadd.f32 %v2197_v27, %v3586_v0 }
 0x258   : > { %v2324_v39 = vmax.f32 %v2260_v30, 0.0  ;;  %v2262_v17 = vadd.f32 %v2198_v29, %v3586_v0  ;;  %2876 = vst [vmem:[%s5600_s4 + $0x640] sm:$0xff] %v2319_v59  ;;  %2877 = vst [vmem:[%s5600_s4 + $0x648] sm:$0xff] %v2320_v34  ;;  %v2199_v40 = vmul.f32 %v2820_v61, %v3550_v42  ;;  %v2200_v41 = vmul.f32 %v2821_v53, %v3550_v42  ;;  %v2836_v30 = vld [vmem:[%s5600_s4 + $0x700] sm:$0xff]  ;;  %v2838_v59 = vld [vmem:[%s5600_s4 + $0x710] sm:$0xff] }
 0x259   : > { %2878 = vst [vmem:[%s5600_s4 + $0x650] sm:$0xff] %v2321_v51  ;;  %2879 = vst [vmem:[%s5600_s4 + $0x658] sm:$0xff] %v2322_v36  ;;  %v2201_v45 = vmul.f32 %v2822_v4, %v3550_v42  ;;  %v2202_v24 = vmul.f32 %v2823_v33, %v3550_v42  ;;  %v2325_v15 = vmax.f32 %v2261_v19, 0.0  ;;  %v2203_v52 = vmul.f32 %v2824_v2, %v3550_v42  ;;  %v2837_v33 = vld [vmem:[%s5600_s4 + $0x708] sm:$0xff]  ;;  %v2839_v34 = vld [vmem:[%s5600_s4 + $0x718] sm:$0xff] }
 0x25a   : > { %2880 = vst [vmem:[%s5600_s4 + $0x660] sm:$0xff] %v2323_v38  ;;  %2881 = vst [vmem:[%s5600_s4 + $0x668] sm:$0xff] %v2324_v39  ;;  %v2326_v50 = vmax.f32 %v2262_v17, 0.0  ;;  %v2204_v22 = vmul.f32 %v2825_v58, %v3550_v42  ;;  %v2263_v16 = vadd.f32 %v2199_v40, %v3586_v0  ;;  %v2264_v54 = vadd.f32 %v2200_v41, %v3586_v0  ;;  %v2840_v38 = vld [vmem:[%s5600_s4 + $0x720] sm:$0xff]  ;;  %v2841_v39 = vld [vmem:[%s5600_s4 + $0x728] sm:$0xff] }
 0x25b   : > { %v2265_v55 = vadd.f32 %v2201_v45, %v3586_v0  ;;  %v2266_v37 = vadd.f32 %v2202_v24, %v3586_v0  ;;  %2882 = vst [vmem:[%s5600_s4 + $0x670] sm:$0xff] %v2325_v15  ;;  %v2267_v28 = vadd.f32 %v2203_v52, %v3586_v0  ;;  %v2205_v62 = vmul.f32 %v2826_v49, %v3550_v42  ;;  %v2842_v15 = vld [vmem:[%s5600_s4 + $0x730] sm:$0xff] }
 0x25c   : > { %2883 = vst [vmem:[%s5600_s4 + $0x678] sm:$0xff] %v2326_v50  ;;  %v2268_v57 = vadd.f32 %v2204_v22, %v3586_v0  ;;  %v2206_v47 = vmul.f32 %v2827_v31, %v3550_v42  ;;  %v2327_v5 = vmax.f32 %v2263_v16, 0.0  ;;  %v2328_v43 = vmax.f32 %v2264_v54, 0.0  ;;  %v2843_v50 = vld [vmem:[%s5600_s4 + $0x738] sm:$0xff] }
 0x25d   : > { %v2329_v7 = vmax.f32 %v2265_v55, 0.0  ;;  %v2330_v9 = vmax.f32 %v2266_v37, 0.0  ;;  %v2331_v10 = vmax.f32 %v2267_v28, 0.0  ;;  %v2269_v8 = vadd.f32 %v2205_v62, %v3586_v0 }
 0x25e   : > { %v2332_v11 = vmax.f32 %v2268_v57, 0.0  ;;  %v2270_v12 = vadd.f32 %v2206_v47, %v3586_v0  ;;  %2884 = vst [vmem:[%s5600_s4 + $0x680] sm:$0xff] %v2327_v5  ;;  %2885 = vst [vmem:[%s5600_s4 + $0x688] sm:$0xff] %v2328_v43  ;;  %v2207_v60 = vmul.f32 %v2828_v56, %v3550_v42  ;;  %v2208_v48 = vmul.f32 %v2829_v1, %v3550_v42  ;;  %v2844_v57 = vld [vmem:[%s5600_s4 + $0x740] sm:$0xff]  ;;  %v2846_v5 = vld [vmem:[%s5600_s4 + $0x750] sm:$0xff] }
 0x25f   : > { %2886 = vst [vmem:[%s5600_s4 + $0x690] sm:$0xff] %v2329_v7  ;;  %2887 = vst [vmem:[%s5600_s4 + $0x698] sm:$0xff] %v2330_v9  ;;  %v2209_v13 = vmul.f32 %v2830_v35, %v3550_v42  ;;  %v2210_v6 = vmul.f32 %v2831_v3, %v3550_v42  ;;  %v2333_v18 = vmax.f32 %v2269_v8, 0.0  ;;  %v2211_v20 = vmul.f32 %v2832_v63, %v3550_v42  ;;  %v2845_v3 = vld [vmem:[%s5600_s4 + $0x748] sm:$0xff]  ;;  %v2847_v43 = vld [vmem:[%s5600_s4 + $0x758] sm:$0xff] }
 0x260   : > { %2888 = vst [vmem:[%s5600_s4 + $0x6a0] sm:$0xff] %v2331_v10  ;;  %2889 = vst [vmem:[%s5600_s4 + $0x6a8] sm:$0xff] %v2332_v11  ;;  %v2334_v46 = vmax.f32 %v2270_v12, 0.0  ;;  %v2212_v32 = vmul.f32 %v2833_v44, %v3550_v42  ;;  %v2271_v23 = vadd.f32 %v2207_v60, %v3586_v0  ;;  %v2272_v21 = vadd.f32 %v2208_v48, %v3586_v0  ;;  %v2848_v10 = vld [vmem:[%s5600_s4 + $0x760] sm:$0xff]  ;;  %v2849_v11 = vld [vmem:[%s5600_s4 + $0x768] sm:$0xff] }
 0x261   : > { %v2273_v61 = vadd.f32 %v2209_v13, %v3586_v0  ;;  %v2274_v26 = vadd.f32 %v2210_v6, %v3586_v0  ;;  %2890 = vst [vmem:[%s5600_s4 + $0x6b0] sm:$0xff] %v2333_v18  ;;  %v2275_v27 = vadd.f32 %v2211_v20, %v3586_v0  ;;  %v2213_v53 = vmul.f32 %v2834_v14, %v3550_v42  ;;  %v2850_v18 = vld [vmem:[%s5600_s4 + $0x770] sm:$0xff] }
 0x262   : > { %2891 = vst [vmem:[%s5600_s4 + $0x6b8] sm:$0xff] %v2334_v46  ;;  %v2276_v29 = vadd.f32 %v2212_v32, %v3586_v0  ;;  %v2214_v4 = vmul.f32 %v2835_v25, %v3550_v42  ;;  %v2335_v51 = vmax.f32 %v2271_v23, 0.0  ;;  %v2336_v36 = vmax.f32 %v2272_v21, 0.0  ;;  %v2851_v46 = vld [vmem:[%s5600_s4 + $0x778] sm:$0xff] }
 0x263   : > { %v2337_v2 = vmax.f32 %v2273_v61, 0.0  ;;  %v2338_v58 = vmax.f32 %v2274_v26, 0.0  ;;  %v2339_v19 = vmax.f32 %v2275_v27, 0.0  ;;  %v2277_v40 = vadd.f32 %v2213_v53, %v3586_v0 }
 0x264   : > { %v2340_v17 = vmax.f32 %v2276_v29, 0.0  ;;  %v2278_v41 = vadd.f32 %v2214_v4, %v3586_v0  ;;  %2892 = vst [vmem:[%s5600_s4 + $0x6c0] sm:$0xff] %v2335_v51  ;;  %2893 = vst [vmem:[%s5600_s4 + $0x6c8] sm:$0xff] %v2336_v36  ;;  %v2215_v45 = vmul.f32 %v2836_v30, %v3550_v42  ;;  %v2216_v24 = vmul.f32 %v2837_v33, %v3550_v42  ;;  %v2852_v29 = vld [vmem:[%s5600_s4 + $0x780] sm:$0xff]  ;;  %v2854_v51 = vld [vmem:[%s5600_s4 + $0x790] sm:$0xff] }
 0x265   : > { %2894 = vst [vmem:[%s5600_s4 + $0x6d0] sm:$0xff] %v2337_v2  ;;  %2895 = vst [vmem:[%s5600_s4 + $0x6d8] sm:$0xff] %v2338_v58  ;;  %v2217_v49 = vmul.f32 %v2838_v59, %v3550_v42  ;;  %v2218_v31 = vmul.f32 %v2839_v34, %v3550_v42  ;;  %v2341_v52 = vmax.f32 %v2277_v40, 0.0  ;;  %v2219_v16 = vmul.f32 %v2840_v38, %v3550_v42  ;;  %v2853_v34 = vld [vmem:[%s5600_s4 + $0x788] sm:$0xff]  ;;  %v2855_v36 = vld [vmem:[%s5600_s4 + $0x798] sm:$0xff] }
 0x266   : > { %2896 = vst [vmem:[%s5600_s4 + $0x6e0] sm:$0xff] %v2339_v19  ;;  %2897 = vst [vmem:[%s5600_s4 + $0x6e8] sm:$0xff] %v2340_v17  ;;  %v2342_v22 = vmax.f32 %v2278_v41, 0.0  ;;  %v2220_v54 = vmul.f32 %v2841_v39, %v3550_v42  ;;  %v2279_v55 = vadd.f32 %v2215_v45, %v3586_v0  ;;  %v2280_v37 = vadd.f32 %v2216_v24, %v3586_v0  ;;  %v2856_v19 = vld [vmem:[%s5600_s4 + $0x7a0] sm:$0xff]  ;;  %v2857_v17 = vld [vmem:[%s5600_s4 + $0x7a8] sm:$0xff] }
 0x267   : > { %v2281_v56 = vadd.f32 %v2217_v49, %v3586_v0  ;;  %v2282_v28 = vadd.f32 %v2218_v31, %v3586_v0  ;;  %2898 = vst [vmem:[%s5600_s4 + $0x6f0] sm:$0xff] %v2341_v52  ;;  %v2283_v62 = vadd.f32 %v2219_v16, %v3586_v0  ;;  %v2221_v1 = vmul.f32 %v2842_v15, %v3550_v42  ;;  %v2858_v52 = vld [vmem:[%s5600_s4 + $0x7b0] sm:$0xff] }
 0x268   : > { %2899 = vst [vmem:[%s5600_s4 + $0x6f8] sm:$0xff] %v2342_v22  ;;  %v2284_v47 = vadd.f32 %v2220_v54, %v3586_v0  ;;  %v2222_v35 = vmul.f32 %v2843_v50, %v3550_v42  ;;  %v2343_v7 = vmax.f32 %v2279_v55, 0.0  ;;  %v2344_v9 = vmax.f32 %v2280_v37, 0.0  ;;  %v2859_v22 = vld [vmem:[%s5600_s4 + $0x7b8] sm:$0xff] }
 0x269   : > { %v2345_v63 = vmax.f32 %v2281_v56, 0.0  ;;  %v2346_v44 = vmax.f32 %v2282_v28, 0.0  ;;  %v2347_v8 = vmax.f32 %v2283_v62, 0.0  ;;  %v2285_v60 = vadd.f32 %v2221_v1, %v3586_v0 }
 0x26a   : > { %v2348_v12 = vmax.f32 %v2284_v47, 0.0  ;;  %v2286_v48 = vadd.f32 %v2222_v35, %v3586_v0  ;;  %2900 = vst [vmem:[%s5600_s4 + $0x700] sm:$0xff] %v2343_v7  ;;  %2901 = vst [vmem:[%s5600_s4 + $0x708] sm:$0xff] %v2344_v9  ;;  %v2223_v13 = vmul.f32 %v2844_v57, %v3550_v42  ;;  %v2224_v6 = vmul.f32 %v2845_v3, %v3550_v42  ;;  %v2860_v47 = vld [vmem:[%s5600_s4 + $0x7c0] sm:$0xff]  ;;  %v2862_v7 = vld [vmem:[%s5600_s4 + $0x7d0] sm:$0xff] }
 0x26b   : > { %2902 = vst [vmem:[%s5600_s4 + $0x710] sm:$0xff] %v2345_v63  ;;  %2903 = vst [vmem:[%s5600_s4 + $0x718] sm:$0xff] %v2346_v44  ;;  %v2225_v14 = vmul.f32 %v2846_v5, %v3550_v42  ;;  %v2226_v25 = vmul.f32 %v2847_v43, %v3550_v42  ;;  %v2349_v20 = vmax.f32 %v2285_v60, 0.0  ;;  %v2227_v23 = vmul.f32 %v2848_v10, %v3550_v42  ;;  %v2861_v43 = vld [vmem:[%s5600_s4 + $0x7c8] sm:$0xff]  ;;  %v2863_v9 = vld [vmem:[%s5600_s4 + $0x7d8] sm:$0xff] }
 0x26c   : > { %2904 = vst [vmem:[%s5600_s4 + $0x720] sm:$0xff] %v2347_v8  ;;  %2905 = vst [vmem:[%s5600_s4 + $0x728] sm:$0xff] %v2348_v12  ;;  %v2350_v32 = vmax.f32 %v2286_v48, 0.0  ;;  %v2228_v21 = vmul.f32 %v2849_v11, %v3550_v42  ;;  %v2287_v61 = vadd.f32 %v2223_v13, %v3586_v0  ;;  %v2288_v26 = vadd.f32 %v2224_v6, %v3586_v0  ;;  %v2864_v8 = vld [vmem:[%s5600_s4 + $0x7e0] sm:$0xff]  ;;  %v2865_v12 = vld [vmem:[%s5600_s4 + $0x7e8] sm:$0xff] }
 0x26d   : > { %v2289_v30 = vadd.f32 %v2225_v14, %v3586_v0  ;;  %v2290_v27 = vadd.f32 %v2226_v25, %v3586_v0  ;;  %2906 = vst [vmem:[%s5600_s4 + $0x730] sm:$0xff] %v2349_v20  ;;  %v2291_v53 = vadd.f32 %v2227_v23, %v3586_v0  ;;  %v2229_v33 = vmul.f32 %v2850_v18, %v3550_v42  ;;  %v2866_v20 = vld [vmem:[%s5600_s4 + $0x7f0] sm:$0xff] }
 0x26e   : > { %2907 = vst [vmem:[%s5600_s4 + $0x738] sm:$0xff] %v2350_v32  ;;  %v2292_v4 = vadd.f32 %v2228_v21, %v3586_v0  ;;  %v2230_v59 = vmul.f32 %v2851_v46, %v3550_v42  ;;  %v2351_v2 = vmax.f32 %v2287_v61, 0.0  ;;  %v2352_v58 = vmax.f32 %v2288_v26, 0.0  ;;  %v2867_v32 = vld [vmem:[%s5600_s4 + $0x7f8] sm:$0xff] }
 0x26f   : > { %v2353_v38 = vmax.f32 %v2289_v30, 0.0  ;;  %v2354_v39 = vmax.f32 %v2290_v27, 0.0  ;;  %v2355_v40 = vmax.f32 %v2291_v53, 0.0  ;;  %v2293_v45 = vadd.f32 %v2229_v33, %v3586_v0 }
 0x270   : > { %v2356_v41 = vmax.f32 %v2292_v4, 0.0  ;;  %v2294_v24 = vadd.f32 %v2230_v59, %v3586_v0  ;;  %2908 = vst [vmem:[%s5600_s4 + $0x740] sm:$0xff] %v2351_v2  ;;  %2909 = vst [vmem:[%s5600_s4 + $0x748] sm:$0xff] %v2352_v58  ;;  %v2231_v49 = vmul.f32 %v2852_v29, %v3550_v42  ;;  %v2232_v31 = vmul.f32 %v2853_v34, %v3550_v42 }
 0x271   : > { %2910 = vst [vmem:[%s5600_s4 + $0x750] sm:$0xff] %v2353_v38  ;;  %2911 = vst [vmem:[%s5600_s4 + $0x758] sm:$0xff] %v2354_v39  ;;  %v2233_v15 = vmul.f32 %v2854_v51, %v3550_v42  ;;  %v2234_v50 = vmul.f32 %v2855_v36, %v3550_v42  ;;  %v2357_v16 = vmax.f32 %v2293_v45, 0.0  ;;  %v2235_v55 = vmul.f32 %v2856_v19, %v3550_v42 }
 0x272   : > { %2912 = vst [vmem:[%s5600_s4 + $0x760] sm:$0xff] %v2355_v40  ;;  %2913 = vst [vmem:[%s5600_s4 + $0x768] sm:$0xff] %v2356_v41  ;;  %v2358_v54 = vmax.f32 %v2294_v24, 0.0  ;;  %v2236_v37 = vmul.f32 %v2857_v17, %v3550_v42  ;;  %v2295_v56 = vadd.f32 %v2231_v49, %v3586_v0  ;;  %v2296_v28 = vadd.f32 %v2232_v31, %v3586_v0 }
 0x273   : > { %v2297_v57 = vadd.f32 %v2233_v15, %v3586_v0  ;;  %v2298_v62 = vadd.f32 %v2234_v50, %v3586_v0  ;;  %2914 = vst [vmem:[%s5600_s4 + $0x770] sm:$0xff] %v2357_v16  ;;  %v2299_v1 = vadd.f32 %v2235_v55, %v3586_v0  ;;  %v2237_v3 = vmul.f32 %v2858_v52, %v3550_v42 }
 0x274   : > { %2915 = vst [vmem:[%s5600_s4 + $0x778] sm:$0xff] %v2358_v54  ;;  %v2300_v35 = vadd.f32 %v2236_v37, %v3586_v0  ;;  %v2238_v5 = vmul.f32 %v2859_v22, %v3550_v42  ;;  %v2359_v63 = vmax.f32 %v2295_v56, 0.0  ;;  %v2360_v44 = vmax.f32 %v2296_v28, 0.0 }
 0x275   : > { %v2361_v10 = vmax.f32 %v2297_v57, 0.0  ;;  %v2362_v11 = vmax.f32 %v2298_v62, 0.0  ;;  %v2363_v60 = vmax.f32 %v2299_v1, 0.0  ;;  %v2301_v13 = vadd.f32 %v2237_v3, %v3586_v0 }
 0x276   : > { %v2364_v48 = vmax.f32 %v2300_v35, 0.0  ;;  %v2302_v6 = vadd.f32 %v2238_v5, %v3586_v0  ;;  %2916 = vst [vmem:[%s5600_s4 + $0x780] sm:$0xff] %v2359_v63  ;;  %2917 = vst [vmem:[%s5600_s4 + $0x788] sm:$0xff] %v2360_v44  ;;  %v2239_v14 = vmul.f32 %v2860_v47, %v3550_v42  ;;  %v2240_v25 = vmul.f32 %v2861_v43, %v3550_v42 }
 0x277   : > { %2918 = vst [vmem:[%s5600_s4 + $0x790] sm:$0xff] %v2361_v10  ;;  %2919 = vst [vmem:[%s5600_s4 + $0x798] sm:$0xff] %v2362_v11  ;;  %v2241_v18 = vmul.f32 %v2862_v7, %v3550_v42  ;;  %v2242_v46 = vmul.f32 %v2863_v9, %v3550_v42  ;;  %v2365_v23 = vmax.f32 %v2301_v13, 0.0  ;;  %v2243_v61 = vmul.f32 %v2864_v8, %v3550_v42 }
 0x278   : > { %2920 = vst [vmem:[%s5600_s4 + $0x7a0] sm:$0xff] %v2363_v60  ;;  %2921 = vst [vmem:[%s5600_s4 + $0x7a8] sm:$0xff] %v2364_v48  ;;  %v2366_v21 = vmax.f32 %v2302_v6, 0.0  ;;  %v2244_v26 = vmul.f32 %v2865_v12, %v3550_v42  ;;  %v2303_v30 = vadd.f32 %v2239_v14, %v3586_v0  ;;  %v2304_v27 = vadd.f32 %v2240_v25, %v3586_v0 }
 0x279   : > { %v2305_v29 = vadd.f32 %v2241_v18, %v3586_v0  ;;  %v2306_v53 = vadd.f32 %v2242_v46, %v3586_v0  ;;  %2922 = vst [vmem:[%s5600_s4 + $0x7b0] sm:$0xff] %v2365_v23  ;;  %v2307_v4 = vadd.f32 %v2243_v61, %v3586_v0  ;;  %v2245_v59 = vmul.f32 %v2866_v20, %v3550_v42 }
 0x27a   : > { %2923 = vst [vmem:[%s5600_s4 + $0x7b8] sm:$0xff] %v2366_v21  ;;  %v2308_v33 = vadd.f32 %v2244_v26, %v3586_v0  ;;  %v2246_v34 = vmul.f32 %v2867_v32, %v3550_v42  ;;  %v2367_v51 = vmax.f32 %v2303_v30, 0.0  ;;  %v2368_v36 = vmax.f32 %v2304_v27, 0.0 }
 0x27b   : > { %v2369_v2 = vmax.f32 %v2305_v29, 0.0  ;;  %v2370_v58 = vmax.f32 %v2306_v53, 0.0  ;;  %v2371_v38 = vmax.f32 %v2307_v4, 0.0  ;;  %v2309_v19 = vadd.f32 %v2245_v59, %v3586_v0 }
 0x27c   : > { %v2372_v39 = vmax.f32 %v2308_v33, 0.0  ;;  %v2310_v17 = vadd.f32 %v2246_v34, %v3586_v0  ;;  %2924 = vst [vmem:[%s5600_s4 + $0x7c0] sm:$0xff] %v2367_v51  ;;  %2925 = vst [vmem:[%s5600_s4 + $0x7c8] sm:$0xff] %v2368_v36 }
 0x27d   : > { %2926 = vst [vmem:[%s5600_s4 + $0x7d0] sm:$0xff] %v2369_v2  ;;  %2927 = vst [vmem:[%s5600_s4 + $0x7d8] sm:$0xff] %v2370_v58  ;;  %v2373_v42 = vmax.f32 %v2309_v19, 0.0 }
 0x27e   : > { %2928 = vst [vmem:[%s5600_s4 + $0x7e0] sm:$0xff] %v2371_v38  ;;  %2929 = vst [vmem:[%s5600_s4 + $0x7e8] sm:$0xff] %v2372_v39  ;;  %v2374_v0 = vmax.f32 %v2310_v17, 0.0 }
 0x27f   : > { %2930 = vst [vmem:[%s5600_s4 + $0x7f0] sm:$0xff] %v2373_v42 }
 0x280   : > { %2931 = vst [vmem:[%s5600_s4 + $0x7f8] sm:$0xff] %v2374_v0 }
 0x281 PF: > { %s14_s17 = sadd.s32 1, %s3163_s17   ;;  %s5601_s15 = smov %s3159_s16 }
 0x282   : > { %p11_p7 = scmp.ge.s32.totalorder %s14_s17, 6   ;;  %s5602_s16 = smov %s5604_s18 }
 0x284   :  { %13 = sbr.rel (!%p11_p7) target bundleno = 2 (0x2), region = 77 }

// kernel: generator_forward.9
= control target key start
LH: loop header
LB: loop body
LE: loop exit
PB: predicated region body
PF: predicated region fallthrough
CT: control target
= control target key end

     0   :  { %s2426_s9 = smov 0   ;;  %s2428_s10 = smov 0   ;;  %s2690_s0 = inlined_call_operand.vmem [shape: bf16[4,2048,128], index: 0, kind: input, shape index: {}]   ;;  %s2691_s1 = inlined_call_operand.vmem [shape: bf16[4,128,128], index: 1, kind: input, shape index: {}]   ;;  %s2692_s2 = inlined_call_operand.vmem [shape: f32[4,2048,128], index: 2, kind: output, shape index: {}]  }
   0x1   :  { %s2430_s11 = smov 0   ;;  %s2432_s12 = smov 0  }
   0x2   :  { %s2434_s13 = smov 0  }
   0x3 LB: > { %s21_s14 = sadd.s32 1, %s2401_s11  ;;  %s24_s15 = sadd.s32 1, %s2405_s12  ;;  %s2409_s13 = sphi %s2434_s13, %s12_s13   ;;  %s2405_s12 = sphi %s2432_s12, %s2696_s12   ;;  %s2401_s11 = sphi %s2430_s11, %s2695_s11   ;;  %s2397_s10 = sphi %s2428_s10, %s2694_s10   ;;  %s2393_s9 = sphi %s2426_s9, %s2693_s9  }
   0x4   : > { %p22_p0 = scmp.ge.s32.totalorder %s21_s14, 2  ;;  %p1687_p1 = scmp.ge.s32.totalorder %s2409_s13, 1 }
   0x5   : > { %p143_p2 = scmp.lt.s32.totalorder %s2409_s13, 9 }
   0x6   : > { %s2698_s14 = smov (%p22_p0, %s21_s14), 0  ;;  %s2700_s15 = smov (!%p22_p0, %s24_s15), %s2405_s12 }
   0x7   : > { %p144_p3 = pnand %p1687_p1, %p143_p2  ;;  %p26_p4 = scmp.ge.s32.totalorder %s2700_s15, 4 }
   0x8   : > { %s1688_s16 = sshll.u32 (!%p144_p3), %s2393_s9, 7  ;;  %p179_p5 = scmp.lt.s32.totalorder (!%p144_p3), %s2397_s10, 3 }
   0x9   : > { %s2702_s15 = smov (%p26_p4, %s2700_s15), 0  ;;  %147 = sbr.rel (%p144_p3) target bundleno = 406 (0x196), region = 28 }
   0xa   : > { %p181_p6 = scmp.lt.s32.totalorder (!%p144_p3), %s1688_s16, 255 }
  0x10   : > { %s2704_s10 = smov (!%p179_p5, %s2397_s10), 3  ;;  %s2706_s16 = smov (!%p181_p6, %s1688_s16), 255 }
  0x11   : > { %s1689_s17 = sshll.u32 %s2704_s10, 8  ;;  %s1770_s18 = sshll.u32 %s2704_s10, 6 }
  0x12   : > { %s2459_s21 = scalar_lea.vmem %s2691_s1, %s1770_s18  ;;  %s2461_s22 = sadd.s32 %s1689_s17, %s2706_s16 }
  0x13   : > { %v2043_v0 = vld [vmem:[%s2459_s21] sm:$0xff]   ;;  %v2044_v1 = vld [vmem:[%s2459_s21 + $0x8] sm:$0xff]   ;;  %s1690_s23 = sshll.u32 %s2461_s22, 2  ;;  %v2045_v2 = vld [vmem:[%s2459_s21 + $0x10] sm:$0xff]   ;;  %s1695_s27 = sshll.u32 %s2461_s22, 3 }
  0x14   : > { %1843 = vmatprep.subr.bf16.mxu0 %v2043_v0  ;;  %1987 = vmatprep.subr.bf16.mxu1 %v2043_v0  ;;  %s2470_s26 = scalar_lea.vmem %s2690_s0, %s1690_s23  ;;  %v2046_v3 = vld [vmem:[%s2459_s21 + $0x18] sm:$0xff]   ;;  %v2047_v6 = vld [vmem:[%s2459_s21 + $0x20] sm:$0xff]   ;;  %v2048_v7 = vld [vmem:[%s2459_s21 + $0x28] sm:$0xff]   ;;  %s2545_s30 = scalar_lea.vmem %s2692_s2, %s1695_s27 }
  0x15   : > { %1844 = vmatpush3.bf16.msra.mxu0 %v2043_v0  ;;  %1995 = vmatpush3.bf16.msra.mxu1 %v2043_v0  ;;  %v2051_v4 = vld [vmem:[%s2470_s26] sm:$0xff]   ;;  %v2049_v8 = vld [vmem:[%s2459_s21 + $0x30] sm:$0xff]   ;;  %v2050_v9 = vld [vmem:[%s2459_s21 + $0x38] sm:$0xff]  }
  0x16   : > { %1845 = vmatprep.subr.bf16.mxu0 %v2044_v1  ;;  %1988 = vmatprep.subr.bf16.mxu1 %v2044_v1  ;;  %v2052_v5 = vld [vmem:[%s2470_s26 + $0x100] sm:$0xff]   ;;  %v2053_v10 = vld [vmem:[%s2470_s26 + $0x8] sm:$0xff]   ;;  %v2055_v12 = vld [vmem:[%s2470_s26 + $0x10] sm:$0xff]  }
  0x17   : > { %1859 = vmatprep.mubr.bf16.mxu0 %v2051_v4  ;;  %1923 = vmatprep.mubr.bf16.mxu1 %v2052_v5  ;;  %v2054_v11 = vld [vmem:[%s2470_s26 + $0x108] sm:$0xff]   ;;  %v2056_v13 = vld [vmem:[%s2470_s26 + $0x110] sm:$0xff]   ;;  %v2057_v14 = vld [vmem:[%s2470_s26 + $0x18] sm:$0xff]  }
  0x18   : > { %v2058_v15 = vld [vmem:[%s2470_s26 + $0x118] sm:$0xff]   ;;  %v2059_v16 = vld [vmem:[%s2470_s26 + $0x20] sm:$0xff]   ;;  %v2061_v18 = vld [vmem:[%s2470_s26 + $0x28] sm:$0xff]  }
  0x19   : > { %1846 = vmatpush3.bf16.msra.mxu0 %v2044_v1  ;;  %1996 = vmatpush3.bf16.msra.mxu1 %v2044_v1  ;;  %v2060_v17 = vld [vmem:[%s2470_s26 + $0x120] sm:$0xff]   ;;  %v2062_v19 = vld [vmem:[%s2470_s26 + $0x128] sm:$0xff]   ;;  %v2063_v20 = vld [vmem:[%s2470_s26 + $0x30] sm:$0xff]  }
  0x1a   : > { %1847 = vmatprep.subr.bf16.mxu0 %v2045_v2  ;;  %1989 = vmatprep.subr.bf16.mxu1 %v2045_v2  ;;  %v2064_v21 = vld [vmem:[%s2470_s26 + $0x130] sm:$0xff]   ;;  %v2065_v22 = vld [vmem:[%s2470_s26 + $0x38] sm:$0xff]   ;;  %v2067_v24 = vld [vmem:[%s2470_s26 + $0x40] sm:$0xff]  }
  0x1b   : > { %v2066_v23 = vld [vmem:[%s2470_s26 + $0x138] sm:$0xff]   ;;  %v2068_v25 = vld [vmem:[%s2470_s26 + $0x140] sm:$0xff]   ;;  %v2069_v26 = vld [vmem:[%s2470_s26 + $0x48] sm:$0xff]  }
  0x1c   : > { %v2070_v27 = vld [vmem:[%s2470_s26 + $0x148] sm:$0xff]   ;;  %v2071_v28 = vld [vmem:[%s2470_s26 + $0x50] sm:$0xff]   ;;  %v2073_v30 = vld [vmem:[%s2470_s26 + $0x58] sm:$0xff]  }
  0x1d   : > { %1848 = vmatpush3.bf16.msra.mxu0 %v2045_v2  ;;  %1997 = vmatpush3.bf16.msra.mxu1 %v2045_v2  ;;  %v2072_v29 = vld [vmem:[%s2470_s26 + $0x150] sm:$0xff]   ;;  %v2074_v31 = vld [vmem:[%s2470_s26 + $0x158] sm:$0xff]   ;;  %v2075_v32 = vld [vmem:[%s2470_s26 + $0x60] sm:$0xff]  }
  0x1e   : > { %1849 = vmatprep.subr.bf16.mxu0 %v2046_v3  ;;  %1990 = vmatprep.subr.bf16.mxu1 %v2046_v3  ;;  %v2076_v33 = vld [vmem:[%s2470_s26 + $0x160] sm:$0xff]   ;;  %v2077_v34 = vld [vmem:[%s2470_s26 + $0x68] sm:$0xff]   ;;  %v2079_v36 = vld [vmem:[%s2470_s26 + $0x70] sm:$0xff]  }
  0x1f   : > { %v2078_v35 = vld [vmem:[%s2470_s26 + $0x168] sm:$0xff]   ;;  %v2080_v37 = vld [vmem:[%s2470_s26 + $0x170] sm:$0xff]   ;;  %v2081_v38 = vld [vmem:[%s2470_s26 + $0x78] sm:$0xff]  }
  0x20   : > { %v2082_v39 = vld [vmem:[%s2470_s26 + $0x178] sm:$0xff]   ;;  %v2083_v40 = vld [vmem:[%s2470_s26 + $0x80] sm:$0xff]   ;;  %v2085_v42 = vld [vmem:[%s2470_s26 + $0x88] sm:$0xff]  }
  0x21   : > { %1850 = vmatpush3.bf16.msra.mxu0 %v2046_v3  ;;  %1998 = vmatpush3.bf16.msra.mxu1 %v2046_v3  ;;  %v2084_v41 = vld [vmem:[%s2470_s26 + $0x180] sm:$0xff]   ;;  %v2086_v43 = vld [vmem:[%s2470_s26 + $0x188] sm:$0xff]   ;;  %v2087_v44 = vld [vmem:[%s2470_s26 + $0x90] sm:$0xff]  }
  0x22   : > { %1851 = vmatprep.subr.bf16.mxu0 %v2047_v6  ;;  %1991 = vmatprep.subr.bf16.mxu1 %v2047_v6  ;;  %v2088_v45 = vld [vmem:[%s2470_s26 + $0x190] sm:$0xff]   ;;  %v2089_v46 = vld [vmem:[%s2470_s26 + $0x98] sm:$0xff]   ;;  %v2091_v48 = vld [vmem:[%s2470_s26 + $0xa0] sm:$0xff]  }
  0x23   : > { %v2090_v47 = vld [vmem:[%s2470_s26 + $0x198] sm:$0xff]   ;;  %v2092_v49 = vld [vmem:[%s2470_s26 + $0x1a0] sm:$0xff]   ;;  %v2093_v50 = vld [vmem:[%s2470_s26 + $0xa8] sm:$0xff]  }
  0x24   : > { %v2094_v51 = vld [vmem:[%s2470_s26 + $0x1a8] sm:$0xff]   ;;  %v2095_v52 = vld [vmem:[%s2470_s26 + $0xb0] sm:$0xff]   ;;  %v2097_v54 = vld [vmem:[%s2470_s26 + $0xb8] sm:$0xff]  }
  0x25   : > { %1852 = vmatpush3.bf16.msra.mxu0 %v2047_v6  ;;  %1999 = vmatpush3.bf16.msra.mxu1 %v2047_v6  ;;  %v2096_v53 = vld [vmem:[%s2470_s26 + $0x1b0] sm:$0xff]   ;;  %v2098_v55 = vld [vmem:[%s2470_s26 + $0x1b8] sm:$0xff]   ;;  %v2099_v56 = vld [vmem:[%s2470_s26 + $0xc0] sm:$0xff]  }
  0x26   : > { %1853 = vmatprep.subr.bf16.mxu0 %v2048_v7  ;;  %1992 = vmatprep.subr.bf16.mxu1 %v2048_v7  ;;  %v2100_v57 = vld [vmem:[%s2470_s26 + $0x1c0] sm:$0xff]   ;;  %v2101_v58 = vld [vmem:[%s2470_s26 + $0xc8] sm:$0xff]   ;;  %v2103_v60 = vld [vmem:[%s2470_s26 + $0xd0] sm:$0xff]  }
  0x27   : > { %v2102_v59 = vld [vmem:[%s2470_s26 + $0x1c8] sm:$0xff]   ;;  %v2104_v61 = vld [vmem:[%s2470_s26 + $0x1d0] sm:$0xff]   ;;  %v2105_v62 = vld [vmem:[%s2470_s26 + $0xd8] sm:$0xff]  }
  0x28   : > { %v2106_v63 = vld [vmem:[%s2470_s26 + $0x1d8] sm:$0xff]   ;;  %v2107_v0 = vld [vmem:[%s2470_s26 + $0xe0] sm:$0xff]   ;;  %v2109_v2 = vld [vmem:[%s2470_s26 + $0xe8] sm:$0xff]  }
  0x29   : > { %1854 = vmatpush3.bf16.msra.mxu0 %v2048_v7  ;;  %2000 = vmatpush3.bf16.msra.mxu1 %v2048_v7  ;;  %v2108_v1 = vld [vmem:[%s2470_s26 + $0x1e0] sm:$0xff]   ;;  %v2110_v3 = vld [vmem:[%s2470_s26 + $0x1e8] sm:$0xff]   ;;  %v2111_v4 = vld [vmem:[%s2470_s26 + $0xf0] sm:$0xff]  }
  0x2a   : > { %1855 = vmatprep.subr.bf16.mxu0 %v2049_v8  ;;  %1993 = vmatprep.subr.bf16.mxu1 %v2049_v8  ;;  %v2112_v5 = vld [vmem:[%s2470_s26 + $0x1f0] sm:$0xff]   ;;  %v2113_v6 = vld [vmem:[%s2470_s26 + $0xf8] sm:$0xff]  }
  0x2b   : > { %v2114_v7 = vld [vmem:[%s2470_s26 + $0x1f8] sm:$0xff]  }
  0x2d   : > { %1856 = vmatpush3.bf16.msra.mxu0 %v2049_v8  ;;  %2001 = vmatpush3.bf16.msra.mxu1 %v2049_v8 }
  0x2e   : > { %1857 = vmatprep.subr.bf16.mxu0 %v2050_v9  ;;  %1994 = vmatprep.subr.bf16.mxu1 %v2050_v9 }
  0x31   : > { %1858 = vmatpush3.bf16.msra.mxu0 %v2050_v9  ;;  %2002 = vmatpush3.bf16.msra.mxu1 %v2050_v9 }
  0x34   : > { %1860 = vmatmul.mubr.bf16.vlgmr.msra.gmra.mrb[0].mxu0 %v2053_v10  ;;  %1924 = vmatmul.mubr.bf16.vlgmr.msra.gmra.mrb[0].mxu1 %v2054_v11 }
  0x35   : > { %1863 = vmatprep.mubr.bf16.mxu0 %v2055_v12  ;;  %1927 = vmatprep.mubr.bf16.mxu1 %v2056_v13 }
  0x3c   : > { %1864 = vmatmul.mubr.bf16.gmra.mrb[4].mxu0 %v2057_v14  ;;  %1928 = vmatmul.mubr.bf16.gmra.mrb[4].mxu1 %v2058_v15 }
  0x3d   : > { %1867 = vmatprep.mubr.bf16.mxu0 %v2059_v16  ;;  %1931 = vmatprep.mubr.bf16.mxu1 %v2060_v17 }
  0x44   : > { %1868 = vmatmul.mubr.bf16.gmra.mrb[8].mxu0 %v2061_v18  ;;  %1932 = vmatmul.mubr.bf16.gmra.mrb[8].mxu1 %v2062_v19 }
  0x45   : > { %1871 = vmatprep.mubr.bf16.mxu0 %v2063_v20  ;;  %1935 = vmatprep.mubr.bf16.mxu1 %v2064_v21 }
  0x4c   : > { %1872 = vmatmul.mubr.bf16.gmra.mrb[12].mxu0 %v2065_v22  ;;  %1936 = vmatmul.mubr.bf16.gmra.mrb[12].mxu1 %v2066_v23 }
  0x4d   : > { %1875 = vmatprep.mubr.bf16.mxu0 %v2067_v24  ;;  %1939 = vmatprep.mubr.bf16.mxu1 %v2068_v25 }
  0x54   : > { %1876 = vmatmul.mubr.bf16.gmra.mrb[16].mxu0 %v2069_v26  ;;  %1940 = vmatmul.mubr.bf16.gmra.mrb[16].mxu1 %v2070_v27 }
  0x55   : > { %1879 = vmatprep.mubr.bf16.mxu0 %v2071_v28  ;;  %1943 = vmatprep.mubr.bf16.mxu1 %v2072_v29 }
  0x5c   : > { %1880 = vmatmul.mubr.bf16.gmra.mrb[20].mxu0 %v2073_v30  ;;  %1944 = vmatmul.mubr.bf16.gmra.mrb[20].mxu1 %v2074_v31 }
  0x5d   : > { %1883 = vmatprep.mubr.bf16.mxu0 %v2075_v32  ;;  %1947 = vmatprep.mubr.bf16.mxu1 %v2076_v33 }
  0x64   : > { %1884 = vmatmul.mubr.bf16.gmra.mrb[24].mxu0 %v2077_v34  ;;  %1948 = vmatmul.mubr.bf16.gmra.mrb[24].mxu1 %v2078_v35 }
  0x65   : > { %1887 = vmatprep.mubr.bf16.mxu0 %v2079_v36  ;;  %1951 = vmatprep.mubr.bf16.mxu1 %v2080_v37 }
  0x6c   : > { %1888 = vmatmul.mubr.bf16.gmra.mrb[28].mxu0 %v2081_v38  ;;  %1952 = vmatmul.mubr.bf16.gmra.mrb[28].mxu1 %v2082_v39 }
  0x6d   : > { %1891 = vmatprep.mubr.bf16.mxu0 %v2083_v40  ;;  %1955 = vmatprep.mubr.bf16.mxu1 %v2084_v41 }
  0x74   : > { %1892 = vmatmul.mubr.bf16.gmra.mrb[32].mxu0 %v2085_v42  ;;  %1956 = vmatmul.mubr.bf16.gmra.mrb[32].mxu1 %v2086_v43 }
  0x75   : > { %1895 = vmatprep.mubr.bf16.mxu0 %v2087_v44  ;;  %1959 = vmatprep.mubr.bf16.mxu1 %v2088_v45 }
  0x7c   : > { %1896 = vmatmul.mubr.bf16.gmra.mrb[36].mxu0 %v2089_v46  ;;  %1960 = vmatmul.mubr.bf16.gmra.mrb[36].mxu1 %v2090_v47 }
  0x7d   : > { %1899 = vmatprep.mubr.bf16.mxu0 %v2091_v48  ;;  %1963 = vmatprep.mubr.bf16.mxu1 %v2092_v49 }
  0x84   : > { %1900 = vmatmul.mubr.bf16.gmra.mrb[40].mxu0 %v2093_v50  ;;  %1964 = vmatmul.mubr.bf16.gmra.mrb[40].mxu1 %v2094_v51 }
  0x85   : > { %1903 = vmatprep.mubr.bf16.mxu0 %v2095_v52  ;;  %1967 = vmatprep.mubr.bf16.mxu1 %v2096_v53 }
  0x8c   : > { %1904 = vmatmul.mubr.bf16.gmra.mrb[44].mxu0 %v2097_v54  ;;  %1968 = vmatmul.mubr.bf16.gmra.mrb[44].mxu1 %v2098_v55 }
  0x8d   : > { %1907 = vmatprep.mubr.bf16.mxu0 %v2099_v56  ;;  %1971 = vmatprep.mubr.bf16.mxu1 %v2100_v57 }
  0x94   : > { %1908 = vmatmul.mubr.bf16.gmra.mrb[48].mxu0 %v2101_v58  ;;  %1972 = vmatmul.mubr.bf16.gmra.mrb[48].mxu1 %v2102_v59 }
  0x95   : > { %1911 = vmatprep.mubr.bf16.mxu0 %v2103_v60  ;;  %1975 = vmatprep.mubr.bf16.mxu1 %v2104_v61 }
  0x9c   : > { %1912 = vmatmul.mubr.bf16.gmra.mrb[52].mxu0 %v2105_v62  ;;  %1976 = vmatmul.mubr.bf16.gmra.mrb[52].mxu1 %v2106_v63 }
  0x9d   : > { %1915 = vmatprep.mubr.bf16.mxu0 %v2107_v0  ;;  %1979 = vmatprep.mubr.bf16.mxu1 %v2108_v1 }
  0xa4   : > { %1916 = vmatmul.mubr.bf16.gmra.mrb[56].mxu0 %v2109_v2  ;;  %1980 = vmatmul.mubr.bf16.gmra.mrb[56].mxu1 %v2110_v3 }
  0xa5   : > { %1919 = vmatprep.mubr.bf16.mxu0 %v2111_v4  ;;  %1983 = vmatprep.mubr.bf16.mxu1 %v2112_v5 }
  0xac   : > { %1920 = vmatmul.mubr.bf16.gmra.mrb[60].mxu0 %v2113_v6  ;;  %1984 = vmatmul.mubr.bf16.gmra.mrb[60].mxu1 %v2114_v7 }
 0x107   : > { %v1861_v8 = vpop.f32.mrb[0].mxu0  ;;  %v1925_v9 = vpop.f32.mrb[0].mxu1 }
 0x108   : > { %2115 = vtanh.f32 %v1861_v8  ;;  %v814_v10 = vpop.f32.mrb[1].mxu0  ;;  %v1070_v11 = vpop.f32.mrb[1].mxu1 }
 0x109   : > { %2117 = vtanh.f32 %v1925_v9  ;;  %v1862_v12 = vpop.f32.mrb[2].mxu0  ;;  %v1926_v13 = vpop.f32.mrb[2].mxu1 }
 0x10a   : > { %2119 = vtanh.f32 %v814_v10  ;;  %v817_v14 = vpop.f32.mrb[3].mxu0  ;;  %v1073_v15 = vpop.f32.mrb[3].mxu1 }
 0x10b   : > { %2121 = vtanh.f32 %v1070_v11 }
 0x10c   : > { %2123 = vtanh.f32 %v1862_v12 }
 0x10d   : > { %2125 = vtanh.f32 %v1926_v13 }
 0x10e   : > { %2127 = vtanh.f32 %v817_v14 }
 0x10f   : > { %2129 = vtanh.f32 %v1073_v15  ;;  %v1865_v16 = vpop.f32.mrb[4].mxu0  ;;  %v1929_v17 = vpop.f32.mrb[4].mxu1 }
 0x110   : > { %2131 = vtanh.f32 %v1865_v16  ;;  %v830_v18 = vpop.f32.mrb[5].mxu0  ;;  %v1086_v19 = vpop.f32.mrb[5].mxu1 }
 0x111   : > { %2133 = vtanh.f32 %v1929_v17  ;;  %v1866_v20 = vpop.f32.mrb[6].mxu0  ;;  %v1930_v21 = vpop.f32.mrb[6].mxu1 }
 0x112   : > { %v2116_v22 = vpop.eup %2115  ;;  %2135 = vtanh.f32 %v830_v18  ;;  %v833_v23 = vpop.f32.mrb[7].mxu0 }
 0x113   : > { %v1089_v24 = vpop.f32.mrb[7].mxu1  ;;  %v2118_v25 = vpop.eup %2117  ;;  %1455 = vst [vmem:[%s2545_s30 + $0x10] sm:$0xff] %v2116_v22  ;;  %2137 = vtanh.f32 %v1086_v19 }
 0x114   : > { %v2120_v26 = vpop.eup %2119  ;;  %1519 = vst [vmem:[%s2545_s30 + $0x210] sm:$0xff] %v2118_v25  ;;  %2139 = vtanh.f32 %v1866_v20 }
 0x115   : > { %v2122_v27 = vpop.eup %2121  ;;  %1453 = vst [vmem:[%s2545_s30] sm:$0xff] %v2120_v26  ;;  %2141 = vtanh.f32 %v1930_v21 }
 0x116   : > { %v2124_v28 = vpop.eup %2123  ;;  %1517 = vst [vmem:[%s2545_s30 + $0x200] sm:$0xff] %v2122_v27  ;;  %2143 = vtanh.f32 %v833_v23 }
 0x117   : > { %v2126_v29 = vpop.eup %2125  ;;  %1456 = vst [vmem:[%s2545_s30 + $0x18] sm:$0xff] %v2124_v28  ;;  %2145 = vtanh.f32 %v1089_v24  ;;  %v1869_v30 = vpop.f32.mrb[8].mxu0 }
 0x118   : > { %v1933_v31 = vpop.f32.mrb[8].mxu1  ;;  %v2128_v32 = vpop.eup %2127  ;;  %1520 = vst [vmem:[%s2545_s30 + $0x218] sm:$0xff] %v2126_v29  ;;  %2147 = vtanh.f32 %v1869_v30 }
 0x119   : > { %v846_v33 = vpop.f32.mrb[9].mxu0  ;;  %v1102_v34 = vpop.f32.mrb[9].mxu1  ;;  %1454 = vst [vmem:[%s2545_s30 + $0x8] sm:$0xff] %v2128_v32  ;;  %2149 = vtanh.f32 %v1933_v31 }
 0x11a   : > { %v2130_v35 = vpop.eup %2129  ;;  %v1870_v36 = vpop.f32.mrb[10].mxu0  ;;  %2151 = vtanh.f32 %v846_v33 }
 0x11b   : > { %v1934_v37 = vpop.f32.mrb[10].mxu1  ;;  %v2132_v38 = vpop.eup %2131  ;;  %1518 = vst [vmem:[%s2545_s30 + $0x208] sm:$0xff] %v2130_v35  ;;  %2153 = vtanh.f32 %v1102_v34 }
 0x11c   : > { %v849_v39 = vpop.f32.mrb[11].mxu0  ;;  %v1105_v40 = vpop.f32.mrb[11].mxu1  ;;  %1459 = vst [vmem:[%s2545_s30 + $0x30] sm:$0xff] %v2132_v38  ;;  %2155 = vtanh.f32 %v1870_v36 }
 0x11d   : > { %v2134_v41 = vpop.eup %2133  ;;  %2157 = vtanh.f32 %v1934_v37 }
 0x11e   : > { %v2136_v42 = vpop.eup %2135  ;;  %1523 = vst [vmem:[%s2545_s30 + $0x230] sm:$0xff] %v2134_v41  ;;  %2159 = vtanh.f32 %v849_v39 }
 0x11f   : > { %v2138_v43 = vpop.eup %2137  ;;  %1457 = vst [vmem:[%s2545_s30 + $0x20] sm:$0xff] %v2136_v42  ;;  %2161 = vtanh.f32 %v1105_v40  ;;  %v1873_v46 = vpop.f32.mrb[12].mxu0 }
 0x120   : > { %v2140_v44 = vpop.eup %2139  ;;  %1521 = vst [vmem:[%s2545_s30 + $0x220] sm:$0xff] %v2138_v43  ;;  %v1937_v47 = vpop.f32.mrb[12].mxu1  ;;  %2163 = vtanh.f32 %v1873_v46 }
 0x121   : > { %v2142_v45 = vpop.eup %2141  ;;  %1460 = vst [vmem:[%s2545_s30 + $0x38] sm:$0xff] %v2140_v44  ;;  %v862_v49 = vpop.f32.mrb[13].mxu0  ;;  %2165 = vtanh.f32 %v1937_v47 }
 0x122   : > { %v2144_v48 = vpop.eup %2143  ;;  %1524 = vst [vmem:[%s2545_s30 + $0x238] sm:$0xff] %v2142_v45  ;;  %v1118_v50 = vpop.f32.mrb[13].mxu1  ;;  %2167 = vtanh.f32 %v862_v49 }
 0x123   : > { %v2146_v51 = vpop.eup %2145  ;;  %1458 = vst [vmem:[%s2545_s30 + $0x28] sm:$0xff] %v2144_v48  ;;  %v1874_v52 = vpop.f32.mrb[14].mxu0  ;;  %2169 = vtanh.f32 %v1118_v50 }
 0x124   : > { %v1938_v53 = vpop.f32.mrb[14].mxu1  ;;  %v2148_v54 = vpop.eup %2147  ;;  %1522 = vst [vmem:[%s2545_s30 + $0x228] sm:$0xff] %v2146_v51  ;;  %2171 = vtanh.f32 %v1874_v52 }
 0x125   : > { %v865_v55 = vpop.f32.mrb[15].mxu0  ;;  %v1121_v56 = vpop.f32.mrb[15].mxu1  ;;  %1463 = vst [vmem:[%s2545_s30 + $0x50] sm:$0xff] %v2148_v54  ;;  %2173 = vtanh.f32 %v1938_v53 }
 0x126   : > { %v2150_v57 = vpop.eup %2149  ;;  %2175 = vtanh.f32 %v865_v55 }
 0x127   : > { %v2152_v58 = vpop.eup %2151  ;;  %1527 = vst [vmem:[%s2545_s30 + $0x250] sm:$0xff] %v2150_v57  ;;  %2177 = vtanh.f32 %v1121_v56  ;;  %v1877_v62 = vpop.f32.mrb[16].mxu0 }
 0x128   : > { %v2154_v59 = vpop.eup %2153  ;;  %1461 = vst [vmem:[%s2545_s30 + $0x40] sm:$0xff] %v2152_v58  ;;  %v1941_v63 = vpop.f32.mrb[16].mxu1  ;;  %2179 = vtanh.f32 %v1877_v62 }
 0x129   : > { %v2156_v60 = vpop.eup %2155  ;;  %1525 = vst [vmem:[%s2545_s30 + $0x240] sm:$0xff] %v2154_v59  ;;  %v878_v1 = vpop.f32.mrb[17].mxu0  ;;  %2181 = vtanh.f32 %v1941_v63 }
 0x12a   : > { %v2158_v61 = vpop.eup %2157  ;;  %1464 = vst [vmem:[%s2545_s30 + $0x58] sm:$0xff] %v2156_v60  ;;  %v1134_v2 = vpop.f32.mrb[17].mxu1  ;;  %2183 = vtanh.f32 %v878_v1 }
 0x12b   : > { %v2160_v0 = vpop.eup %2159  ;;  %1528 = vst [vmem:[%s2545_s30 + $0x258] sm:$0xff] %v2158_v61  ;;  %v1878_v4 = vpop.f32.mrb[18].mxu0  ;;  %2185 = vtanh.f32 %v1134_v2 }
 0x12c   : > { %v2162_v3 = vpop.eup %2161  ;;  %1462 = vst [vmem:[%s2545_s30 + $0x48] sm:$0xff] %v2160_v0  ;;  %v1942_v5 = vpop.f32.mrb[18].mxu1  ;;  %2187 = vtanh.f32 %v1878_v4 }
 0x12d   : > { %v2164_v6 = vpop.eup %2163  ;;  %1526 = vst [vmem:[%s2545_s30 + $0x248] sm:$0xff] %v2162_v3  ;;  %v881_v7 = vpop.f32.mrb[19].mxu0  ;;  %2189 = vtanh.f32 %v1942_v5 }
 0x12e   : > { %v1137_v8 = vpop.f32.mrb[19].mxu1  ;;  %v2166_v9 = vpop.eup %2165  ;;  %1467 = vst [vmem:[%s2545_s30 + $0x70] sm:$0xff] %v2164_v6  ;;  %2191 = vtanh.f32 %v881_v7 }
 0x12f   : > { %v2168_v10 = vpop.eup %2167  ;;  %1531 = vst [vmem:[%s2545_s30 + $0x270] sm:$0xff] %v2166_v9  ;;  %2193 = vtanh.f32 %v1137_v8  ;;  %v1881_v14 = vpop.f32.mrb[20].mxu0 }
 0x130   : > { %v2170_v11 = vpop.eup %2169  ;;  %1465 = vst [vmem:[%s2545_s30 + $0x60] sm:$0xff] %v2168_v10  ;;  %v1945_v15 = vpop.f32.mrb[20].mxu1  ;;  %2195 = vtanh.f32 %v1881_v14 }
 0x131   : > { %v2172_v12 = vpop.eup %2171  ;;  %1529 = vst [vmem:[%s2545_s30 + $0x260] sm:$0xff] %v2170_v11  ;;  %v894_v17 = vpop.f32.mrb[21].mxu0  ;;  %2197 = vtanh.f32 %v1945_v15 }
 0x132   : > { %v2174_v13 = vpop.eup %2173  ;;  %1468 = vst [vmem:[%s2545_s30 + $0x78] sm:$0xff] %v2172_v12  ;;  %v1150_v18 = vpop.f32.mrb[21].mxu1  ;;  %2199 = vtanh.f32 %v894_v17 }
 0x133   : > { %v2176_v16 = vpop.eup %2175  ;;  %1532 = vst [vmem:[%s2545_s30 + $0x278] sm:$0xff] %v2174_v13  ;;  %v1882_v20 = vpop.f32.mrb[22].mxu0  ;;  %2201 = vtanh.f32 %v1150_v18 }
 0x134   : > { %v2178_v19 = vpop.eup %2177  ;;  %1466 = vst [vmem:[%s2545_s30 + $0x68] sm:$0xff] %v2176_v16  ;;  %v1946_v21 = vpop.f32.mrb[22].mxu1  ;;  %2203 = vtanh.f32 %v1882_v20 }
 0x135   : > { %v2180_v22 = vpop.eup %2179  ;;  %1530 = vst [vmem:[%s2545_s30 + $0x268] sm:$0xff] %v2178_v19  ;;  %v897_v23 = vpop.f32.mrb[23].mxu0  ;;  %2205 = vtanh.f32 %v1946_v21 }
 0x136   : > { %v1153_v24 = vpop.f32.mrb[23].mxu1  ;;  %v2182_v25 = vpop.eup %2181  ;;  %1471 = vst [vmem:[%s2545_s30 + $0x90] sm:$0xff] %v2180_v22  ;;  %2207 = vtanh.f32 %v897_v23 }
 0x137   : > { %v2184_v26 = vpop.eup %2183  ;;  %1535 = vst [vmem:[%s2545_s30 + $0x290] sm:$0xff] %v2182_v25  ;;  %2209 = vtanh.f32 %v1153_v24  ;;  %v1885_v30 = vpop.f32.mrb[24].mxu0 }
 0x138   : > { %v2186_v27 = vpop.eup %2185  ;;  %1469 = vst [vmem:[%s2545_s30 + $0x80] sm:$0xff] %v2184_v26  ;;  %v1949_v31 = vpop.f32.mrb[24].mxu1  ;;  %2211 = vtanh.f32 %v1885_v30 }
 0x139   : > { %v2188_v28 = vpop.eup %2187  ;;  %1533 = vst [vmem:[%s2545_s30 + $0x280] sm:$0xff] %v2186_v27  ;;  %v910_v33 = vpop.f32.mrb[25].mxu0  ;;  %2213 = vtanh.f32 %v1949_v31 }
 0x13a   : > { %v2190_v29 = vpop.eup %2189  ;;  %1472 = vst [vmem:[%s2545_s30 + $0x98] sm:$0xff] %v2188_v28  ;;  %v1166_v34 = vpop.f32.mrb[25].mxu1  ;;  %2215 = vtanh.f32 %v910_v33 }
 0x13b   : > { %v2192_v32 = vpop.eup %2191  ;;  %1536 = vst [vmem:[%s2545_s30 + $0x298] sm:$0xff] %v2190_v29  ;;  %v1886_v36 = vpop.f32.mrb[26].mxu0  ;;  %2217 = vtanh.f32 %v1166_v34 }
 0x13c   : > { %v2194_v35 = vpop.eup %2193  ;;  %1470 = vst [vmem:[%s2545_s30 + $0x88] sm:$0xff] %v2192_v32  ;;  %v1950_v37 = vpop.f32.mrb[26].mxu1  ;;  %2219 = vtanh.f32 %v1886_v36 }
 0x13d   : > { %v2196_v38 = vpop.eup %2195  ;;  %1534 = vst [vmem:[%s2545_s30 + $0x288] sm:$0xff] %v2194_v35  ;;  %v913_v39 = vpop.f32.mrb[27].mxu0  ;;  %2221 = vtanh.f32 %v1950_v37 }
 0x13e   : > { %v1169_v40 = vpop.f32.mrb[27].mxu1  ;;  %v2198_v41 = vpop.eup %2197  ;;  %1475 = vst [vmem:[%s2545_s30 + $0xb0] sm:$0xff] %v2196_v38  ;;  %2223 = vtanh.f32 %v913_v39 }
 0x13f   : > { %v2200_v42 = vpop.eup %2199  ;;  %1539 = vst [vmem:[%s2545_s30 + $0x2b0] sm:$0xff] %v2198_v41  ;;  %2225 = vtanh.f32 %v1169_v40  ;;  %v1889_v46 = vpop.f32.mrb[28].mxu0 }
 0x140   : > { %v2202_v43 = vpop.eup %2201  ;;  %1473 = vst [vmem:[%s2545_s30 + $0xa0] sm:$0xff] %v2200_v42  ;;  %v1953_v47 = vpop.f32.mrb[28].mxu1  ;;  %2227 = vtanh.f32 %v1889_v46 }
 0x141   : > { %v2204_v44 = vpop.eup %2203  ;;  %1537 = vst [vmem:[%s2545_s30 + $0x2a0] sm:$0xff] %v2202_v43  ;;  %v926_v49 = vpop.f32.mrb[29].mxu0  ;;  %2229 = vtanh.f32 %v1953_v47 }
 0x142   : > { %v2206_v45 = vpop.eup %2205  ;;  %1476 = vst [vmem:[%s2545_s30 + $0xb8] sm:$0xff] %v2204_v44  ;;  %v1182_v50 = vpop.f32.mrb[29].mxu1  ;;  %2231 = vtanh.f32 %v926_v49 }
 0x143   : > { %v2208_v48 = vpop.eup %2207  ;;  %1540 = vst [vmem:[%s2545_s30 + $0x2b8] sm:$0xff] %v2206_v45  ;;  %v1890_v52 = vpop.f32.mrb[30].mxu0  ;;  %2233 = vtanh.f32 %v1182_v50 }
 0x144   : > { %v2210_v51 = vpop.eup %2209  ;;  %1474 = vst [vmem:[%s2545_s30 + $0xa8] sm:$0xff] %v2208_v48  ;;  %v1954_v53 = vpop.f32.mrb[30].mxu1  ;;  %2235 = vtanh.f32 %v1890_v52 }
 0x145   : > { %v2212_v54 = vpop.eup %2211  ;;  %1538 = vst [vmem:[%s2545_s30 + $0x2a8] sm:$0xff] %v2210_v51  ;;  %v929_v55 = vpop.f32.mrb[31].mxu0  ;;  %2237 = vtanh.f32 %v1954_v53 }
 0x146   : > { %v1185_v56 = vpop.f32.mrb[31].mxu1  ;;  %v2214_v57 = vpop.eup %2213  ;;  %1479 = vst [vmem:[%s2545_s30 + $0xd0] sm:$0xff] %v2212_v54  ;;  %2239 = vtanh.f32 %v929_v55 }
 0x147   : > { %v2216_v58 = vpop.eup %2215  ;;  %1543 = vst [vmem:[%s2545_s30 + $0x2d0] sm:$0xff] %v2214_v57  ;;  %2241 = vtanh.f32 %v1185_v56  ;;  %v1893_v62 = vpop.f32.mrb[32].mxu0 }
 0x148   : > { %v2218_v59 = vpop.eup %2217  ;;  %1477 = vst [vmem:[%s2545_s30 + $0xc0] sm:$0xff] %v2216_v58  ;;  %v1957_v63 = vpop.f32.mrb[32].mxu1  ;;  %2243 = vtanh.f32 %v1893_v62 }
 0x149   : > { %v2220_v60 = vpop.eup %2219  ;;  %1541 = vst [vmem:[%s2545_s30 + $0x2c0] sm:$0xff] %v2218_v59  ;;  %v942_v1 = vpop.f32.mrb[33].mxu0  ;;  %2245 = vtanh.f32 %v1957_v63 }
 0x14a   : > { %v2222_v61 = vpop.eup %2221  ;;  %1480 = vst [vmem:[%s2545_s30 + $0xd8] sm:$0xff] %v2220_v60  ;;  %v1198_v2 = vpop.f32.mrb[33].mxu1  ;;  %2247 = vtanh.f32 %v942_v1 }
 0x14b   : > { %v2224_v0 = vpop.eup %2223  ;;  %1544 = vst [vmem:[%s2545_s30 + $0x2d8] sm:$0xff] %v2222_v61  ;;  %v1894_v4 = vpop.f32.mrb[34].mxu0  ;;  %2249 = vtanh.f32 %v1198_v2 }
 0x14c   : > { %v2226_v3 = vpop.eup %2225  ;;  %1478 = vst [vmem:[%s2545_s30 + $0xc8] sm:$0xff] %v2224_v0  ;;  %v1958_v5 = vpop.f32.mrb[34].mxu1  ;;  %2251 = vtanh.f32 %v1894_v4 }
 0x14d   : > { %v2228_v6 = vpop.eup %2227  ;;  %1542 = vst [vmem:[%s2545_s30 + $0x2c8] sm:$0xff] %v2226_v3  ;;  %v945_v7 = vpop.f32.mrb[35].mxu0  ;;  %2253 = vtanh.f32 %v1958_v5 }
 0x14e   : > { %v1201_v8 = vpop.f32.mrb[35].mxu1  ;;  %v2230_v9 = vpop.eup %2229  ;;  %1483 = vst [vmem:[%s2545_s30 + $0xf0] sm:$0xff] %v2228_v6  ;;  %2255 = vtanh.f32 %v945_v7 }
 0x14f   : > { %v2232_v10 = vpop.eup %2231  ;;  %1547 = vst [vmem:[%s2545_s30 + $0x2f0] sm:$0xff] %v2230_v9  ;;  %2257 = vtanh.f32 %v1201_v8  ;;  %v1897_v14 = vpop.f32.mrb[36].mxu0 }
 0x150   : > { %v2234_v11 = vpop.eup %2233  ;;  %1481 = vst [vmem:[%s2545_s30 + $0xe0] sm:$0xff] %v2232_v10  ;;  %v1961_v15 = vpop.f32.mrb[36].mxu1  ;;  %2259 = vtanh.f32 %v1897_v14 }
 0x151   : > { %v2236_v12 = vpop.eup %2235  ;;  %1545 = vst [vmem:[%s2545_s30 + $0x2e0] sm:$0xff] %v2234_v11  ;;  %v958_v17 = vpop.f32.mrb[37].mxu0  ;;  %2261 = vtanh.f32 %v1961_v15 }
 0x152   : > { %v2238_v13 = vpop.eup %2237  ;;  %1484 = vst [vmem:[%s2545_s30 + $0xf8] sm:$0xff] %v2236_v12  ;;  %v1214_v18 = vpop.f32.mrb[37].mxu1  ;;  %2263 = vtanh.f32 %v958_v17 }
 0x153   : > { %v2240_v16 = vpop.eup %2239  ;;  %1548 = vst [vmem:[%s2545_s30 + $0x2f8] sm:$0xff] %v2238_v13  ;;  %v1898_v20 = vpop.f32.mrb[38].mxu0  ;;  %2265 = vtanh.f32 %v1214_v18 }
 0x154   : > { %v2242_v19 = vpop.eup %2241  ;;  %1482 = vst [vmem:[%s2545_s30 + $0xe8] sm:$0xff] %v2240_v16  ;;  %v1962_v21 = vpop.f32.mrb[38].mxu1  ;;  %2267 = vtanh.f32 %v1898_v20 }
 0x155   : > { %v2244_v22 = vpop.eup %2243  ;;  %1546 = vst [vmem:[%s2545_s30 + $0x2e8] sm:$0xff] %v2242_v19  ;;  %v961_v23 = vpop.f32.mrb[39].mxu0  ;;  %2269 = vtanh.f32 %v1962_v21 }
 0x156   : > { %v1217_v24 = vpop.f32.mrb[39].mxu1  ;;  %v2246_v25 = vpop.eup %2245  ;;  %1487 = vst [vmem:[%s2545_s30 + $0x110] sm:$0xff] %v2244_v22  ;;  %2271 = vtanh.f32 %v961_v23 }
 0x157   : > { %v2248_v26 = vpop.eup %2247  ;;  %1551 = vst [vmem:[%s2545_s30 + $0x310] sm:$0xff] %v2246_v25  ;;  %2273 = vtanh.f32 %v1217_v24  ;;  %v1901_v30 = vpop.f32.mrb[40].mxu0 }
 0x158   : > { %v2250_v27 = vpop.eup %2249  ;;  %1485 = vst [vmem:[%s2545_s30 + $0x100] sm:$0xff] %v2248_v26  ;;  %v1965_v31 = vpop.f32.mrb[40].mxu1  ;;  %2275 = vtanh.f32 %v1901_v30 }
 0x159   : > { %v2252_v28 = vpop.eup %2251  ;;  %1549 = vst [vmem:[%s2545_s30 + $0x300] sm:$0xff] %v2250_v27  ;;  %v974_v33 = vpop.f32.mrb[41].mxu0  ;;  %2277 = vtanh.f32 %v1965_v31 }
 0x15a   : > { %v2254_v29 = vpop.eup %2253  ;;  %1488 = vst [vmem:[%s2545_s30 + $0x118] sm:$0xff] %v2252_v28  ;;  %v1230_v34 = vpop.f32.mrb[41].mxu1  ;;  %2279 = vtanh.f32 %v974_v33 }
 0x15b   : > { %v2256_v32 = vpop.eup %2255  ;;  %1552 = vst [vmem:[%s2545_s30 + $0x318] sm:$0xff] %v2254_v29  ;;  %v1902_v36 = vpop.f32.mrb[42].mxu0  ;;  %2281 = vtanh.f32 %v1230_v34 }
 0x15c   : > { %v2258_v35 = vpop.eup %2257  ;;  %1486 = vst [vmem:[%s2545_s30 + $0x108] sm:$0xff] %v2256_v32  ;;  %v1966_v37 = vpop.f32.mrb[42].mxu1  ;;  %2283 = vtanh.f32 %v1902_v36 }
 0x15d   : > { %v2260_v38 = vpop.eup %2259  ;;  %1550 = vst [vmem:[%s2545_s30 + $0x308] sm:$0xff] %v2258_v35  ;;  %v977_v39 = vpop.f32.mrb[43].mxu0  ;;  %2285 = vtanh.f32 %v1966_v37 }
 0x15e   : > { %v1233_v40 = vpop.f32.mrb[43].mxu1  ;;  %v2262_v41 = vpop.eup %2261  ;;  %1491 = vst [vmem:[%s2545_s30 + $0x130] sm:$0xff] %v2260_v38  ;;  %2287 = vtanh.f32 %v977_v39 }
 0x15f   : > { %v2264_v42 = vpop.eup %2263  ;;  %1555 = vst [vmem:[%s2545_s30 + $0x330] sm:$0xff] %v2262_v41  ;;  %2289 = vtanh.f32 %v1233_v40  ;;  %v1905_v46 = vpop.f32.mrb[44].mxu0 }
 0x160   : > { %v2266_v43 = vpop.eup %2265  ;;  %1489 = vst [vmem:[%s2545_s30 + $0x120] sm:$0xff] %v2264_v42  ;;  %v1969_v47 = vpop.f32.mrb[44].mxu1  ;;  %2291 = vtanh.f32 %v1905_v46 }
 0x161   : > { %v2268_v44 = vpop.eup %2267  ;;  %1553 = vst [vmem:[%s2545_s30 + $0x320] sm:$0xff] %v2266_v43  ;;  %v990_v49 = vpop.f32.mrb[45].mxu0  ;;  %2293 = vtanh.f32 %v1969_v47 }
 0x162   : > { %v2270_v45 = vpop.eup %2269  ;;  %1492 = vst [vmem:[%s2545_s30 + $0x138] sm:$0xff] %v2268_v44  ;;  %v1246_v50 = vpop.f32.mrb[45].mxu1  ;;  %2295 = vtanh.f32 %v990_v49 }
 0x163   : > { %v2272_v48 = vpop.eup %2271  ;;  %1556 = vst [vmem:[%s2545_s30 + $0x338] sm:$0xff] %v2270_v45  ;;  %v1906_v52 = vpop.f32.mrb[46].mxu0  ;;  %2297 = vtanh.f32 %v1246_v50 }
 0x164   : > { %v2274_v51 = vpop.eup %2273  ;;  %1490 = vst [vmem:[%s2545_s30 + $0x128] sm:$0xff] %v2272_v48  ;;  %v1970_v53 = vpop.f32.mrb[46].mxu1  ;;  %2299 = vtanh.f32 %v1906_v52 }
 0x165   : > { %v2276_v54 = vpop.eup %2275  ;;  %1554 = vst [vmem:[%s2545_s30 + $0x328] sm:$0xff] %v2274_v51  ;;  %v993_v55 = vpop.f32.mrb[47].mxu0  ;;  %2301 = vtanh.f32 %v1970_v53 }
 0x166   : > { %v1249_v56 = vpop.f32.mrb[47].mxu1  ;;  %v2278_v57 = vpop.eup %2277  ;;  %1495 = vst [vmem:[%s2545_s30 + $0x150] sm:$0xff] %v2276_v54  ;;  %2303 = vtanh.f32 %v993_v55 }
 0x167   : > { %v2280_v58 = vpop.eup %2279  ;;  %1559 = vst [vmem:[%s2545_s30 + $0x350] sm:$0xff] %v2278_v57  ;;  %2305 = vtanh.f32 %v1249_v56  ;;  %v1909_v62 = vpop.f32.mrb[48].mxu0 }
 0x168   : > { %v2282_v59 = vpop.eup %2281  ;;  %1493 = vst [vmem:[%s2545_s30 + $0x140] sm:$0xff] %v2280_v58  ;;  %v1973_v63 = vpop.f32.mrb[48].mxu1  ;;  %2307 = vtanh.f32 %v1909_v62 }
 0x169   : > { %v2284_v60 = vpop.eup %2283  ;;  %1557 = vst [vmem:[%s2545_s30 + $0x340] sm:$0xff] %v2282_v59  ;;  %v1006_v1 = vpop.f32.mrb[49].mxu0  ;;  %2309 = vtanh.f32 %v1973_v63 }
 0x16a   : > { %v2286_v61 = vpop.eup %2285  ;;  %1496 = vst [vmem:[%s2545_s30 + $0x158] sm:$0xff] %v2284_v60  ;;  %v1262_v2 = vpop.f32.mrb[49].mxu1  ;;  %2311 = vtanh.f32 %v1006_v1 }
 0x16b   : > { %v2288_v0 = vpop.eup %2287  ;;  %1560 = vst [vmem:[%s2545_s30 + $0x358] sm:$0xff] %v2286_v61  ;;  %v1910_v4 = vpop.f32.mrb[50].mxu0  ;;  %2313 = vtanh.f32 %v1262_v2 }
 0x16c   : > { %v2290_v3 = vpop.eup %2289  ;;  %1494 = vst [vmem:[%s2545_s30 + $0x148] sm:$0xff] %v2288_v0  ;;  %v1974_v5 = vpop.f32.mrb[50].mxu1  ;;  %2315 = vtanh.f32 %v1910_v4 }
 0x16d   : > { %v2292_v6 = vpop.eup %2291  ;;  %1558 = vst [vmem:[%s2545_s30 + $0x348] sm:$0xff] %v2290_v3  ;;  %v1009_v7 = vpop.f32.mrb[51].mxu0  ;;  %2317 = vtanh.f32 %v1974_v5 }
 0x16e   : > { %v1265_v8 = vpop.f32.mrb[51].mxu1  ;;  %v2294_v9 = vpop.eup %2293  ;;  %1499 = vst [vmem:[%s2545_s30 + $0x170] sm:$0xff] %v2292_v6  ;;  %2319 = vtanh.f32 %v1009_v7 }
 0x16f   : > { %v2296_v10 = vpop.eup %2295  ;;  %1563 = vst [vmem:[%s2545_s30 + $0x370] sm:$0xff] %v2294_v9  ;;  %2321 = vtanh.f32 %v1265_v8  ;;  %v1913_v14 = vpop.f32.mrb[52].mxu0 }
 0x170   : > { %v2298_v11 = vpop.eup %2297  ;;  %1497 = vst [vmem:[%s2545_s30 + $0x160] sm:$0xff] %v2296_v10  ;;  %v1977_v15 = vpop.f32.mrb[52].mxu1  ;;  %2323 = vtanh.f32 %v1913_v14 }
 0x171   : > { %v2300_v12 = vpop.eup %2299  ;;  %1561 = vst [vmem:[%s2545_s30 + $0x360] sm:$0xff] %v2298_v11  ;;  %v1022_v17 = vpop.f32.mrb[53].mxu0  ;;  %2325 = vtanh.f32 %v1977_v15 }
 0x172   : > { %v2302_v13 = vpop.eup %2301  ;;  %1500 = vst [vmem:[%s2545_s30 + $0x178] sm:$0xff] %v2300_v12  ;;  %v1278_v18 = vpop.f32.mrb[53].mxu1  ;;  %2327 = vtanh.f32 %v1022_v17 }
 0x173   : > { %v2304_v16 = vpop.eup %2303  ;;  %1564 = vst [vmem:[%s2545_s30 + $0x378] sm:$0xff] %v2302_v13  ;;  %v1914_v20 = vpop.f32.mrb[54].mxu0  ;;  %2329 = vtanh.f32 %v1278_v18 }
 0x174   : > { %v2306_v19 = vpop.eup %2305  ;;  %1498 = vst [vmem:[%s2545_s30 + $0x168] sm:$0xff] %v2304_v16  ;;  %v1978_v21 = vpop.f32.mrb[54].mxu1  ;;  %2331 = vtanh.f32 %v1914_v20 }
 0x175   : > { %v2308_v22 = vpop.eup %2307  ;;  %1562 = vst [vmem:[%s2545_s30 + $0x368] sm:$0xff] %v2306_v19  ;;  %v1025_v23 = vpop.f32.mrb[55].mxu0  ;;  %2333 = vtanh.f32 %v1978_v21 }
 0x176   : > { %v1281_v24 = vpop.f32.mrb[55].mxu1  ;;  %v2310_v25 = vpop.eup %2309  ;;  %1503 = vst [vmem:[%s2545_s30 + $0x190] sm:$0xff] %v2308_v22  ;;  %2335 = vtanh.f32 %v1025_v23 }
 0x177   : > { %v2312_v26 = vpop.eup %2311  ;;  %1567 = vst [vmem:[%s2545_s30 + $0x390] sm:$0xff] %v2310_v25  ;;  %2337 = vtanh.f32 %v1281_v24  ;;  %v1917_v30 = vpop.f32.mrb[56].mxu0 }
 0x178   : > { %v2314_v27 = vpop.eup %2313  ;;  %1501 = vst [vmem:[%s2545_s30 + $0x180] sm:$0xff] %v2312_v26  ;;  %v1981_v31 = vpop.f32.mrb[56].mxu1  ;;  %2339 = vtanh.f32 %v1917_v30 }
 0x179   : > { %v2316_v28 = vpop.eup %2315  ;;  %1565 = vst [vmem:[%s2545_s30 + $0x380] sm:$0xff] %v2314_v27  ;;  %v1038_v33 = vpop.f32.mrb[57].mxu0  ;;  %2341 = vtanh.f32 %v1981_v31 }
 0x17a   : > { %v2318_v29 = vpop.eup %2317  ;;  %1504 = vst [vmem:[%s2545_s30 + $0x198] sm:$0xff] %v2316_v28  ;;  %v1294_v34 = vpop.f32.mrb[57].mxu1  ;;  %2343 = vtanh.f32 %v1038_v33 }
 0x17b   : > { %v2320_v32 = vpop.eup %2319  ;;  %1568 = vst [vmem:[%s2545_s30 + $0x398] sm:$0xff] %v2318_v29  ;;  %v1918_v36 = vpop.f32.mrb[58].mxu0  ;;  %2345 = vtanh.f32 %v1294_v34 }
 0x17c   : > { %v2322_v35 = vpop.eup %2321  ;;  %1502 = vst [vmem:[%s2545_s30 + $0x188] sm:$0xff] %v2320_v32  ;;  %v1982_v37 = vpop.f32.mrb[58].mxu1  ;;  %2347 = vtanh.f32 %v1918_v36 }
 0x17d   : > { %v2324_v38 = vpop.eup %2323  ;;  %1566 = vst [vmem:[%s2545_s30 + $0x388] sm:$0xff] %v2322_v35  ;;  %v1041_v39 = vpop.f32.mrb[59].mxu0  ;;  %2349 = vtanh.f32 %v1982_v37 }
 0x17e   : > { %v1297_v40 = vpop.f32.mrb[59].mxu1  ;;  %v2326_v41 = vpop.eup %2325  ;;  %1507 = vst [vmem:[%s2545_s30 + $0x1b0] sm:$0xff] %v2324_v38  ;;  %2351 = vtanh.f32 %v1041_v39 }
 0x17f   : > { %v2328_v42 = vpop.eup %2327  ;;  %1571 = vst [vmem:[%s2545_s30 + $0x3b0] sm:$0xff] %v2326_v41  ;;  %2353 = vtanh.f32 %v1297_v40  ;;  %v1921_v46 = vpop.f32.mrb[60].mxu0 }
 0x180   : > { %v2330_v43 = vpop.eup %2329  ;;  %1505 = vst [vmem:[%s2545_s30 + $0x1a0] sm:$0xff] %v2328_v42  ;;  %v1985_v47 = vpop.f32.mrb[60].mxu1  ;;  %2355 = vtanh.f32 %v1921_v46 }
 0x181   : > { %v2332_v44 = vpop.eup %2331  ;;  %1569 = vst [vmem:[%s2545_s30 + $0x3a0] sm:$0xff] %v2330_v43  ;;  %v1054_v49 = vpop.f32.mrb[61].mxu0  ;;  %2357 = vtanh.f32 %v1985_v47 }
 0x182   : > { %v2334_v45 = vpop.eup %2333  ;;  %1508 = vst [vmem:[%s2545_s30 + $0x1b8] sm:$0xff] %v2332_v44  ;;  %v1310_v50 = vpop.f32.mrb[61].mxu1  ;;  %2359 = vtanh.f32 %v1054_v49 }
 0x183   : > { %v2336_v48 = vpop.eup %2335  ;;  %1572 = vst [vmem:[%s2545_s30 + $0x3b8] sm:$0xff] %v2334_v45  ;;  %v1922_v52 = vpop.f32.mrb[62].mxu0  ;;  %2361 = vtanh.f32 %v1310_v50 }
 0x184   : > { %v2338_v51 = vpop.eup %2337  ;;  %1506 = vst [vmem:[%s2545_s30 + $0x1a8] sm:$0xff] %v2336_v48  ;;  %v1986_v53 = vpop.f32.mrb[62].mxu1  ;;  %2363 = vtanh.f32 %v1922_v52 }
 0x185   : > { %v2340_v54 = vpop.eup %2339  ;;  %1570 = vst [vmem:[%s2545_s30 + $0x3a8] sm:$0xff] %v2338_v51  ;;  %v1057_v55 = vpop.f32.mrb[63].mxu0  ;;  %2365 = vtanh.f32 %v1986_v53 }
 0x186   : > { %v1313_v56 = vpop.f32.mrb[63].mxu1  ;;  %v2342_v57 = vpop.eup %2341  ;;  %1511 = vst [vmem:[%s2545_s30 + $0x1d0] sm:$0xff] %v2340_v54  ;;  %2367 = vtanh.f32 %v1057_v55 }
 0x187   : > { %v2344_v58 = vpop.eup %2343  ;;  %1575 = vst [vmem:[%s2545_s30 + $0x3d0] sm:$0xff] %v2342_v57  ;;  %2369 = vtanh.f32 %v1313_v56 }
 0x188   : > { %v2346_v59 = vpop.eup %2345  ;;  %1509 = vst [vmem:[%s2545_s30 + $0x1c0] sm:$0xff] %v2344_v58 }
 0x189   : > { %v2348_v60 = vpop.eup %2347  ;;  %1573 = vst [vmem:[%s2545_s30 + $0x3c0] sm:$0xff] %v2346_v59 }
 0x18a   : > { %v2350_v61 = vpop.eup %2349  ;;  %1512 = vst [vmem:[%s2545_s30 + $0x1d8] sm:$0xff] %v2348_v60 }
 0x18b   : > { %v2352_v62 = vpop.eup %2351  ;;  %1576 = vst [vmem:[%s2545_s30 + $0x3d8] sm:$0xff] %v2350_v61 }
 0x18c   : > { %v2354_v63 = vpop.eup %2353  ;;  %1510 = vst [vmem:[%s2545_s30 + $0x1c8] sm:$0xff] %v2352_v62 }
 0x18d   : > { %v2356_v0 = vpop.eup %2355  ;;  %1574 = vst [vmem:[%s2545_s30 + $0x3c8] sm:$0xff] %v2354_v63 }
 0x18e   : > { %v2358_v1 = vpop.eup %2357  ;;  %1515 = vst [vmem:[%s2545_s30 + $0x1f0] sm:$0xff] %v2356_v0 }
 0x18f   : > { %v2360_v2 = vpop.eup %2359  ;;  %1579 = vst [vmem:[%s2545_s30 + $0x3f0] sm:$0xff] %v2358_v1 }
 0x190   : > { %v2362_v3 = vpop.eup %2361  ;;  %1513 = vst [vmem:[%s2545_s30 + $0x1e0] sm:$0xff] %v2360_v2 }
 0x191   : > { %v2364_v4 = vpop.eup %2363  ;;  %1577 = vst [vmem:[%s2545_s30 + $0x3e0] sm:$0xff] %v2362_v3 }
 0x192   : > { %v2366_v5 = vpop.eup %2365  ;;  %1516 = vst [vmem:[%s2545_s30 + $0x1f8] sm:$0xff] %v2364_v4 }
 0x193   : > { %v2368_v6 = vpop.eup %2367  ;;  %1580 = vst [vmem:[%s2545_s30 + $0x3f8] sm:$0xff] %v2366_v5 }
 0x194   : > { %v2370_v7 = vpop.eup %2369  ;;  %1514 = vst [vmem:[%s2545_s30 + $0x1e8] sm:$0xff] %v2368_v6 }
 0x195   : > { %1578 = vst [vmem:[%s2545_s30 + $0x3e8] sm:$0xff] %v2370_v7 }
 0x196 PF: > { %s12_s13 = sadd.s32 1, %s2409_s13   ;;  %s2693_s9 = smov %s2401_s11 }
 0x197   : > { %p9_p7 = scmp.ge.s32.totalorder %s12_s13, 10   ;;  %s2694_s10 = smov %s2405_s12 }
 0x198   : > { %s2695_s11 = smov %s2698_s14  ;;  %s2696_s12 = smov %s2702_s15 }
 0x199   :  { %11 = sbr.rel (!%p9_p7) target bundleno = 3 (0x3), region = 61 }

</bundles_post_ra>
